<compile_context>
chip_gen: v7x
topology: tpu7x:2x2x1
jax: 0.10.0
libtpu: 0.0.40
codegen_flags: <defaults>
</compile_context>

<pallas_src>
import jax
import jax.numpy as jnp
from jax.experimental import pallas as pl
from jax.experimental.pallas import tpu as pltpu

_LANE = 128
_OUT_ROWS = 8  # sublane-aligned rows of the per-image output block


def _round_up(v, m):
    return ((v + m - 1) // m) * m


def conv_out_geometry(spatial):
    h1 = (spatial - 8) // 4 + 1
    h2 = (h1 - 4) // 2 + 1
    h3 = (h2 - 3) // 1 + 1
    return h1, h2, h3


# ----------------------------------------------------------------------------
# Fused forward: one pallas_call for the whole network
# ----------------------------------------------------------------------------
def make_dqn_forward(in_ch, spatial, n_actions):
    h0 = spatial
    h1, h2, h3 = conv_out_geometry(h0)
    assert h0 % 4 == 0 and h1 % 2 == 0 and h3 >= 1, (h0, h1, h3)

    q0 = h0 // 4            # stride-4 groups per spatial axis
    q0h = (q0 + 1) // 2     # parity-split (padded) half extent of q0
    q1 = h1 // 2            # conv1 output half extent (parity classes)
    k1 = 16 * in_ch         # conv1 reduction per (a,b) shift: (p, q, c)
    np_ = _round_up(max(n_actions, _LANE), _LANE)

    def kernel(x_ref, w1_ref, b1_ref, w2_ref, b2_ref, w3_ref, b3_ref,
               f1_ref, fb1_ref, f2_ref, fb2_ref, o_ref):
        f32 = jnp.float32
        bf16 = jnp.bfloat16

        # ---- conv1 (k=8, s=4): outputs produced directly in (row,col)-parity
        # classes so conv2's stride-2 becomes contiguous slicing.
        # a1[ph][pw][qh] : (q1, 32) bf16 = relu(conv1)[2*qh+ph, 2*qw+pw, :].
        a1 = [[[None] * q1 for _ in range(2)] for _ in range(2)]
        for ph in range(2):
            for pw in range(2):
                for qh in range(q1):
                    acc = jnp.zeros((q1, 32), f32)
                    for a in range(2):
                        hp = (ph + a) % 2
                        hq = qh + (ph + a) // 2
                        for b in range(2):
                            wp = (pw + b) % 2
                            wq = (pw + b) // 2
                            slab = x_ref[0, hp, hq, wp, wq:wq + q1, :]
                            acc = acc + jnp.dot(slab, w1_ref[a * 2 + b],
                                                preferred_element_type=f32)
                    a1[ph][pw][qh] = jnp.maximum(acc + b1_ref[...], 0.0).astype(bf16)

        # ---- conv2 (k=4, s=2): 16 shifted matmuls over contiguous a1 slices.
        a2 = [None] * h2
        for ho in range(h2):
            acc = jnp.zeros((h2, 64), f32)
            for a in range(2):
                for ph in range(2):
                    for b in range(2):
                        for pw in range(2):
                            slab = a1[ph][pw][ho + a][b:b + h2, :]
                            w = w2_ref[(2 * a + ph) * 4 + (2 * b + pw)]
                            acc = acc + jnp.dot(slab, w,
                                                preferred_element_type=f32)
            a2[ho] = jnp.maximum(acc + b2_ref[...], 0.0).astype(bf16)

        # ---- conv3 (k=3, s=1): 9 shifted matmuls.
        a3 = [None] * h3
        for ho in range(h3):
            acc = jnp.zeros((h3, 64), f32)
            for i in range(3):
                for j in range(3):
                    slab = a2[ho + i][j:j + h3, :]
                    acc = acc + jnp.dot(slab, w3_ref[i * 3 + j],
                                        preferred_element_type=f32)
            a3[ho] = jnp.maximum(acc + b3_ref[...], 0.0).astype(bf16)

        # ---- fc head (per-image). NCHW flatten order is folded into f1.
        hid = jnp.zeros((1, 512), f32)
        for ho in range(h3):
            for wo in range(h3):
                hid = hid + jnp.dot(a3[ho][wo:wo + 1, :], f1_ref[ho * h3 + wo],
                                    preferred_element_type=f32)
        hid = jnp.maximum(hid + fb1_ref[...], 0.0).astype(bf16)
        y = jnp.dot(hid, f2_ref[...], preferred_element_type=f32) + fb2_ref[...]
        o_ref[0, :, :] = jnp.broadcast_to(y, (_OUT_ROWS, y.shape[-1]))

    def prep_input(x_nchw):
        # uint8 frames (0..255, exact in bf16); the /256 scale lives in conv1's
        # weights. Phase-split relayout -> [b, hp, qh0h, wp, qw0h, (p,q,c)] with
        # input row = 4*(2*qh0h + hp) + p, col = 4*(2*qw0h + wp) + q.
        bsz = x_nchw.shape[0]
        xb = x_nchw.astype(jnp.bfloat16)
        xb = xb.reshape(bsz, in_ch, q0, 4, q0, 4)
        xb = jnp.transpose(xb, (0, 2, 4, 3, 5, 1))       # (b, qh0, qw0, p, q, c)
        xb = xb.reshape(bsz, q0, q0, k1)
        pad = 2 * q0h - q0
        if pad:
            xb = jnp.pad(xb, ((0, 0), (0, pad), (0, pad), (0, 0)))
        xb = xb.reshape(bsz, q0h, 2, q0h, 2, k1)
        return jnp.transpose(xb, (0, 2, 1, 4, 3, 5))     # (b, hp, qh0h, wp, qw0h, m)

    def forward(prep, x_nchw):
        bsz = x_nchw.shape[0]
        xp = prep_input(x_nchw)
        out = pl.pallas_call(
            kernel,
            out_shape=jax.ShapeDtypeStruct((bsz, _OUT_ROWS, np_), jnp.float32),
            grid=(bsz,),
            in_specs=[
                pl.BlockSpec((1, 2, q0h, 2, q0h, k1),
                             lambda i: (i, 0, 0, 0, 0, 0)),
                pl.BlockSpec((4, k1, 32), lambda i: (0, 0, 0)),
                pl.BlockSpec((1, 32), lambda i: (0, 0)),
                pl.BlockSpec((16, 32, 64), lambda i: (0, 0, 0)),
                pl.BlockSpec((1, 64), lambda i: (0, 0)),
                pl.BlockSpec((9, 64, 64), lambda i: (0, 0, 0)),
                pl.BlockSpec((1, 64), lambda i: (0, 0)),
                pl.BlockSpec((h3 * h3, 64, 512), lambda i: (0, 0, 0)),
                pl.BlockSpec((1, 512), lambda i: (0, 0)),
                pl.BlockSpec((512, np_), lambda i: (0, 0)),
                pl.BlockSpec((1, np_), lambda i: (0, 0)),
            ],
            out_specs=pl.BlockSpec((1, _OUT_ROWS, np_), lambda i: (i, 0, 0)),
            compiler_params=pltpu.CompilerParams(
                dimension_semantics=("parallel",)),
        )(xp, prep["w1"], prep["b1"], prep["w2"], prep["b2"],
          prep["w3"], prep["b3"], prep["f1"], prep["fb1"],
          prep["f2"], prep["fb2"])
        return out[:, 0, :n_actions]

    return forward


# ----------------------------------------------------------------------------
# Parameter prep (run once, outside jit): layout permutations, /256 fold,
# NCHW-flatten fold into fc1, lane padding of the final layer only.
# ----------------------------------------------------------------------------
def prepare_params(raw, spatial):
    _, _, h3 = conv_out_geometry(spatial)
    in_ch = raw["conv1_w"].shape[1]
    n_actions = raw["fc2_w"].shape[0]
    np_ = _round_up(max(n_actions, _LANE), _LANE)

    def row(v):
        return v.reshape(1, -1).astype(jnp.float32)

    # conv1: OIHW / 256 -> [(a,b), (p,q,c), oc] with kernel offsets i=4a+p, j=4b+q.
    w1 = raw["conv1_w"].astype(jnp.float32) / 256.0
    w1 = w1.reshape(32, in_ch, 2, 4, 2, 4)                 # [oc, c, a, p, b, q]
    w1 = jnp.transpose(w1, (2, 4, 3, 5, 1, 0))             # [a, b, p, q, c, oc]
    w1 = w1.reshape(4, 16 * in_ch, 32).astype(jnp.bfloat16)

    w2 = jnp.transpose(raw["conv2_w"], (2, 3, 1, 0)).reshape(16, 32, 64)
    w3 = jnp.transpose(raw["conv3_w"], (2, 3, 1, 0)).reshape(9, 64, 64)

    # fc1: PyTorch columns are NCHW-flat (c, h3, w3); regroup per spatial cell.
    f1 = raw["fc1_w"].reshape(512, 64, h3, h3)
    f1 = jnp.transpose(f1, (2, 3, 1, 0)).reshape(h3 * h3, 64, 512)

    f2 = jnp.pad(raw["fc2_w"].T, ((0, 0), (0, np_ - n_actions)))
    fb2 = jnp.pad(raw["fc2_b"], (0, np_ - n_actions))

    return {"w1": w1, "b1": row(raw["conv1_b"]),
            "w2": w2.astype(jnp.bfloat16), "b2": row(raw["conv2_b"]),
            "w3": w3.astype(jnp.bfloat16), "b3": row(raw["conv3_b"]),
            "f1": f1.astype(jnp.bfloat16), "fb1": row(raw["fc1_b"]),
            "f2": f2.astype(jnp.bfloat16), "fb2": row(fb2)}


# ----------------------------------------------------------------------------
# Pure-JAX f32 reference (original PyTorch semantics, raw params)
# ----------------------------------------------------------------------------
def dqn_forward_ref(params, x_nchw):
    fx = x_nchw.astype(jnp.float32) / 256.0

    def conv(x, w, b, s):
        y = jax.lax.conv_general_dilated(
            x, w, (s, s), "VALID", dimension_numbers=("NCHW", "OIHW", "NCHW"))
        return jax.nn.relu(y + b.reshape(1, -1, 1, 1))

    y = conv(fx, params["conv1_w"], params["conv1_b"], 4)
    y = conv(y, params["conv2_w"], params["conv2_b"], 2)
    y = conv(y, params["conv3_w"], params["conv3_b"], 1)
    flat = y.reshape(y.shape[0], -1)
    h = jax.nn.relu(flat @ params["fc1_w"].T + params["fc1_b"])
    return h @ params["fc2_w"].T + params["fc2_b"]


# ----------------------------------------------------------------------------
# Deterministic parameter init (PyTorch layouts: conv OIHW, linear (out, in))
# ----------------------------------------------------------------------------
def make_params(key, in_ch, conv_out_size, n_actions):
    ks = jax.random.split(key, 10)
    s = 0.1
    return {
        "conv1_w": s * jax.random.normal(ks[0], (32, in_ch, 8, 8), jnp.float32),
        "conv1_b": s * jax.random.normal(ks[1], (32,), jnp.float32),
        "conv2_w": s * jax.random.normal(ks[2], (64, 32, 4, 4), jnp.float32),
        "conv2_b": s * jax.random.normal(ks[3], (64,), jnp.float32),
        "conv3_w": s * jax.random.normal(ks[4], (64, 64, 3, 3), jnp.float32),
        "conv3_b": s * jax.random.normal(ks[5], (64,), jnp.float32),
        "fc1_w": s * jax.random.normal(ks[6], (512, conv_out_size), jnp.float32),
        "fc1_b": s * jax.random.normal(ks[7], (512,), jnp.float32),
        "fc2_w": s * jax.random.normal(ks[8], (n_actions, 512), jnp.float32),
        "fc2_b": s * jax.random.normal(ks[9], (n_actions,), jnp.float32),
    }


if __name__ == "__main__":
    # The conv stack (k8/s4, k4/s2, k3/s1) needs spatial >= 36; use batch=2,
    # channels=4, spatial=36 (-> 8 -> 3 -> 1), n_actions=6.
    batch, in_ch, spatial, n_actions = 2, 4, 36, 6

    _, _, h3 = conv_out_geometry(spatial)
    conv_out_size = 64 * h3 * h3

    key = jax.random.PRNGKey(0)
    pkey, xkey = jax.random.split(key)
    raw_params = make_params(pkey, in_ch, conv_out_size, n_actions)
    prep_params = prepare_params(raw_params, spatial)

    # uint8 "frames" (values 0..255); the /256 scale is folded into conv1's weights.
    x = jax.random.randint(xkey, (batch, in_ch, spatial, spatial), 0, 256, jnp.int32)
    x = x.astype(jnp.uint8)

    fwd = jax.jit(make_dqn_forward(in_ch, spatial, n_actions))
    out = jax.block_until_ready(fwd(prep_params, x))

    ref = dqn_forward_ref(raw_params, x)
    assert out.shape == (batch, n_actions), out.shape
    err = float(jnp.max(jnp.abs(out - ref)))
    ref_scale = float(jnp.max(jnp.abs(ref)))
    # bf16 MXU operands / bf16 intermediate activations -> relaxed tolerance
    assert err <= 5e-3 + 5e-2 * ref_scale, ("mismatch vs reference", err, ref_scale)

    print("KERNEL_OK")
</pallas_src>

<mosaic_0001>
module attributes {stable_mosaic.version = 11 : i64} {
  func.func @kernel(%arg0: i32, %arg1: memref<1x2x5x2x5x64xbf16, #tpu.memory_space<vmem>>, %arg2: memref<4x64x32xbf16, #tpu.memory_space<vmem>>, %arg3: memref<1x32xf32, #tpu.memory_space<vmem>>, %arg4: memref<16x32x64xbf16, #tpu.memory_space<vmem>>, %arg5: memref<1x64xf32, #tpu.memory_space<vmem>>, %arg6: memref<9x64x64xbf16, #tpu.memory_space<vmem>>, %arg7: memref<1x64xf32, #tpu.memory_space<vmem>>, %arg8: memref<1x64x512xbf16, #tpu.memory_space<vmem>>, %arg9: memref<1x512xf32, #tpu.memory_space<vmem>>, %arg10: memref<512x128xbf16, #tpu.memory_space<vmem>>, %arg11: memref<1x128xf32, #tpu.memory_space<vmem>>, %arg12: memref<1x8x128xf32, #tpu.memory_space<vmem>>) attributes {dimension_semantics = [#tpu.dimension_semantics<parallel>], iteration_bounds = array<i64: 2>, scalar_prefetch = 0 : i64, scratch_operands = 0 : i64, tpu.core_type = #tpu.core_type<tc>, window_params = [{transform_indices = @transform_0, window_bounds = array<i64: 1, 2, 5, 2, 5, 64>}, {pipeline_mode = #tpu.pipeline_mode<synchronous>, transform_indices = @transform_1, window_bounds = array<i64: 4, 64, 32>}, {pipeline_mode = #tpu.pipeline_mode<synchronous>, transform_indices = @transform_2, window_bounds = array<i64: 1, 32>}, {pipeline_mode = #tpu.pipeline_mode<synchronous>, transform_indices = @transform_3, window_bounds = array<i64: 16, 32, 64>}, {pipeline_mode = #tpu.pipeline_mode<synchronous>, transform_indices = @transform_4, window_bounds = array<i64: 1, 64>}, {pipeline_mode = #tpu.pipeline_mode<synchronous>, transform_indices = @transform_5, window_bounds = array<i64: 9, 64, 64>}, {pipeline_mode = #tpu.pipeline_mode<synchronous>, transform_indices = @transform_6, window_bounds = array<i64: 1, 64>}, {pipeline_mode = #tpu.pipeline_mode<synchronous>, transform_indices = @transform_7, window_bounds = array<i64: 1, 64, 512>}, {pipeline_mode = #tpu.pipeline_mode<synchronous>, transform_indices = @transform_8, window_bounds = array<i64: 1, 512>}, {pipeline_mode = #tpu.pipeline_mode<synchronous>, transform_indices = @transform_9, window_bounds = array<i64: 512, 128>}, {pipeline_mode = #tpu.pipeline_mode<synchronous>, transform_indices = @transform_10, window_bounds = array<i64: 1, 128>}, {transform_indices = @transform_11, window_bounds = array<i64: 1, 8, 128>}]} {
    %cst = arith.constant 0.000000e+00 : f32
    %0 = vector.broadcast %cst : f32 to vector<4x32xf32>
    %c0 = arith.constant 0 : index
    %c0_0 = arith.constant 0 : index
    %c0_1 = arith.constant 0 : index
    %c0_2 = arith.constant 0 : index
    %c0_3 = arith.constant 0 : index
    %c0_4 = arith.constant 0 : index
    %1 = vector.load %arg1[%c0, %c0_0, %c0_1, %c0_2, %c0_3, %c0_4] : memref<1x2x5x2x5x64xbf16, #tpu.memory_space<vmem>>, vector<1x1x1x1x4x64xbf16>
    %2 = vector.shape_cast %1 : vector<1x1x1x1x4x64xbf16> to vector<4x64xbf16>
    %c0_5 = arith.constant 0 : index
    %c0_6 = arith.constant 0 : index
    %c0_7 = arith.constant 0 : index
    %3 = vector.load %arg2[%c0_5, %c0_6, %c0_7] : memref<4x64x32xbf16, #tpu.memory_space<vmem>>, vector<1x64x32xbf16>
    %4 = vector.shape_cast %3 : vector<1x64x32xbf16> to vector<64x32xbf16>
    %cst_8 = arith.constant dense<0.000000e+00> : vector<4x32xf32>
    %5 = tpu.matmul %2, %4, %cst_8 {dimension_numbers = #tpu.dot_dimension_numbers<[1], [0], [0], [1], [0, 0, 1, 1], [], []>} : vector<4x64xbf16>, vector<64x32xbf16>, vector<4x32xf32> -> vector<4x32xf32>
    %6 = arith.addf %0, %5 : vector<4x32xf32>
    %c0_9 = arith.constant 0 : index
    %c0_10 = arith.constant 0 : index
    %c0_11 = arith.constant 0 : index
    %c1 = arith.constant 1 : index
    %c0_12 = arith.constant 0 : index
    %c0_13 = arith.constant 0 : index
    %7 = vector.load %arg1[%c0_9, %c0_10, %c0_11, %c1, %c0_12, %c0_13] : memref<1x2x5x2x5x64xbf16, #tpu.memory_space<vmem>>, vector<1x1x1x1x4x64xbf16>
    %8 = vector.shape_cast %7 : vector<1x1x1x1x4x64xbf16> to vector<4x64xbf16>
    %c1_14 = arith.constant 1 : index
    %c0_15 = arith.constant 0 : index
    %c0_16 = arith.constant 0 : index
    %9 = vector.load %arg2[%c1_14, %c0_15, %c0_16] : memref<4x64x32xbf16, #tpu.memory_space<vmem>>, vector<1x64x32xbf16>
    %10 = vector.shape_cast %9 : vector<1x64x32xbf16> to vector<64x32xbf16>
    %cst_17 = arith.constant dense<0.000000e+00> : vector<4x32xf32>
    %11 = tpu.matmul %8, %10, %cst_17 {dimension_numbers = #tpu.dot_dimension_numbers<[1], [0], [0], [1], [0, 0, 1, 1], [], []>} : vector<4x64xbf16>, vector<64x32xbf16>, vector<4x32xf32> -> vector<4x32xf32>
    %12 = arith.addf %6, %11 : vector<4x32xf32>
    %c0_18 = arith.constant 0 : index
    %c1_19 = arith.constant 1 : index
    %c0_20 = arith.constant 0 : index
    %c0_21 = arith.constant 0 : index
    %c0_22 = arith.constant 0 : index
    %c0_23 = arith.constant 0 : index
    %13 = vector.load %arg1[%c0_18, %c1_19, %c0_20, %c0_21, %c0_22, %c0_23] : memref<1x2x5x2x5x64xbf16, #tpu.memory_space<vmem>>, vector<1x1x1x1x4x64xbf16>
    %14 = vector.shape_cast %13 : vector<1x1x1x1x4x64xbf16> to vector<4x64xbf16>
    %c2 = arith.constant 2 : index
    %c0_24 = arith.constant 0 : index
    %c0_25 = arith.constant 0 : index
    %15 = vector.load %arg2[%c2, %c0_24, %c0_25] : memref<4x64x32xbf16, #tpu.memory_space<vmem>>, vector<1x64x32xbf16>
    %16 = vector.shape_cast %15 : vector<1x64x32xbf16> to vector<64x32xbf16>
    %cst_26 = arith.constant dense<0.000000e+00> : vector<4x32xf32>
    %17 = tpu.matmul %14, %16, %cst_26 {dimension_numbers = #tpu.dot_dimension_numbers<[1], [0], [0], [1], [0, 0, 1, 1], [], []>} : vector<4x64xbf16>, vector<64x32xbf16>, vector<4x32xf32> -> vector<4x32xf32>
    %18 = arith.addf %12, %17 : vector<4x32xf32>
    %c0_27 = arith.constant 0 : index
    %c1_28 = arith.constant 1 : index
    %c0_29 = arith.constant 0 : index
    %c1_30 = arith.constant 1 : index
    %c0_31 = arith.constant 0 : index
    %c0_32 = arith.constant 0 : index
    %19 = vector.load %arg1[%c0_27, %c1_28, %c0_29, %c1_30, %c0_31, %c0_32] : memref<1x2x5x2x5x64xbf16, #tpu.memory_space<vmem>>, vector<1x1x1x1x4x64xbf16>
    %20 = vector.shape_cast %19 : vector<1x1x1x1x4x64xbf16> to vector<4x64xbf16>
    %c3 = arith.constant 3 : index
    %c0_33 = arith.constant 0 : index
    %c0_34 = arith.constant 0 : index
    %21 = vector.load %arg2[%c3, %c0_33, %c0_34] : memref<4x64x32xbf16, #tpu.memory_space<vmem>>, vector<1x64x32xbf16>
    %22 = vector.shape_cast %21 : vector<1x64x32xbf16> to vector<64x32xbf16>
    %cst_35 = arith.constant dense<0.000000e+00> : vector<4x32xf32>
    %23 = tpu.matmul %20, %22, %cst_35 {dimension_numbers = #tpu.dot_dimension_numbers<[1], [0], [0], [1], [0, 0, 1, 1], [], []>} : vector<4x64xbf16>, vector<64x32xbf16>, vector<4x32xf32> -> vector<4x32xf32>
    %24 = arith.addf %18, %23 : vector<4x32xf32>
    %c0_36 = arith.constant 0 : index
    %c0_37 = arith.constant 0 : index
    %25 = vector.load %arg3[%c0_36, %c0_37] : memref<1x32xf32, #tpu.memory_space<vmem>>, vector<1x32xf32>
    %26 = vector.broadcast %25 : vector<1x32xf32> to vector<4x32xf32>
    %27 = arith.addf %24, %26 : vector<4x32xf32>
    %cst_38 = arith.constant 0.000000e+00 : f32
    %28 = vector.broadcast %cst_38 : f32 to vector<4x32xf32>
    %29 = arith.maximumf %27, %28 : vector<4x32xf32>
    %30 = arith.truncf %29 : vector<4x32xf32> to vector<4x32xbf16>
    %cst_39 = arith.constant 0.000000e+00 : f32
    %31 = vector.broadcast %cst_39 : f32 to vector<4x32xf32>
    %c0_40 = arith.constant 0 : index
    %c0_41 = arith.constant 0 : index
    %c1_42 = arith.constant 1 : index
    %c0_43 = arith.constant 0 : index
    %c0_44 = arith.constant 0 : index
    %c0_45 = arith.constant 0 : index
    %32 = vector.load %arg1[%c0_40, %c0_41, %c1_42, %c0_43, %c0_44, %c0_45] : memref<1x2x5x2x5x64xbf16, #tpu.memory_space<vmem>>, vector<1x1x1x1x4x64xbf16>
    %33 = vector.shape_cast %32 : vector<1x1x1x1x4x64xbf16> to vector<4x64xbf16>
    %c0_46 = arith.constant 0 : index
    %c0_47 = arith.constant 0 : index
    %c0_48 = arith.constant 0 : index
    %34 = vector.load %arg2[%c0_46, %c0_47, %c0_48] : memref<4x64x32xbf16, #tpu.memory_space<vmem>>, vector<1x64x32xbf16>
    %35 = vector.shape_cast %34 : vector<1x64x32xbf16> to vector<64x32xbf16>
    %cst_49 = arith.constant dense<0.000000e+00> : vector<4x32xf32>
    %36 = tpu.matmul %33, %35, %cst_49 {dimension_numbers = #tpu.dot_dimension_numbers<[1], [0], [0], [1], [0, 0, 1, 1], [], []>} : vector<4x64xbf16>, vector<64x32xbf16>, vector<4x32xf32> -> vector<4x32xf32>
    %37 = arith.addf %31, %36 : vector<4x32xf32>
    %c0_50 = arith.constant 0 : index
    %c0_51 = arith.constant 0 : index
    %c1_52 = arith.constant 1 : index
    %c1_53 = arith.constant 1 : index
    %c0_54 = arith.constant 0 : index
    %c0_55 = arith.constant 0 : index
    %38 = vector.load %arg1[%c0_50, %c0_51, %c1_52, %c1_53, %c0_54, %c0_55] : memref<1x2x5x2x5x64xbf16, #tpu.memory_space<vmem>>, vector<1x1x1x1x4x64xbf16>
    %39 = vector.shape_cast %38 : vector<1x1x1x1x4x64xbf16> to vector<4x64xbf16>
    %c1_56 = arith.constant 1 : index
    %c0_57 = arith.constant 0 : index
    %c0_58 = arith.constant 0 : index
    %40 = vector.load %arg2[%c1_56, %c0_57, %c0_58] : memref<4x64x32xbf16, #tpu.memory_space<vmem>>, vector<1x64x32xbf16>
    %41 = vector.shape_cast %40 : vector<1x64x32xbf16> to vector<64x32xbf16>
    %cst_59 = arith.constant dense<0.000000e+00> : vector<4x32xf32>
    %42 = tpu.matmul %39, %41, %cst_59 {dimension_numbers = #tpu.dot_dimension_numbers<[1], [0], [0], [1], [0, 0, 1, 1], [], []>} : vector<4x64xbf16>, vector<64x32xbf16>, vector<4x32xf32> -> vector<4x32xf32>
    %43 = arith.addf %37, %42 : vector<4x32xf32>
    %c0_60 = arith.constant 0 : index
    %c1_61 = arith.constant 1 : index
    %c1_62 = arith.constant 1 : index
    %c0_63 = arith.constant 0 : index
    %c0_64 = arith.constant 0 : index
    %c0_65 = arith.constant 0 : index
    %44 = vector.load %arg1[%c0_60, %c1_61, %c1_62, %c0_63, %c0_64, %c0_65] : memref<1x2x5x2x5x64xbf16, #tpu.memory_space<vmem>>, vector<1x1x1x1x4x64xbf16>
    %45 = vector.shape_cast %44 : vector<1x1x1x1x4x64xbf16> to vector<4x64xbf16>
    %c2_66 = arith.constant 2 : index
    %c0_67 = arith.constant 0 : index
    %c0_68 = arith.constant 0 : index
    %46 = vector.load %arg2[%c2_66, %c0_67, %c0_68] : memref<4x64x32xbf16, #tpu.memory_space<vmem>>, vector<1x64x32xbf16>
    %47 = vector.shape_cast %46 : vector<1x64x32xbf16> to vector<64x32xbf16>
    %cst_69 = arith.constant dense<0.000000e+00> : vector<4x32xf32>
    %48 = tpu.matmul %45, %47, %cst_69 {dimension_numbers = #tpu.dot_dimension_numbers<[1], [0], [0], [1], [0, 0, 1, 1], [], []>} : vector<4x64xbf16>, vector<64x32xbf16>, vector<4x32xf32> -> vector<4x32xf32>
    %49 = arith.addf %43, %48 : vector<4x32xf32>
    %c0_70 = arith.constant 0 : index
    %c1_71 = arith.constant 1 : index
    %c1_72 = arith.constant 1 : index
    %c1_73 = arith.constant 1 : index
    %c0_74 = arith.constant 0 : index
    %c0_75 = arith.constant 0 : index
    %50 = vector.load %arg1[%c0_70, %c1_71, %c1_72, %c1_73, %c0_74, %c0_75] : memref<1x2x5x2x5x64xbf16, #tpu.memory_space<vmem>>, vector<1x1x1x1x4x64xbf16>
    %51 = vector.shape_cast %50 : vector<1x1x1x1x4x64xbf16> to vector<4x64xbf16>
    %c3_76 = arith.constant 3 : index
    %c0_77 = arith.constant 0 : index
    %c0_78 = arith.constant 0 : index
    %52 = vector.load %arg2[%c3_76, %c0_77, %c0_78] : memref<4x64x32xbf16, #tpu.memory_space<vmem>>, vector<1x64x32xbf16>
    %53 = vector.shape_cast %52 : vector<1x64x32xbf16> to vector<64x32xbf16>
    %cst_79 = arith.constant dense<0.000000e+00> : vector<4x32xf32>
    %54 = tpu.matmul %51, %53, %cst_79 {dimension_numbers = #tpu.dot_dimension_numbers<[1], [0], [0], [1], [0, 0, 1, 1], [], []>} : vector<4x64xbf16>, vector<64x32xbf16>, vector<4x32xf32> -> vector<4x32xf32>
    %55 = arith.addf %49, %54 : vector<4x32xf32>
    %c0_80 = arith.constant 0 : index
    %c0_81 = arith.constant 0 : index
    %56 = vector.load %arg3[%c0_80, %c0_81] : memref<1x32xf32, #tpu.memory_space<vmem>>, vector<1x32xf32>
    %57 = vector.broadcast %56 : vector<1x32xf32> to vector<4x32xf32>
    %58 = arith.addf %55, %57 : vector<4x32xf32>
    %cst_82 = arith.constant 0.000000e+00 : f32
    %59 = vector.broadcast %cst_82 : f32 to vector<4x32xf32>
    %60 = arith.maximumf %58, %59 : vector<4x32xf32>
    %61 = arith.truncf %60 : vector<4x32xf32> to vector<4x32xbf16>
    %cst_83 = arith.constant 0.000000e+00 : f32
    %62 = vector.broadcast %cst_83 : f32 to vector<4x32xf32>
    %c0_84 = arith.constant 0 : index
    %c0_85 = arith.constant 0 : index
    %c2_86 = arith.constant 2 : index
    %c0_87 = arith.constant 0 : index
    %c0_88 = arith.constant 0 : index
    %c0_89 = arith.constant 0 : index
    %63 = vector.load %arg1[%c0_84, %c0_85, %c2_86, %c0_87, %c0_88, %c0_89] : memref<1x2x5x2x5x64xbf16, #tpu.memory_space<vmem>>, vector<1x1x1x1x4x64xbf16>
    %64 = vector.shape_cast %63 : vector<1x1x1x1x4x64xbf16> to vector<4x64xbf16>
    %c0_90 = arith.constant 0 : index
    %c0_91 = arith.constant 0 : index
    %c0_92 = arith.constant 0 : index
    %65 = vector.load %arg2[%c0_90, %c0_91, %c0_92] : memref<4x64x32xbf16, #tpu.memory_space<vmem>>, vector<1x64x32xbf16>
    %66 = vector.shape_cast %65 : vector<1x64x32xbf16> to vector<64x32xbf16>
    %cst_93 = arith.constant dense<0.000000e+00> : vector<4x32xf32>
    %67 = tpu.matmul %64, %66, %cst_93 {dimension_numbers = #tpu.dot_dimension_numbers<[1], [0], [0], [1], [0, 0, 1, 1], [], []>} : vector<4x64xbf16>, vector<64x32xbf16>, vector<4x32xf32> -> vector<4x32xf32>
    %68 = arith.addf %62, %67 : vector<4x32xf32>
    %c0_94 = arith.constant 0 : index
    %c0_95 = arith.constant 0 : index
    %c2_96 = arith.constant 2 : index
    %c1_97 = arith.constant 1 : index
    %c0_98 = arith.constant 0 : index
    %c0_99 = arith.constant 0 : index
    %69 = vector.load %arg1[%c0_94, %c0_95, %c2_96, %c1_97, %c0_98, %c0_99] : memref<1x2x5x2x5x64xbf16, #tpu.memory_space<vmem>>, vector<1x1x1x1x4x64xbf16>
    %70 = vector.shape_cast %69 : vector<1x1x1x1x4x64xbf16> to vector<4x64xbf16>
    %c1_100 = arith.constant 1 : index
    %c0_101 = arith.constant 0 : index
    %c0_102 = arith.constant 0 : index
    %71 = vector.load %arg2[%c1_100, %c0_101, %c0_102] : memref<4x64x32xbf16, #tpu.memory_space<vmem>>, vector<1x64x32xbf16>
    %72 = vector.shape_cast %71 : vector<1x64x32xbf16> to vector<64x32xbf16>
    %cst_103 = arith.constant dense<0.000000e+00> : vector<4x32xf32>
    %73 = tpu.matmul %70, %72, %cst_103 {dimension_numbers = #tpu.dot_dimension_numbers<[1], [0], [0], [1], [0, 0, 1, 1], [], []>} : vector<4x64xbf16>, vector<64x32xbf16>, vector<4x32xf32> -> vector<4x32xf32>
    %74 = arith.addf %68, %73 : vector<4x32xf32>
    %c0_104 = arith.constant 0 : index
    %c1_105 = arith.constant 1 : index
    %c2_106 = arith.constant 2 : index
    %c0_107 = arith.constant 0 : index
    %c0_108 = arith.constant 0 : index
    %c0_109 = arith.constant 0 : index
    %75 = vector.load %arg1[%c0_104, %c1_105, %c2_106, %c0_107, %c0_108, %c0_109] : memref<1x2x5x2x5x64xbf16, #tpu.memory_space<vmem>>, vector<1x1x1x1x4x64xbf16>
    %76 = vector.shape_cast %75 : vector<1x1x1x1x4x64xbf16> to vector<4x64xbf16>
    %c2_110 = arith.constant 2 : index
    %c0_111 = arith.constant 0 : index
    %c0_112 = arith.constant 0 : index
    %77 = vector.load %arg2[%c2_110, %c0_111, %c0_112] : memref<4x64x32xbf16, #tpu.memory_space<vmem>>, vector<1x64x32xbf16>
    %78 = vector.shape_cast %77 : vector<1x64x32xbf16> to vector<64x32xbf16>
    %cst_113 = arith.constant dense<0.000000e+00> : vector<4x32xf32>
    %79 = tpu.matmul %76, %78, %cst_113 {dimension_numbers = #tpu.dot_dimension_numbers<[1], [0], [0], [1], [0, 0, 1, 1], [], []>} : vector<4x64xbf16>, vector<64x32xbf16>, vector<4x32xf32> -> vector<4x32xf32>
    %80 = arith.addf %74, %79 : vector<4x32xf32>
    %c0_114 = arith.constant 0 : index
    %c1_115 = arith.constant 1 : index
    %c2_116 = arith.constant 2 : index
    %c1_117 = arith.constant 1 : index
    %c0_118 = arith.constant 0 : index
    %c0_119 = arith.constant 0 : index
    %81 = vector.load %arg1[%c0_114, %c1_115, %c2_116, %c1_117, %c0_118, %c0_119] : memref<1x2x5x2x5x64xbf16, #tpu.memory_space<vmem>>, vector<1x1x1x1x4x64xbf16>
    %82 = vector.shape_cast %81 : vector<1x1x1x1x4x64xbf16> to vector<4x64xbf16>
    %c3_120 = arith.constant 3 : index
    %c0_121 = arith.constant 0 : index
    %c0_122 = arith.constant 0 : index
    %83 = vector.load %arg2[%c3_120, %c0_121, %c0_122] : memref<4x64x32xbf16, #tpu.memory_space<vmem>>, vector<1x64x32xbf16>
    %84 = vector.shape_cast %83 : vector<1x64x32xbf16> to vector<64x32xbf16>
    %cst_123 = arith.constant dense<0.000000e+00> : vector<4x32xf32>
    %85 = tpu.matmul %82, %84, %cst_123 {dimension_numbers = #tpu.dot_dimension_numbers<[1], [0], [0], [1], [0, 0, 1, 1], [], []>} : vector<4x64xbf16>, vector<64x32xbf16>, vector<4x32xf32> -> vector<4x32xf32>
    %86 = arith.addf %80, %85 : vector<4x32xf32>
    %c0_124 = arith.constant 0 : index
    %c0_125 = arith.constant 0 : index
    %87 = vector.load %arg3[%c0_124, %c0_125] : memref<1x32xf32, #tpu.memory_space<vmem>>, vector<1x32xf32>
    %88 = vector.broadcast %87 : vector<1x32xf32> to vector<4x32xf32>
    %89 = arith.addf %86, %88 : vector<4x32xf32>
    %cst_126 = arith.constant 0.000000e+00 : f32
    %90 = vector.broadcast %cst_126 : f32 to vector<4x32xf32>
    %91 = arith.maximumf %89, %90 : vector<4x32xf32>
    %92 = arith.truncf %91 : vector<4x32xf32> to vector<4x32xbf16>
    %cst_127 = arith.constant 0.000000e+00 : f32
    %93 = vector.broadcast %cst_127 : f32 to vector<4x32xf32>
    %c0_128 = arith.constant 0 : index
    %c0_129 = arith.constant 0 : index
    %c3_130 = arith.constant 3 : index
    %c0_131 = arith.constant 0 : index
    %c0_132 = arith.constant 0 : index
    %c0_133 = arith.constant 0 : index
    %94 = vector.load %arg1[%c0_128, %c0_129, %c3_130, %c0_131, %c0_132, %c0_133] : memref<1x2x5x2x5x64xbf16, #tpu.memory_space<vmem>>, vector<1x1x1x1x4x64xbf16>
    %95 = vector.shape_cast %94 : vector<1x1x1x1x4x64xbf16> to vector<4x64xbf16>
    %c0_134 = arith.constant 0 : index
    %c0_135 = arith.constant 0 : index
    %c0_136 = arith.constant 0 : index
    %96 = vector.load %arg2[%c0_134, %c0_135, %c0_136] : memref<4x64x32xbf16, #tpu.memory_space<vmem>>, vector<1x64x32xbf16>
    %97 = vector.shape_cast %96 : vector<1x64x32xbf16> to vector<64x32xbf16>
    %cst_137 = arith.constant dense<0.000000e+00> : vector<4x32xf32>
    %98 = tpu.matmul %95, %97, %cst_137 {dimension_numbers = #tpu.dot_dimension_numbers<[1], [0], [0], [1], [0, 0, 1, 1], [], []>} : vector<4x64xbf16>, vector<64x32xbf16>, vector<4x32xf32> -> vector<4x32xf32>
    %99 = arith.addf %93, %98 : vector<4x32xf32>
    %c0_138 = arith.constant 0 : index
    %c0_139 = arith.constant 0 : index
    %c3_140 = arith.constant 3 : index
    %c1_141 = arith.constant 1 : index
    %c0_142 = arith.constant 0 : index
    %c0_143 = arith.constant 0 : index
    %100 = vector.load %arg1[%c0_138, %c0_139, %c3_140, %c1_141, %c0_142, %c0_143] : memref<1x2x5x2x5x64xbf16, #tpu.memory_space<vmem>>, vector<1x1x1x1x4x64xbf16>
    %101 = vector.shape_cast %100 : vector<1x1x1x1x4x64xbf16> to vector<4x64xbf16>
    %c1_144 = arith.constant 1 : index
    %c0_145 = arith.constant 0 : index
    %c0_146 = arith.constant 0 : index
    %102 = vector.load %arg2[%c1_144, %c0_145, %c0_146] : memref<4x64x32xbf16, #tpu.memory_space<vmem>>, vector<1x64x32xbf16>
    %103 = vector.shape_cast %102 : vector<1x64x32xbf16> to vector<64x32xbf16>
    %cst_147 = arith.constant dense<0.000000e+00> : vector<4x32xf32>
    %104 = tpu.matmul %101, %103, %cst_147 {dimension_numbers = #tpu.dot_dimension_numbers<[1], [0], [0], [1], [0, 0, 1, 1], [], []>} : vector<4x64xbf16>, vector<64x32xbf16>, vector<4x32xf32> -> vector<4x32xf32>
    %105 = arith.addf %99, %104 : vector<4x32xf32>
    %c0_148 = arith.constant 0 : index
    %c1_149 = arith.constant 1 : index
    %c3_150 = arith.constant 3 : index
    %c0_151 = arith.constant 0 : index
    %c0_152 = arith.constant 0 : index
    %c0_153 = arith.constant 0 : index
    %106 = vector.load %arg1[%c0_148, %c1_149, %c3_150, %c0_151, %c0_152, %c0_153] : memref<1x2x5x2x5x64xbf16, #tpu.memory_space<vmem>>, vector<1x1x1x1x4x64xbf16>
    %107 = vector.shape_cast %106 : vector<1x1x1x1x4x64xbf16> to vector<4x64xbf16>
    %c2_154 = arith.constant 2 : index
    %c0_155 = arith.constant 0 : index
    %c0_156 = arith.constant 0 : index
    %108 = vector.load %arg2[%c2_154, %c0_155, %c0_156] : memref<4x64x32xbf16, #tpu.memory_space<vmem>>, vector<1x64x32xbf16>
    %109 = vector.shape_cast %108 : vector<1x64x32xbf16> to vector<64x32xbf16>
    %cst_157 = arith.constant dense<0.000000e+00> : vector<4x32xf32>
    %110 = tpu.matmul %107, %109, %cst_157 {dimension_numbers = #tpu.dot_dimension_numbers<[1], [0], [0], [1], [0, 0, 1, 1], [], []>} : vector<4x64xbf16>, vector<64x32xbf16>, vector<4x32xf32> -> vector<4x32xf32>
    %111 = arith.addf %105, %110 : vector<4x32xf32>
    %c0_158 = arith.constant 0 : index
    %c1_159 = arith.constant 1 : index
    %c3_160 = arith.constant 3 : index
    %c1_161 = arith.constant 1 : index
    %c0_162 = arith.constant 0 : index
    %c0_163 = arith.constant 0 : index
    %112 = vector.load %arg1[%c0_158, %c1_159, %c3_160, %c1_161, %c0_162, %c0_163] : memref<1x2x5x2x5x64xbf16, #tpu.memory_space<vmem>>, vector<1x1x1x1x4x64xbf16>
    %113 = vector.shape_cast %112 : vector<1x1x1x1x4x64xbf16> to vector<4x64xbf16>
    %c3_164 = arith.constant 3 : index
    %c0_165 = arith.constant 0 : index
    %c0_166 = arith.constant 0 : index
    %114 = vector.load %arg2[%c3_164, %c0_165, %c0_166] : memref<4x64x32xbf16, #tpu.memory_space<vmem>>, vector<1x64x32xbf16>
    %115 = vector.shape_cast %114 : vector<1x64x32xbf16> to vector<64x32xbf16>
    %cst_167 = arith.constant dense<0.000000e+00> : vector<4x32xf32>
    %116 = tpu.matmul %113, %115, %cst_167 {dimension_numbers = #tpu.dot_dimension_numbers<[1], [0], [0], [1], [0, 0, 1, 1], [], []>} : vector<4x64xbf16>, vector<64x32xbf16>, vector<4x32xf32> -> vector<4x32xf32>
    %117 = arith.addf %111, %116 : vector<4x32xf32>
    %c0_168 = arith.constant 0 : index
    %c0_169 = arith.constant 0 : index
    %118 = vector.load %arg3[%c0_168, %c0_169] : memref<1x32xf32, #tpu.memory_space<vmem>>, vector<1x32xf32>
    %119 = vector.broadcast %118 : vector<1x32xf32> to vector<4x32xf32>
    %120 = arith.addf %117, %119 : vector<4x32xf32>
    %cst_170 = arith.constant 0.000000e+00 : f32
    %121 = vector.broadcast %cst_170 : f32 to vector<4x32xf32>
    %122 = arith.maximumf %120, %121 : vector<4x32xf32>
    %123 = arith.truncf %122 : vector<4x32xf32> to vector<4x32xbf16>
    %cst_171 = arith.constant 0.000000e+00 : f32
    %124 = vector.broadcast %cst_171 : f32 to vector<4x32xf32>
    %c0_172 = arith.constant 0 : index
    %c0_173 = arith.constant 0 : index
    %c0_174 = arith.constant 0 : index
    %c1_175 = arith.constant 1 : index
    %c0_176 = arith.constant 0 : index
    %c0_177 = arith.constant 0 : index
    %125 = vector.load %arg1[%c0_172, %c0_173, %c0_174, %c1_175, %c0_176, %c0_177] : memref<1x2x5x2x5x64xbf16, #tpu.memory_space<vmem>>, vector<1x1x1x1x4x64xbf16>
    %126 = vector.shape_cast %125 : vector<1x1x1x1x4x64xbf16> to vector<4x64xbf16>
    %c0_178 = arith.constant 0 : index
    %c0_179 = arith.constant 0 : index
    %c0_180 = arith.constant 0 : index
    %127 = vector.load %arg2[%c0_178, %c0_179, %c0_180] : memref<4x64x32xbf16, #tpu.memory_space<vmem>>, vector<1x64x32xbf16>
    %128 = vector.shape_cast %127 : vector<1x64x32xbf16> to vector<64x32xbf16>
    %cst_181 = arith.constant dense<0.000000e+00> : vector<4x32xf32>
    %129 = tpu.matmul %126, %128, %cst_181 {dimension_numbers = #tpu.dot_dimension_numbers<[1], [0], [0], [1], [0, 0, 1, 1], [], []>} : vector<4x64xbf16>, vector<64x32xbf16>, vector<4x32xf32> -> vector<4x32xf32>
    %130 = arith.addf %124, %129 : vector<4x32xf32>
    %c0_182 = arith.constant 0 : index
    %c0_183 = arith.constant 0 : index
    %c0_184 = arith.constant 0 : index
    %c0_185 = arith.constant 0 : index
    %c1_186 = arith.constant 1 : index
    %c0_187 = arith.constant 0 : index
    %131 = vector.load %arg1[%c0_182, %c0_183, %c0_184, %c0_185, %c1_186, %c0_187] : memref<1x2x5x2x5x64xbf16, #tpu.memory_space<vmem>>, vector<1x1x1x1x4x64xbf16>
    %132 = vector.shape_cast %131 : vector<1x1x1x1x4x64xbf16> to vector<4x64xbf16>
    %c1_188 = arith.constant 1 : index
    %c0_189 = arith.constant 0 : index
    %c0_190 = arith.constant 0 : index
    %133 = vector.load %arg2[%c1_188, %c0_189, %c0_190] : memref<4x64x32xbf16, #tpu.memory_space<vmem>>, vector<1x64x32xbf16>
    %134 = vector.shape_cast %133 : vector<1x64x32xbf16> to vector<64x32xbf16>
    %cst_191 = arith.constant dense<0.000000e+00> : vector<4x32xf32>
    %135 = tpu.matmul %132, %134, %cst_191 {dimension_numbers = #tpu.dot_dimension_numbers<[1], [0], [0], [1], [0, 0, 1, 1], [], []>} : vector<4x64xbf16>, vector<64x32xbf16>, vector<4x32xf32> -> vector<4x32xf32>
    %136 = arith.addf %130, %135 : vector<4x32xf32>
    %c0_192 = arith.constant 0 : index
    %c1_193 = arith.constant 1 : index
    %c0_194 = arith.constant 0 : index
    %c1_195 = arith.constant 1 : index
    %c0_196 = arith.constant 0 : index
    %c0_197 = arith.constant 0 : index
    %137 = vector.load %arg1[%c0_192, %c1_193, %c0_194, %c1_195, %c0_196, %c0_197] : memref<1x2x5x2x5x64xbf16, #tpu.memory_space<vmem>>, vector<1x1x1x1x4x64xbf16>
    %138 = vector.shape_cast %137 : vector<1x1x1x1x4x64xbf16> to vector<4x64xbf16>
    %c2_198 = arith.constant 2 : index
    %c0_199 = arith.constant 0 : index
    %c0_200 = arith.constant 0 : index
    %139 = vector.load %arg2[%c2_198, %c0_199, %c0_200] : memref<4x64x32xbf16, #tpu.memory_space<vmem>>, vector<1x64x32xbf16>
    %140 = vector.shape_cast %139 : vector<1x64x32xbf16> to vector<64x32xbf16>
    %cst_201 = arith.constant dense<0.000000e+00> : vector<4x32xf32>
    %141 = tpu.matmul %138, %140, %cst_201 {dimension_numbers = #tpu.dot_dimension_numbers<[1], [0], [0], [1], [0, 0, 1, 1], [], []>} : vector<4x64xbf16>, vector<64x32xbf16>, vector<4x32xf32> -> vector<4x32xf32>
    %142 = arith.addf %136, %141 : vector<4x32xf32>
    %c0_202 = arith.constant 0 : index
    %c1_203 = arith.constant 1 : index
    %c0_204 = arith.constant 0 : index
    %c0_205 = arith.constant 0 : index
    %c1_206 = arith.constant 1 : index
    %c0_207 = arith.constant 0 : index
    %143 = vector.load %arg1[%c0_202, %c1_203, %c0_204, %c0_205, %c1_206, %c0_207] : memref<1x2x5x2x5x64xbf16, #tpu.memory_space<vmem>>, vector<1x1x1x1x4x64xbf16>
    %144 = vector.shape_cast %143 : vector<1x1x1x1x4x64xbf16> to vector<4x64xbf16>
    %c3_208 = arith.constant 3 : index
    %c0_209 = arith.constant 0 : index
    %c0_210 = arith.constant 0 : index
    %145 = vector.load %arg2[%c3_208, %c0_209, %c0_210] : memref<4x64x32xbf16, #tpu.memory_space<vmem>>, vector<1x64x32xbf16>
    %146 = vector.shape_cast %145 : vector<1x64x32xbf16> to vector<64x32xbf16>
    %cst_211 = arith.constant dense<0.000000e+00> : vector<4x32xf32>
    %147 = tpu.matmul %144, %146, %cst_211 {dimension_numbers = #tpu.dot_dimension_numbers<[1], [0], [0], [1], [0, 0, 1, 1], [], []>} : vector<4x64xbf16>, vector<64x32xbf16>, vector<4x32xf32> -> vector<4x32xf32>
    %148 = arith.addf %142, %147 : vector<4x32xf32>
    %c0_212 = arith.constant 0 : index
    %c0_213 = arith.constant 0 : index
    %149 = vector.load %arg3[%c0_212, %c0_213] : memref<1x32xf32, #tpu.memory_space<vmem>>, vector<1x32xf32>
    %150 = vector.broadcast %149 : vector<1x32xf32> to vector<4x32xf32>
    %151 = arith.addf %148, %150 : vector<4x32xf32>
    %cst_214 = arith.constant 0.000000e+00 : f32
    %152 = vector.broadcast %cst_214 : f32 to vector<4x32xf32>
    %153 = arith.maximumf %151, %152 : vector<4x32xf32>
    %154 = arith.truncf %153 : vector<4x32xf32> to vector<4x32xbf16>
    %cst_215 = arith.constant 0.000000e+00 : f32
    %155 = vector.broadcast %cst_215 : f32 to vector<4x32xf32>
    %c0_216 = arith.constant 0 : index
    %c0_217 = arith.constant 0 : index
    %c1_218 = arith.constant 1 : index
    %c1_219 = arith.constant 1 : index
    %c0_220 = arith.constant 0 : index
    %c0_221 = arith.constant 0 : index
    %156 = vector.load %arg1[%c0_216, %c0_217, %c1_218, %c1_219, %c0_220, %c0_221] : memref<1x2x5x2x5x64xbf16, #tpu.memory_space<vmem>>, vector<1x1x1x1x4x64xbf16>
    %157 = vector.shape_cast %156 : vector<1x1x1x1x4x64xbf16> to vector<4x64xbf16>
    %c0_222 = arith.constant 0 : index
    %c0_223 = arith.constant 0 : index
    %c0_224 = arith.constant 0 : index
    %158 = vector.load %arg2[%c0_222, %c0_223, %c0_224] : memref<4x64x32xbf16, #tpu.memory_space<vmem>>, vector<1x64x32xbf16>
    %159 = vector.shape_cast %158 : vector<1x64x32xbf16> to vector<64x32xbf16>
    %cst_225 = arith.constant dense<0.000000e+00> : vector<4x32xf32>
    %160 = tpu.matmul %157, %159, %cst_225 {dimension_numbers = #tpu.dot_dimension_numbers<[1], [0], [0], [1], [0, 0, 1, 1], [], []>} : vector<4x64xbf16>, vector<64x32xbf16>, vector<4x32xf32> -> vector<4x32xf32>
    %161 = arith.addf %155, %160 : vector<4x32xf32>
    %c0_226 = arith.constant 0 : index
    %c0_227 = arith.constant 0 : index
    %c1_228 = arith.constant 1 : index
    %c0_229 = arith.constant 0 : index
    %c1_230 = arith.constant 1 : index
    %c0_231 = arith.constant 0 : index
    %162 = vector.load %arg1[%c0_226, %c0_227, %c1_228, %c0_229, %c1_230, %c0_231] : memref<1x2x5x2x5x64xbf16, #tpu.memory_space<vmem>>, vector<1x1x1x1x4x64xbf16>
    %163 = vector.shape_cast %162 : vector<1x1x1x1x4x64xbf16> to vector<4x64xbf16>
    %c1_232 = arith.constant 1 : index
    %c0_233 = arith.constant 0 : index
    %c0_234 = arith.constant 0 : index
    %164 = vector.load %arg2[%c1_232, %c0_233, %c0_234] : memref<4x64x32xbf16, #tpu.memory_space<vmem>>, vector<1x64x32xbf16>
    %165 = vector.shape_cast %164 : vector<1x64x32xbf16> to vector<64x32xbf16>
    %cst_235 = arith.constant dense<0.000000e+00> : vector<4x32xf32>
    %166 = tpu.matmul %163, %165, %cst_235 {dimension_numbers = #tpu.dot_dimension_numbers<[1], [0], [0], [1], [0, 0, 1, 1], [], []>} : vector<4x64xbf16>, vector<64x32xbf16>, vector<4x32xf32> -> vector<4x32xf32>
    %167 = arith.addf %161, %166 : vector<4x32xf32>
    %c0_236 = arith.constant 0 : index
    %c1_237 = arith.constant 1 : index
    %c1_238 = arith.constant 1 : index
    %c1_239 = arith.constant 1 : index
    %c0_240 = arith.constant 0 : index
    %c0_241 = arith.constant 0 : index
    %168 = vector.load %arg1[%c0_236, %c1_237, %c1_238, %c1_239, %c0_240, %c0_241] : memref<1x2x5x2x5x64xbf16, #tpu.memory_space<vmem>>, vector<1x1x1x1x4x64xbf16>
    %169 = vector.shape_cast %168 : vector<1x1x1x1x4x64xbf16> to vector<4x64xbf16>
    %c2_242 = arith.constant 2 : index
    %c0_243 = arith.constant 0 : index
    %c0_244 = arith.constant 0 : index
    %170 = vector.load %arg2[%c2_242, %c0_243, %c0_244] : memref<4x64x32xbf16, #tpu.memory_space<vmem>>, vector<1x64x32xbf16>
    %171 = vector.shape_cast %170 : vector<1x64x32xbf16> to vector<64x32xbf16>
    %cst_245 = arith.constant dense<0.000000e+00> : vector<4x32xf32>
    %172 = tpu.matmul %169, %171, %cst_245 {dimension_numbers = #tpu.dot_dimension_numbers<[1], [0], [0], [1], [0, 0, 1, 1], [], []>} : vector<4x64xbf16>, vector<64x32xbf16>, vector<4x32xf32> -> vector<4x32xf32>
    %173 = arith.addf %167, %172 : vector<4x32xf32>
    %c0_246 = arith.constant 0 : index
    %c1_247 = arith.constant 1 : index
    %c1_248 = arith.constant 1 : index
    %c0_249 = arith.constant 0 : index
    %c1_250 = arith.constant 1 : index
    %c0_251 = arith.constant 0 : index
    %174 = vector.load %arg1[%c0_246, %c1_247, %c1_248, %c0_249, %c1_250, %c0_251] : memref<1x2x5x2x5x64xbf16, #tpu.memory_space<vmem>>, vector<1x1x1x1x4x64xbf16>
    %175 = vector.shape_cast %174 : vector<1x1x1x1x4x64xbf16> to vector<4x64xbf16>
    %c3_252 = arith.constant 3 : index
    %c0_253 = arith.constant 0 : index
    %c0_254 = arith.constant 0 : index
    %176 = vector.load %arg2[%c3_252, %c0_253, %c0_254] : memref<4x64x32xbf16, #tpu.memory_space<vmem>>, vector<1x64x32xbf16>
    %177 = vector.shape_cast %176 : vector<1x64x32xbf16> to vector<64x32xbf16>
    %cst_255 = arith.constant dense<0.000000e+00> : vector<4x32xf32>
    %178 = tpu.matmul %175, %177, %cst_255 {dimension_numbers = #tpu.dot_dimension_numbers<[1], [0], [0], [1], [0, 0, 1, 1], [], []>} : vector<4x64xbf16>, vector<64x32xbf16>, vector<4x32xf32> -> vector<4x32xf32>
    %179 = arith.addf %173, %178 : vector<4x32xf32>
    %c0_256 = arith.constant 0 : index
    %c0_257 = arith.constant 0 : index
    %180 = vector.load %arg3[%c0_256, %c0_257] : memref<1x32xf32, #tpu.memory_space<vmem>>, vector<1x32xf32>
    %181 = vector.broadcast %180 : vector<1x32xf32> to vector<4x32xf32>
    %182 = arith.addf %179, %181 : vector<4x32xf32>
    %cst_258 = arith.constant 0.000000e+00 : f32
    %183 = vector.broadcast %cst_258 : f32 to vector<4x32xf32>
    %184 = arith.maximumf %182, %183 : vector<4x32xf32>
    %185 = arith.truncf %184 : vector<4x32xf32> to vector<4x32xbf16>
    %cst_259 = arith.constant 0.000000e+00 : f32
    %186 = vector.broadcast %cst_259 : f32 to vector<4x32xf32>
    %c0_260 = arith.constant 0 : index
    %c0_261 = arith.constant 0 : index
    %c2_262 = arith.constant 2 : index
    %c1_263 = arith.constant 1 : index
    %c0_264 = arith.constant 0 : index
    %c0_265 = arith.constant 0 : index
    %187 = vector.load %arg1[%c0_260, %c0_261, %c2_262, %c1_263, %c0_264, %c0_265] : memref<1x2x5x2x5x64xbf16, #tpu.memory_space<vmem>>, vector<1x1x1x1x4x64xbf16>
    %188 = vector.shape_cast %187 : vector<1x1x1x1x4x64xbf16> to vector<4x64xbf16>
    %c0_266 = arith.constant 0 : index
    %c0_267 = arith.constant 0 : index
    %c0_268 = arith.constant 0 : index
    %189 = vector.load %arg2[%c0_266, %c0_267, %c0_268] : memref<4x64x32xbf16, #tpu.memory_space<vmem>>, vector<1x64x32xbf16>
    %190 = vector.shape_cast %189 : vector<1x64x32xbf16> to vector<64x32xbf16>
    %cst_269 = arith.constant dense<0.000000e+00> : vector<4x32xf32>
    %191 = tpu.matmul %188, %190, %cst_269 {dimension_numbers = #tpu.dot_dimension_numbers<[1], [0], [0], [1], [0, 0, 1, 1], [], []>} : vector<4x64xbf16>, vector<64x32xbf16>, vector<4x32xf32> -> vector<4x32xf32>
    %192 = arith.addf %186, %191 : vector<4x32xf32>
    %c0_270 = arith.constant 0 : index
    %c0_271 = arith.constant 0 : index
    %c2_272 = arith.constant 2 : index
    %c0_273 = arith.constant 0 : index
    %c1_274 = arith.constant 1 : index
    %c0_275 = arith.constant 0 : index
    %193 = vector.load %arg1[%c0_270, %c0_271, %c2_272, %c0_273, %c1_274, %c0_275] : memref<1x2x5x2x5x64xbf16, #tpu.memory_space<vmem>>, vector<1x1x1x1x4x64xbf16>
    %194 = vector.shape_cast %193 : vector<1x1x1x1x4x64xbf16> to vector<4x64xbf16>
    %c1_276 = arith.constant 1 : index
    %c0_277 = arith.constant 0 : index
    %c0_278 = arith.constant 0 : index
    %195 = vector.load %arg2[%c1_276, %c0_277, %c0_278] : memref<4x64x32xbf16, #tpu.memory_space<vmem>>, vector<1x64x32xbf16>
    %196 = vector.shape_cast %195 : vector<1x64x32xbf16> to vector<64x32xbf16>
    %cst_279 = arith.constant dense<0.000000e+00> : vector<4x32xf32>
    %197 = tpu.matmul %194, %196, %cst_279 {dimension_numbers = #tpu.dot_dimension_numbers<[1], [0], [0], [1], [0, 0, 1, 1], [], []>} : vector<4x64xbf16>, vector<64x32xbf16>, vector<4x32xf32> -> vector<4x32xf32>
    %198 = arith.addf %192, %197 : vector<4x32xf32>
    %c0_280 = arith.constant 0 : index
    %c1_281 = arith.constant 1 : index
    %c2_282 = arith.constant 2 : index
    %c1_283 = arith.constant 1 : index
    %c0_284 = arith.constant 0 : index
    %c0_285 = arith.constant 0 : index
    %199 = vector.load %arg1[%c0_280, %c1_281, %c2_282, %c1_283, %c0_284, %c0_285] : memref<1x2x5x2x5x64xbf16, #tpu.memory_space<vmem>>, vector<1x1x1x1x4x64xbf16>
    %200 = vector.shape_cast %199 : vector<1x1x1x1x4x64xbf16> to vector<4x64xbf16>
    %c2_286 = arith.constant 2 : index
    %c0_287 = arith.constant 0 : index
    %c0_288 = arith.constant 0 : index
    %201 = vector.load %arg2[%c2_286, %c0_287, %c0_288] : memref<4x64x32xbf16, #tpu.memory_space<vmem>>, vector<1x64x32xbf16>
    %202 = vector.shape_cast %201 : vector<1x64x32xbf16> to vector<64x32xbf16>
    %cst_289 = arith.constant dense<0.000000e+00> : vector<4x32xf32>
    %203 = tpu.matmul %200, %202, %cst_289 {dimension_numbers = #tpu.dot_dimension_numbers<[1], [0], [0], [1], [0, 0, 1, 1], [], []>} : vector<4x64xbf16>, vector<64x32xbf16>, vector<4x32xf32> -> vector<4x32xf32>
    %204 = arith.addf %198, %203 : vector<4x32xf32>
    %c0_290 = arith.constant 0 : index
    %c1_291 = arith.constant 1 : index
    %c2_292 = arith.constant 2 : index
    %c0_293 = arith.constant 0 : index
    %c1_294 = arith.constant 1 : index
    %c0_295 = arith.constant 0 : index
    %205 = vector.load %arg1[%c0_290, %c1_291, %c2_292, %c0_293, %c1_294, %c0_295] : memref<1x2x5x2x5x64xbf16, #tpu.memory_space<vmem>>, vector<1x1x1x1x4x64xbf16>
    %206 = vector.shape_cast %205 : vector<1x1x1x1x4x64xbf16> to vector<4x64xbf16>
    %c3_296 = arith.constant 3 : index
    %c0_297 = arith.constant 0 : index
    %c0_298 = arith.constant 0 : index
    %207 = vector.load %arg2[%c3_296, %c0_297, %c0_298] : memref<4x64x32xbf16, #tpu.memory_space<vmem>>, vector<1x64x32xbf16>
    %208 = vector.shape_cast %207 : vector<1x64x32xbf16> to vector<64x32xbf16>
    %cst_299 = arith.constant dense<0.000000e+00> : vector<4x32xf32>
    %209 = tpu.matmul %206, %208, %cst_299 {dimension_numbers = #tpu.dot_dimension_numbers<[1], [0], [0], [1], [0, 0, 1, 1], [], []>} : vector<4x64xbf16>, vector<64x32xbf16>, vector<4x32xf32> -> vector<4x32xf32>
    %210 = arith.addf %204, %209 : vector<4x32xf32>
    %c0_300 = arith.constant 0 : index
    %c0_301 = arith.constant 0 : index
    %211 = vector.load %arg3[%c0_300, %c0_301] : memref<1x32xf32, #tpu.memory_space<vmem>>, vector<1x32xf32>
    %212 = vector.broadcast %211 : vector<1x32xf32> to vector<4x32xf32>
    %213 = arith.addf %210, %212 : vector<4x32xf32>
    %cst_302 = arith.constant 0.000000e+00 : f32
    %214 = vector.broadcast %cst_302 : f32 to vector<4x32xf32>
    %215 = arith.maximumf %213, %214 : vector<4x32xf32>
    %216 = arith.truncf %215 : vector<4x32xf32> to vector<4x32xbf16>
    %cst_303 = arith.constant 0.000000e+00 : f32
    %217 = vector.broadcast %cst_303 : f32 to vector<4x32xf32>
    %c0_304 = arith.constant 0 : index
    %c0_305 = arith.constant 0 : index
    %c3_306 = arith.constant 3 : index
    %c1_307 = arith.constant 1 : index
    %c0_308 = arith.constant 0 : index
    %c0_309 = arith.constant 0 : index
    %218 = vector.load %arg1[%c0_304, %c0_305, %c3_306, %c1_307, %c0_308, %c0_309] : memref<1x2x5x2x5x64xbf16, #tpu.memory_space<vmem>>, vector<1x1x1x1x4x64xbf16>
    %219 = vector.shape_cast %218 : vector<1x1x1x1x4x64xbf16> to vector<4x64xbf16>
    %c0_310 = arith.constant 0 : index
    %c0_311 = arith.constant 0 : index
    %c0_312 = arith.constant 0 : index
    %220 = vector.load %arg2[%c0_310, %c0_311, %c0_312] : memref<4x64x32xbf16, #tpu.memory_space<vmem>>, vector<1x64x32xbf16>
    %221 = vector.shape_cast %220 : vector<1x64x32xbf16> to vector<64x32xbf16>
    %cst_313 = arith.constant dense<0.000000e+00> : vector<4x32xf32>
    %222 = tpu.matmul %219, %221, %cst_313 {dimension_numbers = #tpu.dot_dimension_numbers<[1], [0], [0], [1], [0, 0, 1, 1], [], []>} : vector<4x64xbf16>, vector<64x32xbf16>, vector<4x32xf32> -> vector<4x32xf32>
    %223 = arith.addf %217, %222 : vector<4x32xf32>
    %c0_314 = arith.constant 0 : index
    %c0_315 = arith.constant 0 : index
    %c3_316 = arith.constant 3 : index
    %c0_317 = arith.constant 0 : index
    %c1_318 = arith.constant 1 : index
    %c0_319 = arith.constant 0 : index
    %224 = vector.load %arg1[%c0_314, %c0_315, %c3_316, %c0_317, %c1_318, %c0_319] : memref<1x2x5x2x5x64xbf16, #tpu.memory_space<vmem>>, vector<1x1x1x1x4x64xbf16>
    %225 = vector.shape_cast %224 : vector<1x1x1x1x4x64xbf16> to vector<4x64xbf16>
    %c1_320 = arith.constant 1 : index
    %c0_321 = arith.constant 0 : index
    %c0_322 = arith.constant 0 : index
    %226 = vector.load %arg2[%c1_320, %c0_321, %c0_322] : memref<4x64x32xbf16, #tpu.memory_space<vmem>>, vector<1x64x32xbf16>
    %227 = vector.shape_cast %226 : vector<1x64x32xbf16> to vector<64x32xbf16>
    %cst_323 = arith.constant dense<0.000000e+00> : vector<4x32xf32>
    %228 = tpu.matmul %225, %227, %cst_323 {dimension_numbers = #tpu.dot_dimension_numbers<[1], [0], [0], [1], [0, 0, 1, 1], [], []>} : vector<4x64xbf16>, vector<64x32xbf16>, vector<4x32xf32> -> vector<4x32xf32>
    %229 = arith.addf %223, %228 : vector<4x32xf32>
    %c0_324 = arith.constant 0 : index
    %c1_325 = arith.constant 1 : index
    %c3_326 = arith.constant 3 : index
    %c1_327 = arith.constant 1 : index
    %c0_328 = arith.constant 0 : index
    %c0_329 = arith.constant 0 : index
    %230 = vector.load %arg1[%c0_324, %c1_325, %c3_326, %c1_327, %c0_328, %c0_329] : memref<1x2x5x2x5x64xbf16, #tpu.memory_space<vmem>>, vector<1x1x1x1x4x64xbf16>
    %231 = vector.shape_cast %230 : vector<1x1x1x1x4x64xbf16> to vector<4x64xbf16>
    %c2_330 = arith.constant 2 : index
    %c0_331 = arith.constant 0 : index
    %c0_332 = arith.constant 0 : index
    %232 = vector.load %arg2[%c2_330, %c0_331, %c0_332] : memref<4x64x32xbf16, #tpu.memory_space<vmem>>, vector<1x64x32xbf16>
    %233 = vector.shape_cast %232 : vector<1x64x32xbf16> to vector<64x32xbf16>
    %cst_333 = arith.constant dense<0.000000e+00> : vector<4x32xf32>
    %234 = tpu.matmul %231, %233, %cst_333 {dimension_numbers = #tpu.dot_dimension_numbers<[1], [0], [0], [1], [0, 0, 1, 1], [], []>} : vector<4x64xbf16>, vector<64x32xbf16>, vector<4x32xf32> -> vector<4x32xf32>
    %235 = arith.addf %229, %234 : vector<4x32xf32>
    %c0_334 = arith.constant 0 : index
    %c1_335 = arith.constant 1 : index
    %c3_336 = arith.constant 3 : index
    %c0_337 = arith.constant 0 : index
    %c1_338 = arith.constant 1 : index
    %c0_339 = arith.constant 0 : index
    %236 = vector.load %arg1[%c0_334, %c1_335, %c3_336, %c0_337, %c1_338, %c0_339] : memref<1x2x5x2x5x64xbf16, #tpu.memory_space<vmem>>, vector<1x1x1x1x4x64xbf16>
    %237 = vector.shape_cast %236 : vector<1x1x1x1x4x64xbf16> to vector<4x64xbf16>
    %c3_340 = arith.constant 3 : index
    %c0_341 = arith.constant 0 : index
    %c0_342 = arith.constant 0 : index
    %238 = vector.load %arg2[%c3_340, %c0_341, %c0_342] : memref<4x64x32xbf16, #tpu.memory_space<vmem>>, vector<1x64x32xbf16>
    %239 = vector.shape_cast %238 : vector<1x64x32xbf16> to vector<64x32xbf16>
    %cst_343 = arith.constant dense<0.000000e+00> : vector<4x32xf32>
    %240 = tpu.matmul %237, %239, %cst_343 {dimension_numbers = #tpu.dot_dimension_numbers<[1], [0], [0], [1], [0, 0, 1, 1], [], []>} : vector<4x64xbf16>, vector<64x32xbf16>, vector<4x32xf32> -> vector<4x32xf32>
    %241 = arith.addf %235, %240 : vector<4x32xf32>
    %c0_344 = arith.constant 0 : index
    %c0_345 = arith.constant 0 : index
    %242 = vector.load %arg3[%c0_344, %c0_345] : memref<1x32xf32, #tpu.memory_space<vmem>>, vector<1x32xf32>
    %243 = vector.broadcast %242 : vector<1x32xf32> to vector<4x32xf32>
    %244 = arith.addf %241, %243 : vector<4x32xf32>
    %cst_346 = arith.constant 0.000000e+00 : f32
    %245 = vector.broadcast %cst_346 : f32 to vector<4x32xf32>
    %246 = arith.maximumf %244, %245 : vector<4x32xf32>
    %247 = arith.truncf %246 : vector<4x32xf32> to vector<4x32xbf16>
    %cst_347 = arith.constant 0.000000e+00 : f32
    %248 = vector.broadcast %cst_347 : f32 to vector<4x32xf32>
    %c0_348 = arith.constant 0 : index
    %c1_349 = arith.constant 1 : index
    %c0_350 = arith.constant 0 : index
    %c0_351 = arith.constant 0 : index
    %c0_352 = arith.constant 0 : index
    %c0_353 = arith.constant 0 : index
    %249 = vector.load %arg1[%c0_348, %c1_349, %c0_350, %c0_351, %c0_352, %c0_353] : memref<1x2x5x2x5x64xbf16, #tpu.memory_space<vmem>>, vector<1x1x1x1x4x64xbf16>
    %250 = vector.shape_cast %249 : vector<1x1x1x1x4x64xbf16> to vector<4x64xbf16>
    %c0_354 = arith.constant 0 : index
    %c0_355 = arith.constant 0 : index
    %c0_356 = arith.constant 0 : index
    %251 = vector.load %arg2[%c0_354, %c0_355, %c0_356] : memref<4x64x32xbf16, #tpu.memory_space<vmem>>, vector<1x64x32xbf16>
    %252 = vector.shape_cast %251 : vector<1x64x32xbf16> to vector<64x32xbf16>
    %cst_357 = arith.constant dense<0.000000e+00> : vector<4x32xf32>
    %253 = tpu.matmul %250, %252, %cst_357 {dimension_numbers = #tpu.dot_dimension_numbers<[1], [0], [0], [1], [0, 0, 1, 1], [], []>} : vector<4x64xbf16>, vector<64x32xbf16>, vector<4x32xf32> -> vector<4x32xf32>
    %254 = arith.addf %248, %253 : vector<4x32xf32>
    %c0_358 = arith.constant 0 : index
    %c1_359 = arith.constant 1 : index
    %c0_360 = arith.constant 0 : index
    %c1_361 = arith.constant 1 : index
    %c0_362 = arith.constant 0 : index
    %c0_363 = arith.constant 0 : index
    %255 = vector.load %arg1[%c0_358, %c1_359, %c0_360, %c1_361, %c0_362, %c0_363] : memref<1x2x5x2x5x64xbf16, #tpu.memory_space<vmem>>, vector<1x1x1x1x4x64xbf16>
    %256 = vector.shape_cast %255 : vector<1x1x1x1x4x64xbf16> to vector<4x64xbf16>
    %c1_364 = arith.constant 1 : index
    %c0_365 = arith.constant 0 : index
    %c0_366 = arith.constant 0 : index
    %257 = vector.load %arg2[%c1_364, %c0_365, %c0_366] : memref<4x64x32xbf16, #tpu.memory_space<vmem>>, vector<1x64x32xbf16>
    %258 = vector.shape_cast %257 : vector<1x64x32xbf16> to vector<64x32xbf16>
    %cst_367 = arith.constant dense<0.000000e+00> : vector<4x32xf32>
    %259 = tpu.matmul %256, %258, %cst_367 {dimension_numbers = #tpu.dot_dimension_numbers<[1], [0], [0], [1], [0, 0, 1, 1], [], []>} : vector<4x64xbf16>, vector<64x32xbf16>, vector<4x32xf32> -> vector<4x32xf32>
    %260 = arith.addf %254, %259 : vector<4x32xf32>
    %c0_368 = arith.constant 0 : index
    %c0_369 = arith.constant 0 : index
    %c1_370 = arith.constant 1 : index
    %c0_371 = arith.constant 0 : index
    %c0_372 = arith.constant 0 : index
    %c0_373 = arith.constant 0 : index
    %261 = vector.load %arg1[%c0_368, %c0_369, %c1_370, %c0_371, %c0_372, %c0_373] : memref<1x2x5x2x5x64xbf16, #tpu.memory_space<vmem>>, vector<1x1x1x1x4x64xbf16>
    %262 = vector.shape_cast %261 : vector<1x1x1x1x4x64xbf16> to vector<4x64xbf16>
    %c2_374 = arith.constant 2 : index
    %c0_375 = arith.constant 0 : index
    %c0_376 = arith.constant 0 : index
    %263 = vector.load %arg2[%c2_374, %c0_375, %c0_376] : memref<4x64x32xbf16, #tpu.memory_space<vmem>>, vector<1x64x32xbf16>
    %264 = vector.shape_cast %263 : vector<1x64x32xbf16> to vector<64x32xbf16>
    %cst_377 = arith.constant dense<0.000000e+00> : vector<4x32xf32>
    %265 = tpu.matmul %262, %264, %cst_377 {dimension_numbers = #tpu.dot_dimension_numbers<[1], [0], [0], [1], [0, 0, 1, 1], [], []>} : vector<4x64xbf16>, vector<64x32xbf16>, vector<4x32xf32> -> vector<4x32xf32>
    %266 = arith.addf %260, %265 : vector<4x32xf32>
    %c0_378 = arith.constant 0 : index
    %c0_379 = arith.constant 0 : index
    %c1_380 = arith.constant 1 : index
    %c1_381 = arith.constant 1 : index
    %c0_382 = arith.constant 0 : index
    %c0_383 = arith.constant 0 : index
    %267 = vector.load %arg1[%c0_378, %c0_379, %c1_380, %c1_381, %c0_382, %c0_383] : memref<1x2x5x2x5x64xbf16, #tpu.memory_space<vmem>>, vector<1x1x1x1x4x64xbf16>
    %268 = vector.shape_cast %267 : vector<1x1x1x1x4x64xbf16> to vector<4x64xbf16>
    %c3_384 = arith.constant 3 : index
    %c0_385 = arith.constant 0 : index
    %c0_386 = arith.constant 0 : index
    %269 = vector.load %arg2[%c3_384, %c0_385, %c0_386] : memref<4x64x32xbf16, #tpu.memory_space<vmem>>, vector<1x64x32xbf16>
    %270 = vector.shape_cast %269 : vector<1x64x32xbf16> to vector<64x32xbf16>
    %cst_387 = arith.constant dense<0.000000e+00> : vector<4x32xf32>
    %271 = tpu.matmul %268, %270, %cst_387 {dimension_numbers = #tpu.dot_dimension_numbers<[1], [0], [0], [1], [0, 0, 1, 1], [], []>} : vector<4x64xbf16>, vector<64x32xbf16>, vector<4x32xf32> -> vector<4x32xf32>
    %272 = arith.addf %266, %271 : vector<4x32xf32>
    %c0_388 = arith.constant 0 : index
    %c0_389 = arith.constant 0 : index
    %273 = vector.load %arg3[%c0_388, %c0_389] : memref<1x32xf32, #tpu.memory_space<vmem>>, vector<1x32xf32>
    %274 = vector.broadcast %273 : vector<1x32xf32> to vector<4x32xf32>
    %275 = arith.addf %272, %274 : vector<4x32xf32>
    %cst_390 = arith.constant 0.000000e+00 : f32
    %276 = vector.broadcast %cst_390 : f32 to vector<4x32xf32>
    %277 = arith.maximumf %275, %276 : vector<4x32xf32>
    %278 = arith.truncf %277 : vector<4x32xf32> to vector<4x32xbf16>
    %cst_391 = arith.constant 0.000000e+00 : f32
    %279 = vector.broadcast %cst_391 : f32 to vector<4x32xf32>
    %c0_392 = arith.constant 0 : index
    %c1_393 = arith.constant 1 : index
    %c1_394 = arith.constant 1 : index
    %c0_395 = arith.constant 0 : index
    %c0_396 = arith.constant 0 : index
    %c0_397 = arith.constant 0 : index
    %280 = vector.load %arg1[%c0_392, %c1_393, %c1_394, %c0_395, %c0_396, %c0_397] : memref<1x2x5x2x5x64xbf16, #tpu.memory_space<vmem>>, vector<1x1x1x1x4x64xbf16>
    %281 = vector.shape_cast %280 : vector<1x1x1x1x4x64xbf16> to vector<4x64xbf16>
    %c0_398 = arith.constant 0 : index
    %c0_399 = arith.constant 0 : index
    %c0_400 = arith.constant 0 : index
    %282 = vector.load %arg2[%c0_398, %c0_399, %c0_400] : memref<4x64x32xbf16, #tpu.memory_space<vmem>>, vector<1x64x32xbf16>
    %283 = vector.shape_cast %282 : vector<1x64x32xbf16> to vector<64x32xbf16>
    %cst_401 = arith.constant dense<0.000000e+00> : vector<4x32xf32>
    %284 = tpu.matmul %281, %283, %cst_401 {dimension_numbers = #tpu.dot_dimension_numbers<[1], [0], [0], [1], [0, 0, 1, 1], [], []>} : vector<4x64xbf16>, vector<64x32xbf16>, vector<4x32xf32> -> vector<4x32xf32>
    %285 = arith.addf %279, %284 : vector<4x32xf32>
    %c0_402 = arith.constant 0 : index
    %c1_403 = arith.constant 1 : index
    %c1_404 = arith.constant 1 : index
    %c1_405 = arith.constant 1 : index
    %c0_406 = arith.constant 0 : index
    %c0_407 = arith.constant 0 : index
    %286 = vector.load %arg1[%c0_402, %c1_403, %c1_404, %c1_405, %c0_406, %c0_407] : memref<1x2x5x2x5x64xbf16, #tpu.memory_space<vmem>>, vector<1x1x1x1x4x64xbf16>
    %287 = vector.shape_cast %286 : vector<1x1x1x1x4x64xbf16> to vector<4x64xbf16>
    %c1_408 = arith.constant 1 : index
    %c0_409 = arith.constant 0 : index
    %c0_410 = arith.constant 0 : index
    %288 = vector.load %arg2[%c1_408, %c0_409, %c0_410] : memref<4x64x32xbf16, #tpu.memory_space<vmem>>, vector<1x64x32xbf16>
    %289 = vector.shape_cast %288 : vector<1x64x32xbf16> to vector<64x32xbf16>
    %cst_411 = arith.constant dense<0.000000e+00> : vector<4x32xf32>
    %290 = tpu.matmul %287, %289, %cst_411 {dimension_numbers = #tpu.dot_dimension_numbers<[1], [0], [0], [1], [0, 0, 1, 1], [], []>} : vector<4x64xbf16>, vector<64x32xbf16>, vector<4x32xf32> -> vector<4x32xf32>
    %291 = arith.addf %285, %290 : vector<4x32xf32>
    %c0_412 = arith.constant 0 : index
    %c0_413 = arith.constant 0 : index
    %c2_414 = arith.constant 2 : index
    %c0_415 = arith.constant 0 : index
    %c0_416 = arith.constant 0 : index
    %c0_417 = arith.constant 0 : index
    %292 = vector.load %arg1[%c0_412, %c0_413, %c2_414, %c0_415, %c0_416, %c0_417] : memref<1x2x5x2x5x64xbf16, #tpu.memory_space<vmem>>, vector<1x1x1x1x4x64xbf16>
    %293 = vector.shape_cast %292 : vector<1x1x1x1x4x64xbf16> to vector<4x64xbf16>
    %c2_418 = arith.constant 2 : index
    %c0_419 = arith.constant 0 : index
    %c0_420 = arith.constant 0 : index
    %294 = vector.load %arg2[%c2_418, %c0_419, %c0_420] : memref<4x64x32xbf16, #tpu.memory_space<vmem>>, vector<1x64x32xbf16>
    %295 = vector.shape_cast %294 : vector<1x64x32xbf16> to vector<64x32xbf16>
    %cst_421 = arith.constant dense<0.000000e+00> : vector<4x32xf32>
    %296 = tpu.matmul %293, %295, %cst_421 {dimension_numbers = #tpu.dot_dimension_numbers<[1], [0], [0], [1], [0, 0, 1, 1], [], []>} : vector<4x64xbf16>, vector<64x32xbf16>, vector<4x32xf32> -> vector<4x32xf32>
    %297 = arith.addf %291, %296 : vector<4x32xf32>
    %c0_422 = arith.constant 0 : index
    %c0_423 = arith.constant 0 : index
    %c2_424 = arith.constant 2 : index
    %c1_425 = arith.constant 1 : index
    %c0_426 = arith.constant 0 : index
    %c0_427 = arith.constant 0 : index
    %298 = vector.load %arg1[%c0_422, %c0_423, %c2_424, %c1_425, %c0_426, %c0_427] : memref<1x2x5x2x5x64xbf16, #tpu.memory_space<vmem>>, vector<1x1x1x1x4x64xbf16>
    %299 = vector.shape_cast %298 : vector<1x1x1x1x4x64xbf16> to vector<4x64xbf16>
    %c3_428 = arith.constant 3 : index
    %c0_429 = arith.constant 0 : index
    %c0_430 = arith.constant 0 : index
    %300 = vector.load %arg2[%c3_428, %c0_429, %c0_430] : memref<4x64x32xbf16, #tpu.memory_space<vmem>>, vector<1x64x32xbf16>
    %301 = vector.shape_cast %300 : vector<1x64x32xbf16> to vector<64x32xbf16>
    %cst_431 = arith.constant dense<0.000000e+00> : vector<4x32xf32>
    %302 = tpu.matmul %299, %301, %cst_431 {dimension_numbers = #tpu.dot_dimension_numbers<[1], [0], [0], [1], [0, 0, 1, 1], [], []>} : vector<4x64xbf16>, vector<64x32xbf16>, vector<4x32xf32> -> vector<4x32xf32>
    %303 = arith.addf %297, %302 : vector<4x32xf32>
    %c0_432 = arith.constant 0 : index
    %c0_433 = arith.constant 0 : index
    %304 = vector.load %arg3[%c0_432, %c0_433] : memref<1x32xf32, #tpu.memory_space<vmem>>, vector<1x32xf32>
    %305 = vector.broadcast %304 : vector<1x32xf32> to vector<4x32xf32>
    %306 = arith.addf %303, %305 : vector<4x32xf32>
    %cst_434 = arith.constant 0.000000e+00 : f32
    %307 = vector.broadcast %cst_434 : f32 to vector<4x32xf32>
    %308 = arith.maximumf %306, %307 : vector<4x32xf32>
    %309 = arith.truncf %308 : vector<4x32xf32> to vector<4x32xbf16>
    %cst_435 = arith.constant 0.000000e+00 : f32
    %310 = vector.broadcast %cst_435 : f32 to vector<4x32xf32>
    %c0_436 = arith.constant 0 : index
    %c1_437 = arith.constant 1 : index
    %c2_438 = arith.constant 2 : index
    %c0_439 = arith.constant 0 : index
    %c0_440 = arith.constant 0 : index
    %c0_441 = arith.constant 0 : index
    %311 = vector.load %arg1[%c0_436, %c1_437, %c2_438, %c0_439, %c0_440, %c0_441] : memref<1x2x5x2x5x64xbf16, #tpu.memory_space<vmem>>, vector<1x1x1x1x4x64xbf16>
    %312 = vector.shape_cast %311 : vector<1x1x1x1x4x64xbf16> to vector<4x64xbf16>
    %c0_442 = arith.constant 0 : index
    %c0_443 = arith.constant 0 : index
    %c0_444 = arith.constant 0 : index
    %313 = vector.load %arg2[%c0_442, %c0_443, %c0_444] : memref<4x64x32xbf16, #tpu.memory_space<vmem>>, vector<1x64x32xbf16>
    %314 = vector.shape_cast %313 : vector<1x64x32xbf16> to vector<64x32xbf16>
    %cst_445 = arith.constant dense<0.000000e+00> : vector<4x32xf32>
    %315 = tpu.matmul %312, %314, %cst_445 {dimension_numbers = #tpu.dot_dimension_numbers<[1], [0], [0], [1], [0, 0, 1, 1], [], []>} : vector<4x64xbf16>, vector<64x32xbf16>, vector<4x32xf32> -> vector<4x32xf32>
    %316 = arith.addf %310, %315 : vector<4x32xf32>
    %c0_446 = arith.constant 0 : index
    %c1_447 = arith.constant 1 : index
    %c2_448 = arith.constant 2 : index
    %c1_449 = arith.constant 1 : index
    %c0_450 = arith.constant 0 : index
    %c0_451 = arith.constant 0 : index
    %317 = vector.load %arg1[%c0_446, %c1_447, %c2_448, %c1_449, %c0_450, %c0_451] : memref<1x2x5x2x5x64xbf16, #tpu.memory_space<vmem>>, vector<1x1x1x1x4x64xbf16>
    %318 = vector.shape_cast %317 : vector<1x1x1x1x4x64xbf16> to vector<4x64xbf16>
    %c1_452 = arith.constant 1 : index
    %c0_453 = arith.constant 0 : index
    %c0_454 = arith.constant 0 : index
    %319 = vector.load %arg2[%c1_452, %c0_453, %c0_454] : memref<4x64x32xbf16, #tpu.memory_space<vmem>>, vector<1x64x32xbf16>
    %320 = vector.shape_cast %319 : vector<1x64x32xbf16> to vector<64x32xbf16>
    %cst_455 = arith.constant dense<0.000000e+00> : vector<4x32xf32>
    %321 = tpu.matmul %318, %320, %cst_455 {dimension_numbers = #tpu.dot_dimension_numbers<[1], [0], [0], [1], [0, 0, 1, 1], [], []>} : vector<4x64xbf16>, vector<64x32xbf16>, vector<4x32xf32> -> vector<4x32xf32>
    %322 = arith.addf %316, %321 : vector<4x32xf32>
    %c0_456 = arith.constant 0 : index
    %c0_457 = arith.constant 0 : index
    %c3_458 = arith.constant 3 : index
    %c0_459 = arith.constant 0 : index
    %c0_460 = arith.constant 0 : index
    %c0_461 = arith.constant 0 : index
    %323 = vector.load %arg1[%c0_456, %c0_457, %c3_458, %c0_459, %c0_460, %c0_461] : memref<1x2x5x2x5x64xbf16, #tpu.memory_space<vmem>>, vector<1x1x1x1x4x64xbf16>
    %324 = vector.shape_cast %323 : vector<1x1x1x1x4x64xbf16> to vector<4x64xbf16>
    %c2_462 = arith.constant 2 : index
    %c0_463 = arith.constant 0 : index
    %c0_464 = arith.constant 0 : index
    %325 = vector.load %arg2[%c2_462, %c0_463, %c0_464] : memref<4x64x32xbf16, #tpu.memory_space<vmem>>, vector<1x64x32xbf16>
    %326 = vector.shape_cast %325 : vector<1x64x32xbf16> to vector<64x32xbf16>
    %cst_465 = arith.constant dense<0.000000e+00> : vector<4x32xf32>
    %327 = tpu.matmul %324, %326, %cst_465 {dimension_numbers = #tpu.dot_dimension_numbers<[1], [0], [0], [1], [0, 0, 1, 1], [], []>} : vector<4x64xbf16>, vector<64x32xbf16>, vector<4x32xf32> -> vector<4x32xf32>
    %328 = arith.addf %322, %327 : vector<4x32xf32>
    %c0_466 = arith.constant 0 : index
    %c0_467 = arith.constant 0 : index
    %c3_468 = arith.constant 3 : index
    %c1_469 = arith.constant 1 : index
    %c0_470 = arith.constant 0 : index
    %c0_471 = arith.constant 0 : index
    %329 = vector.load %arg1[%c0_466, %c0_467, %c3_468, %c1_469, %c0_470, %c0_471] : memref<1x2x5x2x5x64xbf16, #tpu.memory_space<vmem>>, vector<1x1x1x1x4x64xbf16>
    %330 = vector.shape_cast %329 : vector<1x1x1x1x4x64xbf16> to vector<4x64xbf16>
    %c3_472 = arith.constant 3 : index
    %c0_473 = arith.constant 0 : index
    %c0_474 = arith.constant 0 : index
    %331 = vector.load %arg2[%c3_472, %c0_473, %c0_474] : memref<4x64x32xbf16, #tpu.memory_space<vmem>>, vector<1x64x32xbf16>
    %332 = vector.shape_cast %331 : vector<1x64x32xbf16> to vector<64x32xbf16>
    %cst_475 = arith.constant dense<0.000000e+00> : vector<4x32xf32>
    %333 = tpu.matmul %330, %332, %cst_475 {dimension_numbers = #tpu.dot_dimension_numbers<[1], [0], [0], [1], [0, 0, 1, 1], [], []>} : vector<4x64xbf16>, vector<64x32xbf16>, vector<4x32xf32> -> vector<4x32xf32>
    %334 = arith.addf %328, %333 : vector<4x32xf32>
    %c0_476 = arith.constant 0 : index
    %c0_477 = arith.constant 0 : index
    %335 = vector.load %arg3[%c0_476, %c0_477] : memref<1x32xf32, #tpu.memory_space<vmem>>, vector<1x32xf32>
    %336 = vector.broadcast %335 : vector<1x32xf32> to vector<4x32xf32>
    %337 = arith.addf %334, %336 : vector<4x32xf32>
    %cst_478 = arith.constant 0.000000e+00 : f32
    %338 = vector.broadcast %cst_478 : f32 to vector<4x32xf32>
    %339 = arith.maximumf %337, %338 : vector<4x32xf32>
    %340 = arith.truncf %339 : vector<4x32xf32> to vector<4x32xbf16>
    %cst_479 = arith.constant 0.000000e+00 : f32
    %341 = vector.broadcast %cst_479 : f32 to vector<4x32xf32>
    %c0_480 = arith.constant 0 : index
    %c1_481 = arith.constant 1 : index
    %c3_482 = arith.constant 3 : index
    %c0_483 = arith.constant 0 : index
    %c0_484 = arith.constant 0 : index
    %c0_485 = arith.constant 0 : index
    %342 = vector.load %arg1[%c0_480, %c1_481, %c3_482, %c0_483, %c0_484, %c0_485] : memref<1x2x5x2x5x64xbf16, #tpu.memory_space<vmem>>, vector<1x1x1x1x4x64xbf16>
    %343 = vector.shape_cast %342 : vector<1x1x1x1x4x64xbf16> to vector<4x64xbf16>
    %c0_486 = arith.constant 0 : index
    %c0_487 = arith.constant 0 : index
    %c0_488 = arith.constant 0 : index
    %344 = vector.load %arg2[%c0_486, %c0_487, %c0_488] : memref<4x64x32xbf16, #tpu.memory_space<vmem>>, vector<1x64x32xbf16>
    %345 = vector.shape_cast %344 : vector<1x64x32xbf16> to vector<64x32xbf16>
    %cst_489 = arith.constant dense<0.000000e+00> : vector<4x32xf32>
    %346 = tpu.matmul %343, %345, %cst_489 {dimension_numbers = #tpu.dot_dimension_numbers<[1], [0], [0], [1], [0, 0, 1, 1], [], []>} : vector<4x64xbf16>, vector<64x32xbf16>, vector<4x32xf32> -> vector<4x32xf32>
    %347 = arith.addf %341, %346 : vector<4x32xf32>
    %c0_490 = arith.constant 0 : index
    %c1_491 = arith.constant 1 : index
    %c3_492 = arith.constant 3 : index
    %c1_493 = arith.constant 1 : index
    %c0_494 = arith.constant 0 : index
    %c0_495 = arith.constant 0 : index
    %348 = vector.load %arg1[%c0_490, %c1_491, %c3_492, %c1_493, %c0_494, %c0_495] : memref<1x2x5x2x5x64xbf16, #tpu.memory_space<vmem>>, vector<1x1x1x1x4x64xbf16>
    %349 = vector.shape_cast %348 : vector<1x1x1x1x4x64xbf16> to vector<4x64xbf16>
    %c1_496 = arith.constant 1 : index
    %c0_497 = arith.constant 0 : index
    %c0_498 = arith.constant 0 : index
    %350 = vector.load %arg2[%c1_496, %c0_497, %c0_498] : memref<4x64x32xbf16, #tpu.memory_space<vmem>>, vector<1x64x32xbf16>
    %351 = vector.shape_cast %350 : vector<1x64x32xbf16> to vector<64x32xbf16>
    %cst_499 = arith.constant dense<0.000000e+00> : vector<4x32xf32>
    %352 = tpu.matmul %349, %351, %cst_499 {dimension_numbers = #tpu.dot_dimension_numbers<[1], [0], [0], [1], [0, 0, 1, 1], [], []>} : vector<4x64xbf16>, vector<64x32xbf16>, vector<4x32xf32> -> vector<4x32xf32>
    %353 = arith.addf %347, %352 : vector<4x32xf32>
    %c0_500 = arith.constant 0 : index
    %c0_501 = arith.constant 0 : index
    %c4 = arith.constant 4 : index
    %c0_502 = arith.constant 0 : index
    %c0_503 = arith.constant 0 : index
    %c0_504 = arith.constant 0 : index
    %354 = vector.load %arg1[%c0_500, %c0_501, %c4, %c0_502, %c0_503, %c0_504] : memref<1x2x5x2x5x64xbf16, #tpu.memory_space<vmem>>, vector<1x1x1x1x4x64xbf16>
    %355 = vector.shape_cast %354 : vector<1x1x1x1x4x64xbf16> to vector<4x64xbf16>
    %c2_505 = arith.constant 2 : index
    %c0_506 = arith.constant 0 : index
    %c0_507 = arith.constant 0 : index
    %356 = vector.load %arg2[%c2_505, %c0_506, %c0_507] : memref<4x64x32xbf16, #tpu.memory_space<vmem>>, vector<1x64x32xbf16>
    %357 = vector.shape_cast %356 : vector<1x64x32xbf16> to vector<64x32xbf16>
    %cst_508 = arith.constant dense<0.000000e+00> : vector<4x32xf32>
    %358 = tpu.matmul %355, %357, %cst_508 {dimension_numbers = #tpu.dot_dimension_numbers<[1], [0], [0], [1], [0, 0, 1, 1], [], []>} : vector<4x64xbf16>, vector<64x32xbf16>, vector<4x32xf32> -> vector<4x32xf32>
    %359 = arith.addf %353, %358 : vector<4x32xf32>
    %c0_509 = arith.constant 0 : index
    %c0_510 = arith.constant 0 : index
    %c4_511 = arith.constant 4 : index
    %c1_512 = arith.constant 1 : index
    %c0_513 = arith.constant 0 : index
    %c0_514 = arith.constant 0 : index
    %360 = vector.load %arg1[%c0_509, %c0_510, %c4_511, %c1_512, %c0_513, %c0_514] : memref<1x2x5x2x5x64xbf16, #tpu.memory_space<vmem>>, vector<1x1x1x1x4x64xbf16>
    %361 = vector.shape_cast %360 : vector<1x1x1x1x4x64xbf16> to vector<4x64xbf16>
    %c3_515 = arith.constant 3 : index
    %c0_516 = arith.constant 0 : index
    %c0_517 = arith.constant 0 : index
    %362 = vector.load %arg2[%c3_515, %c0_516, %c0_517] : memref<4x64x32xbf16, #tpu.memory_space<vmem>>, vector<1x64x32xbf16>
    %363 = vector.shape_cast %362 : vector<1x64x32xbf16> to vector<64x32xbf16>
    %cst_518 = arith.constant dense<0.000000e+00> : vector<4x32xf32>
    %364 = tpu.matmul %361, %363, %cst_518 {dimension_numbers = #tpu.dot_dimension_numbers<[1], [0], [0], [1], [0, 0, 1, 1], [], []>} : vector<4x64xbf16>, vector<64x32xbf16>, vector<4x32xf32> -> vector<4x32xf32>
    %365 = arith.addf %359, %364 : vector<4x32xf32>
    %c0_519 = arith.constant 0 : index
    %c0_520 = arith.constant 0 : index
    %366 = vector.load %arg3[%c0_519, %c0_520] : memref<1x32xf32, #tpu.memory_space<vmem>>, vector<1x32xf32>
    %367 = vector.broadcast %366 : vector<1x32xf32> to vector<4x32xf32>
    %368 = arith.addf %365, %367 : vector<4x32xf32>
    %cst_521 = arith.constant 0.000000e+00 : f32
    %369 = vector.broadcast %cst_521 : f32 to vector<4x32xf32>
    %370 = arith.maximumf %368, %369 : vector<4x32xf32>
    %371 = arith.truncf %370 : vector<4x32xf32> to vector<4x32xbf16>
    %cst_522 = arith.constant 0.000000e+00 : f32
    %372 = vector.broadcast %cst_522 : f32 to vector<4x32xf32>
    %c0_523 = arith.constant 0 : index
    %c1_524 = arith.constant 1 : index
    %c0_525 = arith.constant 0 : index
    %c1_526 = arith.constant 1 : index
    %c0_527 = arith.constant 0 : index
    %c0_528 = arith.constant 0 : index
    %373 = vector.load %arg1[%c0_523, %c1_524, %c0_525, %c1_526, %c0_527, %c0_528] : memref<1x2x5x2x5x64xbf16, #tpu.memory_space<vmem>>, vector<1x1x1x1x4x64xbf16>
    %374 = vector.shape_cast %373 : vector<1x1x1x1x4x64xbf16> to vector<4x64xbf16>
    %c0_529 = arith.constant 0 : index
    %c0_530 = arith.constant 0 : index
    %c0_531 = arith.constant 0 : index
    %375 = vector.load %arg2[%c0_529, %c0_530, %c0_531] : memref<4x64x32xbf16, #tpu.memory_space<vmem>>, vector<1x64x32xbf16>
    %376 = vector.shape_cast %375 : vector<1x64x32xbf16> to vector<64x32xbf16>
    %cst_532 = arith.constant dense<0.000000e+00> : vector<4x32xf32>
    %377 = tpu.matmul %374, %376, %cst_532 {dimension_numbers = #tpu.dot_dimension_numbers<[1], [0], [0], [1], [0, 0, 1, 1], [], []>} : vector<4x64xbf16>, vector<64x32xbf16>, vector<4x32xf32> -> vector<4x32xf32>
    %378 = arith.addf %372, %377 : vector<4x32xf32>
    %c0_533 = arith.constant 0 : index
    %c1_534 = arith.constant 1 : index
    %c0_535 = arith.constant 0 : index
    %c0_536 = arith.constant 0 : index
    %c1_537 = arith.constant 1 : index
    %c0_538 = arith.constant 0 : index
    %379 = vector.load %arg1[%c0_533, %c1_534, %c0_535, %c0_536, %c1_537, %c0_538] : memref<1x2x5x2x5x64xbf16, #tpu.memory_space<vmem>>, vector<1x1x1x1x4x64xbf16>
    %380 = vector.shape_cast %379 : vector<1x1x1x1x4x64xbf16> to vector<4x64xbf16>
    %c1_539 = arith.constant 1 : index
    %c0_540 = arith.constant 0 : index
    %c0_541 = arith.constant 0 : index
    %381 = vector.load %arg2[%c1_539, %c0_540, %c0_541] : memref<4x64x32xbf16, #tpu.memory_space<vmem>>, vector<1x64x32xbf16>
    %382 = vector.shape_cast %381 : vector<1x64x32xbf16> to vector<64x32xbf16>
    %cst_542 = arith.constant dense<0.000000e+00> : vector<4x32xf32>
    %383 = tpu.matmul %380, %382, %cst_542 {dimension_numbers = #tpu.dot_dimension_numbers<[1], [0], [0], [1], [0, 0, 1, 1], [], []>} : vector<4x64xbf16>, vector<64x32xbf16>, vector<4x32xf32> -> vector<4x32xf32>
    %384 = arith.addf %378, %383 : vector<4x32xf32>
    %c0_543 = arith.constant 0 : index
    %c0_544 = arith.constant 0 : index
    %c1_545 = arith.constant 1 : index
    %c1_546 = arith.constant 1 : index
    %c0_547 = arith.constant 0 : index
    %c0_548 = arith.constant 0 : index
    %385 = vector.load %arg1[%c0_543, %c0_544, %c1_545, %c1_546, %c0_547, %c0_548] : memref<1x2x5x2x5x64xbf16, #tpu.memory_space<vmem>>, vector<1x1x1x1x4x64xbf16>
    %386 = vector.shape_cast %385 : vector<1x1x1x1x4x64xbf16> to vector<4x64xbf16>
    %c2_549 = arith.constant 2 : index
    %c0_550 = arith.constant 0 : index
    %c0_551 = arith.constant 0 : index
    %387 = vector.load %arg2[%c2_549, %c0_550, %c0_551] : memref<4x64x32xbf16, #tpu.memory_space<vmem>>, vector<1x64x32xbf16>
    %388 = vector.shape_cast %387 : vector<1x64x32xbf16> to vector<64x32xbf16>
    %cst_552 = arith.constant dense<0.000000e+00> : vector<4x32xf32>
    %389 = tpu.matmul %386, %388, %cst_552 {dimension_numbers = #tpu.dot_dimension_numbers<[1], [0], [0], [1], [0, 0, 1, 1], [], []>} : vector<4x64xbf16>, vector<64x32xbf16>, vector<4x32xf32> -> vector<4x32xf32>
    %390 = arith.addf %384, %389 : vector<4x32xf32>
    %c0_553 = arith.constant 0 : index
    %c0_554 = arith.constant 0 : index
    %c1_555 = arith.constant 1 : index
    %c0_556 = arith.constant 0 : index
    %c1_557 = arith.constant 1 : index
    %c0_558 = arith.constant 0 : index
    %391 = vector.load %arg1[%c0_553, %c0_554, %c1_555, %c0_556, %c1_557, %c0_558] : memref<1x2x5x2x5x64xbf16, #tpu.memory_space<vmem>>, vector<1x1x1x1x4x64xbf16>
    %392 = vector.shape_cast %391 : vector<1x1x1x1x4x64xbf16> to vector<4x64xbf16>
    %c3_559 = arith.constant 3 : index
    %c0_560 = arith.constant 0 : index
    %c0_561 = arith.constant 0 : index
    %393 = vector.load %arg2[%c3_559, %c0_560, %c0_561] : memref<4x64x32xbf16, #tpu.memory_space<vmem>>, vector<1x64x32xbf16>
    %394 = vector.shape_cast %393 : vector<1x64x32xbf16> to vector<64x32xbf16>
    %cst_562 = arith.constant dense<0.000000e+00> : vector<4x32xf32>
    %395 = tpu.matmul %392, %394, %cst_562 {dimension_numbers = #tpu.dot_dimension_numbers<[1], [0], [0], [1], [0, 0, 1, 1], [], []>} : vector<4x64xbf16>, vector<64x32xbf16>, vector<4x32xf32> -> vector<4x32xf32>
    %396 = arith.addf %390, %395 : vector<4x32xf32>
    %c0_563 = arith.constant 0 : index
    %c0_564 = arith.constant 0 : index
    %397 = vector.load %arg3[%c0_563, %c0_564] : memref<1x32xf32, #tpu.memory_space<vmem>>, vector<1x32xf32>
    %398 = vector.broadcast %397 : vector<1x32xf32> to vector<4x32xf32>
    %399 = arith.addf %396, %398 : vector<4x32xf32>
    %cst_565 = arith.constant 0.000000e+00 : f32
    %400 = vector.broadcast %cst_565 : f32 to vector<4x32xf32>
    %401 = arith.maximumf %399, %400 : vector<4x32xf32>
    %402 = arith.truncf %401 : vector<4x32xf32> to vector<4x32xbf16>
    %cst_566 = arith.constant 0.000000e+00 : f32
    %403 = vector.broadcast %cst_566 : f32 to vector<4x32xf32>
    %c0_567 = arith.constant 0 : index
    %c1_568 = arith.constant 1 : index
    %c1_569 = arith.constant 1 : index
    %c1_570 = arith.constant 1 : index
    %c0_571 = arith.constant 0 : index
    %c0_572 = arith.constant 0 : index
    %404 = vector.load %arg1[%c0_567, %c1_568, %c1_569, %c1_570, %c0_571, %c0_572] : memref<1x2x5x2x5x64xbf16, #tpu.memory_space<vmem>>, vector<1x1x1x1x4x64xbf16>
    %405 = vector.shape_cast %404 : vector<1x1x1x1x4x64xbf16> to vector<4x64xbf16>
    %c0_573 = arith.constant 0 : index
    %c0_574 = arith.constant 0 : index
    %c0_575 = arith.constant 0 : index
    %406 = vector.load %arg2[%c0_573, %c0_574, %c0_575] : memref<4x64x32xbf16, #tpu.memory_space<vmem>>, vector<1x64x32xbf16>
    %407 = vector.shape_cast %406 : vector<1x64x32xbf16> to vector<64x32xbf16>
    %cst_576 = arith.constant dense<0.000000e+00> : vector<4x32xf32>
    %408 = tpu.matmul %405, %407, %cst_576 {dimension_numbers = #tpu.dot_dimension_numbers<[1], [0], [0], [1], [0, 0, 1, 1], [], []>} : vector<4x64xbf16>, vector<64x32xbf16>, vector<4x32xf32> -> vector<4x32xf32>
    %409 = arith.addf %403, %408 : vector<4x32xf32>
    %c0_577 = arith.constant 0 : index
    %c1_578 = arith.constant 1 : index
    %c1_579 = arith.constant 1 : index
    %c0_580 = arith.constant 0 : index
    %c1_581 = arith.constant 1 : index
    %c0_582 = arith.constant 0 : index
    %410 = vector.load %arg1[%c0_577, %c1_578, %c1_579, %c0_580, %c1_581, %c0_582] : memref<1x2x5x2x5x64xbf16, #tpu.memory_space<vmem>>, vector<1x1x1x1x4x64xbf16>
    %411 = vector.shape_cast %410 : vector<1x1x1x1x4x64xbf16> to vector<4x64xbf16>
    %c1_583 = arith.constant 1 : index
    %c0_584 = arith.constant 0 : index
    %c0_585 = arith.constant 0 : index
    %412 = vector.load %arg2[%c1_583, %c0_584, %c0_585] : memref<4x64x32xbf16, #tpu.memory_space<vmem>>, vector<1x64x32xbf16>
    %413 = vector.shape_cast %412 : vector<1x64x32xbf16> to vector<64x32xbf16>
    %cst_586 = arith.constant dense<0.000000e+00> : vector<4x32xf32>
    %414 = tpu.matmul %411, %413, %cst_586 {dimension_numbers = #tpu.dot_dimension_numbers<[1], [0], [0], [1], [0, 0, 1, 1], [], []>} : vector<4x64xbf16>, vector<64x32xbf16>, vector<4x32xf32> -> vector<4x32xf32>
    %415 = arith.addf %409, %414 : vector<4x32xf32>
    %c0_587 = arith.constant 0 : index
    %c0_588 = arith.constant 0 : index
    %c2_589 = arith.constant 2 : index
    %c1_590 = arith.constant 1 : index
    %c0_591 = arith.constant 0 : index
    %c0_592 = arith.constant 0 : index
    %416 = vector.load %arg1[%c0_587, %c0_588, %c2_589, %c1_590, %c0_591, %c0_592] : memref<1x2x5x2x5x64xbf16, #tpu.memory_space<vmem>>, vector<1x1x1x1x4x64xbf16>
    %417 = vector.shape_cast %416 : vector<1x1x1x1x4x64xbf16> to vector<4x64xbf16>
    %c2_593 = arith.constant 2 : index
    %c0_594 = arith.constant 0 : index
    %c0_595 = arith.constant 0 : index
    %418 = vector.load %arg2[%c2_593, %c0_594, %c0_595] : memref<4x64x32xbf16, #tpu.memory_space<vmem>>, vector<1x64x32xbf16>
    %419 = vector.shape_cast %418 : vector<1x64x32xbf16> to vector<64x32xbf16>
    %cst_596 = arith.constant dense<0.000000e+00> : vector<4x32xf32>
    %420 = tpu.matmul %417, %419, %cst_596 {dimension_numbers = #tpu.dot_dimension_numbers<[1], [0], [0], [1], [0, 0, 1, 1], [], []>} : vector<4x64xbf16>, vector<64x32xbf16>, vector<4x32xf32> -> vector<4x32xf32>
    %421 = arith.addf %415, %420 : vector<4x32xf32>
    %c0_597 = arith.constant 0 : index
    %c0_598 = arith.constant 0 : index
    %c2_599 = arith.constant 2 : index
    %c0_600 = arith.constant 0 : index
    %c1_601 = arith.constant 1 : index
    %c0_602 = arith.constant 0 : index
    %422 = vector.load %arg1[%c0_597, %c0_598, %c2_599, %c0_600, %c1_601, %c0_602] : memref<1x2x5x2x5x64xbf16, #tpu.memory_space<vmem>>, vector<1x1x1x1x4x64xbf16>
    %423 = vector.shape_cast %422 : vector<1x1x1x1x4x64xbf16> to vector<4x64xbf16>
    %c3_603 = arith.constant 3 : index
    %c0_604 = arith.constant 0 : index
    %c0_605 = arith.constant 0 : index
    %424 = vector.load %arg2[%c3_603, %c0_604, %c0_605] : memref<4x64x32xbf16, #tpu.memory_space<vmem>>, vector<1x64x32xbf16>
    %425 = vector.shape_cast %424 : vector<1x64x32xbf16> to vector<64x32xbf16>
    %cst_606 = arith.constant dense<0.000000e+00> : vector<4x32xf32>
    %426 = tpu.matmul %423, %425, %cst_606 {dimension_numbers = #tpu.dot_dimension_numbers<[1], [0], [0], [1], [0, 0, 1, 1], [], []>} : vector<4x64xbf16>, vector<64x32xbf16>, vector<4x32xf32> -> vector<4x32xf32>
    %427 = arith.addf %421, %426 : vector<4x32xf32>
    %c0_607 = arith.constant 0 : index
    %c0_608 = arith.constant 0 : index
    %428 = vector.load %arg3[%c0_607, %c0_608] : memref<1x32xf32, #tpu.memory_space<vmem>>, vector<1x32xf32>
    %429 = vector.broadcast %428 : vector<1x32xf32> to vector<4x32xf32>
    %430 = arith.addf %427, %429 : vector<4x32xf32>
    %cst_609 = arith.constant 0.000000e+00 : f32
    %431 = vector.broadcast %cst_609 : f32 to vector<4x32xf32>
    %432 = arith.maximumf %430, %431 : vector<4x32xf32>
    %433 = arith.truncf %432 : vector<4x32xf32> to vector<4x32xbf16>
    %cst_610 = arith.constant 0.000000e+00 : f32
    %434 = vector.broadcast %cst_610 : f32 to vector<4x32xf32>
    %c0_611 = arith.constant 0 : index
    %c1_612 = arith.constant 1 : index
    %c2_613 = arith.constant 2 : index
    %c1_614 = arith.constant 1 : index
    %c0_615 = arith.constant 0 : index
    %c0_616 = arith.constant 0 : index
    %435 = vector.load %arg1[%c0_611, %c1_612, %c2_613, %c1_614, %c0_615, %c0_616] : memref<1x2x5x2x5x64xbf16, #tpu.memory_space<vmem>>, vector<1x1x1x1x4x64xbf16>
    %436 = vector.shape_cast %435 : vector<1x1x1x1x4x64xbf16> to vector<4x64xbf16>
    %c0_617 = arith.constant 0 : index
    %c0_618 = arith.constant 0 : index
    %c0_619 = arith.constant 0 : index
    %437 = vector.load %arg2[%c0_617, %c0_618, %c0_619] : memref<4x64x32xbf16, #tpu.memory_space<vmem>>, vector<1x64x32xbf16>
    %438 = vector.shape_cast %437 : vector<1x64x32xbf16> to vector<64x32xbf16>
    %cst_620 = arith.constant dense<0.000000e+00> : vector<4x32xf32>
    %439 = tpu.matmul %436, %438, %cst_620 {dimension_numbers = #tpu.dot_dimension_numbers<[1], [0], [0], [1], [0, 0, 1, 1], [], []>} : vector<4x64xbf16>, vector<64x32xbf16>, vector<4x32xf32> -> vector<4x32xf32>
    %440 = arith.addf %434, %439 : vector<4x32xf32>
    %c0_621 = arith.constant 0 : index
    %c1_622 = arith.constant 1 : index
    %c2_623 = arith.constant 2 : index
    %c0_624 = arith.constant 0 : index
    %c1_625 = arith.constant 1 : index
    %c0_626 = arith.constant 0 : index
    %441 = vector.load %arg1[%c0_621, %c1_622, %c2_623, %c0_624, %c1_625, %c0_626] : memref<1x2x5x2x5x64xbf16, #tpu.memory_space<vmem>>, vector<1x1x1x1x4x64xbf16>
    %442 = vector.shape_cast %441 : vector<1x1x1x1x4x64xbf16> to vector<4x64xbf16>
    %c1_627 = arith.constant 1 : index
    %c0_628 = arith.constant 0 : index
    %c0_629 = arith.constant 0 : index
    %443 = vector.load %arg2[%c1_627, %c0_628, %c0_629] : memref<4x64x32xbf16, #tpu.memory_space<vmem>>, vector<1x64x32xbf16>
    %444 = vector.shape_cast %443 : vector<1x64x32xbf16> to vector<64x32xbf16>
    %cst_630 = arith.constant dense<0.000000e+00> : vector<4x32xf32>
    %445 = tpu.matmul %442, %444, %cst_630 {dimension_numbers = #tpu.dot_dimension_numbers<[1], [0], [0], [1], [0, 0, 1, 1], [], []>} : vector<4x64xbf16>, vector<64x32xbf16>, vector<4x32xf32> -> vector<4x32xf32>
    %446 = arith.addf %440, %445 : vector<4x32xf32>
    %c0_631 = arith.constant 0 : index
    %c0_632 = arith.constant 0 : index
    %c3_633 = arith.constant 3 : index
    %c1_634 = arith.constant 1 : index
    %c0_635 = arith.constant 0 : index
    %c0_636 = arith.constant 0 : index
    %447 = vector.load %arg1[%c0_631, %c0_632, %c3_633, %c1_634, %c0_635, %c0_636] : memref<1x2x5x2x5x64xbf16, #tpu.memory_space<vmem>>, vector<1x1x1x1x4x64xbf16>
    %448 = vector.shape_cast %447 : vector<1x1x1x1x4x64xbf16> to vector<4x64xbf16>
    %c2_637 = arith.constant 2 : index
    %c0_638 = arith.constant 0 : index
    %c0_639 = arith.constant 0 : index
    %449 = vector.load %arg2[%c2_637, %c0_638, %c0_639] : memref<4x64x32xbf16, #tpu.memory_space<vmem>>, vector<1x64x32xbf16>
    %450 = vector.shape_cast %449 : vector<1x64x32xbf16> to vector<64x32xbf16>
    %cst_640 = arith.constant dense<0.000000e+00> : vector<4x32xf32>
    %451 = tpu.matmul %448, %450, %cst_640 {dimension_numbers = #tpu.dot_dimension_numbers<[1], [0], [0], [1], [0, 0, 1, 1], [], []>} : vector<4x64xbf16>, vector<64x32xbf16>, vector<4x32xf32> -> vector<4x32xf32>
    %452 = arith.addf %446, %451 : vector<4x32xf32>
    %c0_641 = arith.constant 0 : index
    %c0_642 = arith.constant 0 : index
    %c3_643 = arith.constant 3 : index
    %c0_644 = arith.constant 0 : index
    %c1_645 = arith.constant 1 : index
    %c0_646 = arith.constant 0 : index
    %453 = vector.load %arg1[%c0_641, %c0_642, %c3_643, %c0_644, %c1_645, %c0_646] : memref<1x2x5x2x5x64xbf16, #tpu.memory_space<vmem>>, vector<1x1x1x1x4x64xbf16>
    %454 = vector.shape_cast %453 : vector<1x1x1x1x4x64xbf16> to vector<4x64xbf16>
    %c3_647 = arith.constant 3 : index
    %c0_648 = arith.constant 0 : index
    %c0_649 = arith.constant 0 : index
    %455 = vector.load %arg2[%c3_647, %c0_648, %c0_649] : memref<4x64x32xbf16, #tpu.memory_space<vmem>>, vector<1x64x32xbf16>
    %456 = vector.shape_cast %455 : vector<1x64x32xbf16> to vector<64x32xbf16>
    %cst_650 = arith.constant dense<0.000000e+00> : vector<4x32xf32>
    %457 = tpu.matmul %454, %456, %cst_650 {dimension_numbers = #tpu.dot_dimension_numbers<[1], [0], [0], [1], [0, 0, 1, 1], [], []>} : vector<4x64xbf16>, vector<64x32xbf16>, vector<4x32xf32> -> vector<4x32xf32>
    %458 = arith.addf %452, %457 : vector<4x32xf32>
    %c0_651 = arith.constant 0 : index
    %c0_652 = arith.constant 0 : index
    %459 = vector.load %arg3[%c0_651, %c0_652] : memref<1x32xf32, #tpu.memory_space<vmem>>, vector<1x32xf32>
    %460 = vector.broadcast %459 : vector<1x32xf32> to vector<4x32xf32>
    %461 = arith.addf %458, %460 : vector<4x32xf32>
    %cst_653 = arith.constant 0.000000e+00 : f32
    %462 = vector.broadcast %cst_653 : f32 to vector<4x32xf32>
    %463 = arith.maximumf %461, %462 : vector<4x32xf32>
    %464 = arith.truncf %463 : vector<4x32xf32> to vector<4x32xbf16>
    %cst_654 = arith.constant 0.000000e+00 : f32
    %465 = vector.broadcast %cst_654 : f32 to vector<4x32xf32>
    %c0_655 = arith.constant 0 : index
    %c1_656 = arith.constant 1 : index
    %c3_657 = arith.constant 3 : index
    %c1_658 = arith.constant 1 : index
    %c0_659 = arith.constant 0 : index
    %c0_660 = arith.constant 0 : index
    %466 = vector.load %arg1[%c0_655, %c1_656, %c3_657, %c1_658, %c0_659, %c0_660] : memref<1x2x5x2x5x64xbf16, #tpu.memory_space<vmem>>, vector<1x1x1x1x4x64xbf16>
    %467 = vector.shape_cast %466 : vector<1x1x1x1x4x64xbf16> to vector<4x64xbf16>
    %c0_661 = arith.constant 0 : index
    %c0_662 = arith.constant 0 : index
    %c0_663 = arith.constant 0 : index
    %468 = vector.load %arg2[%c0_661, %c0_662, %c0_663] : memref<4x64x32xbf16, #tpu.memory_space<vmem>>, vector<1x64x32xbf16>
    %469 = vector.shape_cast %468 : vector<1x64x32xbf16> to vector<64x32xbf16>
    %cst_664 = arith.constant dense<0.000000e+00> : vector<4x32xf32>
    %470 = tpu.matmul %467, %469, %cst_664 {dimension_numbers = #tpu.dot_dimension_numbers<[1], [0], [0], [1], [0, 0, 1, 1], [], []>} : vector<4x64xbf16>, vector<64x32xbf16>, vector<4x32xf32> -> vector<4x32xf32>
    %471 = arith.addf %465, %470 : vector<4x32xf32>
    %c0_665 = arith.constant 0 : index
    %c1_666 = arith.constant 1 : index
    %c3_667 = arith.constant 3 : index
    %c0_668 = arith.constant 0 : index
    %c1_669 = arith.constant 1 : index
    %c0_670 = arith.constant 0 : index
    %472 = vector.load %arg1[%c0_665, %c1_666, %c3_667, %c0_668, %c1_669, %c0_670] : memref<1x2x5x2x5x64xbf16, #tpu.memory_space<vmem>>, vector<1x1x1x1x4x64xbf16>
    %473 = vector.shape_cast %472 : vector<1x1x1x1x4x64xbf16> to vector<4x64xbf16>
    %c1_671 = arith.constant 1 : index
    %c0_672 = arith.constant 0 : index
    %c0_673 = arith.constant 0 : index
    %474 = vector.load %arg2[%c1_671, %c0_672, %c0_673] : memref<4x64x32xbf16, #tpu.memory_space<vmem>>, vector<1x64x32xbf16>
    %475 = vector.shape_cast %474 : vector<1x64x32xbf16> to vector<64x32xbf16>
    %cst_674 = arith.constant dense<0.000000e+00> : vector<4x32xf32>
    %476 = tpu.matmul %473, %475, %cst_674 {dimension_numbers = #tpu.dot_dimension_numbers<[1], [0], [0], [1], [0, 0, 1, 1], [], []>} : vector<4x64xbf16>, vector<64x32xbf16>, vector<4x32xf32> -> vector<4x32xf32>
    %477 = arith.addf %471, %476 : vector<4x32xf32>
    %c0_675 = arith.constant 0 : index
    %c0_676 = arith.constant 0 : index
    %c4_677 = arith.constant 4 : index
    %c1_678 = arith.constant 1 : index
    %c0_679 = arith.constant 0 : index
    %c0_680 = arith.constant 0 : index
    %478 = vector.load %arg1[%c0_675, %c0_676, %c4_677, %c1_678, %c0_679, %c0_680] : memref<1x2x5x2x5x64xbf16, #tpu.memory_space<vmem>>, vector<1x1x1x1x4x64xbf16>
    %479 = vector.shape_cast %478 : vector<1x1x1x1x4x64xbf16> to vector<4x64xbf16>
    %c2_681 = arith.constant 2 : index
    %c0_682 = arith.constant 0 : index
    %c0_683 = arith.constant 0 : index
    %480 = vector.load %arg2[%c2_681, %c0_682, %c0_683] : memref<4x64x32xbf16, #tpu.memory_space<vmem>>, vector<1x64x32xbf16>
    %481 = vector.shape_cast %480 : vector<1x64x32xbf16> to vector<64x32xbf16>
    %cst_684 = arith.constant dense<0.000000e+00> : vector<4x32xf32>
    %482 = tpu.matmul %479, %481, %cst_684 {dimension_numbers = #tpu.dot_dimension_numbers<[1], [0], [0], [1], [0, 0, 1, 1], [], []>} : vector<4x64xbf16>, vector<64x32xbf16>, vector<4x32xf32> -> vector<4x32xf32>
    %483 = arith.addf %477, %482 : vector<4x32xf32>
    %c0_685 = arith.constant 0 : index
    %c0_686 = arith.constant 0 : index
    %c4_687 = arith.constant 4 : index
    %c0_688 = arith.constant 0 : index
    %c1_689 = arith.constant 1 : index
    %c0_690 = arith.constant 0 : index
    %484 = vector.load %arg1[%c0_685, %c0_686, %c4_687, %c0_688, %c1_689, %c0_690] : memref<1x2x5x2x5x64xbf16, #tpu.memory_space<vmem>>, vector<1x1x1x1x4x64xbf16>
    %485 = vector.shape_cast %484 : vector<1x1x1x1x4x64xbf16> to vector<4x64xbf16>
    %c3_691 = arith.constant 3 : index
    %c0_692 = arith.constant 0 : index
    %c0_693 = arith.constant 0 : index
    %486 = vector.load %arg2[%c3_691, %c0_692, %c0_693] : memref<4x64x32xbf16, #tpu.memory_space<vmem>>, vector<1x64x32xbf16>
    %487 = vector.shape_cast %486 : vector<1x64x32xbf16> to vector<64x32xbf16>
    %cst_694 = arith.constant dense<0.000000e+00> : vector<4x32xf32>
    %488 = tpu.matmul %485, %487, %cst_694 {dimension_numbers = #tpu.dot_dimension_numbers<[1], [0], [0], [1], [0, 0, 1, 1], [], []>} : vector<4x64xbf16>, vector<64x32xbf16>, vector<4x32xf32> -> vector<4x32xf32>
    %489 = arith.addf %483, %488 : vector<4x32xf32>
    %c0_695 = arith.constant 0 : index
    %c0_696 = arith.constant 0 : index
    %490 = vector.load %arg3[%c0_695, %c0_696] : memref<1x32xf32, #tpu.memory_space<vmem>>, vector<1x32xf32>
    %491 = vector.broadcast %490 : vector<1x32xf32> to vector<4x32xf32>
    %492 = arith.addf %489, %491 : vector<4x32xf32>
    %cst_697 = arith.constant 0.000000e+00 : f32
    %493 = vector.broadcast %cst_697 : f32 to vector<4x32xf32>
    %494 = arith.maximumf %492, %493 : vector<4x32xf32>
    %495 = arith.truncf %494 : vector<4x32xf32> to vector<4x32xbf16>
    %cst_698 = arith.constant 0.000000e+00 : f32
    %496 = vector.broadcast %cst_698 : f32 to vector<3x64xf32>
    %497 = vector.extract_strided_slice %30 {offsets = [0, 0], sizes = [3, 32], strides = [1, 1]} : vector<4x32xbf16> to vector<3x32xbf16>
    %c0_699 = arith.constant 0 : index
    %c0_700 = arith.constant 0 : index
    %c0_701 = arith.constant 0 : index
    %498 = vector.load %arg4[%c0_699, %c0_700, %c0_701] : memref<16x32x64xbf16, #tpu.memory_space<vmem>>, vector<1x32x64xbf16>
    %499 = vector.shape_cast %498 : vector<1x32x64xbf16> to vector<32x64xbf16>
    %cst_702 = arith.constant dense<0.000000e+00> : vector<3x64xf32>
    %500 = tpu.matmul %497, %499, %cst_702 {dimension_numbers = #tpu.dot_dimension_numbers<[1], [0], [0], [1], [0, 0, 1, 1], [], []>} : vector<3x32xbf16>, vector<32x64xbf16>, vector<3x64xf32> -> vector<3x64xf32>
    %501 = arith.addf %496, %500 : vector<3x64xf32>
    %502 = vector.extract_strided_slice %154 {offsets = [0, 0], sizes = [3, 32], strides = [1, 1]} : vector<4x32xbf16> to vector<3x32xbf16>
    %c1_703 = arith.constant 1 : index
    %c0_704 = arith.constant 0 : index
    %c0_705 = arith.constant 0 : index
    %503 = vector.load %arg4[%c1_703, %c0_704, %c0_705] : memref<16x32x64xbf16, #tpu.memory_space<vmem>>, vector<1x32x64xbf16>
    %504 = vector.shape_cast %503 : vector<1x32x64xbf16> to vector<32x64xbf16>
    %cst_706 = arith.constant dense<0.000000e+00> : vector<3x64xf32>
    %505 = tpu.matmul %502, %504, %cst_706 {dimension_numbers = #tpu.dot_dimension_numbers<[1], [0], [0], [1], [0, 0, 1, 1], [], []>} : vector<3x32xbf16>, vector<32x64xbf16>, vector<3x64xf32> -> vector<3x64xf32>
    %506 = arith.addf %501, %505 : vector<3x64xf32>
    %507 = vector.extract_strided_slice %30 {offsets = [1, 0], sizes = [3, 32], strides = [1, 1]} : vector<4x32xbf16> to vector<3x32xbf16>
    %c2_707 = arith.constant 2 : index
    %c0_708 = arith.constant 0 : index
    %c0_709 = arith.constant 0 : index
    %508 = vector.load %arg4[%c2_707, %c0_708, %c0_709] : memref<16x32x64xbf16, #tpu.memory_space<vmem>>, vector<1x32x64xbf16>
    %509 = vector.shape_cast %508 : vector<1x32x64xbf16> to vector<32x64xbf16>
    %cst_710 = arith.constant dense<0.000000e+00> : vector<3x64xf32>
    %510 = tpu.matmul %507, %509, %cst_710 {dimension_numbers = #tpu.dot_dimension_numbers<[1], [0], [0], [1], [0, 0, 1, 1], [], []>} : vector<3x32xbf16>, vector<32x64xbf16>, vector<3x64xf32> -> vector<3x64xf32>
    %511 = arith.addf %506, %510 : vector<3x64xf32>
    %512 = vector.extract_strided_slice %154 {offsets = [1, 0], sizes = [3, 32], strides = [1, 1]} : vector<4x32xbf16> to vector<3x32xbf16>
    %c3_711 = arith.constant 3 : index
    %c0_712 = arith.constant 0 : index
    %c0_713 = arith.constant 0 : index
    %513 = vector.load %arg4[%c3_711, %c0_712, %c0_713] : memref<16x32x64xbf16, #tpu.memory_space<vmem>>, vector<1x32x64xbf16>
    %514 = vector.shape_cast %513 : vector<1x32x64xbf16> to vector<32x64xbf16>
    %cst_714 = arith.constant dense<0.000000e+00> : vector<3x64xf32>
    %515 = tpu.matmul %512, %514, %cst_714 {dimension_numbers = #tpu.dot_dimension_numbers<[1], [0], [0], [1], [0, 0, 1, 1], [], []>} : vector<3x32xbf16>, vector<32x64xbf16>, vector<3x64xf32> -> vector<3x64xf32>
    %516 = arith.addf %511, %515 : vector<3x64xf32>
    %517 = vector.extract_strided_slice %278 {offsets = [0, 0], sizes = [3, 32], strides = [1, 1]} : vector<4x32xbf16> to vector<3x32xbf16>
    %c4_715 = arith.constant 4 : index
    %c0_716 = arith.constant 0 : index
    %c0_717 = arith.constant 0 : index
    %518 = vector.load %arg4[%c4_715, %c0_716, %c0_717] : memref<16x32x64xbf16, #tpu.memory_space<vmem>>, vector<1x32x64xbf16>
    %519 = vector.shape_cast %518 : vector<1x32x64xbf16> to vector<32x64xbf16>
    %cst_718 = arith.constant dense<0.000000e+00> : vector<3x64xf32>
    %520 = tpu.matmul %517, %519, %cst_718 {dimension_numbers = #tpu.dot_dimension_numbers<[1], [0], [0], [1], [0, 0, 1, 1], [], []>} : vector<3x32xbf16>, vector<32x64xbf16>, vector<3x64xf32> -> vector<3x64xf32>
    %521 = arith.addf %516, %520 : vector<3x64xf32>
    %522 = vector.extract_strided_slice %402 {offsets = [0, 0], sizes = [3, 32], strides = [1, 1]} : vector<4x32xbf16> to vector<3x32xbf16>
    %c5 = arith.constant 5 : index
    %c0_719 = arith.constant 0 : index
    %c0_720 = arith.constant 0 : index
    %523 = vector.load %arg4[%c5, %c0_719, %c0_720] : memref<16x32x64xbf16, #tpu.memory_space<vmem>>, vector<1x32x64xbf16>
    %524 = vector.shape_cast %523 : vector<1x32x64xbf16> to vector<32x64xbf16>
    %cst_721 = arith.constant dense<0.000000e+00> : vector<3x64xf32>
    %525 = tpu.matmul %522, %524, %cst_721 {dimension_numbers = #tpu.dot_dimension_numbers<[1], [0], [0], [1], [0, 0, 1, 1], [], []>} : vector<3x32xbf16>, vector<32x64xbf16>, vector<3x64xf32> -> vector<3x64xf32>
    %526 = arith.addf %521, %525 : vector<3x64xf32>
    %527 = vector.extract_strided_slice %278 {offsets = [1, 0], sizes = [3, 32], strides = [1, 1]} : vector<4x32xbf16> to vector<3x32xbf16>
    %c6 = arith.constant 6 : index
    %c0_722 = arith.constant 0 : index
    %c0_723 = arith.constant 0 : index
    %528 = vector.load %arg4[%c6, %c0_722, %c0_723] : memref<16x32x64xbf16, #tpu.memory_space<vmem>>, vector<1x32x64xbf16>
    %529 = vector.shape_cast %528 : vector<1x32x64xbf16> to vector<32x64xbf16>
    %cst_724 = arith.constant dense<0.000000e+00> : vector<3x64xf32>
    %530 = tpu.matmul %527, %529, %cst_724 {dimension_numbers = #tpu.dot_dimension_numbers<[1], [0], [0], [1], [0, 0, 1, 1], [], []>} : vector<3x32xbf16>, vector<32x64xbf16>, vector<3x64xf32> -> vector<3x64xf32>
    %531 = arith.addf %526, %530 : vector<3x64xf32>
    %532 = vector.extract_strided_slice %402 {offsets = [1, 0], sizes = [3, 32], strides = [1, 1]} : vector<4x32xbf16> to vector<3x32xbf16>
    %c7 = arith.constant 7 : index
    %c0_725 = arith.constant 0 : index
    %c0_726 = arith.constant 0 : index
    %533 = vector.load %arg4[%c7, %c0_725, %c0_726] : memref<16x32x64xbf16, #tpu.memory_space<vmem>>, vector<1x32x64xbf16>
    %534 = vector.shape_cast %533 : vector<1x32x64xbf16> to vector<32x64xbf16>
    %cst_727 = arith.constant dense<0.000000e+00> : vector<3x64xf32>
    %535 = tpu.matmul %532, %534, %cst_727 {dimension_numbers = #tpu.dot_dimension_numbers<[1], [0], [0], [1], [0, 0, 1, 1], [], []>} : vector<3x32xbf16>, vector<32x64xbf16>, vector<3x64xf32> -> vector<3x64xf32>
    %536 = arith.addf %531, %535 : vector<3x64xf32>
    %537 = vector.extract_strided_slice %61 {offsets = [0, 0], sizes = [3, 32], strides = [1, 1]} : vector<4x32xbf16> to vector<3x32xbf16>
    %c8 = arith.constant 8 : index
    %c0_728 = arith.constant 0 : index
    %c0_729 = arith.constant 0 : index
    %538 = vector.load %arg4[%c8, %c0_728, %c0_729] : memref<16x32x64xbf16, #tpu.memory_space<vmem>>, vector<1x32x64xbf16>
    %539 = vector.shape_cast %538 : vector<1x32x64xbf16> to vector<32x64xbf16>
    %cst_730 = arith.constant dense<0.000000e+00> : vector<3x64xf32>
    %540 = tpu.matmul %537, %539, %cst_730 {dimension_numbers = #tpu.dot_dimension_numbers<[1], [0], [0], [1], [0, 0, 1, 1], [], []>} : vector<3x32xbf16>, vector<32x64xbf16>, vector<3x64xf32> -> vector<3x64xf32>
    %541 = arith.addf %536, %540 : vector<3x64xf32>
    %542 = vector.extract_strided_slice %185 {offsets = [0, 0], sizes = [3, 32], strides = [1, 1]} : vector<4x32xbf16> to vector<3x32xbf16>
    %c9 = arith.constant 9 : index
    %c0_731 = arith.constant 0 : index
    %c0_732 = arith.constant 0 : index
    %543 = vector.load %arg4[%c9, %c0_731, %c0_732] : memref<16x32x64xbf16, #tpu.memory_space<vmem>>, vector<1x32x64xbf16>
    %544 = vector.shape_cast %543 : vector<1x32x64xbf16> to vector<32x64xbf16>
    %cst_733 = arith.constant dense<0.000000e+00> : vector<3x64xf32>
    %545 = tpu.matmul %542, %544, %cst_733 {dimension_numbers = #tpu.dot_dimension_numbers<[1], [0], [0], [1], [0, 0, 1, 1], [], []>} : vector<3x32xbf16>, vector<32x64xbf16>, vector<3x64xf32> -> vector<3x64xf32>
    %546 = arith.addf %541, %545 : vector<3x64xf32>
    %547 = vector.extract_strided_slice %61 {offsets = [1, 0], sizes = [3, 32], strides = [1, 1]} : vector<4x32xbf16> to vector<3x32xbf16>
    %c10 = arith.constant 10 : index
    %c0_734 = arith.constant 0 : index
    %c0_735 = arith.constant 0 : index
    %548 = vector.load %arg4[%c10, %c0_734, %c0_735] : memref<16x32x64xbf16, #tpu.memory_space<vmem>>, vector<1x32x64xbf16>
    %549 = vector.shape_cast %548 : vector<1x32x64xbf16> to vector<32x64xbf16>
    %cst_736 = arith.constant dense<0.000000e+00> : vector<3x64xf32>
    %550 = tpu.matmul %547, %549, %cst_736 {dimension_numbers = #tpu.dot_dimension_numbers<[1], [0], [0], [1], [0, 0, 1, 1], [], []>} : vector<3x32xbf16>, vector<32x64xbf16>, vector<3x64xf32> -> vector<3x64xf32>
    %551 = arith.addf %546, %550 : vector<3x64xf32>
    %552 = vector.extract_strided_slice %185 {offsets = [1, 0], sizes = [3, 32], strides = [1, 1]} : vector<4x32xbf16> to vector<3x32xbf16>
    %c11 = arith.constant 11 : index
    %c0_737 = arith.constant 0 : index
    %c0_738 = arith.constant 0 : index
    %553 = vector.load %arg4[%c11, %c0_737, %c0_738] : memref<16x32x64xbf16, #tpu.memory_space<vmem>>, vector<1x32x64xbf16>
    %554 = vector.shape_cast %553 : vector<1x32x64xbf16> to vector<32x64xbf16>
    %cst_739 = arith.constant dense<0.000000e+00> : vector<3x64xf32>
    %555 = tpu.matmul %552, %554, %cst_739 {dimension_numbers = #tpu.dot_dimension_numbers<[1], [0], [0], [1], [0, 0, 1, 1], [], []>} : vector<3x32xbf16>, vector<32x64xbf16>, vector<3x64xf32> -> vector<3x64xf32>
    %556 = arith.addf %551, %555 : vector<3x64xf32>
    %557 = vector.extract_strided_slice %309 {offsets = [0, 0], sizes = [3, 32], strides = [1, 1]} : vector<4x32xbf16> to vector<3x32xbf16>
    %c12 = arith.constant 12 : index
    %c0_740 = arith.constant 0 : index
    %c0_741 = arith.constant 0 : index
    %558 = vector.load %arg4[%c12, %c0_740, %c0_741] : memref<16x32x64xbf16, #tpu.memory_space<vmem>>, vector<1x32x64xbf16>
    %559 = vector.shape_cast %558 : vector<1x32x64xbf16> to vector<32x64xbf16>
    %cst_742 = arith.constant dense<0.000000e+00> : vector<3x64xf32>
    %560 = tpu.matmul %557, %559, %cst_742 {dimension_numbers = #tpu.dot_dimension_numbers<[1], [0], [0], [1], [0, 0, 1, 1], [], []>} : vector<3x32xbf16>, vector<32x64xbf16>, vector<3x64xf32> -> vector<3x64xf32>
    %561 = arith.addf %556, %560 : vector<3x64xf32>
    %562 = vector.extract_strided_slice %433 {offsets = [0, 0], sizes = [3, 32], strides = [1, 1]} : vector<4x32xbf16> to vector<3x32xbf16>
    %c13 = arith.constant 13 : index
    %c0_743 = arith.constant 0 : index
    %c0_744 = arith.constant 0 : index
    %563 = vector.load %arg4[%c13, %c0_743, %c0_744] : memref<16x32x64xbf16, #tpu.memory_space<vmem>>, vector<1x32x64xbf16>
    %564 = vector.shape_cast %563 : vector<1x32x64xbf16> to vector<32x64xbf16>
    %cst_745 = arith.constant dense<0.000000e+00> : vector<3x64xf32>
    %565 = tpu.matmul %562, %564, %cst_745 {dimension_numbers = #tpu.dot_dimension_numbers<[1], [0], [0], [1], [0, 0, 1, 1], [], []>} : vector<3x32xbf16>, vector<32x64xbf16>, vector<3x64xf32> -> vector<3x64xf32>
    %566 = arith.addf %561, %565 : vector<3x64xf32>
    %567 = vector.extract_strided_slice %309 {offsets = [1, 0], sizes = [3, 32], strides = [1, 1]} : vector<4x32xbf16> to vector<3x32xbf16>
    %c14 = arith.constant 14 : index
    %c0_746 = arith.constant 0 : index
    %c0_747 = arith.constant 0 : index
    %568 = vector.load %arg4[%c14, %c0_746, %c0_747] : memref<16x32x64xbf16, #tpu.memory_space<vmem>>, vector<1x32x64xbf16>
    %569 = vector.shape_cast %568 : vector<1x32x64xbf16> to vector<32x64xbf16>
    %cst_748 = arith.constant dense<0.000000e+00> : vector<3x64xf32>
    %570 = tpu.matmul %567, %569, %cst_748 {dimension_numbers = #tpu.dot_dimension_numbers<[1], [0], [0], [1], [0, 0, 1, 1], [], []>} : vector<3x32xbf16>, vector<32x64xbf16>, vector<3x64xf32> -> vector<3x64xf32>
    %571 = arith.addf %566, %570 : vector<3x64xf32>
    %572 = vector.extract_strided_slice %433 {offsets = [1, 0], sizes = [3, 32], strides = [1, 1]} : vector<4x32xbf16> to vector<3x32xbf16>
    %c15 = arith.constant 15 : index
    %c0_749 = arith.constant 0 : index
    %c0_750 = arith.constant 0 : index
    %573 = vector.load %arg4[%c15, %c0_749, %c0_750] : memref<16x32x64xbf16, #tpu.memory_space<vmem>>, vector<1x32x64xbf16>
    %574 = vector.shape_cast %573 : vector<1x32x64xbf16> to vector<32x64xbf16>
    %cst_751 = arith.constant dense<0.000000e+00> : vector<3x64xf32>
    %575 = tpu.matmul %572, %574, %cst_751 {dimension_numbers = #tpu.dot_dimension_numbers<[1], [0], [0], [1], [0, 0, 1, 1], [], []>} : vector<3x32xbf16>, vector<32x64xbf16>, vector<3x64xf32> -> vector<3x64xf32>
    %576 = arith.addf %571, %575 : vector<3x64xf32>
    %c0_752 = arith.constant 0 : index
    %c0_753 = arith.constant 0 : index
    %577 = vector.load %arg5[%c0_752, %c0_753] : memref<1x64xf32, #tpu.memory_space<vmem>>, vector<1x64xf32>
    %578 = vector.broadcast %577 : vector<1x64xf32> to vector<3x64xf32>
    %579 = arith.addf %576, %578 : vector<3x64xf32>
    %cst_754 = arith.constant 0.000000e+00 : f32
    %580 = vector.broadcast %cst_754 : f32 to vector<3x64xf32>
    %581 = arith.maximumf %579, %580 : vector<3x64xf32>
    %582 = arith.truncf %581 : vector<3x64xf32> to vector<3x64xbf16>
    %cst_755 = arith.constant 0.000000e+00 : f32
    %583 = vector.broadcast %cst_755 : f32 to vector<3x64xf32>
    %584 = vector.extract_strided_slice %61 {offsets = [0, 0], sizes = [3, 32], strides = [1, 1]} : vector<4x32xbf16> to vector<3x32xbf16>
    %c0_756 = arith.constant 0 : index
    %c0_757 = arith.constant 0 : index
    %c0_758 = arith.constant 0 : index
    %585 = vector.load %arg4[%c0_756, %c0_757, %c0_758] : memref<16x32x64xbf16, #tpu.memory_space<vmem>>, vector<1x32x64xbf16>
    %586 = vector.shape_cast %585 : vector<1x32x64xbf16> to vector<32x64xbf16>
    %cst_759 = arith.constant dense<0.000000e+00> : vector<3x64xf32>
    %587 = tpu.matmul %584, %586, %cst_759 {dimension_numbers = #tpu.dot_dimension_numbers<[1], [0], [0], [1], [0, 0, 1, 1], [], []>} : vector<3x32xbf16>, vector<32x64xbf16>, vector<3x64xf32> -> vector<3x64xf32>
    %588 = arith.addf %583, %587 : vector<3x64xf32>
    %589 = vector.extract_strided_slice %185 {offsets = [0, 0], sizes = [3, 32], strides = [1, 1]} : vector<4x32xbf16> to vector<3x32xbf16>
    %c1_760 = arith.constant 1 : index
    %c0_761 = arith.constant 0 : index
    %c0_762 = arith.constant 0 : index
    %590 = vector.load %arg4[%c1_760, %c0_761, %c0_762] : memref<16x32x64xbf16, #tpu.memory_space<vmem>>, vector<1x32x64xbf16>
    %591 = vector.shape_cast %590 : vector<1x32x64xbf16> to vector<32x64xbf16>
    %cst_763 = arith.constant dense<0.000000e+00> : vector<3x64xf32>
    %592 = tpu.matmul %589, %591, %cst_763 {dimension_numbers = #tpu.dot_dimension_numbers<[1], [0], [0], [1], [0, 0, 1, 1], [], []>} : vector<3x32xbf16>, vector<32x64xbf16>, vector<3x64xf32> -> vector<3x64xf32>
    %593 = arith.addf %588, %592 : vector<3x64xf32>
    %594 = vector.extract_strided_slice %61 {offsets = [1, 0], sizes = [3, 32], strides = [1, 1]} : vector<4x32xbf16> to vector<3x32xbf16>
    %c2_764 = arith.constant 2 : index
    %c0_765 = arith.constant 0 : index
    %c0_766 = arith.constant 0 : index
    %595 = vector.load %arg4[%c2_764, %c0_765, %c0_766] : memref<16x32x64xbf16, #tpu.memory_space<vmem>>, vector<1x32x64xbf16>
    %596 = vector.shape_cast %595 : vector<1x32x64xbf16> to vector<32x64xbf16>
    %cst_767 = arith.constant dense<0.000000e+00> : vector<3x64xf32>
    %597 = tpu.matmul %594, %596, %cst_767 {dimension_numbers = #tpu.dot_dimension_numbers<[1], [0], [0], [1], [0, 0, 1, 1], [], []>} : vector<3x32xbf16>, vector<32x64xbf16>, vector<3x64xf32> -> vector<3x64xf32>
    %598 = arith.addf %593, %597 : vector<3x64xf32>
    %599 = vector.extract_strided_slice %185 {offsets = [1, 0], sizes = [3, 32], strides = [1, 1]} : vector<4x32xbf16> to vector<3x32xbf16>
    %c3_768 = arith.constant 3 : index
    %c0_769 = arith.constant 0 : index
    %c0_770 = arith.constant 0 : index
    %600 = vector.load %arg4[%c3_768, %c0_769, %c0_770] : memref<16x32x64xbf16, #tpu.memory_space<vmem>>, vector<1x32x64xbf16>
    %601 = vector.shape_cast %600 : vector<1x32x64xbf16> to vector<32x64xbf16>
    %cst_771 = arith.constant dense<0.000000e+00> : vector<3x64xf32>
    %602 = tpu.matmul %599, %601, %cst_771 {dimension_numbers = #tpu.dot_dimension_numbers<[1], [0], [0], [1], [0, 0, 1, 1], [], []>} : vector<3x32xbf16>, vector<32x64xbf16>, vector<3x64xf32> -> vector<3x64xf32>
    %603 = arith.addf %598, %602 : vector<3x64xf32>
    %604 = vector.extract_strided_slice %309 {offsets = [0, 0], sizes = [3, 32], strides = [1, 1]} : vector<4x32xbf16> to vector<3x32xbf16>
    %c4_772 = arith.constant 4 : index
    %c0_773 = arith.constant 0 : index
    %c0_774 = arith.constant 0 : index
    %605 = vector.load %arg4[%c4_772, %c0_773, %c0_774] : memref<16x32x64xbf16, #tpu.memory_space<vmem>>, vector<1x32x64xbf16>
    %606 = vector.shape_cast %605 : vector<1x32x64xbf16> to vector<32x64xbf16>
    %cst_775 = arith.constant dense<0.000000e+00> : vector<3x64xf32>
    %607 = tpu.matmul %604, %606, %cst_775 {dimension_numbers = #tpu.dot_dimension_numbers<[1], [0], [0], [1], [0, 0, 1, 1], [], []>} : vector<3x32xbf16>, vector<32x64xbf16>, vector<3x64xf32> -> vector<3x64xf32>
    %608 = arith.addf %603, %607 : vector<3x64xf32>
    %609 = vector.extract_strided_slice %433 {offsets = [0, 0], sizes = [3, 32], strides = [1, 1]} : vector<4x32xbf16> to vector<3x32xbf16>
    %c5_776 = arith.constant 5 : index
    %c0_777 = arith.constant 0 : index
    %c0_778 = arith.constant 0 : index
    %610 = vector.load %arg4[%c5_776, %c0_777, %c0_778] : memref<16x32x64xbf16, #tpu.memory_space<vmem>>, vector<1x32x64xbf16>
    %611 = vector.shape_cast %610 : vector<1x32x64xbf16> to vector<32x64xbf16>
    %cst_779 = arith.constant dense<0.000000e+00> : vector<3x64xf32>
    %612 = tpu.matmul %609, %611, %cst_779 {dimension_numbers = #tpu.dot_dimension_numbers<[1], [0], [0], [1], [0, 0, 1, 1], [], []>} : vector<3x32xbf16>, vector<32x64xbf16>, vector<3x64xf32> -> vector<3x64xf32>
    %613 = arith.addf %608, %612 : vector<3x64xf32>
    %614 = vector.extract_strided_slice %309 {offsets = [1, 0], sizes = [3, 32], strides = [1, 1]} : vector<4x32xbf16> to vector<3x32xbf16>
    %c6_780 = arith.constant 6 : index
    %c0_781 = arith.constant 0 : index
    %c0_782 = arith.constant 0 : index
    %615 = vector.load %arg4[%c6_780, %c0_781, %c0_782] : memref<16x32x64xbf16, #tpu.memory_space<vmem>>, vector<1x32x64xbf16>
    %616 = vector.shape_cast %615 : vector<1x32x64xbf16> to vector<32x64xbf16>
    %cst_783 = arith.constant dense<0.000000e+00> : vector<3x64xf32>
    %617 = tpu.matmul %614, %616, %cst_783 {dimension_numbers = #tpu.dot_dimension_numbers<[1], [0], [0], [1], [0, 0, 1, 1], [], []>} : vector<3x32xbf16>, vector<32x64xbf16>, vector<3x64xf32> -> vector<3x64xf32>
    %618 = arith.addf %613, %617 : vector<3x64xf32>
    %619 = vector.extract_strided_slice %433 {offsets = [1, 0], sizes = [3, 32], strides = [1, 1]} : vector<4x32xbf16> to vector<3x32xbf16>
    %c7_784 = arith.constant 7 : index
    %c0_785 = arith.constant 0 : index
    %c0_786 = arith.constant 0 : index
    %620 = vector.load %arg4[%c7_784, %c0_785, %c0_786] : memref<16x32x64xbf16, #tpu.memory_space<vmem>>, vector<1x32x64xbf16>
    %621 = vector.shape_cast %620 : vector<1x32x64xbf16> to vector<32x64xbf16>
    %cst_787 = arith.constant dense<0.000000e+00> : vector<3x64xf32>
    %622 = tpu.matmul %619, %621, %cst_787 {dimension_numbers = #tpu.dot_dimension_numbers<[1], [0], [0], [1], [0, 0, 1, 1], [], []>} : vector<3x32xbf16>, vector<32x64xbf16>, vector<3x64xf32> -> vector<3x64xf32>
    %623 = arith.addf %618, %622 : vector<3x64xf32>
    %624 = vector.extract_strided_slice %92 {offsets = [0, 0], sizes = [3, 32], strides = [1, 1]} : vector<4x32xbf16> to vector<3x32xbf16>
    %c8_788 = arith.constant 8 : index
    %c0_789 = arith.constant 0 : index
    %c0_790 = arith.constant 0 : index
    %625 = vector.load %arg4[%c8_788, %c0_789, %c0_790] : memref<16x32x64xbf16, #tpu.memory_space<vmem>>, vector<1x32x64xbf16>
    %626 = vector.shape_cast %625 : vector<1x32x64xbf16> to vector<32x64xbf16>
    %cst_791 = arith.constant dense<0.000000e+00> : vector<3x64xf32>
    %627 = tpu.matmul %624, %626, %cst_791 {dimension_numbers = #tpu.dot_dimension_numbers<[1], [0], [0], [1], [0, 0, 1, 1], [], []>} : vector<3x32xbf16>, vector<32x64xbf16>, vector<3x64xf32> -> vector<3x64xf32>
    %628 = arith.addf %623, %627 : vector<3x64xf32>
    %629 = vector.extract_strided_slice %216 {offsets = [0, 0], sizes = [3, 32], strides = [1, 1]} : vector<4x32xbf16> to vector<3x32xbf16>
    %c9_792 = arith.constant 9 : index
    %c0_793 = arith.constant 0 : index
    %c0_794 = arith.constant 0 : index
    %630 = vector.load %arg4[%c9_792, %c0_793, %c0_794] : memref<16x32x64xbf16, #tpu.memory_space<vmem>>, vector<1x32x64xbf16>
    %631 = vector.shape_cast %630 : vector<1x32x64xbf16> to vector<32x64xbf16>
    %cst_795 = arith.constant dense<0.000000e+00> : vector<3x64xf32>
    %632 = tpu.matmul %629, %631, %cst_795 {dimension_numbers = #tpu.dot_dimension_numbers<[1], [0], [0], [1], [0, 0, 1, 1], [], []>} : vector<3x32xbf16>, vector<32x64xbf16>, vector<3x64xf32> -> vector<3x64xf32>
    %633 = arith.addf %628, %632 : vector<3x64xf32>
    %634 = vector.extract_strided_slice %92 {offsets = [1, 0], sizes = [3, 32], strides = [1, 1]} : vector<4x32xbf16> to vector<3x32xbf16>
    %c10_796 = arith.constant 10 : index
    %c0_797 = arith.constant 0 : index
    %c0_798 = arith.constant 0 : index
    %635 = vector.load %arg4[%c10_796, %c0_797, %c0_798] : memref<16x32x64xbf16, #tpu.memory_space<vmem>>, vector<1x32x64xbf16>
    %636 = vector.shape_cast %635 : vector<1x32x64xbf16> to vector<32x64xbf16>
    %cst_799 = arith.constant dense<0.000000e+00> : vector<3x64xf32>
    %637 = tpu.matmul %634, %636, %cst_799 {dimension_numbers = #tpu.dot_dimension_numbers<[1], [0], [0], [1], [0, 0, 1, 1], [], []>} : vector<3x32xbf16>, vector<32x64xbf16>, vector<3x64xf32> -> vector<3x64xf32>
    %638 = arith.addf %633, %637 : vector<3x64xf32>
    %639 = vector.extract_strided_slice %216 {offsets = [1, 0], sizes = [3, 32], strides = [1, 1]} : vector<4x32xbf16> to vector<3x32xbf16>
    %c11_800 = arith.constant 11 : index
    %c0_801 = arith.constant 0 : index
    %c0_802 = arith.constant 0 : index
    %640 = vector.load %arg4[%c11_800, %c0_801, %c0_802] : memref<16x32x64xbf16, #tpu.memory_space<vmem>>, vector<1x32x64xbf16>
    %641 = vector.shape_cast %640 : vector<1x32x64xbf16> to vector<32x64xbf16>
    %cst_803 = arith.constant dense<0.000000e+00> : vector<3x64xf32>
    %642 = tpu.matmul %639, %641, %cst_803 {dimension_numbers = #tpu.dot_dimension_numbers<[1], [0], [0], [1], [0, 0, 1, 1], [], []>} : vector<3x32xbf16>, vector<32x64xbf16>, vector<3x64xf32> -> vector<3x64xf32>
    %643 = arith.addf %638, %642 : vector<3x64xf32>
    %644 = vector.extract_strided_slice %340 {offsets = [0, 0], sizes = [3, 32], strides = [1, 1]} : vector<4x32xbf16> to vector<3x32xbf16>
    %c12_804 = arith.constant 12 : index
    %c0_805 = arith.constant 0 : index
    %c0_806 = arith.constant 0 : index
    %645 = vector.load %arg4[%c12_804, %c0_805, %c0_806] : memref<16x32x64xbf16, #tpu.memory_space<vmem>>, vector<1x32x64xbf16>
    %646 = vector.shape_cast %645 : vector<1x32x64xbf16> to vector<32x64xbf16>
    %cst_807 = arith.constant dense<0.000000e+00> : vector<3x64xf32>
    %647 = tpu.matmul %644, %646, %cst_807 {dimension_numbers = #tpu.dot_dimension_numbers<[1], [0], [0], [1], [0, 0, 1, 1], [], []>} : vector<3x32xbf16>, vector<32x64xbf16>, vector<3x64xf32> -> vector<3x64xf32>
    %648 = arith.addf %643, %647 : vector<3x64xf32>
    %649 = vector.extract_strided_slice %464 {offsets = [0, 0], sizes = [3, 32], strides = [1, 1]} : vector<4x32xbf16> to vector<3x32xbf16>
    %c13_808 = arith.constant 13 : index
    %c0_809 = arith.constant 0 : index
    %c0_810 = arith.constant 0 : index
    %650 = vector.load %arg4[%c13_808, %c0_809, %c0_810] : memref<16x32x64xbf16, #tpu.memory_space<vmem>>, vector<1x32x64xbf16>
    %651 = vector.shape_cast %650 : vector<1x32x64xbf16> to vector<32x64xbf16>
    %cst_811 = arith.constant dense<0.000000e+00> : vector<3x64xf32>
    %652 = tpu.matmul %649, %651, %cst_811 {dimension_numbers = #tpu.dot_dimension_numbers<[1], [0], [0], [1], [0, 0, 1, 1], [], []>} : vector<3x32xbf16>, vector<32x64xbf16>, vector<3x64xf32> -> vector<3x64xf32>
    %653 = arith.addf %648, %652 : vector<3x64xf32>
    %654 = vector.extract_strided_slice %340 {offsets = [1, 0], sizes = [3, 32], strides = [1, 1]} : vector<4x32xbf16> to vector<3x32xbf16>
    %c14_812 = arith.constant 14 : index
    %c0_813 = arith.constant 0 : index
    %c0_814 = arith.constant 0 : index
    %655 = vector.load %arg4[%c14_812, %c0_813, %c0_814] : memref<16x32x64xbf16, #tpu.memory_space<vmem>>, vector<1x32x64xbf16>
    %656 = vector.shape_cast %655 : vector<1x32x64xbf16> to vector<32x64xbf16>
    %cst_815 = arith.constant dense<0.000000e+00> : vector<3x64xf32>
    %657 = tpu.matmul %654, %656, %cst_815 {dimension_numbers = #tpu.dot_dimension_numbers<[1], [0], [0], [1], [0, 0, 1, 1], [], []>} : vector<3x32xbf16>, vector<32x64xbf16>, vector<3x64xf32> -> vector<3x64xf32>
    %658 = arith.addf %653, %657 : vector<3x64xf32>
    %659 = vector.extract_strided_slice %464 {offsets = [1, 0], sizes = [3, 32], strides = [1, 1]} : vector<4x32xbf16> to vector<3x32xbf16>
    %c15_816 = arith.constant 15 : index
    %c0_817 = arith.constant 0 : index
    %c0_818 = arith.constant 0 : index
    %660 = vector.load %arg4[%c15_816, %c0_817, %c0_818] : memref<16x32x64xbf16, #tpu.memory_space<vmem>>, vector<1x32x64xbf16>
    %661 = vector.shape_cast %660 : vector<1x32x64xbf16> to vector<32x64xbf16>
    %cst_819 = arith.constant dense<0.000000e+00> : vector<3x64xf32>
    %662 = tpu.matmul %659, %661, %cst_819 {dimension_numbers = #tpu.dot_dimension_numbers<[1], [0], [0], [1], [0, 0, 1, 1], [], []>} : vector<3x32xbf16>, vector<32x64xbf16>, vector<3x64xf32> -> vector<3x64xf32>
    %663 = arith.addf %658, %662 : vector<3x64xf32>
    %c0_820 = arith.constant 0 : index
    %c0_821 = arith.constant 0 : index
    %664 = vector.load %arg5[%c0_820, %c0_821] : memref<1x64xf32, #tpu.memory_space<vmem>>, vector<1x64xf32>
    %665 = vector.broadcast %664 : vector<1x64xf32> to vector<3x64xf32>
    %666 = arith.addf %663, %665 : vector<3x64xf32>
    %cst_822 = arith.constant 0.000000e+00 : f32
    %667 = vector.broadcast %cst_822 : f32 to vector<3x64xf32>
    %668 = arith.maximumf %666, %667 : vector<3x64xf32>
    %669 = arith.truncf %668 : vector<3x64xf32> to vector<3x64xbf16>
    %cst_823 = arith.constant 0.000000e+00 : f32
    %670 = vector.broadcast %cst_823 : f32 to vector<3x64xf32>
    %671 = vector.extract_strided_slice %92 {offsets = [0, 0], sizes = [3, 32], strides = [1, 1]} : vector<4x32xbf16> to vector<3x32xbf16>
    %c0_824 = arith.constant 0 : index
    %c0_825 = arith.constant 0 : index
    %c0_826 = arith.constant 0 : index
    %672 = vector.load %arg4[%c0_824, %c0_825, %c0_826] : memref<16x32x64xbf16, #tpu.memory_space<vmem>>, vector<1x32x64xbf16>
    %673 = vector.shape_cast %672 : vector<1x32x64xbf16> to vector<32x64xbf16>
    %cst_827 = arith.constant dense<0.000000e+00> : vector<3x64xf32>
    %674 = tpu.matmul %671, %673, %cst_827 {dimension_numbers = #tpu.dot_dimension_numbers<[1], [0], [0], [1], [0, 0, 1, 1], [], []>} : vector<3x32xbf16>, vector<32x64xbf16>, vector<3x64xf32> -> vector<3x64xf32>
    %675 = arith.addf %670, %674 : vector<3x64xf32>
    %676 = vector.extract_strided_slice %216 {offsets = [0, 0], sizes = [3, 32], strides = [1, 1]} : vector<4x32xbf16> to vector<3x32xbf16>
    %c1_828 = arith.constant 1 : index
    %c0_829 = arith.constant 0 : index
    %c0_830 = arith.constant 0 : index
    %677 = vector.load %arg4[%c1_828, %c0_829, %c0_830] : memref<16x32x64xbf16, #tpu.memory_space<vmem>>, vector<1x32x64xbf16>
    %678 = vector.shape_cast %677 : vector<1x32x64xbf16> to vector<32x64xbf16>
    %cst_831 = arith.constant dense<0.000000e+00> : vector<3x64xf32>
    %679 = tpu.matmul %676, %678, %cst_831 {dimension_numbers = #tpu.dot_dimension_numbers<[1], [0], [0], [1], [0, 0, 1, 1], [], []>} : vector<3x32xbf16>, vector<32x64xbf16>, vector<3x64xf32> -> vector<3x64xf32>
    %680 = arith.addf %675, %679 : vector<3x64xf32>
    %681 = vector.extract_strided_slice %92 {offsets = [1, 0], sizes = [3, 32], strides = [1, 1]} : vector<4x32xbf16> to vector<3x32xbf16>
    %c2_832 = arith.constant 2 : index
    %c0_833 = arith.constant 0 : index
    %c0_834 = arith.constant 0 : index
    %682 = vector.load %arg4[%c2_832, %c0_833, %c0_834] : memref<16x32x64xbf16, #tpu.memory_space<vmem>>, vector<1x32x64xbf16>
    %683 = vector.shape_cast %682 : vector<1x32x64xbf16> to vector<32x64xbf16>
    %cst_835 = arith.constant dense<0.000000e+00> : vector<3x64xf32>
    %684 = tpu.matmul %681, %683, %cst_835 {dimension_numbers = #tpu.dot_dimension_numbers<[1], [0], [0], [1], [0, 0, 1, 1], [], []>} : vector<3x32xbf16>, vector<32x64xbf16>, vector<3x64xf32> -> vector<3x64xf32>
    %685 = arith.addf %680, %684 : vector<3x64xf32>
    %686 = vector.extract_strided_slice %216 {offsets = [1, 0], sizes = [3, 32], strides = [1, 1]} : vector<4x32xbf16> to vector<3x32xbf16>
    %c3_836 = arith.constant 3 : index
    %c0_837 = arith.constant 0 : index
    %c0_838 = arith.constant 0 : index
    %687 = vector.load %arg4[%c3_836, %c0_837, %c0_838] : memref<16x32x64xbf16, #tpu.memory_space<vmem>>, vector<1x32x64xbf16>
    %688 = vector.shape_cast %687 : vector<1x32x64xbf16> to vector<32x64xbf16>
    %cst_839 = arith.constant dense<0.000000e+00> : vector<3x64xf32>
    %689 = tpu.matmul %686, %688, %cst_839 {dimension_numbers = #tpu.dot_dimension_numbers<[1], [0], [0], [1], [0, 0, 1, 1], [], []>} : vector<3x32xbf16>, vector<32x64xbf16>, vector<3x64xf32> -> vector<3x64xf32>
    %690 = arith.addf %685, %689 : vector<3x64xf32>
    %691 = vector.extract_strided_slice %340 {offsets = [0, 0], sizes = [3, 32], strides = [1, 1]} : vector<4x32xbf16> to vector<3x32xbf16>
    %c4_840 = arith.constant 4 : index
    %c0_841 = arith.constant 0 : index
    %c0_842 = arith.constant 0 : index
    %692 = vector.load %arg4[%c4_840, %c0_841, %c0_842] : memref<16x32x64xbf16, #tpu.memory_space<vmem>>, vector<1x32x64xbf16>
    %693 = vector.shape_cast %692 : vector<1x32x64xbf16> to vector<32x64xbf16>
    %cst_843 = arith.constant dense<0.000000e+00> : vector<3x64xf32>
    %694 = tpu.matmul %691, %693, %cst_843 {dimension_numbers = #tpu.dot_dimension_numbers<[1], [0], [0], [1], [0, 0, 1, 1], [], []>} : vector<3x32xbf16>, vector<32x64xbf16>, vector<3x64xf32> -> vector<3x64xf32>
    %695 = arith.addf %690, %694 : vector<3x64xf32>
    %696 = vector.extract_strided_slice %464 {offsets = [0, 0], sizes = [3, 32], strides = [1, 1]} : vector<4x32xbf16> to vector<3x32xbf16>
    %c5_844 = arith.constant 5 : index
    %c0_845 = arith.constant 0 : index
    %c0_846 = arith.constant 0 : index
    %697 = vector.load %arg4[%c5_844, %c0_845, %c0_846] : memref<16x32x64xbf16, #tpu.memory_space<vmem>>, vector<1x32x64xbf16>
    %698 = vector.shape_cast %697 : vector<1x32x64xbf16> to vector<32x64xbf16>
    %cst_847 = arith.constant dense<0.000000e+00> : vector<3x64xf32>
    %699 = tpu.matmul %696, %698, %cst_847 {dimension_numbers = #tpu.dot_dimension_numbers<[1], [0], [0], [1], [0, 0, 1, 1], [], []>} : vector<3x32xbf16>, vector<32x64xbf16>, vector<3x64xf32> -> vector<3x64xf32>
    %700 = arith.addf %695, %699 : vector<3x64xf32>
    %701 = vector.extract_strided_slice %340 {offsets = [1, 0], sizes = [3, 32], strides = [1, 1]} : vector<4x32xbf16> to vector<3x32xbf16>
    %c6_848 = arith.constant 6 : index
    %c0_849 = arith.constant 0 : index
    %c0_850 = arith.constant 0 : index
    %702 = vector.load %arg4[%c6_848, %c0_849, %c0_850] : memref<16x32x64xbf16, #tpu.memory_space<vmem>>, vector<1x32x64xbf16>
    %703 = vector.shape_cast %702 : vector<1x32x64xbf16> to vector<32x64xbf16>
    %cst_851 = arith.constant dense<0.000000e+00> : vector<3x64xf32>
    %704 = tpu.matmul %701, %703, %cst_851 {dimension_numbers = #tpu.dot_dimension_numbers<[1], [0], [0], [1], [0, 0, 1, 1], [], []>} : vector<3x32xbf16>, vector<32x64xbf16>, vector<3x64xf32> -> vector<3x64xf32>
    %705 = arith.addf %700, %704 : vector<3x64xf32>
    %706 = vector.extract_strided_slice %464 {offsets = [1, 0], sizes = [3, 32], strides = [1, 1]} : vector<4x32xbf16> to vector<3x32xbf16>
    %c7_852 = arith.constant 7 : index
    %c0_853 = arith.constant 0 : index
    %c0_854 = arith.constant 0 : index
    %707 = vector.load %arg4[%c7_852, %c0_853, %c0_854] : memref<16x32x64xbf16, #tpu.memory_space<vmem>>, vector<1x32x64xbf16>
    %708 = vector.shape_cast %707 : vector<1x32x64xbf16> to vector<32x64xbf16>
    %cst_855 = arith.constant dense<0.000000e+00> : vector<3x64xf32>
    %709 = tpu.matmul %706, %708, %cst_855 {dimension_numbers = #tpu.dot_dimension_numbers<[1], [0], [0], [1], [0, 0, 1, 1], [], []>} : vector<3x32xbf16>, vector<32x64xbf16>, vector<3x64xf32> -> vector<3x64xf32>
    %710 = arith.addf %705, %709 : vector<3x64xf32>
    %711 = vector.extract_strided_slice %123 {offsets = [0, 0], sizes = [3, 32], strides = [1, 1]} : vector<4x32xbf16> to vector<3x32xbf16>
    %c8_856 = arith.constant 8 : index
    %c0_857 = arith.constant 0 : index
    %c0_858 = arith.constant 0 : index
    %712 = vector.load %arg4[%c8_856, %c0_857, %c0_858] : memref<16x32x64xbf16, #tpu.memory_space<vmem>>, vector<1x32x64xbf16>
    %713 = vector.shape_cast %712 : vector<1x32x64xbf16> to vector<32x64xbf16>
    %cst_859 = arith.constant dense<0.000000e+00> : vector<3x64xf32>
    %714 = tpu.matmul %711, %713, %cst_859 {dimension_numbers = #tpu.dot_dimension_numbers<[1], [0], [0], [1], [0, 0, 1, 1], [], []>} : vector<3x32xbf16>, vector<32x64xbf16>, vector<3x64xf32> -> vector<3x64xf32>
    %715 = arith.addf %710, %714 : vector<3x64xf32>
    %716 = vector.extract_strided_slice %247 {offsets = [0, 0], sizes = [3, 32], strides = [1, 1]} : vector<4x32xbf16> to vector<3x32xbf16>
    %c9_860 = arith.constant 9 : index
    %c0_861 = arith.constant 0 : index
    %c0_862 = arith.constant 0 : index
    %717 = vector.load %arg4[%c9_860, %c0_861, %c0_862] : memref<16x32x64xbf16, #tpu.memory_space<vmem>>, vector<1x32x64xbf16>
    %718 = vector.shape_cast %717 : vector<1x32x64xbf16> to vector<32x64xbf16>
    %cst_863 = arith.constant dense<0.000000e+00> : vector<3x64xf32>
    %719 = tpu.matmul %716, %718, %cst_863 {dimension_numbers = #tpu.dot_dimension_numbers<[1], [0], [0], [1], [0, 0, 1, 1], [], []>} : vector<3x32xbf16>, vector<32x64xbf16>, vector<3x64xf32> -> vector<3x64xf32>
    %720 = arith.addf %715, %719 : vector<3x64xf32>
    %721 = vector.extract_strided_slice %123 {offsets = [1, 0], sizes = [3, 32], strides = [1, 1]} : vector<4x32xbf16> to vector<3x32xbf16>
    %c10_864 = arith.constant 10 : index
    %c0_865 = arith.constant 0 : index
    %c0_866 = arith.constant 0 : index
    %722 = vector.load %arg4[%c10_864, %c0_865, %c0_866] : memref<16x32x64xbf16, #tpu.memory_space<vmem>>, vector<1x32x64xbf16>
    %723 = vector.shape_cast %722 : vector<1x32x64xbf16> to vector<32x64xbf16>
    %cst_867 = arith.constant dense<0.000000e+00> : vector<3x64xf32>
    %724 = tpu.matmul %721, %723, %cst_867 {dimension_numbers = #tpu.dot_dimension_numbers<[1], [0], [0], [1], [0, 0, 1, 1], [], []>} : vector<3x32xbf16>, vector<32x64xbf16>, vector<3x64xf32> -> vector<3x64xf32>
    %725 = arith.addf %720, %724 : vector<3x64xf32>
    %726 = vector.extract_strided_slice %247 {offsets = [1, 0], sizes = [3, 32], strides = [1, 1]} : vector<4x32xbf16> to vector<3x32xbf16>
    %c11_868 = arith.constant 11 : index
    %c0_869 = arith.constant 0 : index
    %c0_870 = arith.constant 0 : index
    %727 = vector.load %arg4[%c11_868, %c0_869, %c0_870] : memref<16x32x64xbf16, #tpu.memory_space<vmem>>, vector<1x32x64xbf16>
    %728 = vector.shape_cast %727 : vector<1x32x64xbf16> to vector<32x64xbf16>
    %cst_871 = arith.constant dense<0.000000e+00> : vector<3x64xf32>
    %729 = tpu.matmul %726, %728, %cst_871 {dimension_numbers = #tpu.dot_dimension_numbers<[1], [0], [0], [1], [0, 0, 1, 1], [], []>} : vector<3x32xbf16>, vector<32x64xbf16>, vector<3x64xf32> -> vector<3x64xf32>
    %730 = arith.addf %725, %729 : vector<3x64xf32>
    %731 = vector.extract_strided_slice %371 {offsets = [0, 0], sizes = [3, 32], strides = [1, 1]} : vector<4x32xbf16> to vector<3x32xbf16>
    %c12_872 = arith.constant 12 : index
    %c0_873 = arith.constant 0 : index
    %c0_874 = arith.constant 0 : index
    %732 = vector.load %arg4[%c12_872, %c0_873, %c0_874] : memref<16x32x64xbf16, #tpu.memory_space<vmem>>, vector<1x32x64xbf16>
    %733 = vector.shape_cast %732 : vector<1x32x64xbf16> to vector<32x64xbf16>
    %cst_875 = arith.constant dense<0.000000e+00> : vector<3x64xf32>
    %734 = tpu.matmul %731, %733, %cst_875 {dimension_numbers = #tpu.dot_dimension_numbers<[1], [0], [0], [1], [0, 0, 1, 1], [], []>} : vector<3x32xbf16>, vector<32x64xbf16>, vector<3x64xf32> -> vector<3x64xf32>
    %735 = arith.addf %730, %734 : vector<3x64xf32>
    %736 = vector.extract_strided_slice %495 {offsets = [0, 0], sizes = [3, 32], strides = [1, 1]} : vector<4x32xbf16> to vector<3x32xbf16>
    %c13_876 = arith.constant 13 : index
    %c0_877 = arith.constant 0 : index
    %c0_878 = arith.constant 0 : index
    %737 = vector.load %arg4[%c13_876, %c0_877, %c0_878] : memref<16x32x64xbf16, #tpu.memory_space<vmem>>, vector<1x32x64xbf16>
    %738 = vector.shape_cast %737 : vector<1x32x64xbf16> to vector<32x64xbf16>
    %cst_879 = arith.constant dense<0.000000e+00> : vector<3x64xf32>
    %739 = tpu.matmul %736, %738, %cst_879 {dimension_numbers = #tpu.dot_dimension_numbers<[1], [0], [0], [1], [0, 0, 1, 1], [], []>} : vector<3x32xbf16>, vector<32x64xbf16>, vector<3x64xf32> -> vector<3x64xf32>
    %740 = arith.addf %735, %739 : vector<3x64xf32>
    %741 = vector.extract_strided_slice %371 {offsets = [1, 0], sizes = [3, 32], strides = [1, 1]} : vector<4x32xbf16> to vector<3x32xbf16>
    %c14_880 = arith.constant 14 : index
    %c0_881 = arith.constant 0 : index
    %c0_882 = arith.constant 0 : index
    %742 = vector.load %arg4[%c14_880, %c0_881, %c0_882] : memref<16x32x64xbf16, #tpu.memory_space<vmem>>, vector<1x32x64xbf16>
    %743 = vector.shape_cast %742 : vector<1x32x64xbf16> to vector<32x64xbf16>
    %cst_883 = arith.constant dense<0.000000e+00> : vector<3x64xf32>
    %744 = tpu.matmul %741, %743, %cst_883 {dimension_numbers = #tpu.dot_dimension_numbers<[1], [0], [0], [1], [0, 0, 1, 1], [], []>} : vector<3x32xbf16>, vector<32x64xbf16>, vector<3x64xf32> -> vector<3x64xf32>
    %745 = arith.addf %740, %744 : vector<3x64xf32>
    %746 = vector.extract_strided_slice %495 {offsets = [1, 0], sizes = [3, 32], strides = [1, 1]} : vector<4x32xbf16> to vector<3x32xbf16>
    %c15_884 = arith.constant 15 : index
    %c0_885 = arith.constant 0 : index
    %c0_886 = arith.constant 0 : index
    %747 = vector.load %arg4[%c15_884, %c0_885, %c0_886] : memref<16x32x64xbf16, #tpu.memory_space<vmem>>, vector<1x32x64xbf16>
    %748 = vector.shape_cast %747 : vector<1x32x64xbf16> to vector<32x64xbf16>
    %cst_887 = arith.constant dense<0.000000e+00> : vector<3x64xf32>
    %749 = tpu.matmul %746, %748, %cst_887 {dimension_numbers = #tpu.dot_dimension_numbers<[1], [0], [0], [1], [0, 0, 1, 1], [], []>} : vector<3x32xbf16>, vector<32x64xbf16>, vector<3x64xf32> -> vector<3x64xf32>
    %750 = arith.addf %745, %749 : vector<3x64xf32>
    %c0_888 = arith.constant 0 : index
    %c0_889 = arith.constant 0 : index
    %751 = vector.load %arg5[%c0_888, %c0_889] : memref<1x64xf32, #tpu.memory_space<vmem>>, vector<1x64xf32>
    %752 = vector.broadcast %751 : vector<1x64xf32> to vector<3x64xf32>
    %753 = arith.addf %750, %752 : vector<3x64xf32>
    %cst_890 = arith.constant 0.000000e+00 : f32
    %754 = vector.broadcast %cst_890 : f32 to vector<3x64xf32>
    %755 = arith.maximumf %753, %754 : vector<3x64xf32>
    %756 = arith.truncf %755 : vector<3x64xf32> to vector<3x64xbf16>
    %cst_891 = arith.constant 0.000000e+00 : f32
    %757 = vector.broadcast %cst_891 : f32 to vector<1x64xf32>
    %758 = vector.extract_strided_slice %582 {offsets = [0, 0], sizes = [1, 64], strides = [1, 1]} : vector<3x64xbf16> to vector<1x64xbf16>
    %c0_892 = arith.constant 0 : index
    %c0_893 = arith.constant 0 : index
    %c0_894 = arith.constant 0 : index
    %759 = vector.load %arg6[%c0_892, %c0_893, %c0_894] : memref<9x64x64xbf16, #tpu.memory_space<vmem>>, vector<1x64x64xbf16>
    %760 = vector.shape_cast %759 : vector<1x64x64xbf16> to vector<64x64xbf16>
    %cst_895 = arith.constant dense<0.000000e+00> : vector<1x64xf32>
    %761 = tpu.matmul %758, %760, %cst_895 {dimension_numbers = #tpu.dot_dimension_numbers<[1], [0], [0], [1], [0, 0, 1, 1], [], []>} : vector<1x64xbf16>, vector<64x64xbf16>, vector<1x64xf32> -> vector<1x64xf32>
    %762 = arith.addf %757, %761 : vector<1x64xf32>
    %763 = vector.extract_strided_slice %582 {offsets = [1, 0], sizes = [1, 64], strides = [1, 1]} : vector<3x64xbf16> to vector<1x64xbf16>
    %c1_896 = arith.constant 1 : index
    %c0_897 = arith.constant 0 : index
    %c0_898 = arith.constant 0 : index
    %764 = vector.load %arg6[%c1_896, %c0_897, %c0_898] : memref<9x64x64xbf16, #tpu.memory_space<vmem>>, vector<1x64x64xbf16>
    %765 = vector.shape_cast %764 : vector<1x64x64xbf16> to vector<64x64xbf16>
    %cst_899 = arith.constant dense<0.000000e+00> : vector<1x64xf32>
    %766 = tpu.matmul %763, %765, %cst_899 {dimension_numbers = #tpu.dot_dimension_numbers<[1], [0], [0], [1], [0, 0, 1, 1], [], []>} : vector<1x64xbf16>, vector<64x64xbf16>, vector<1x64xf32> -> vector<1x64xf32>
    %767 = arith.addf %762, %766 : vector<1x64xf32>
    %768 = vector.extract_strided_slice %582 {offsets = [2, 0], sizes = [1, 64], strides = [1, 1]} : vector<3x64xbf16> to vector<1x64xbf16>
    %c2_900 = arith.constant 2 : index
    %c0_901 = arith.constant 0 : index
    %c0_902 = arith.constant 0 : index
    %769 = vector.load %arg6[%c2_900, %c0_901, %c0_902] : memref<9x64x64xbf16, #tpu.memory_space<vmem>>, vector<1x64x64xbf16>
    %770 = vector.shape_cast %769 : vector<1x64x64xbf16> to vector<64x64xbf16>
    %cst_903 = arith.constant dense<0.000000e+00> : vector<1x64xf32>
    %771 = tpu.matmul %768, %770, %cst_903 {dimension_numbers = #tpu.dot_dimension_numbers<[1], [0], [0], [1], [0, 0, 1, 1], [], []>} : vector<1x64xbf16>, vector<64x64xbf16>, vector<1x64xf32> -> vector<1x64xf32>
    %772 = arith.addf %767, %771 : vector<1x64xf32>
    %773 = vector.extract_strided_slice %669 {offsets = [0, 0], sizes = [1, 64], strides = [1, 1]} : vector<3x64xbf16> to vector<1x64xbf16>
    %c3_904 = arith.constant 3 : index
    %c0_905 = arith.constant 0 : index
    %c0_906 = arith.constant 0 : index
    %774 = vector.load %arg6[%c3_904, %c0_905, %c0_906] : memref<9x64x64xbf16, #tpu.memory_space<vmem>>, vector<1x64x64xbf16>
    %775 = vector.shape_cast %774 : vector<1x64x64xbf16> to vector<64x64xbf16>
    %cst_907 = arith.constant dense<0.000000e+00> : vector<1x64xf32>
    %776 = tpu.matmul %773, %775, %cst_907 {dimension_numbers = #tpu.dot_dimension_numbers<[1], [0], [0], [1], [0, 0, 1, 1], [], []>} : vector<1x64xbf16>, vector<64x64xbf16>, vector<1x64xf32> -> vector<1x64xf32>
    %777 = arith.addf %772, %776 : vector<1x64xf32>
    %778 = vector.extract_strided_slice %669 {offsets = [1, 0], sizes = [1, 64], strides = [1, 1]} : vector<3x64xbf16> to vector<1x64xbf16>
    %c4_908 = arith.constant 4 : index
    %c0_909 = arith.constant 0 : index
    %c0_910 = arith.constant 0 : index
    %779 = vector.load %arg6[%c4_908, %c0_909, %c0_910] : memref<9x64x64xbf16, #tpu.memory_space<vmem>>, vector<1x64x64xbf16>
    %780 = vector.shape_cast %779 : vector<1x64x64xbf16> to vector<64x64xbf16>
    %cst_911 = arith.constant dense<0.000000e+00> : vector<1x64xf32>
    %781 = tpu.matmul %778, %780, %cst_911 {dimension_numbers = #tpu.dot_dimension_numbers<[1], [0], [0], [1], [0, 0, 1, 1], [], []>} : vector<1x64xbf16>, vector<64x64xbf16>, vector<1x64xf32> -> vector<1x64xf32>
    %782 = arith.addf %777, %781 : vector<1x64xf32>
    %783 = vector.extract_strided_slice %669 {offsets = [2, 0], sizes = [1, 64], strides = [1, 1]} : vector<3x64xbf16> to vector<1x64xbf16>
    %c5_912 = arith.constant 5 : index
    %c0_913 = arith.constant 0 : index
    %c0_914 = arith.constant 0 : index
    %784 = vector.load %arg6[%c5_912, %c0_913, %c0_914] : memref<9x64x64xbf16, #tpu.memory_space<vmem>>, vector<1x64x64xbf16>
    %785 = vector.shape_cast %784 : vector<1x64x64xbf16> to vector<64x64xbf16>
    %cst_915 = arith.constant dense<0.000000e+00> : vector<1x64xf32>
    %786 = tpu.matmul %783, %785, %cst_915 {dimension_numbers = #tpu.dot_dimension_numbers<[1], [0], [0], [1], [0, 0, 1, 1], [], []>} : vector<1x64xbf16>, vector<64x64xbf16>, vector<1x64xf32> -> vector<1x64xf32>
    %787 = arith.addf %782, %786 : vector<1x64xf32>
    %788 = vector.extract_strided_slice %756 {offsets = [0, 0], sizes = [1, 64], strides = [1, 1]} : vector<3x64xbf16> to vector<1x64xbf16>
    %c6_916 = arith.constant 6 : index
    %c0_917 = arith.constant 0 : index
    %c0_918 = arith.constant 0 : index
    %789 = vector.load %arg6[%c6_916, %c0_917, %c0_918] : memref<9x64x64xbf16, #tpu.memory_space<vmem>>, vector<1x64x64xbf16>
    %790 = vector.shape_cast %789 : vector<1x64x64xbf16> to vector<64x64xbf16>
    %cst_919 = arith.constant dense<0.000000e+00> : vector<1x64xf32>
    %791 = tpu.matmul %788, %790, %cst_919 {dimension_numbers = #tpu.dot_dimension_numbers<[1], [0], [0], [1], [0, 0, 1, 1], [], []>} : vector<1x64xbf16>, vector<64x64xbf16>, vector<1x64xf32> -> vector<1x64xf32>
    %792 = arith.addf %787, %791 : vector<1x64xf32>
    %793 = vector.extract_strided_slice %756 {offsets = [1, 0], sizes = [1, 64], strides = [1, 1]} : vector<3x64xbf16> to vector<1x64xbf16>
    %c7_920 = arith.constant 7 : index
    %c0_921 = arith.constant 0 : index
    %c0_922 = arith.constant 0 : index
    %794 = vector.load %arg6[%c7_920, %c0_921, %c0_922] : memref<9x64x64xbf16, #tpu.memory_space<vmem>>, vector<1x64x64xbf16>
    %795 = vector.shape_cast %794 : vector<1x64x64xbf16> to vector<64x64xbf16>
    %cst_923 = arith.constant dense<0.000000e+00> : vector<1x64xf32>
    %796 = tpu.matmul %793, %795, %cst_923 {dimension_numbers = #tpu.dot_dimension_numbers<[1], [0], [0], [1], [0, 0, 1, 1], [], []>} : vector<1x64xbf16>, vector<64x64xbf16>, vector<1x64xf32> -> vector<1x64xf32>
    %797 = arith.addf %792, %796 : vector<1x64xf32>
    %798 = vector.extract_strided_slice %756 {offsets = [2, 0], sizes = [1, 64], strides = [1, 1]} : vector<3x64xbf16> to vector<1x64xbf16>
    %c8_924 = arith.constant 8 : index
    %c0_925 = arith.constant 0 : index
    %c0_926 = arith.constant 0 : index
    %799 = vector.load %arg6[%c8_924, %c0_925, %c0_926] : memref<9x64x64xbf16, #tpu.memory_space<vmem>>, vector<1x64x64xbf16>
    %800 = vector.shape_cast %799 : vector<1x64x64xbf16> to vector<64x64xbf16>
    %cst_927 = arith.constant dense<0.000000e+00> : vector<1x64xf32>
    %801 = tpu.matmul %798, %800, %cst_927 {dimension_numbers = #tpu.dot_dimension_numbers<[1], [0], [0], [1], [0, 0, 1, 1], [], []>} : vector<1x64xbf16>, vector<64x64xbf16>, vector<1x64xf32> -> vector<1x64xf32>
    %802 = arith.addf %797, %801 : vector<1x64xf32>
    %c0_928 = arith.constant 0 : index
    %c0_929 = arith.constant 0 : index
    %803 = vector.load %arg7[%c0_928, %c0_929] : memref<1x64xf32, #tpu.memory_space<vmem>>, vector<1x64xf32>
    %804 = arith.addf %802, %803 : vector<1x64xf32>
    %cst_930 = arith.constant 0.000000e+00 : f32
    %805 = vector.broadcast %cst_930 : f32 to vector<1x64xf32>
    %806 = arith.maximumf %804, %805 : vector<1x64xf32>
    %807 = arith.truncf %806 : vector<1x64xf32> to vector<1x64xbf16>
    %cst_931 = arith.constant 0.000000e+00 : f32
    %808 = vector.broadcast %cst_931 : f32 to vector<1x512xf32>
    %c0_932 = arith.constant 0 : index
    %c0_933 = arith.constant 0 : index
    %c0_934 = arith.constant 0 : index
    %809 = vector.load %arg8[%c0_932, %c0_933, %c0_934] : memref<1x64x512xbf16, #tpu.memory_space<vmem>>, vector<1x64x512xbf16>
    %810 = vector.shape_cast %809 : vector<1x64x512xbf16> to vector<64x512xbf16>
    %cst_935 = arith.constant dense<0.000000e+00> : vector<1x512xf32>
    %811 = tpu.matmul %807, %810, %cst_935 {dimension_numbers = #tpu.dot_dimension_numbers<[1], [0], [0], [1], [0, 0, 1, 1], [], []>} : vector<1x64xbf16>, vector<64x512xbf16>, vector<1x512xf32> -> vector<1x512xf32>
    %812 = arith.addf %808, %811 : vector<1x512xf32>
    %c0_936 = arith.constant 0 : index
    %c0_937 = arith.constant 0 : index
    %813 = vector.load %arg9[%c0_936, %c0_937] : memref<1x512xf32, #tpu.memory_space<vmem>>, vector<1x512xf32>
    %814 = arith.addf %812, %813 : vector<1x512xf32>
    %cst_938 = arith.constant 0.000000e+00 : f32
    %815 = vector.broadcast %cst_938 : f32 to vector<1x512xf32>
    %816 = arith.maximumf %814, %815 : vector<1x512xf32>
    %817 = arith.truncf %816 : vector<1x512xf32> to vector<1x512xbf16>
    %c0_939 = arith.constant 0 : index
    %c0_940 = arith.constant 0 : index
    %818 = vector.load %arg10[%c0_939, %c0_940] : memref<512x128xbf16, #tpu.memory_space<vmem>>, vector<512x128xbf16>
    %cst_941 = arith.constant dense<0.000000e+00> : vector<1x128xf32>
    %819 = tpu.matmul %817, %818, %cst_941 {dimension_numbers = #tpu.dot_dimension_numbers<[1], [0], [0], [1], [0, 0, 1, 1], [], []>} : vector<1x512xbf16>, vector<512x128xbf16>, vector<1x128xf32> -> vector<1x128xf32>
    %c0_942 = arith.constant 0 : index
    %c0_943 = arith.constant 0 : index
    %820 = vector.load %arg11[%c0_942, %c0_943] : memref<1x128xf32, #tpu.memory_space<vmem>>, vector<1x128xf32>
    %821 = arith.addf %819, %820 : vector<1x128xf32>
    %822 = vector.shape_cast %821 : vector<1x128xf32> to vector<1x128xf32>
    %823 = vector.broadcast %822 : vector<1x128xf32> to vector<8x128xf32>
    %c0_944 = arith.constant 0 : index
    %c0_945 = arith.constant 0 : index
    %c0_946 = arith.constant 0 : index
    %824 = vector.load %arg12[%c0_944, %c0_945, %c0_946] : memref<1x8x128xf32, #tpu.memory_space<vmem>>, vector<1x8x128xf32>
    %825 = vector.shape_cast %824 : vector<1x8x128xf32> to vector<8x128xf32>
    %826 = vector.shape_cast %823 : vector<8x128xf32> to vector<1x8x128xf32>
    tpu.vector_store %arg12[%c0_944, %c0_945, %c0_946], %826 {strides = array<i32>} : memref<1x8x128xf32, #tpu.memory_space<vmem>>, vector<1x8x128xf32>,
    return
  }
  func.func @transform_0(%arg0: i32) -> (i32, i32, i32, i32, i32, i32) {
    %c0_i32 = arith.constant 0 : i32
    %c0_i32_0 = arith.constant 0 : i32
    %c0_i32_1 = arith.constant 0 : i32
    %c0_i32_2 = arith.constant 0 : i32
    %c0_i32_3 = arith.constant 0 : i32
    %c0_i32_4 = arith.constant 0 : i32
    return %arg0, %c0_i32, %c0_i32_0, %c0_i32_1, %c0_i32_2, %c0_i32_3 : i32, i32, i32, i32, i32, i32
  }
  func.func @transform_1(%arg0: i32) -> (i32, i32, i32) {
    %c0_i32 = arith.constant 0 : i32
    %c0_i32_0 = arith.constant 0 : i32
    %c0_i32_1 = arith.constant 0 : i32
    %c0_i32_2 = arith.constant 0 : i32
    return %c0_i32, %c0_i32_0, %c0_i32_1 : i32, i32, i32
  }
  func.func @transform_2(%arg0: i32) -> (i32, i32) {
    %c0_i32 = arith.constant 0 : i32
    %c0_i32_0 = arith.constant 0 : i32
    %c0_i32_1 = arith.constant 0 : i32
    return %c0_i32, %c0_i32_0 : i32, i32
  }
  func.func @transform_3(%arg0: i32) -> (i32, i32, i32) {
    %c0_i32 = arith.constant 0 : i32
    %c0_i32_0 = arith.constant 0 : i32
    %c0_i32_1 = arith.constant 0 : i32
    %c0_i32_2 = arith.constant 0 : i32
    return %c0_i32, %c0_i32_0, %c0_i32_1 : i32, i32, i32
  }
  func.func @transform_4(%arg0: i32) -> (i32, i32) {
    %c0_i32 = arith.constant 0 : i32
    %c0_i32_0 = arith.constant 0 : i32
    %c0_i32_1 = arith.constant 0 : i32
    return %c0_i32, %c0_i32_0 : i32, i32
  }
  func.func @transform_5(%arg0: i32) -> (i32, i32, i32) {
    %c0_i32 = arith.constant 0 : i32
    %c0_i32_0 = arith.constant 0 : i32
    %c0_i32_1 = arith.constant 0 : i32
    %c0_i32_2 = arith.constant 0 : i32
    return %c0_i32, %c0_i32_0, %c0_i32_1 : i32, i32, i32
  }
  func.func @transform_6(%arg0: i32) -> (i32, i32) {
    %c0_i32 = arith.constant 0 : i32
    %c0_i32_0 = arith.constant 0 : i32
    %c0_i32_1 = arith.constant 0 : i32
    return %c0_i32, %c0_i32_0 : i32, i32
  }
  func.func @transform_7(%arg0: i32) -> (i32, i32, i32) {
    %c0_i32 = arith.constant 0 : i32
    %c0_i32_0 = arith.constant 0 : i32
    %c0_i32_1 = arith.constant 0 : i32
    %c0_i32_2 = arith.constant 0 : i32
    return %c0_i32, %c0_i32_0, %c0_i32_1 : i32, i32, i32
  }
  func.func @transform_8(%arg0: i32) -> (i32, i32) {
    %c0_i32 = arith.constant 0 : i32
    %c0_i32_0 = arith.constant 0 : i32
    %c0_i32_1 = arith.constant 0 : i32
    return %c0_i32, %c0_i32_0 : i32, i32
  }
  func.func @transform_9(%arg0: i32) -> (i32, i32) {
    %c0_i32 = arith.constant 0 : i32
    %c0_i32_0 = arith.constant 0 : i32
    %c0_i32_1 = arith.constant 0 : i32
    return %c0_i32, %c0_i32_0 : i32, i32
  }
  func.func @transform_10(%arg0: i32) -> (i32, i32) {
    %c0_i32 = arith.constant 0 : i32
    %c0_i32_0 = arith.constant 0 : i32
    %c0_i32_1 = arith.constant 0 : i32
    return %c0_i32, %c0_i32_0 : i32, i32
  }
  func.func @transform_11(%arg0: i32) -> (i32, i32, i32) {
    %c0_i32 = arith.constant 0 : i32
    %c0_i32_0 = arith.constant 0 : i32
    %c0_i32_1 = arith.constant 0 : i32
    return %arg0, %c0_i32, %c0_i32_0 : i32, i32, i32
  }
}

</mosaic_0001>

<bundles_post_ra>
// kernel: forward.1
= control target key start
LH: loop header
LB: loop body
LE: loop exit
PB: predicated region body
PF: predicated region fallthrough
CT: control target
= control target key end

     0   :  { %s9668_s17 = smov 0   ;;  %s11735_s0 = inlined_call_operand.vmem [shape: bf16[2,2,5,2,5,64], index: 0, kind: input, shape index: {}]   ;;  %s11736_s1 = inlined_call_operand.vmem [shape: bf16[4,64,32], index: 1, kind: input, shape index: {}]   ;;  %s11737_s2 = inlined_call_operand.vmem [shape: f32[1,32], index: 2, kind: input, shape index: {}]   ;;  %s11738_s3 = inlined_call_operand.vmem [shape: bf16[16,32,64], index: 3, kind: input, shape index: {}]   ;;  %s11739_s4 = inlined_call_operand.vmem [shape: f32[1,64], index: 4, kind: input, shape index: {}]   ;;  %s11740_s5 = inlined_call_operand.vmem [shape: bf16[9,64,64], index: 5, kind: input, shape index: {}]   ;;  %s11741_s6 = inlined_call_operand.vmem [shape: f32[1,64], index: 6, kind: input, shape index: {}]   ;;  %s11742_s7 = inlined_call_operand.vmem [shape: bf16[1,64,512], index: 7, kind: input, shape index: {}]   ;;  %s11743_s8 = inlined_call_operand.vmem [shape: f32[1,512], index: 8, kind: input, shape index: {}]   ;;  %s11744_s9 = inlined_call_operand.vmem [shape: bf16[512,128], index: 9, kind: input, shape index: {}]   ;;  %s11745_s10 = inlined_call_operand.vmem [shape: f32[1,128], index: 10, kind: input, shape index: {}]   ;;  %s11746_s11 = inlined_call_operand.vmem [shape: f32[2,8,128], index: 11, kind: output, shape index: {}]  }
   0x1 LB: > { %s7134_s18 = sadd.s32 4294967295, %s9603_s17   ;;  %p7138_p0 = scmp.ge.s32.totalorder %s9603_s17, 1  ;;  %s9603_s17 = sphi %s9668_s17, %s21_s17  }
   0x2   : > { %p337_p1 = scmp.lt.s32.totalorder %s9603_s17, 3 }
   0x4   : > { %p338_p2 = pnand %p7138_p0, %p337_p1 }
   0x5   : > { %v9679_v0 = vld [vmem:[%s11736_s1 + $0x20] sm:$0xff] (!%p338_p2)   ;;  %v9605_v1 = vmov (!%p338_p2), 0.0   ;;  %v9692_v3 = vld [vmem:[%s11736_s1 + $0x28] sm:$0xff] (!%p338_p2)   ;;  %vm9606_vm0 = vmmov (!%p338_p2), 0   ;;  %p376_p3 = scmp.lt.s32.totalorder (!%p338_p2), %s7134_s18, 1  ;;  %v9712_v5 = vld [vmem:[%s11736_s1 + $0x30] sm:$0xff] (!%p338_p2)  }
   0x6   : > { %341 = sbr.rel (%p338_p2) target bundleno = 1710 (0x6ae), region = 64  ;;  %8135 = vmatprep.subr.bf16.mxu0 (!%p338_p2), %v9605_v1  ;;  %8147 = vmatprep.subr.bf16.mxu1 (!%p338_p2), %v9605_v1  ;;  %v9686_v2 = vld [vmem:[%s11736_s1] sm:$0xff] (!%p338_p2)   ;;  %v9701_v4 = vld [vmem:[%s11736_s1 + $0x8] sm:$0xff] (!%p338_p2)   ;;  %v9720_v6 = vld [vmem:[%s11736_s1 + $0x10] sm:$0xff] (!%p338_p2)   ;;  %vm430_vm1 = vcmask (!%p338_p2), 523264   ;;  %vm3401_vm2 = vcmask (!%p338_p2), 261120  }
   0x7   : > { %8136 = vmatpush3.bf16.msra.mxu0 (!%p338_p2), %v9679_v0  ;;  %8143 = vmatprep.mubr.msk.bf16.mxu0 (!%p338_p2), %vm9606_vm0, %v9605_v1  ;;  %v9727_v7 = vld [vmem:[%s11736_s1 + $0x38] sm:$0xff] (!%p338_p2)   ;;  %v9745_v9 = vld [vmem:[%s11736_s1 + $0x40] sm:$0xff] (!%p338_p2)   ;;  %v9767_v13 = vld [vmem:[%s11736_s1 + $0x48] sm:$0xff] (!%p338_p2)  }
   0x8   : > { %8148 = vmatpush3.bf16.msra.mxu1 (!%p338_p2), %v9686_v2  ;;  %8137 = vmatprep.subr.bf16.mxu0 (!%p338_p2), %v9605_v1  ;;  %v9739_v8 = vld [vmem:[%s11736_s1 + $0x18] sm:$0xff] (!%p338_p2)   ;;  %v9757_v12 = vld [vmem:[%s11736_s1 + $0x60] sm:$0xff] (!%p338_p2)   ;;  %v9774_v14 = vld [vmem:[%s11736_s1 + $0x68] sm:$0xff] (!%p338_p2)  }
   0x9   : > { %8149 = vmatprep.subr.bf16.mxu1 (!%p338_p2), %v9605_v1  ;;  %8155 = vmatprep.mubr.msk.bf16.mxu1 (!%p338_p2), %vm9606_vm0, %v9605_v1  ;;  %v9782_v15 = vld [vmem:[%s11736_s1 + $0x50] sm:$0xff] (!%p338_p2)   ;;  %v9799_v17 = vld [vmem:[%s11736_s1 + $0x58] sm:$0xff] (!%p338_p2)   ;;  %v10103_v54 = vld [vmem:[%s11736_s1 + $0x20] sm:$0xff] (!%p338_p2)  }
   0xa   : > { %v9790_v16 = vld [vmem:[%s11736_s1 + $0x70] sm:$0xff] (!%p338_p2)   ;;  %v9804_v18 = vld [vmem:[%s11736_s1 + $0x78] sm:$0xff] (!%p338_p2)   ;;  %v10109_v55 = vld [vmem:[%s11736_s1] sm:$0xff] (!%p338_p2)  }
   0xb   : > { %8138 = vmatpush3.bf16.msra.mxu0 (!%p338_p2), %v9692_v3  ;;  %v10121_v57 = vld [vmem:[%s11736_s1 + $0x28] sm:$0xff] (!%p338_p2)   ;;  %v10135_v61 = vld [vmem:[%s11736_s1 + $0x30] sm:$0xff] (!%p338_p2)  }
   0xc   : > { %8150 = vmatpush3.bf16.msra.mxu1 (!%p338_p2), %v9701_v4  ;;  %8139 = vmatprep.subr.bf16.mxu0 (!%p338_p2), %v9605_v1  ;;  %v10127_v58 = vld [vmem:[%s11736_s1 + $0x8] sm:$0xff] (!%p338_p2)   ;;  %v10141_v62 = vld [vmem:[%s11736_s1 + $0x10] sm:$0xff] (!%p338_p2)  }
   0xd   : > { %s11748_s18 = smov (!%p376_p3, %s7134_s18), 1  ;;  %8151 = vmatprep.subr.bf16.mxu1 %v9605_v1 }
   0xe   : > { %s9395_s29 = smul.u32 80, %s11748_s18  ;;  %s7140_s23 = sshll.u32 %s11748_s18, 3 }
   0xf   : > { %8140 = vmatpush3.bf16.msra.mxu0 %v9712_v5  ;;  %s384_s26 = scalar_lea.vmem %s11746_s11, %s7140_s23 }
  0x10   : > { %s9732_s19 = scalar_lea.vmem %s11735_s0, %s9395_s29  ;;  %8152 = vmatpush3.bf16.msra.mxu1 %v9720_v6  ;;  %8141 = vmatprep.subr.bf16.mxu0 %v9605_v1 }
  0x11   : > { %8153 = vmatprep.subr.bf16.mxu1 %v9605_v1  ;;  %v9748_v10 = vld [vmem:[%s9732_s19 + $0x4] sm:$0x3]  ;;  %v386_v11 = vld [vmem:[%s9732_s19] sm:$0x3]  ;;  %v7160_v19 = vld [vmem:[%s9732_s19 + $0x28] sm:$0x3] }
  0x12   : > { %v9812_v20 = vld [vmem:[%s9732_s19 + $0x2c] sm:$0x3]  ;;  %v7189_v22 = vld [vmem:[%s9732_s19 + $0x8] sm:$0x3]  ;;  %v7193_v23 = vld [vmem:[%s9732_s19 + $0x30] sm:$0x3] }
  0x13   : > { %8142 = vmatpush3.bf16.msra.mxu0 %v9727_v7  ;;  %v9837_v21 = vld [vmem:[%s9732_s19 + $0xc] sm:$0x3]  ;;  %v9866_v24 = vld [vmem:[%s9732_s19 + $0x34] sm:$0x3]  ;;  %v9895_v26 = vld [vmem:[%s9732_s19 + $0x10] sm:$0x3] }
  0x14   : > { %8154 = vmatpush3.bf16.msra.mxu1 %v9739_v8  ;;  %8159 = vmatprep.subr.bf16.mxu0 %v9605_v1  ;;  %v9891_v25 = vld [vmem:[%s9732_s19 + $0x14] sm:$0x3]  ;;  %v9921_v27 = vld [vmem:[%s9732_s19 + $0x38] sm:$0x3]  ;;  %v9925_v28 = vld [vmem:[%s9732_s19 + $0x3c] sm:$0x3] }
  0x15   : > { %8171 = vmatprep.subr.bf16.mxu1 %v9605_v1  ;;  %v9952_v29 = vld [vmem:[%s9732_s19 + $0x1c] sm:$0x3]  ;;  %v9956_v30 = vld [vmem:[%s9732_s19 + $0x18] sm:$0x3]  ;;  %v9982_v31 = vld [vmem:[%s9732_s19 + $0x40] sm:$0x3] }
  0x16   : > { %8144 = vmatmul.mubr.msk.bf16.vlgmr.msra.gmra.mrb[0].mxu0 %vm430_vm1, %v9748_v10  ;;  %v9986_v32 = vld [vmem:[%s9732_s19 + $0x44] sm:$0x3]  ;;  %v9423_v33 = vld [vmem:[%s9732_s19] ss:$0 sps:$4 sm:$0x77]  }
  0x17   : > { %8156 = vmatmul.mubr.msk.bf16.vlgmr.msra.gmra.mrb[0].mxu1 %vm430_vm1, %v386_v11  ;;  %8160 = vmatpush3.bf16.msra.mxu0 %v9745_v9  ;;  %v1271_v34 = vshll.u32 %v9423_v33, 16  ;;  %v1269_v35 = vshrl.u32 %v9423_v33, 16  ;;  %v9424_v38 = vld [vmem:[%s9732_s19 + $0x28] ss:$0 sps:$4 sm:$0x77]  }
  0x18   : > { %8172 = vmatpush3.bf16.msra.mxu1 %v9757_v12  ;;  %8161 = vmatprep.subr.bf16.mxu0 %v9605_v1  ;;  %v1406_v39 = vshll.u32 %v9424_v38, 16  ;;  %v1404_v40 = vshrl.u32 %v9424_v38, 16  ;;  %v9425_v43 = vld [vmem:[%s9732_s19 + $0x8] ss:$0 sps:$4 sm:$0x77]  }
  0x19   : > { %8173 = vmatprep.subr.bf16.mxu1 %v9605_v1  ;;  %8167 = vmatprep.mubr.msk.bf16.mxu0 %vm9606_vm0, %v9605_v1  ;;  %v1273_v36 = vrot.slane %v1271_v34, 1  ;;  %v1464_v44 = vshll.u32 %v9425_v43, 16  ;;  %v1462_v45 = vshrl.u32 %v9425_v43, 16  ;;  %v9426_v48 = vld [vmem:[%s9732_s19 + $0x30] ss:$0 sps:$4 sm:$0x77]  }
  0x1a   : > { %8179 = vmatprep.mubr.msk.bf16.mxu1 %vm9606_vm0, %v9605_v1  ;;  %v1408_v41 = vrot.slane %v1406_v39, 1  ;;  %v1599_v49 = vshll.u32 %v9426_v48, 16  ;;  %v1597_v50 = vshrl.u32 %v9426_v48, 16  ;;  %v9427_v53 = vld [vmem:[%s9732_s19 + $0x10] ss:$0 sps:$4 sm:$0x77]  }
  0x1b   : > { %8162 = vmatpush3.bf16.msra.mxu0 %v9767_v13  ;;  %v1274_v37 = vor.u32 %v1273_v36, %v1269_v35  ;;  %v1466_v46 = vrot.slane %v1464_v44, 1  ;;  %v1657_v56 = vshll.u32 %v9427_v53, 16  ;;  %v1655_v59 = vshrl.u32 %v9427_v53, 16 }
  0x1c   : > { %8174 = vmatpush3.bf16.msra.mxu1 %v9774_v14  ;;  %8163 = vmatprep.subr.bf16.mxu0 %v9605_v1  ;;  %v10036_v42 = vor.u32 %v1408_v41, %v1404_v40  ;;  %v1601_v51 = vrot.slane %v1599_v49, 1 }
  0x1d   : > { %8175 = vmatprep.subr.bf16.mxu1 %v9605_v1  ;;  %v10062_v47 = vor.u32 %v1466_v46, %v1462_v45  ;;  %v1659_v60 = vrot.slane %v1657_v56, 1  ;;  %v10272_v56 = vld [vmem:[%s11736_s1 + $0x58] sm:$0xff]  }
  0x1e   : > { %v10090_v52 = vor.u32 %v1601_v51, %v1597_v50 }
  0x1f   : > { %8164 = vmatpush3.bf16.msra.mxu0 %v9782_v15  ;;  %v10146_v63 = vor.u32 %v1659_v60, %v1655_v59  ;;  %v10280_v60 = vld [vmem:[%s11736_s1 + $0x78] sm:$0xff]  }
  0x20   : > { %8176 = vmatpush3.bf16.msra.mxu1 %v9790_v16  ;;  %8165 = vmatprep.subr.bf16.mxu0 %v9605_v1 }
  0x21   : > { %8177 = vmatprep.subr.bf16.mxu1 %v9605_v1 }
  0x23   : > { %8166 = vmatpush3.bf16.msra.mxu0 %v9799_v17 }
  0x24   : > { %8178 = vmatpush3.bf16.msra.mxu1 %v9804_v18  ;;  %8183 = vmatprep.subr.bf16.mxu0 %v9605_v1 }
  0x25   : > { %8195 = vmatprep.subr.bf16.mxu1 %v9605_v1 }
  0x26   : > { %8168 = vmatmul.mubr.msk.bf16.vlgmr.msra.gmra.mrb[4].mxu0 %vm430_vm1, %v7160_v19 }
  0x27   : > { %8180 = vmatmul.mubr.msk.bf16.vlgmr.msra.gmra.mrb[4].mxu1 %vm430_vm1, %v9812_v20  ;;  %8184 = vmatpush3.bf16.msra.mxu0 %v9679_v0 }
  0x28   : > { %8196 = vmatpush3.bf16.msra.mxu1 %v9686_v2  ;;  %8185 = vmatprep.subr.bf16.mxu0 %v9605_v1 }
  0x29   : > { %8197 = vmatprep.subr.bf16.mxu1 %v9605_v1  ;;  %8191 = vmatprep.mubr.msk.bf16.mxu0 %vm9606_vm0, %v9605_v1 }
  0x2a   : > { %8203 = vmatprep.mubr.msk.bf16.mxu1 %vm9606_vm0, %v9605_v1 }
  0x2b   : > { %8186 = vmatpush3.bf16.msra.mxu0 %v9692_v3 }
  0x2c   : > { %8198 = vmatpush3.bf16.msra.mxu1 %v9701_v4  ;;  %8187 = vmatprep.subr.bf16.mxu0 %v9605_v1 }
  0x2d   : > { %8199 = vmatprep.subr.bf16.mxu1 %v9605_v1 }
  0x2f   : > { %8188 = vmatpush3.bf16.msra.mxu0 %v9712_v5 }
  0x30   : > { %8200 = vmatpush3.bf16.msra.mxu1 %v9720_v6  ;;  %8189 = vmatprep.subr.bf16.mxu0 %v9605_v1 }
  0x31   : > { %8201 = vmatprep.subr.bf16.mxu1 %v9605_v1 }
  0x33   : > { %8190 = vmatpush3.bf16.msra.mxu0 %v9727_v7 }
  0x34   : > { %8202 = vmatpush3.bf16.msra.mxu1 %v9739_v8  ;;  %8207 = vmatprep.subr.bf16.mxu0 %v9605_v1 }
  0x35   : > { %8219 = vmatprep.subr.bf16.mxu1 %v9605_v1 }
  0x36   : > { %8192 = vmatmul.mubr.msk.bf16.vlgmr.msra.gmra.mrb[8].mxu0 %vm430_vm1, %v9837_v21 }
  0x37   : > { %8204 = vmatmul.mubr.msk.bf16.vlgmr.msra.gmra.mrb[8].mxu1 %vm430_vm1, %v7189_v22  ;;  %8208 = vmatpush3.bf16.msra.mxu0 %v9745_v9 }
  0x38   : > { %8220 = vmatpush3.bf16.msra.mxu1 %v9757_v12  ;;  %8209 = vmatprep.subr.bf16.mxu0 %v9605_v1 }
  0x39   : > { %8221 = vmatprep.subr.bf16.mxu1 %v9605_v1  ;;  %8215 = vmatprep.mubr.msk.bf16.mxu0 %vm9606_vm0, %v9605_v1 }
  0x3a   : > { %8227 = vmatprep.mubr.msk.bf16.mxu1 %vm9606_vm0, %v9605_v1 }
  0x3b   : > { %8210 = vmatpush3.bf16.msra.mxu0 %v9767_v13 }
  0x3c   : > { %8222 = vmatpush3.bf16.msra.mxu1 %v9774_v14  ;;  %8211 = vmatprep.subr.bf16.mxu0 %v9605_v1 }
  0x3d   : > { %8223 = vmatprep.subr.bf16.mxu1 %v9605_v1 }
  0x3f   : > { %8212 = vmatpush3.bf16.msra.mxu0 %v9782_v15 }
  0x40   : > { %8224 = vmatpush3.bf16.msra.mxu1 %v9790_v16  ;;  %8213 = vmatprep.subr.bf16.mxu0 %v9605_v1 }
  0x41   : > { %8225 = vmatprep.subr.bf16.mxu1 %v9605_v1 }
  0x43   : > { %8214 = vmatpush3.bf16.msra.mxu0 %v9799_v17 }
  0x44   : > { %8226 = vmatpush3.bf16.msra.mxu1 %v9804_v18  ;;  %8231 = vmatprep.subr.bf16.mxu0 %v9605_v1 }
  0x45   : > { %8243 = vmatprep.subr.bf16.mxu1 %v9605_v1 }
  0x46   : > { %8216 = vmatmul.mubr.msk.bf16.vlgmr.msra.gmra.mrb[12].mxu0 %vm430_vm1, %v7193_v23 }
  0x47   : > { %8228 = vmatmul.mubr.msk.bf16.vlgmr.msra.gmra.mrb[12].mxu1 %vm430_vm1, %v9866_v24  ;;  %8232 = vmatpush3.bf16.msra.mxu0 %v9679_v0 }
  0x48   : > { %8244 = vmatpush3.bf16.msra.mxu1 %v9686_v2  ;;  %8233 = vmatprep.subr.bf16.mxu0 %v9605_v1 }
  0x49   : > { %8245 = vmatprep.subr.bf16.mxu1 %v9605_v1  ;;  %8239 = vmatprep.mubr.msk.bf16.mxu0 %vm9606_vm0, %v9605_v1 }
  0x4a   : > { %8251 = vmatprep.mubr.msk.bf16.mxu1 %vm9606_vm0, %v9605_v1 }
  0x4b   : > { %8234 = vmatpush3.bf16.msra.mxu0 %v9692_v3 }
  0x4c   : > { %8246 = vmatpush3.bf16.msra.mxu1 %v9701_v4  ;;  %8235 = vmatprep.subr.bf16.mxu0 %v9605_v1 }
  0x4d   : > { %8247 = vmatprep.subr.bf16.mxu1 %v9605_v1 }
  0x4f   : > { %8236 = vmatpush3.bf16.msra.mxu0 %v9712_v5 }
  0x50   : > { %8248 = vmatpush3.bf16.msra.mxu1 %v9720_v6  ;;  %8237 = vmatprep.subr.bf16.mxu0 %v9605_v1 }
  0x51   : > { %8249 = vmatprep.subr.bf16.mxu1 %v9605_v1 }
  0x53   : > { %8238 = vmatpush3.bf16.msra.mxu0 %v9727_v7 }
  0x54   : > { %8250 = vmatpush3.bf16.msra.mxu1 %v9739_v8  ;;  %8255 = vmatprep.subr.bf16.mxu0 %v9605_v1 }
  0x55   : > { %8267 = vmatprep.subr.bf16.mxu1 %v9605_v1 }
  0x56   : > { %8240 = vmatmul.mubr.msk.bf16.vlgmr.msra.gmra.mrb[16].mxu0 %vm430_vm1, %v9891_v25 }
  0x57   : > { %8252 = vmatmul.mubr.msk.bf16.vlgmr.msra.gmra.mrb[16].mxu1 %vm430_vm1, %v9895_v26  ;;  %8256 = vmatpush3.bf16.msra.mxu0 %v9745_v9 }
  0x58   : > { %8268 = vmatpush3.bf16.msra.mxu1 %v9757_v12  ;;  %8257 = vmatprep.subr.bf16.mxu0 %v9605_v1 }
  0x59   : > { %8269 = vmatprep.subr.bf16.mxu1 %v9605_v1  ;;  %8263 = vmatprep.mubr.msk.bf16.mxu0 %vm9606_vm0, %v9605_v1 }
  0x5a   : > { %8275 = vmatprep.mubr.msk.bf16.mxu1 %vm9606_vm0, %v9605_v1 }
  0x5b   : > { %8258 = vmatpush3.bf16.msra.mxu0 %v9767_v13 }
  0x5c   : > { %8270 = vmatpush3.bf16.msra.mxu1 %v9774_v14  ;;  %8259 = vmatprep.subr.bf16.mxu0 %v9605_v1 }
  0x5d   : > { %8271 = vmatprep.subr.bf16.mxu1 %v9605_v1 }
  0x5f   : > { %8260 = vmatpush3.bf16.msra.mxu0 %v9782_v15 }
  0x60   : > { %8272 = vmatpush3.bf16.msra.mxu1 %v9790_v16  ;;  %8261 = vmatprep.subr.bf16.mxu0 %v9605_v1 }
  0x61   : > { %8273 = vmatprep.subr.bf16.mxu1 %v9605_v1 }
  0x63   : > { %8262 = vmatpush3.bf16.msra.mxu0 %v9799_v17 }
  0x64   : > { %8274 = vmatpush3.bf16.msra.mxu1 %v9804_v18  ;;  %8279 = vmatprep.subr.bf16.mxu0 %v9605_v1 }
  0x65   : > { %8291 = vmatprep.subr.bf16.mxu1 %v9605_v1 }
  0x66   : > { %8264 = vmatmul.mubr.msk.bf16.vlgmr.msra.gmra.mrb[20].mxu0 %vm430_vm1, %v9921_v27 }
  0x67   : > { %8276 = vmatmul.mubr.msk.bf16.vlgmr.msra.gmra.mrb[20].mxu1 %vm430_vm1, %v9925_v28  ;;  %8280 = vmatpush3.bf16.msra.mxu0 %v9679_v0 }
  0x68   : > { %8292 = vmatpush3.bf16.msra.mxu1 %v9686_v2  ;;  %8281 = vmatprep.subr.bf16.mxu0 %v9605_v1 }
  0x69   : > { %8293 = vmatprep.subr.bf16.mxu1 %v9605_v1  ;;  %8287 = vmatprep.mubr.msk.bf16.mxu0 %vm9606_vm0, %v9605_v1 }
  0x6a   : > { %8299 = vmatprep.mubr.msk.bf16.mxu1 %vm9606_vm0, %v9605_v1 }
  0x6b   : > { %8282 = vmatpush3.bf16.msra.mxu0 %v9692_v3 }
  0x6c   : > { %8294 = vmatpush3.bf16.msra.mxu1 %v9701_v4  ;;  %8283 = vmatprep.subr.bf16.mxu0 %v9605_v1 }
  0x6d   : > { %8295 = vmatprep.subr.bf16.mxu1 %v9605_v1 }
  0x6f   : > { %8284 = vmatpush3.bf16.msra.mxu0 %v9712_v5 }
  0x70   : > { %8296 = vmatpush3.bf16.msra.mxu1 %v9720_v6  ;;  %8285 = vmatprep.subr.bf16.mxu0 %v9605_v1 }
  0x71   : > { %8297 = vmatprep.subr.bf16.mxu1 %v9605_v1 }
  0x73   : > { %8286 = vmatpush3.bf16.msra.mxu0 %v9727_v7 }
  0x74   : > { %8298 = vmatpush3.bf16.msra.mxu1 %v9739_v8  ;;  %8303 = vmatprep.subr.bf16.mxu0 %v9605_v1 }
  0x75   : > { %8315 = vmatprep.subr.bf16.mxu1 %v9605_v1 }
  0x76   : > { %8288 = vmatmul.mubr.msk.bf16.vlgmr.msra.gmra.mrb[24].mxu0 %vm430_vm1, %v9952_v29 }
  0x77   : > { %8300 = vmatmul.mubr.msk.bf16.vlgmr.msra.gmra.mrb[24].mxu1 %vm430_vm1, %v9956_v30  ;;  %8304 = vmatpush3.bf16.msra.mxu0 %v9745_v9 }
  0x78   : > { %8316 = vmatpush3.bf16.msra.mxu1 %v9757_v12  ;;  %8305 = vmatprep.subr.bf16.mxu0 %v9605_v1 }
  0x79   : > { %8317 = vmatprep.subr.bf16.mxu1 %v9605_v1  ;;  %8311 = vmatprep.mubr.msk.bf16.mxu0 %vm9606_vm0, %v9605_v1 }
  0x7a   : > { %8323 = vmatprep.mubr.msk.bf16.mxu1 %vm9606_vm0, %v9605_v1 }
  0x7b   : > { %8306 = vmatpush3.bf16.msra.mxu0 %v9767_v13 }
  0x7c   : > { %8318 = vmatpush3.bf16.msra.mxu1 %v9774_v14  ;;  %8307 = vmatprep.subr.bf16.mxu0 %v9605_v1 }
  0x7d   : > { %8319 = vmatprep.subr.bf16.mxu1 %v9605_v1 }
  0x7f   : > { %8308 = vmatpush3.bf16.msra.mxu0 %v9782_v15 }
  0x80   : > { %8320 = vmatpush3.bf16.msra.mxu1 %v9790_v16  ;;  %8309 = vmatprep.subr.bf16.mxu0 %v9605_v1 }
  0x81   : > { %8321 = vmatprep.subr.bf16.mxu1 %v9605_v1 }
  0x83   : > { %8310 = vmatpush3.bf16.msra.mxu0 %v9799_v17 }
  0x84   : > { %8322 = vmatpush3.bf16.msra.mxu1 %v9804_v18  ;;  %8327 = vmatprep.subr.bf16.mxu0 %v9605_v1 }
  0x85   : > { %8339 = vmatprep.subr.bf16.mxu1 %v9605_v1 }
  0x86   : > { %8312 = vmatmul.mubr.msk.bf16.vlgmr.msra.gmra.mrb[28].mxu0 %vm430_vm1, %v9982_v31 }
  0x87   : > { %8324 = vmatmul.mubr.msk.bf16.vlgmr.msra.gmra.mrb[28].mxu1 %vm430_vm1, %v9986_v32  ;;  %8328 = vmatpush3.bf16.msra.mxu0 %v9679_v0 }
  0x88   : > { %8340 = vmatpush3.bf16.msra.mxu1 %v9686_v2  ;;  %8329 = vmatprep.subr.bf16.mxu0 %v9605_v1 }
  0x89   : > { %8341 = vmatprep.subr.bf16.mxu1 %v9605_v1  ;;  %8335 = vmatprep.mubr.msk.bf16.mxu0 %vm9606_vm0, %v9605_v1 }
  0x8a   : > { %8347 = vmatprep.mubr.msk.bf16.mxu1 %vm9606_vm0, %v9605_v1 }
  0x8b   : > { %8330 = vmatpush3.bf16.msra.mxu0 %v9692_v3 }
  0x8c   : > { %8342 = vmatpush3.bf16.msra.mxu1 %v9701_v4  ;;  %8331 = vmatprep.subr.bf16.mxu0 %v9605_v1 }
  0x8d   : > { %8343 = vmatprep.subr.bf16.mxu1 %v9605_v1 }
  0x8f   : > { %8332 = vmatpush3.bf16.msra.mxu0 %v9712_v5 }
  0x90   : > { %8344 = vmatpush3.bf16.msra.mxu1 %v9720_v6  ;;  %8333 = vmatprep.subr.bf16.mxu0 %v9605_v1 }
  0x91   : > { %8345 = vmatprep.subr.bf16.mxu1 %v9605_v1 }
  0x93   : > { %8334 = vmatpush3.bf16.msra.mxu0 %v9727_v7 }
  0x94   : > { %8346 = vmatpush3.bf16.msra.mxu1 %v9739_v8  ;;  %8351 = vmatprep.subr.bf16.mxu0 %v9605_v1 }
  0x95   : > { %8363 = vmatprep.subr.bf16.mxu1 %v9605_v1 }
  0x96   : > { %8336 = vmatmul.mubr.msk.bf16.vlgmr.msra.gmra.mrb[32].mxu0 %vm430_vm1, %v1274_v37  ;;  %v9430_v37 = vld [vmem:[%s9732_s19 + $0x40] ss:$0 sps:$4 sm:$0x77]  }
  0x97   : > { %8348 = vmatmul.mubr.msk.bf16.vlgmr.msra.gmra.mrb[32].mxu1 %vm430_vm1, %v9748_v10  ;;  %8352 = vmatpush3.bf16.msra.mxu0 %v9745_v9  ;;  %v1985_v45 = vshll.u32 %v9430_v37, 16  ;;  %v1983_v51 = vshrl.u32 %v9430_v37, 16 }
  0x98   : > { %8364 = vmatpush3.bf16.msra.mxu1 %v9757_v12  ;;  %8353 = vmatprep.subr.bf16.mxu0 %v9605_v1 }
  0x99   : > { %8365 = vmatprep.subr.bf16.mxu1 %v9605_v1  ;;  %8359 = vmatprep.mubr.msk.bf16.mxu0 %vm9606_vm0, %v9605_v1  ;;  %v1987_v53 = vrot.slane %v1985_v45, 1 }
  0x9a   : > { %8371 = vmatprep.mubr.msk.bf16.mxu1 %vm9606_vm0, %v9605_v1 }
  0x9b   : > { %8354 = vmatpush3.bf16.msra.mxu0 %v9767_v13  ;;  %v10275_v59 = vor.u32 %v1987_v53, %v1983_v51 }
  0x9c   : > { %8366 = vmatpush3.bf16.msra.mxu1 %v9774_v14  ;;  %8355 = vmatprep.subr.bf16.mxu0 %v9605_v1 }
  0x9d   : > { %8367 = vmatprep.subr.bf16.mxu1 %v9605_v1 }
  0x9f   : > { %8356 = vmatpush3.bf16.msra.mxu0 %v9782_v15 }
  0xa0   : > { %8368 = vmatpush3.bf16.msra.mxu1 %v9790_v16  ;;  %8357 = vmatprep.subr.bf16.mxu0 %v9605_v1 }
  0xa1   : > { %8369 = vmatprep.subr.bf16.mxu1 %v9605_v1 }
  0xa3   : > { %8358 = vmatpush3.bf16.msra.mxu0 %v9799_v17 }
  0xa4   : > { %8370 = vmatpush3.bf16.msra.mxu1 %v9804_v18  ;;  %8375 = vmatprep.subr.bf16.mxu0 %v9605_v1 }
  0xa5   : > { %8387 = vmatprep.subr.bf16.mxu1 %v9605_v1 }
  0xa6   : > { %8360 = vmatmul.mubr.msk.bf16.vlgmr.msra.gmra.mrb[36].mxu0 %vm430_vm1, %v9812_v20 }
  0xa7   : > { %8372 = vmatmul.mubr.msk.bf16.vlgmr.msra.gmra.mrb[36].mxu1 %vm430_vm1, %v10036_v42  ;;  %8376 = vmatpush3.bf16.msra.mxu0 %v9679_v0  ;;  %v10151_v0 = vld [vmem:[%s11736_s1 + $0x38] sm:$0xff]  }
  0xa8   : > { %8388 = vmatpush3.bf16.msra.mxu1 %v9686_v2  ;;  %8377 = vmatprep.subr.bf16.mxu0 %v9605_v1  ;;  %v10157_v2 = vld [vmem:[%s11736_s1 + $0x18] sm:$0xff]  }
  0xa9   : > { %8389 = vmatprep.subr.bf16.mxu1 %v9605_v1  ;;  %8383 = vmatprep.mubr.msk.bf16.mxu0 %vm9606_vm0, %v9605_v1 }
  0xaa   : > { %8395 = vmatprep.mubr.msk.bf16.mxu1 %vm9606_vm0, %v9605_v1 }
  0xab   : > { %8378 = vmatpush3.bf16.msra.mxu0 %v9692_v3  ;;  %v10169_v3 = vld [vmem:[%s11736_s1 + $0x40] sm:$0xff]  }
  0xac   : > { %8390 = vmatpush3.bf16.msra.mxu1 %v9701_v4  ;;  %8379 = vmatprep.subr.bf16.mxu0 %v9605_v1  ;;  %v9428_v4 = vld [vmem:[%s9732_s19 + $0x38] ss:$0 sps:$4 sm:$0x77]  }
  0xad   : > { %8391 = vmatprep.subr.bf16.mxu1 %v9605_v1  ;;  %v1790_v10 = vshrl.u32 %v9428_v4, 16 }
  0xaf   : > { %8380 = vmatpush3.bf16.msra.mxu0 %v9712_v5  ;;  %v10176_v5 = vld [vmem:[%s11736_s1 + $0x60] sm:$0xff]  }
  0xb0   : > { %8392 = vmatpush3.bf16.msra.mxu1 %v9720_v6  ;;  %8381 = vmatprep.subr.bf16.mxu0 %v9605_v1  ;;  %v10188_v6 = vld [vmem:[%s11736_s1 + $0x48] sm:$0xff]  }
  0xb1   : > { %8393 = vmatprep.subr.bf16.mxu1 %v9605_v1 }
  0xb3   : > { %8382 = vmatpush3.bf16.msra.mxu0 %v9727_v7  ;;  %v1792_v7 = vshll.u32 %v9428_v4, 16 }
  0xb4   : > { %8394 = vmatpush3.bf16.msra.mxu1 %v9739_v8  ;;  %8399 = vmatprep.subr.bf16.mxu0 %v9605_v1  ;;  %v10194_v8 = vld [vmem:[%s11736_s1 + $0x68] sm:$0xff]  }
  0xb5   : > { %8411 = vmatprep.subr.bf16.mxu1 %v9605_v1  ;;  %v1794_v11 = vrot.slane %v1792_v7, 1 }
  0xb6   : > { %8384 = vmatmul.mubr.msk.bf16.vlgmr.msra.gmra.mrb[40].mxu0 %vm430_vm1, %v10062_v47 }
  0xb7   : > { %8396 = vmatmul.mubr.msk.bf16.vlgmr.msra.gmra.mrb[40].mxu1 %vm430_vm1, %v9837_v21  ;;  %8400 = vmatpush3.bf16.msra.mxu0 %v9745_v9  ;;  %v10202_v9 = vld [vmem:[%s11736_s1 + $0x50] sm:$0xff]  }
  0xb8   : > { %8412 = vmatpush3.bf16.msra.mxu1 %v9757_v12  ;;  %8401 = vmatprep.subr.bf16.mxu0 %v9605_v1  ;;  %v10208_v12 = vld [vmem:[%s11736_s1 + $0x70] sm:$0xff]  }
  0xb9   : > { %8413 = vmatprep.subr.bf16.mxu1 %v9605_v1  ;;  %8407 = vmatprep.mubr.msk.bf16.mxu0 %vm9606_vm0, %v9605_v1 }
  0xba   : > { %8419 = vmatprep.mubr.msk.bf16.mxu1 %vm9606_vm0, %v9605_v1 }
  0xbb   : > { %8402 = vmatpush3.bf16.msra.mxu0 %v9767_v13  ;;  %v10214_v13 = vor.u32 %v1794_v11, %v1790_v10 }
  0xbc   : > { %8414 = vmatpush3.bf16.msra.mxu1 %v9774_v14  ;;  %8403 = vmatprep.subr.bf16.mxu0 %v9605_v1  ;;  %v9429_v14 = vld [vmem:[%s9732_s19 + $0x18] ss:$0 sps:$4 sm:$0x77]  }
  0xbd   : > { %8415 = vmatprep.subr.bf16.mxu1 %v9605_v1  ;;  %v1848_v34 = vshrl.u32 %v9429_v14, 16 }
  0xbf   : > { %8404 = vmatpush3.bf16.msra.mxu0 %v9782_v15 }
  0xc0   : > { %8416 = vmatpush3.bf16.msra.mxu1 %v9790_v16  ;;  %8405 = vmatprep.subr.bf16.mxu0 %v9605_v1 }
  0xc1   : > { %8417 = vmatprep.subr.bf16.mxu1 %v9605_v1 }
  0xc3   : > { %8406 = vmatpush3.bf16.msra.mxu0 %v9799_v17 }
  0xc4   : > { %8418 = vmatpush3.bf16.msra.mxu1 %v9804_v18  ;;  %8423 = vmatprep.subr.bf16.mxu0 %v9605_v1 }
  0xc5   : > { %8435 = vmatprep.subr.bf16.mxu1 %v9605_v1 }
  0xc6   : > { %8408 = vmatmul.mubr.msk.bf16.vlgmr.msra.gmra.mrb[44].mxu0 %vm430_vm1, %v9866_v24 }
  0xc7   : > { %8420 = vmatmul.mubr.msk.bf16.vlgmr.msra.gmra.mrb[44].mxu1 %vm430_vm1, %v10090_v52  ;;  %8424 = vmatpush3.bf16.msra.mxu0 %v10103_v54 }
  0xc8   : > { %8436 = vmatpush3.bf16.msra.mxu1 %v10109_v55  ;;  %8425 = vmatprep.subr.bf16.mxu0 %v9605_v1 }
  0xc9   : > { %8437 = vmatprep.subr.bf16.mxu1 %v9605_v1  ;;  %8431 = vmatprep.mubr.msk.bf16.mxu0 %vm9606_vm0, %v9605_v1 }
  0xca   : > { %8443 = vmatprep.mubr.msk.bf16.mxu1 %vm9606_vm0, %v9605_v1 }
  0xcb   : > { %8426 = vmatpush3.bf16.msra.mxu0 %v10121_v57 }
  0xcc   : > { %8438 = vmatpush3.bf16.msra.mxu1 %v10127_v58  ;;  %8427 = vmatprep.subr.bf16.mxu0 %v9605_v1 }
  0xcd   : > { %8439 = vmatprep.subr.bf16.mxu1 %v9605_v1 }
  0xcf   : > { %8428 = vmatpush3.bf16.msra.mxu0 %v10135_v61 }
  0xd0   : > { %8440 = vmatpush3.bf16.msra.mxu1 %v10141_v62  ;;  %8429 = vmatprep.subr.bf16.mxu0 %v9605_v1 }
  0xd1   : > { %8441 = vmatprep.subr.bf16.mxu1 %v9605_v1 }
  0xd3   : > { %8430 = vmatpush3.bf16.msra.mxu0 %v10151_v0 }
  0xd4   : > { %8442 = vmatpush3.bf16.msra.mxu1 %v10157_v2  ;;  %8447 = vmatprep.subr.bf16.mxu0 %v9605_v1 }
  0xd5   : > { %8459 = vmatprep.subr.bf16.mxu1 %v9605_v1 }
  0xd6   : > { %8432 = vmatmul.mubr.msk.bf16.vlgmr.msra.gmra.mrb[48].mxu0 %vm430_vm1, %v10146_v63 }
  0xd7   : > { %8444 = vmatmul.mubr.msk.bf16.vlgmr.msra.gmra.mrb[48].mxu1 %vm430_vm1, %v9891_v25  ;;  %8448 = vmatpush3.bf16.msra.mxu0 %v10169_v3 }
  0xd8   : > { %8460 = vmatpush3.bf16.msra.mxu1 %v10176_v5  ;;  %8449 = vmatprep.subr.bf16.mxu0 %v9605_v1 }
  0xd9   : > { %8461 = vmatprep.subr.bf16.mxu1 %v9605_v1  ;;  %8455 = vmatprep.mubr.msk.bf16.mxu0 %vm9606_vm0, %v9605_v1 }
  0xda   : > { %8467 = vmatprep.mubr.msk.bf16.mxu1 %vm9606_vm0, %v9605_v1 }
  0xdb   : > { %8450 = vmatpush3.bf16.msra.mxu0 %v10188_v6 }
  0xdc   : > { %8462 = vmatpush3.bf16.msra.mxu1 %v10194_v8  ;;  %8451 = vmatprep.subr.bf16.mxu0 %v9605_v1 }
  0xdd   : > { %8463 = vmatprep.subr.bf16.mxu1 %v9605_v1 }
  0xdf   : > { %8452 = vmatpush3.bf16.msra.mxu0 %v10202_v9 }
  0xe0   : > { %8464 = vmatpush3.bf16.msra.mxu1 %v10208_v12  ;;  %8453 = vmatprep.subr.bf16.mxu0 %v9605_v1 }
  0xe1   : > { %8465 = vmatprep.subr.bf16.mxu1 %v9605_v1 }
  0xe3   : > { %8454 = vmatpush3.bf16.msra.mxu0 %v9799_v17 }
  0xe4   : > { %8466 = vmatpush3.bf16.msra.mxu1 %v9804_v18  ;;  %8471 = vmatprep.subr.bf16.mxu0 %v9605_v1  ;;  %v1850_v18 = vshll.u32 %v9429_v14, 16 }
  0xe5   : > { %8483 = vmatprep.subr.bf16.mxu1 %v9605_v1 }
  0xe6   : > { %8456 = vmatmul.mubr.msk.bf16.vlgmr.msra.gmra.mrb[52].mxu0 %vm430_vm1, %v9925_v28  ;;  %v1852_v35 = vrot.slane %v1850_v18, 1 }
  0xe7   : > { %8468 = vmatmul.mubr.msk.bf16.vlgmr.msra.gmra.mrb[52].mxu1 %vm430_vm1, %v10214_v13  ;;  %8472 = vmatpush3.bf16.msra.mxu0 %v10103_v54 }
  0xe8   : > { %8484 = vmatpush3.bf16.msra.mxu1 %v10109_v55  ;;  %8473 = vmatprep.subr.bf16.mxu0 %v9605_v1  ;;  %v10240_v36 = vor.u32 %v1852_v35, %v1848_v34 }
  0xe9   : > { %v468_v15 = vpop.f32.mrb[0].mxu0  ;;  %8485 = vmatprep.subr.bf16.mxu1 %v9605_v1  ;;  %8479 = vmatprep.mubr.msk.bf16.mxu0 %vm9606_vm0, %v9605_v1 }
  0xea   : > { %v535_v16 = vpop.f32.mrb[0].mxu1  ;;  %v8145_v17 = vpop.f32.mrb[1].mxu0  ;;  %8491 = vmatprep.mubr.msk.bf16.mxu1 %vm9606_vm0, %v9605_v1 }
  0xeb   : > { %v536_v19 = vadd.f32 %v535_v16, %v468_v15  ;;  %v8157_v20 = vpop.f32.mrb[1].mxu1  ;;  %v471_v21 = vpop.f32.mrb[2].mxu0  ;;  %8474 = vmatpush3.bf16.msra.mxu0 %v10121_v57 }
  0xec   : > { %v538_v22 = vpop.f32.mrb[2].mxu1  ;;  %8486 = vmatpush3.bf16.msra.mxu1 %v10127_v58  ;;  %v8146_v23 = vpop.f32.mrb[3].mxu0  ;;  %8475 = vmatprep.subr.bf16.mxu0 %v9605_v1  ;;  %v9573_v20 = vld [vmem:[%s9732_s19 + $0x28] sm:$0x3] }
  0xed   : > { %v8158_v33 = vpop.f32.mrb[3].mxu1  ;;  %8487 = vmatprep.subr.bf16.mxu1 %v9605_v1 }
  0xef   : > { %8476 = vmatpush3.bf16.msra.mxu0 %v10135_v61 }
  0xf0   : > { %8488 = vmatpush3.bf16.msra.mxu1 %v10141_v62  ;;  %8477 = vmatprep.subr.bf16.mxu0 %v9605_v1 }
  0xf1   : > { %8489 = vmatprep.subr.bf16.mxu1 %v9605_v1 }
  0xf3   : > { %8478 = vmatpush3.bf16.msra.mxu0 %v10151_v0 }
  0xf4   : > { %8490 = vmatpush3.bf16.msra.mxu1 %v10157_v2  ;;  %8495 = vmatprep.subr.bf16.mxu0 %v9605_v1 }
  0xf5   : > { %8507 = vmatprep.subr.bf16.mxu1 %v9605_v1 }
  0xf6   : > { %8480 = vmatmul.mubr.msk.bf16.vlgmr.msra.gmra.mrb[56].mxu0 %vm430_vm1, %v10240_v36 }
  0xf7   : > { %8492 = vmatmul.mubr.msk.bf16.vlgmr.msra.gmra.mrb[56].mxu1 %vm430_vm1, %v9952_v29  ;;  %8496 = vmatpush3.bf16.msra.mxu0 %v10169_v3 }
  0xf8   : > { %8508 = vmatpush3.bf16.msra.mxu1 %v10176_v5  ;;  %8497 = vmatprep.subr.bf16.mxu0 %v9605_v1 }
  0xf9   : > { %v613_v38 = vpop.f32.mrb[4].mxu0  ;;  %8509 = vmatprep.subr.bf16.mxu1 %v9605_v1  ;;  %8503 = vmatprep.mubr.msk.bf16.mxu0 %vm9606_vm0, %v9605_v1 }
  0xfa   : > { %v619_v39 = vadd.f32 %v613_v38, %v536_v19  ;;  %v692_v40 = vpop.f32.mrb[4].mxu1  ;;  %v8169_v41 = vpop.f32.mrb[5].mxu0  ;;  %8515 = vmatprep.mubr.msk.bf16.mxu1 %vm9606_vm0, %v9605_v1  ;;  %v10310_v19 = vld [vmem:[%s9732_s19 + $0x2c] sm:$0x3] }
  0xfb   : > { %v8181_v43 = vpop.f32.mrb[5].mxu1  ;;  %v616_v44 = vpop.f32.mrb[6].mxu0  ;;  %8498 = vmatpush3.bf16.msra.mxu0 %v10188_v6  ;;  %v9574_v41 = vld [vmem:[%s9732_s19 + $0x8] sm:$0x3] }
  0xfc   : > { %v10260_v46 = vadd.f32 %v692_v40, %v619_v39  ;;  %v695_v48 = vpop.f32.mrb[6].mxu1  ;;  %8510 = vmatpush3.bf16.msra.mxu1 %v10194_v8  ;;  %v8170_v49 = vpop.f32.mrb[7].mxu0  ;;  %8499 = vmatprep.subr.bf16.mxu0 %v9605_v1  ;;  %v10341_v43 = vld [vmem:[%s9732_s19 + $0xc] sm:$0x3] }
  0xfd   : > { %v8182_v50 = vpop.f32.mrb[7].mxu1  ;;  %8511 = vmatprep.subr.bf16.mxu1 %v9605_v1 }
  0xff   : > { %8500 = vmatpush3.bf16.msra.mxu0 %v10202_v9 }
 0x100   : > { %8512 = vmatpush3.bf16.msra.mxu1 %v10208_v12  ;;  %8501 = vmatprep.subr.bf16.mxu0 %v9605_v1 }
 0x101   : > { %8513 = vmatprep.subr.bf16.mxu1 %v9605_v1 }
 0x103   : > { %8502 = vmatpush3.bf16.msra.mxu0 %v10272_v56 }
 0x104   : > { %8514 = vmatpush3.bf16.msra.mxu1 %v10280_v60  ;;  %8519 = vmatprep.subr.bf16.mxu0 %v9605_v1 }
 0x105   : > { %8531 = vmatprep.subr.bf16.mxu1 %v9605_v1 }
 0x106   : > { %8504 = vmatmul.mubr.msk.bf16.vlgmr.msra.gmra.mrb[60].mxu0 %vm430_vm1, %v9986_v32 }
 0x107   : > { %8516 = vmatmul.mubr.msk.bf16.vlgmr.msra.gmra.mrb[60].mxu1 %vm430_vm1, %v10275_v59  ;;  %8520 = vmatpush3.bf16.msra.mxu0 %v10103_v54 }
 0x108   : > { %8532 = vmatpush3.bf16.msra.mxu1 %v10109_v55  ;;  %8521 = vmatprep.subr.bf16.mxu0 %v9605_v1 }
 0x109   : > { %v750_v4 = vpop.f32.mrb[8].mxu0  ;;  %8533 = vmatprep.subr.bf16.mxu1 %v9605_v1  ;;  %8527 = vmatprep.mubr.msk.bf16.mxu0 %vm9606_vm0, %v9605_v1 }
 0x10a   : > { %v793_v7 = vpop.f32.mrb[8].mxu1  ;;  %v8193_v10 = vpop.f32.mrb[9].mxu0  ;;  %8539 = vmatprep.mubr.msk.bf16.mxu1 %vm9606_vm0, %v9605_v1 }
 0x10b   : > { %v794_v11 = vadd.f32 %v793_v7, %v750_v4  ;;  %v8205_v14 = vpop.f32.mrb[9].mxu1  ;;  %v753_v15 = vpop.f32.mrb[10].mxu0  ;;  %8522 = vmatpush3.bf16.msra.mxu0 %v10121_v57  ;;  %v9576_v10 = vld [vmem:[%s9732_s19 + $0x30] sm:$0x3] }
 0x10c   : > { %v796_v16 = vpop.f32.mrb[10].mxu1  ;;  %8534 = vmatpush3.bf16.msra.mxu1 %v10127_v58  ;;  %v8194_v17 = vpop.f32.mrb[11].mxu0  ;;  %8523 = vmatprep.subr.bf16.mxu0 %v9605_v1 }
 0x10d   : > { %v8206_v18 = vpop.f32.mrb[11].mxu1  ;;  %8535 = vmatprep.subr.bf16.mxu1 %v9605_v1 }
 0x10f   : > { %8524 = vmatpush3.bf16.msra.mxu0 %v10135_v61 }
 0x110   : > { %8536 = vmatpush3.bf16.msra.mxu1 %v10141_v62  ;;  %8525 = vmatprep.subr.bf16.mxu0 %v9605_v1 }
 0x111   : > { %8537 = vmatprep.subr.bf16.mxu1 %v9605_v1 }
 0x113   : > { %8526 = vmatpush3.bf16.msra.mxu0 %v10151_v0 }
 0x114   : > { %8538 = vmatpush3.bf16.msra.mxu1 %v10157_v2  ;;  %8543 = vmatprep.subr.bf16.mxu0 %v9605_v1 }
 0x115   : > { %8555 = vmatprep.subr.bf16.mxu1 %v9605_v1 }
 0x116   : > { %8528 = vmatmul.mubr.msk.bf16.vlgmr.msra.gmra.mrb[64].mxu0 %vm430_vm1, %v10310_v19 }
 0x117   : > { %8540 = vmatmul.mubr.msk.bf16.vlgmr.msra.gmra.mrb[64].mxu1 %vm430_vm1, %v9573_v20  ;;  %8544 = vmatpush3.bf16.msra.mxu0 %v10169_v3 }
 0x118   : > { %8556 = vmatpush3.bf16.msra.mxu1 %v10176_v5  ;;  %8545 = vmatprep.subr.bf16.mxu0 %v9605_v1 }
 0x119   : > { %v838_v21 = vpop.f32.mrb[12].mxu0  ;;  %8557 = vmatprep.subr.bf16.mxu1 %v9605_v1  ;;  %8551 = vmatprep.mubr.msk.bf16.mxu0 %vm9606_vm0, %v9605_v1 }
 0x11a   : > { %v844_v22 = vadd.f32 %v838_v21, %v794_v11  ;;  %v884_v23 = vpop.f32.mrb[12].mxu1  ;;  %v8217_v33 = vpop.f32.mrb[13].mxu0  ;;  %8563 = vmatprep.mubr.msk.bf16.mxu1 %vm9606_vm0, %v9605_v1 }
 0x11b   : > { %v8229_v34 = vpop.f32.mrb[13].mxu1  ;;  %v841_v35 = vpop.f32.mrb[14].mxu0  ;;  %8546 = vmatpush3.bf16.msra.mxu0 %v10188_v6 }
 0x11c   : > { %v10325_v37 = vadd.f32 %v884_v23, %v844_v22  ;;  %v887_v38 = vpop.f32.mrb[14].mxu1  ;;  %8558 = vmatpush3.bf16.msra.mxu1 %v10194_v8  ;;  %v8218_v39 = vpop.f32.mrb[15].mxu0  ;;  %8547 = vmatprep.subr.bf16.mxu0 %v9605_v1 }
 0x11d   : > { %v8230_v40 = vpop.f32.mrb[15].mxu1  ;;  %8559 = vmatprep.subr.bf16.mxu1 %v9605_v1 }
 0x11f   : > { %8548 = vmatpush3.bf16.msra.mxu0 %v10202_v9 }
 0x120   : > { %8560 = vmatpush3.bf16.msra.mxu1 %v10208_v12  ;;  %8549 = vmatprep.subr.bf16.mxu0 %v9605_v1 }
 0x121   : > { %8561 = vmatprep.subr.bf16.mxu1 %v9605_v1 }
 0x123   : > { %8550 = vmatpush3.bf16.msra.mxu0 %v10272_v56 }
 0x124   : > { %8562 = vmatpush3.bf16.msra.mxu1 %v10280_v60  ;;  %8567 = vmatprep.subr.bf16.mxu0 %v9605_v1 }
 0x125   : > { %8579 = vmatprep.subr.bf16.mxu1 %v9605_v1 }
 0x126   : > { %8552 = vmatmul.mubr.msk.bf16.vlgmr.msra.gmra.mrb[68].mxu0 %vm430_vm1, %v9574_v41 }
 0x127   : > { %8564 = vmatmul.mubr.msk.bf16.vlgmr.msra.gmra.mrb[68].mxu1 %vm430_vm1, %v10341_v43  ;;  %8568 = vmatpush3.bf16.msra.mxu0 %v10103_v54 }
 0x128   : > { %8580 = vmatpush3.bf16.msra.mxu1 %v10109_v55  ;;  %8569 = vmatprep.subr.bf16.mxu0 %v9605_v1 }
 0x129   : > { %v935_v44 = vpop.f32.mrb[16].mxu0  ;;  %8581 = vmatprep.subr.bf16.mxu1 %v9605_v1  ;;  %8575 = vmatprep.mubr.msk.bf16.mxu0 %vm9606_vm0, %v9605_v1 }
 0x12a   : > { %v978_v45 = vpop.f32.mrb[16].mxu1  ;;  %v8241_v48 = vpop.f32.mrb[17].mxu0  ;;  %8587 = vmatprep.mubr.msk.bf16.mxu1 %vm9606_vm0, %v9605_v1 }
 0x12b   : > { %v979_v49 = vadd.f32 %v978_v45, %v935_v44  ;;  %v8253_v50 = vpop.f32.mrb[17].mxu1  ;;  %v938_v51 = vpop.f32.mrb[18].mxu0  ;;  %8570 = vmatpush3.bf16.msra.mxu0 %v10121_v57 }
 0x12c   : > { %v981_v53 = vpop.f32.mrb[18].mxu1  ;;  %8582 = vmatpush3.bf16.msra.mxu1 %v10127_v58  ;;  %v8242_v4 = vpop.f32.mrb[19].mxu0  ;;  %8571 = vmatprep.subr.bf16.mxu0 %v9605_v1 }
 0x12d   : > { %v8254_v7 = vpop.f32.mrb[19].mxu1  ;;  %8583 = vmatprep.subr.bf16.mxu1 %v9605_v1 }
 0x12f   : > { %8572 = vmatpush3.bf16.msra.mxu0 %v10135_v61 }
 0x130   : > { %8584 = vmatpush3.bf16.msra.mxu1 %v10141_v62  ;;  %8573 = vmatprep.subr.bf16.mxu0 %v9605_v1 }
 0x131   : > { %8585 = vmatprep.subr.bf16.mxu1 %v9605_v1 }
 0x133   : > { %8574 = vmatpush3.bf16.msra.mxu0 %v10151_v0 }
 0x134   : > { %8586 = vmatpush3.bf16.msra.mxu1 %v10157_v2  ;;  %8591 = vmatprep.subr.bf16.mxu0 %v9605_v1 }
 0x135   : > { %8603 = vmatprep.subr.bf16.mxu1 %v9605_v1 }
 0x136   : > { %8576 = vmatmul.mubr.msk.bf16.vlgmr.msra.gmra.mrb[72].mxu0 %vm430_vm1, %v9866_v24 }
 0x137   : > { %8588 = vmatmul.mubr.msk.bf16.vlgmr.msra.gmra.mrb[72].mxu1 %vm430_vm1, %v9576_v10  ;;  %8592 = vmatpush3.bf16.msra.mxu0 %v10169_v3 }
 0x138   : > { %8604 = vmatpush3.bf16.msra.mxu1 %v10176_v5  ;;  %8593 = vmatprep.subr.bf16.mxu0 %v9605_v1 }
 0x139   : > { %v1023_v11 = vpop.f32.mrb[20].mxu0  ;;  %8605 = vmatprep.subr.bf16.mxu1 %v9605_v1  ;;  %8599 = vmatprep.mubr.msk.bf16.mxu0 %vm9606_vm0, %v9605_v1 }
 0x13a   : > { %v1029_v14 = vadd.f32 %v1023_v11, %v979_v49  ;;  %v1069_v15 = vpop.f32.mrb[20].mxu1  ;;  %v8265_v16 = vpop.f32.mrb[21].mxu0  ;;  %8611 = vmatprep.mubr.msk.bf16.mxu1 %vm9606_vm0, %v9605_v1 }
 0x13b   : > { %v8277_v24 = vpop.f32.mrb[21].mxu1  ;;  %v1026_v17 = vpop.f32.mrb[22].mxu0  ;;  %8594 = vmatpush3.bf16.msra.mxu0 %v10188_v6 }
 0x13c   : > { %v10378_v18 = vadd.f32 %v1069_v15, %v1029_v14  ;;  %v1072_v20 = vpop.f32.mrb[22].mxu1  ;;  %8606 = vmatpush3.bf16.msra.mxu1 %v10194_v8  ;;  %v8266_v21 = vpop.f32.mrb[23].mxu0  ;;  %8595 = vmatprep.subr.bf16.mxu0 %v9605_v1 }
 0x13d   : > { %v8278_v22 = vpop.f32.mrb[23].mxu1  ;;  %8607 = vmatprep.subr.bf16.mxu1 %v9605_v1 }
 0x13f   : > { %8596 = vmatpush3.bf16.msra.mxu0 %v10202_v9 }
 0x140   : > { %8608 = vmatpush3.bf16.msra.mxu1 %v10208_v12  ;;  %8597 = vmatprep.subr.bf16.mxu0 %v9605_v1 }
 0x141   : > { %8609 = vmatprep.subr.bf16.mxu1 %v9605_v1 }
 0x143   : > { %8598 = vmatpush3.bf16.msra.mxu0 %v10272_v56 }
 0x144   : > { %8610 = vmatpush3.bf16.msra.mxu1 %v10280_v60  ;;  %8615 = vmatprep.subr.bf16.mxu0 %v9605_v1 }
 0x145   : > { %8627 = vmatprep.subr.bf16.mxu1 %v9605_v1 }
 0x146   : > { %8600 = vmatmul.mubr.msk.bf16.vlgmr.msra.gmra.mrb[76].mxu0 %vm430_vm1, %v9895_v26 }
 0x147   : > { %8612 = vmatmul.mubr.msk.bf16.vlgmr.msra.gmra.mrb[76].mxu1 %vm430_vm1, %v9891_v25  ;;  %8616 = vmatpush3.bf16.msra.mxu0 %v10103_v54 }
 0x148   : > { %8628 = vmatpush3.bf16.msra.mxu1 %v10109_v55  ;;  %8617 = vmatprep.subr.bf16.mxu0 %v9605_v1 }
 0x149   : > { %v1120_v23 = vpop.f32.mrb[24].mxu0  ;;  %8629 = vmatprep.subr.bf16.mxu1 %v9605_v1  ;;  %8623 = vmatprep.mubr.msk.bf16.mxu0 %vm9606_vm0, %v9605_v1 }
 0x14a   : > { %v1163_v33 = vpop.f32.mrb[24].mxu1  ;;  %v8289_v34 = vpop.f32.mrb[25].mxu0  ;;  %8635 = vmatprep.mubr.msk.bf16.mxu1 %vm9606_vm0, %v9605_v1 }
 0x14b   : > { %v1164_v26 = vadd.f32 %v1163_v33, %v1120_v23  ;;  %v8301_v35 = vpop.f32.mrb[25].mxu1  ;;  %v1123_v25 = vpop.f32.mrb[26].mxu0  ;;  %8618 = vmatpush3.bf16.msra.mxu0 %v10121_v57 }
 0x14c   : > { %v1166_v38 = vpop.f32.mrb[26].mxu1  ;;  %8630 = vmatpush3.bf16.msra.mxu1 %v10127_v58  ;;  %v8290_v39 = vpop.f32.mrb[27].mxu0  ;;  %8619 = vmatprep.subr.bf16.mxu0 %v9605_v1  ;;  %v10491_v35 = vld [vmem:[%s9732_s19 + $0x24] sm:$0x3] }
 0x14d   : > { %v8302_v40 = vpop.f32.mrb[27].mxu1  ;;  %8631 = vmatprep.subr.bf16.mxu1 %v9605_v1 }
 0x14f   : > { %8620 = vmatpush3.bf16.msra.mxu0 %v10135_v61 }
 0x150   : > { %8632 = vmatpush3.bf16.msra.mxu1 %v10141_v62  ;;  %8621 = vmatprep.subr.bf16.mxu0 %v9605_v1 }
 0x151   : > { %8633 = vmatprep.subr.bf16.mxu1 %v9605_v1 }
 0x153   : > { %8622 = vmatpush3.bf16.msra.mxu0 %v10151_v0 }
 0x154   : > { %8634 = vmatpush3.bf16.msra.mxu1 %v10157_v2  ;;  %8639 = vmatprep.subr.bf16.mxu0 %v9605_v1 }
 0x155   : > { %8651 = vmatprep.subr.bf16.mxu1 %v9605_v1 }
 0x156   : > { %8624 = vmatmul.mubr.msk.bf16.vlgmr.msra.gmra.mrb[80].mxu0 %vm430_vm1, %v9925_v28 }
 0x157   : > { %8636 = vmatmul.mubr.msk.bf16.vlgmr.msra.gmra.mrb[80].mxu1 %vm430_vm1, %v9921_v27  ;;  %8640 = vmatpush3.bf16.msra.mxu0 %v10169_v3 }
 0x158   : > { %8652 = vmatpush3.bf16.msra.mxu1 %v10176_v5  ;;  %8641 = vmatprep.subr.bf16.mxu0 %v9605_v1 }
 0x159   : > { %v1208_v41 = vpop.f32.mrb[28].mxu0  ;;  %8653 = vmatprep.subr.bf16.mxu1 %v9605_v1  ;;  %8647 = vmatprep.mubr.msk.bf16.mxu0 %vm9606_vm0, %v9605_v1 }
 0x15a   : > { %v1214_v44 = vadd.f32 %v1208_v41, %v1164_v26  ;;  %v1254_v45 = vpop.f32.mrb[28].mxu1  ;;  %v8313_v48 = vpop.f32.mrb[29].mxu0  ;;  %8659 = vmatprep.mubr.msk.bf16.mxu1 %vm9606_vm0, %v9605_v1  ;;  %v7258_v26 = vld [vmem:[%s9732_s19 + $0x20] sm:$0x3] }
 0x15b   : > { %v8325_v28 = vpop.f32.mrb[29].mxu1  ;;  %v1211_v27 = vpop.f32.mrb[30].mxu0  ;;  %8642 = vmatpush3.bf16.msra.mxu0 %v10188_v6 }
 0x15c   : > { %v10428_v49 = vadd.f32 %v1254_v45, %v1214_v44  ;;  %v1257_v50 = vpop.f32.mrb[30].mxu1  ;;  %8654 = vmatpush3.bf16.msra.mxu1 %v10194_v8  ;;  %v8314_v51 = vpop.f32.mrb[31].mxu0  ;;  %8643 = vmatprep.subr.bf16.mxu0 %v9605_v1 }
 0x15d   : > { %v8326_v53 = vpop.f32.mrb[31].mxu1  ;;  %8655 = vmatprep.subr.bf16.mxu1 %v9605_v1 }
 0x15f   : > { %8644 = vmatpush3.bf16.msra.mxu0 %v10202_v9 }
 0x160   : > { %8656 = vmatpush3.bf16.msra.mxu1 %v10208_v12  ;;  %8645 = vmatprep.subr.bf16.mxu0 %v9605_v1 }
 0x161   : > { %8657 = vmatprep.subr.bf16.mxu1 %v9605_v1 }
 0x163   : > { %8646 = vmatpush3.bf16.msra.mxu0 %v10272_v56 }
 0x164   : > { %8658 = vmatpush3.bf16.msra.mxu1 %v10280_v60  ;;  %8663 = vmatprep.subr.bf16.mxu0 %v9605_v1 }
 0x165   : > { %8675 = vmatprep.subr.bf16.mxu1 %v9605_v1 }
 0x166   : > { %8648 = vmatmul.mubr.msk.bf16.vlgmr.msra.gmra.mrb[84].mxu0 %vm430_vm1, %v9956_v30 }
 0x167   : > { %8660 = vmatmul.mubr.msk.bf16.vlgmr.msra.gmra.mrb[84].mxu1 %vm430_vm1, %v9952_v29  ;;  %8664 = vmatpush3.bf16.msra.mxu0 %v10103_v54 }
 0x168   : > { %8676 = vmatpush3.bf16.msra.mxu1 %v10109_v55  ;;  %8665 = vmatprep.subr.bf16.mxu0 %v9605_v1 }
 0x169   : > { %v1312_v4 = vpop.f32.mrb[32].mxu0  ;;  %8677 = vmatprep.subr.bf16.mxu1 %v9605_v1  ;;  %8671 = vmatprep.mubr.msk.bf16.mxu0 %vm9606_vm0, %v9605_v1 }
 0x16a   : > { %v1352_v7 = vpop.f32.mrb[32].mxu1  ;;  %v8337_v10 = vpop.f32.mrb[33].mxu0  ;;  %8683 = vmatprep.mubr.msk.bf16.mxu1 %vm9606_vm0, %v9605_v1 }
 0x16b   : > { %v1353_v30 = vadd.f32 %v1352_v7, %v1312_v4  ;;  %v8349_v11 = vpop.f32.mrb[33].mxu1  ;;  %v1315_v29 = vpop.f32.mrb[34].mxu0  ;;  %8666 = vmatpush3.bf16.msra.mxu0 %v10121_v57 }
 0x16c   : > { %v1355_v14 = vpop.f32.mrb[34].mxu1  ;;  %8678 = vmatpush3.bf16.msra.mxu1 %v10127_v58  ;;  %v8338_v15 = vpop.f32.mrb[35].mxu0  ;;  %8667 = vmatprep.subr.bf16.mxu0 %v9605_v1 }
 0x16d   : > { %v8350_v16 = vpop.f32.mrb[35].mxu1  ;;  %8679 = vmatprep.subr.bf16.mxu1 %v9605_v1 }
 0x16f   : > { %8668 = vmatpush3.bf16.msra.mxu0 %v10135_v61 }
 0x170   : > { %8680 = vmatpush3.bf16.msra.mxu1 %v10141_v62  ;;  %8669 = vmatprep.subr.bf16.mxu0 %v9605_v1 }
 0x171   : > { %8681 = vmatprep.subr.bf16.mxu1 %v9605_v1 }
 0x173   : > { %8670 = vmatpush3.bf16.msra.mxu0 %v10151_v0 }
 0x174   : > { %8682 = vmatpush3.bf16.msra.mxu1 %v10157_v2  ;;  %8687 = vmatprep.subr.bf16.mxu0 %v9605_v1 }
 0x175   : > { %8699 = vmatprep.subr.bf16.mxu1 %v9605_v1 }
 0x176   : > { %8672 = vmatmul.mubr.msk.bf16.vlgmr.msra.gmra.mrb[88].mxu0 %vm430_vm1, %v9986_v32 }
 0x177   : > { %8684 = vmatmul.mubr.msk.bf16.vlgmr.msra.gmra.mrb[88].mxu1 %vm430_vm1, %v9982_v31  ;;  %8688 = vmatpush3.bf16.msra.mxu0 %v10169_v3 }
 0x178   : > { %8700 = vmatpush3.bf16.msra.mxu1 %v10176_v5  ;;  %8689 = vmatprep.subr.bf16.mxu0 %v9605_v1 }
 0x179   : > { %v1392_v24 = vpop.f32.mrb[36].mxu0  ;;  %8701 = vmatprep.subr.bf16.mxu1 %v9605_v1  ;;  %8695 = vmatprep.mubr.msk.bf16.mxu0 %vm9606_vm0, %v9605_v1 }
 0x17a   : > { %v1398_v17 = vadd.f32 %v1392_v24, %v1353_v30  ;;  %v1447_v20 = vpop.f32.mrb[36].mxu1  ;;  %v8361_v21 = vpop.f32.mrb[37].mxu0  ;;  %8707 = vmatprep.mubr.msk.bf16.mxu1 %vm9606_vm0, %v9605_v1 }
 0x17b   : > { %v8373_v31 = vpop.f32.mrb[37].mxu1  ;;  %v1395_v32 = vpop.f32.mrb[38].mxu0  ;;  %8690 = vmatpush3.bf16.msra.mxu0 %v10188_v6 }
 0x17c   : > { %v10478_v22 = vadd.f32 %v1447_v20, %v1398_v17  ;;  %v1450_v23 = vpop.f32.mrb[38].mxu1  ;;  %8702 = vmatpush3.bf16.msra.mxu1 %v10194_v8  ;;  %v8362_v33 = vpop.f32.mrb[39].mxu0  ;;  %8691 = vmatprep.subr.bf16.mxu0 %v9605_v1  ;;  %v9577_v20 = vld [vmem:[%s9732_s19 + $0x34] sm:$0x3] }
 0x17d   : > { %v8374_v34 = vpop.f32.mrb[39].mxu1  ;;  %8703 = vmatprep.subr.bf16.mxu1 %v9605_v1 }
 0x17f   : > { %8692 = vmatpush3.bf16.msra.mxu0 %v10202_v9 }
 0x180   : > { %8704 = vmatpush3.bf16.msra.mxu1 %v10208_v12  ;;  %8693 = vmatprep.subr.bf16.mxu0 %v9605_v1 }
 0x181   : > { %8705 = vmatprep.subr.bf16.mxu1 %v9605_v1 }
 0x183   : > { %8694 = vmatpush3.bf16.msra.mxu0 %v10272_v56 }
 0x184   : > { %8706 = vmatpush3.bf16.msra.mxu1 %v10280_v60  ;;  %8711 = vmatprep.subr.bf16.mxu0 %v9605_v1 }
 0x185   : > { %8723 = vmatprep.subr.bf16.mxu1 %v9605_v1 }
 0x186   : > { %8696 = vmatmul.mubr.msk.bf16.vlgmr.msra.gmra.mrb[92].mxu0 %vm430_vm1, %v7258_v26 }
 0x187   : > { %8708 = vmatmul.mubr.msk.bf16.vlgmr.msra.gmra.mrb[92].mxu1 %vm430_vm1, %v10491_v35  ;;  %8712 = vmatpush3.bf16.msra.mxu0 %v10103_v54 }
 0x188   : > { %8724 = vmatpush3.bf16.msra.mxu1 %v10109_v55  ;;  %8713 = vmatprep.subr.bf16.mxu0 %v9605_v1 }
 0x189   : > { %v1505_v25 = vpop.f32.mrb[40].mxu0  ;;  %8725 = vmatprep.subr.bf16.mxu1 %v9605_v1  ;;  %8719 = vmatprep.mubr.msk.bf16.mxu0 %vm9606_vm0, %v9605_v1 }
 0x18a   : > { %v1545_v38 = vpop.f32.mrb[40].mxu1  ;;  %v8385_v39 = vpop.f32.mrb[41].mxu0  ;;  %8731 = vmatprep.mubr.msk.bf16.mxu1 %vm9606_vm0, %v9605_v1 }
 0x18b   : > { %v1546_v40 = vadd.f32 %v1545_v38, %v1505_v25  ;;  %v8397_v41 = vpop.f32.mrb[41].mxu1  ;;  %v1508_v44 = vpop.f32.mrb[42].mxu0  ;;  %8714 = vmatpush3.bf16.msra.mxu0 %v10121_v57  ;;  %v9578_v39 = vld [vmem:[%s9732_s19 + $0x14] sm:$0x3] }
 0x18c   : > { %v1548_v45 = vpop.f32.mrb[42].mxu1  ;;  %8726 = vmatpush3.bf16.msra.mxu1 %v10127_v58  ;;  %v8386_v48 = vpop.f32.mrb[43].mxu0  ;;  %8715 = vmatprep.subr.bf16.mxu0 %v9605_v1 }
 0x18d   : > { %v8398_v28 = vpop.f32.mrb[43].mxu1  ;;  %8727 = vmatprep.subr.bf16.mxu1 %v9605_v1 }
 0x18f   : > { %8716 = vmatpush3.bf16.msra.mxu0 %v10135_v61 }
 0x190   : > { %8728 = vmatpush3.bf16.msra.mxu1 %v10141_v62  ;;  %8717 = vmatprep.subr.bf16.mxu0 %v9605_v1 }
 0x191   : > { %8729 = vmatprep.subr.bf16.mxu1 %v9605_v1 }
 0x193   : > { %8718 = vmatpush3.bf16.msra.mxu0 %v10151_v0 }
 0x194   : > { %8730 = vmatpush3.bf16.msra.mxu1 %v10157_v2  ;;  %8735 = vmatprep.subr.bf16.mxu0 %v9605_v1 }
 0x195   : > { %8747 = vmatprep.subr.bf16.mxu1 %v9605_v1 }
 0x196   : > { %8720 = vmatmul.mubr.msk.bf16.vlgmr.msra.gmra.mrb[96].mxu0 %vm430_vm1, %v10036_v42 }
 0x197   : > { %8732 = vmatmul.mubr.msk.bf16.vlgmr.msra.gmra.mrb[96].mxu1 %vm430_vm1, %v10310_v19  ;;  %8736 = vmatpush3.bf16.msra.mxu0 %v10169_v3 }
 0x198   : > { %8748 = vmatpush3.bf16.msra.mxu1 %v10176_v5  ;;  %8737 = vmatprep.subr.bf16.mxu0 %v9605_v1 }
 0x199   : > { %v1585_v27 = vpop.f32.mrb[44].mxu0  ;;  %8749 = vmatprep.subr.bf16.mxu1 %v9605_v1  ;;  %8743 = vmatprep.mubr.msk.bf16.mxu0 %vm9606_vm0, %v9605_v1 }
 0x19a   : > { %v1591_v50 = vadd.f32 %v1585_v27, %v1546_v40  ;;  %v1640_v51 = vpop.f32.mrb[44].mxu1  ;;  %v8409_v53 = vpop.f32.mrb[45].mxu0  ;;  %8755 = vmatprep.mubr.msk.bf16.mxu1 %vm9606_vm0, %v9605_v1 }
 0x19b   : > { %v8421_v42 = vpop.f32.mrb[45].mxu1  ;;  %v1588_v19 = vpop.f32.mrb[46].mxu0  ;;  %8738 = vmatpush3.bf16.msra.mxu0 %v10188_v6 }
 0x19c   : > { %v10531_v4 = vadd.f32 %v1640_v51, %v1591_v50  ;;  %v1643_v7 = vpop.f32.mrb[46].mxu1  ;;  %8750 = vmatpush3.bf16.msra.mxu1 %v10194_v8  ;;  %v8410_v10 = vpop.f32.mrb[47].mxu0  ;;  %8739 = vmatprep.subr.bf16.mxu0 %v9605_v1 }
 0x19d   : > { %v8422_v30 = vpop.f32.mrb[47].mxu1  ;;  %8751 = vmatprep.subr.bf16.mxu1 %v9605_v1  ;;  %v9583_v7 = vld [vmem:[%s11736_s1 + $0x28] sm:$0xff]  }
 0x19e   : > { %v9584_v30 = vld [vmem:[%s11736_s1 + $0x8] sm:$0xff]  }
 0x19f   : > { %8740 = vmatpush3.bf16.msra.mxu0 %v10202_v9 }
 0x1a0   : > { %8752 = vmatpush3.bf16.msra.mxu1 %v10208_v12  ;;  %8741 = vmatprep.subr.bf16.mxu0 %v9605_v1 }
 0x1a1   : > { %8753 = vmatprep.subr.bf16.mxu1 %v9605_v1 }
 0x1a3   : > { %8742 = vmatpush3.bf16.msra.mxu0 %v10272_v56 }
 0x1a4   : > { %8754 = vmatpush3.bf16.msra.mxu1 %v10280_v60  ;;  %8759 = vmatprep.subr.bf16.mxu0 %v9605_v1 }
 0x1a5   : > { %8771 = vmatprep.subr.bf16.mxu1 %v9605_v1 }
 0x1a6   : > { %8744 = vmatmul.mubr.msk.bf16.vlgmr.msra.gmra.mrb[100].mxu0 %vm430_vm1, %v10341_v43 }
 0x1a7   : > { %8756 = vmatmul.mubr.msk.bf16.vlgmr.msra.gmra.mrb[100].mxu1 %vm430_vm1, %v10062_v47  ;;  %8760 = vmatpush3.bf16.msra.mxu0 %v10103_v54 }
 0x1a8   : > { %8772 = vmatpush3.bf16.msra.mxu1 %v10109_v55  ;;  %8761 = vmatprep.subr.bf16.mxu0 %v9605_v1 }
 0x1a9   : > { %v1698_v11 = vpop.f32.mrb[48].mxu0  ;;  %8773 = vmatprep.subr.bf16.mxu1 %v9605_v1  ;;  %8767 = vmatprep.mubr.msk.bf16.mxu0 %vm9606_vm0, %v9605_v1 }
 0x1aa   : > { %v1738_v29 = vpop.f32.mrb[48].mxu1  ;;  %v8433_v14 = vpop.f32.mrb[49].mxu0  ;;  %8779 = vmatprep.mubr.msk.bf16.mxu1 %vm9606_vm0, %v9605_v1 }
 0x1ab   : > { %v1739_v43 = vadd.f32 %v1738_v29, %v1698_v11  ;;  %v8445_v15 = vpop.f32.mrb[49].mxu1  ;;  %v1701_v47 = vpop.f32.mrb[50].mxu0  ;;  %8762 = vmatpush3.bf16.msra.mxu0 %v10121_v57  ;;  %v9585_v14 = vld [vmem:[%s11736_s1 + $0x30] sm:$0xff]  }
 0x1ac   : > { %v1741_v16 = vpop.f32.mrb[50].mxu1  ;;  %8774 = vmatpush3.bf16.msra.mxu1 %v10127_v58  ;;  %v8434_v24 = vpop.f32.mrb[51].mxu0  ;;  %8763 = vmatprep.subr.bf16.mxu0 %v9605_v1  ;;  %v9587_v15 = vld [vmem:[%s11736_s1 + $0x38] sm:$0xff]  }
 0x1ad   : > { %v8446_v17 = vpop.f32.mrb[51].mxu1  ;;  %8775 = vmatprep.subr.bf16.mxu1 %v9605_v1  ;;  %v9588_v47 = vld [vmem:[%s11736_s1 + $0x18] sm:$0xff]   ;;  %v10686_v16 = vld [vmem:[%s11737_s2] ss:$0 sm:$0xff]  ;;  %v9589_v24 = vld [vmem:[%s9732_s19 + $0x44] sm:$0x3] }
 0x1ae   : > { %v9590_v17 = vld [vmem:[%s11736_s1 + $0x40] sm:$0xff]  }
 0x1af   : > { %8764 = vmatpush3.bf16.msra.mxu0 %v10135_v61 }
 0x1b0   : > { %8776 = vmatpush3.bf16.msra.mxu1 %v10141_v62  ;;  %8765 = vmatprep.subr.bf16.mxu0 %v9605_v1 }
 0x1b1   : > { %8777 = vmatprep.subr.bf16.mxu1 %v9605_v1 }
 0x1b3   : > { %8766 = vmatpush3.bf16.msra.mxu0 %v10151_v0 }
 0x1b4   : > { %8778 = vmatpush3.bf16.msra.mxu1 %v10157_v2  ;;  %8783 = vmatprep.subr.bf16.mxu0 %v9605_v1 }
 0x1b5   : > { %8795 = vmatprep.subr.bf16.mxu1 %v9605_v1 }
 0x1b6   : > { %8768 = vmatmul.mubr.msk.bf16.vlgmr.msra.gmra.mrb[104].mxu0 %vm430_vm1, %v10090_v52 }
 0x1b7   : > { %8780 = vmatmul.mubr.msk.bf16.vlgmr.msra.gmra.mrb[104].mxu1 %vm430_vm1, %v9577_v20  ;;  %8784 = vmatpush3.bf16.msra.mxu0 %v10169_v3  ;;  %v9431_v20 = vld [vmem:[%s9732_s19 + $0x20] ss:$0 sps:$4 sm:$0x77]  }
 0x1b8   : > { %8796 = vmatpush3.bf16.msra.mxu1 %v10176_v5  ;;  %8785 = vmatprep.subr.bf16.mxu0 %v9605_v1 }
 0x1b9   : > { %v1778_v21 = vpop.f32.mrb[52].mxu0  ;;  %8797 = vmatprep.subr.bf16.mxu1 %v9605_v1  ;;  %8791 = vmatprep.mubr.msk.bf16.mxu0 %vm9606_vm0, %v9605_v1 }
 0x1ba   : > { %v1784_v31 = vadd.f32 %v1778_v21, %v1739_v43  ;;  %v1833_v32 = vpop.f32.mrb[52].mxu1  ;;  %v8457_v23 = vpop.f32.mrb[53].mxu0  ;;  %8803 = vmatprep.mubr.msk.bf16.mxu1 %vm9606_vm0, %v9605_v1  ;;  %v9586_v43 = vld [vmem:[%s11736_s1 + $0x10] sm:$0xff]   ;;  %v706_v21 = vadd.f32 %v10686_v16, %v10260_v46 }
 0x1bb   : > { %v8469_v52 = vpop.f32.mrb[53].mxu1  ;;  %v1781_v33 = vpop.f32.mrb[54].mxu0  ;;  %8786 = vmatpush3.bf16.msra.mxu0 %v10188_v6 }
 0x1bc   : > { %v10581_v34 = vadd.f32 %v1833_v32, %v1784_v31  ;;  %v1836_v26 = vpop.f32.mrb[54].mxu1  ;;  %8798 = vmatpush3.bf16.msra.mxu1 %v10194_v8  ;;  %v8458_v25 = vpop.f32.mrb[55].mxu0  ;;  %8787 = vmatprep.subr.bf16.mxu0 %v9605_v1  ;;  %v9591_v31 = vld [vmem:[%s11736_s1 + $0x60] sm:$0xff]  }
 0x1bd   : > { %v8470_v38 = vpop.f32.mrb[55].mxu1  ;;  %8799 = vmatprep.subr.bf16.mxu1 %v9605_v1  ;;  %v9592_v26 = vld [vmem:[%s11736_s1 + $0x48] sm:$0xff]   ;;  %v3329_v25 = vshll.u32 %v9431_v20, 16 }
 0x1be   : > { %v707_v38 = vmax.f32 %v706_v21, 0.0  ;;  %v10830_v21 = vld [vmem:[%s11738_s3 + $0x38] sm:$0xff]  }
 0x1bf   : > { %8788 = vmatpush3.bf16.msra.mxu0 %v10202_v9 }
 0x1c0   : > { %8800 = vmatpush3.bf16.msra.mxu1 %v10208_v12  ;;  %8789 = vmatprep.subr.bf16.mxu0 %v9605_v1 }
 0x1c1   : > { %8801 = vmatprep.subr.bf16.mxu1 %v9605_v1 }
 0x1c3   : > { %8790 = vmatpush3.bf16.msra.mxu0 %v10272_v56 }
 0x1c4   : > { %8802 = vmatpush3.bf16.msra.mxu1 %v10280_v60  ;;  %8807 = vmatprep.subr.bf16.mxu0 %v9605_v1 }
 0x1c5   : > { %8819 = vmatprep.subr.bf16.mxu1 %v9605_v1 }
 0x1c6   : > { %8792 = vmatmul.mubr.msk.bf16.vlgmr.msra.gmra.mrb[108].mxu0 %vm430_vm1, %v9578_v39 }
 0x1c7   : > { %8804 = vmatmul.mubr.msk.bf16.vlgmr.msra.gmra.mrb[108].mxu1 %vm430_vm1, %v10146_v63  ;;  %8808 = vmatpush3.bf16.msra.mxu0 %v10103_v54 }
 0x1c8   : > { %8820 = vmatpush3.bf16.msra.mxu1 %v10109_v55  ;;  %8809 = vmatprep.subr.bf16.mxu0 %v9605_v1 }
 0x1c9   : > { %v1891_v40 = vpop.f32.mrb[56].mxu0  ;;  %8821 = vmatprep.subr.bf16.mxu1 %v9605_v1  ;;  %8815 = vmatprep.mubr.msk.bf16.mxu0 %vm9606_vm0, %v9605_v1 }
 0x1ca   : > { %v1931_v41 = vpop.f32.mrb[56].mxu1  ;;  %v8481_v44 = vpop.f32.mrb[57].mxu0  ;;  %8827 = vmatprep.mubr.msk.bf16.mxu1 %vm9606_vm0, %v9605_v1 }
 0x1cb   : > { %v1932_v45 = vadd.f32 %v1931_v41, %v1891_v40  ;;  %v8493_v48 = vpop.f32.mrb[57].mxu1  ;;  %v1894_v63 = vpop.f32.mrb[58].mxu0  ;;  %8810 = vmatpush3.bf16.msra.mxu0 %v10121_v57  ;;  %v9579_v57 = vld [vmem:[%s9732_s19 + $0x3c] sm:$0x3]  ;;  %v9593_v41 = vld [vmem:[%s11736_s1 + $0x68] sm:$0xff]  }
 0x1cc   : > { %v1934_v54 = vpop.f32.mrb[58].mxu1  ;;  %8822 = vmatpush3.bf16.msra.mxu1 %v10127_v58  ;;  %v8482_v55 = vpop.f32.mrb[59].mxu0  ;;  %8811 = vmatprep.subr.bf16.mxu0 %v9605_v1  ;;  %v9594_v48 = vld [vmem:[%s11736_s1 + $0x50] sm:$0xff]   ;;  %v3327_v63 = vshrl.u32 %v9431_v20, 16 }
 0x1cd   : > { %v8494_v28 = vpop.f32.mrb[59].mxu1  ;;  %8823 = vmatprep.subr.bf16.mxu1 %v9605_v1  ;;  %v3331_v54 = vrot.slane %v3329_v25, 1  ;;  %v10719_v55 = vpack.c.bf16 %v707_v38, %v707_v38  ;;  %v10841_v25 = vld [vmem:[%s11738_s3 + $0x80] sm:$0xff]  }
 0x1ce   : > { %v9595_v28 = vld [vmem:[%s11736_s1 + $0x70] sm:$0xff]  }
 0x1cf   : > { %8812 = vmatpush3.bf16.msra.mxu0 %v10135_v61 }
 0x1d0   : > { %8824 = vmatpush3.bf16.msra.mxu1 %v10141_v62  ;;  %8813 = vmatprep.subr.bf16.mxu0 %v9605_v1 }
 0x1d1   : > { %8825 = vmatprep.subr.bf16.mxu1 %v9605_v1 }
 0x1d3   : > { %8814 = vmatpush3.bf16.msra.mxu0 %v10151_v0 }
 0x1d4   : > { %8826 = vmatpush3.bf16.msra.mxu1 %v10157_v2  ;;  %8831 = vmatprep.subr.bf16.mxu0 %v9605_v1 }
 0x1d5   : > { %8843 = vmatprep.subr.bf16.mxu1 %v9605_v1 }
 0x1d6   : > { %8816 = vmatmul.mubr.msk.bf16.vlgmr.msra.gmra.mrb[112].mxu0 %vm430_vm1, %v10214_v13 }
 0x1d7   : > { %8828 = vmatmul.mubr.msk.bf16.vlgmr.msra.gmra.mrb[112].mxu1 %vm430_vm1, %v9579_v57  ;;  %8832 = vmatpush3.bf16.msra.mxu0 %v10169_v3  ;;  %v3332_v57 = vor.u32 %v3331_v54, %v3327_v63  ;;  %v10849_v63 = vld [vmem:[%s11738_s3 + $0x50] sm:$0xff]   ;;  %v10857_v54 = vld [vmem:[%s11738_s3 + $0x88] sm:$0xff]  }
 0x1d8   : > { %8844 = vmatpush3.bf16.msra.mxu1 %v10176_v5  ;;  %8833 = vmatprep.subr.bf16.mxu0 %v9605_v1 }
 0x1d9   : > { %v1971_v58 = vpop.f32.mrb[60].mxu0  ;;  %8845 = vmatprep.subr.bf16.mxu1 %v9605_v1  ;;  %8839 = vmatprep.mubr.msk.bf16.mxu0 %vm9606_vm0, %v9605_v1 }
 0x1da   : > { %v1977_v61 = vadd.f32 %v1971_v58, %v1932_v45  ;;  %v2026_v62 = vpop.f32.mrb[60].mxu1  ;;  %v8505_v0 = vpop.f32.mrb[61].mxu0  ;;  %8851 = vmatprep.mubr.msk.bf16.mxu1 %vm9606_vm0, %v9605_v1  ;;  %v10730_v58 = vld [vmem:[%s11738_s3 + $0x20] sm:$0xff]  }
 0x1db   : > { %v8517_v2 = vpop.f32.mrb[61].mxu1  ;;  %v1974_v13 = vpop.f32.mrb[62].mxu0  ;;  %8834 = vmatpush3.bf16.msra.mxu0 %v10188_v6  ;;  %v9580_v6 = vld [vmem:[%s9732_s19 + $0x1c] sm:$0x3] }
 0x1dc   : > { %v10631_v3 = vadd.f32 %v2026_v62, %v1977_v61  ;;  %v2029_v5 = vpop.f32.mrb[62].mxu1  ;;  %8846 = vmatpush3.bf16.msra.mxu1 %v10194_v8  ;;  %v8506_v27 = vpop.f32.mrb[63].mxu0  ;;  %8835 = vmatprep.subr.bf16.mxu0 %v9605_v1  ;;  %v9581_v8 = vld [vmem:[%s11736_s1 + $0x20] sm:$0xff]   ;;  %v3507_v61 = vshll.u32 %v10719_v55, 16  ;;  %v10738_v62 = vld [vmem:[%s11738_s3 + $0x10] sm:$0xff]  }
 0x1dd   : > { %v8518_v50 = vpop.f32.mrb[63].mxu1  ;;  %8847 = vmatprep.subr.bf16.mxu1 %v9605_v1  ;;  %v3505_v5 = vshrl.u32 %v10719_v55, 16 }
 0x1de   : > { %v3509_v0 = vrot.slane %v3507_v61, 1 }
 0x1df   : > { %8836 = vmatpush3.bf16.msra.mxu0 %v10202_v9  ;;  %v9582_v9 = vld [vmem:[%s11736_s1] sm:$0xff]  }
 0x1e0   : > { %8848 = vmatpush3.bf16.msra.mxu1 %v10208_v12  ;;  %8837 = vmatprep.subr.bf16.mxu0 %v9605_v1 }
 0x1e1   : > { %8849 = vmatprep.subr.bf16.mxu1 %v9605_v1 }
 0x1e3   : > { %8838 = vmatpush3.bf16.msra.mxu0 %v10272_v56 }
 0x1e4   : > { %8850 = vmatpush3.bf16.msra.mxu1 %v10280_v60  ;;  %8855 = vmatprep.subr.bf16.mxu0 %v9605_v1 }
 0x1e5   : > { %8867 = vmatprep.subr.bf16.mxu1 %v9605_v1 }
 0x1e6   : > { %8840 = vmatmul.mubr.msk.bf16.vlgmr.msra.gmra.mrb[116].mxu0 %vm430_vm1, %v9580_v6 }
 0x1e7   : > { %8852 = vmatmul.mubr.msk.bf16.vlgmr.msra.gmra.mrb[116].mxu1 %vm430_vm1, %v10240_v36  ;;  %8856 = vmatpush3.bf16.msra.mxu0 %v9581_v8 }
 0x1e8   : > { %8868 = vmatpush3.bf16.msra.mxu1 %v9582_v9  ;;  %8857 = vmatprep.subr.bf16.mxu0 %v9605_v1 }
 0x1e9   : > { %v2070_v12 = vpop.f32.mrb[64].mxu0  ;;  %8869 = vmatprep.subr.bf16.mxu1 %v9605_v1  ;;  %8863 = vmatprep.mubr.msk.bf16.mxu0 %vm9606_vm0, %v9605_v1 }
 0x1ea   : > { %v2110_v51 = vpop.f32.mrb[64].mxu1  ;;  %v8529_v36 = vpop.f32.mrb[65].mxu0  ;;  %8875 = vmatprep.mubr.msk.bf16.mxu1 %vm9606_vm0, %v9605_v1 }
 0x1eb   : > { %v2111_v53 = vadd.f32 %v2110_v51, %v2070_v12  ;;  %v8541_v42 = vpop.f32.mrb[65].mxu1  ;;  %v2073_v19 = vpop.f32.mrb[66].mxu0  ;;  %8858 = vmatpush3.bf16.msra.mxu0 %v9583_v7  ;;  %v10770_v12 = vld [vmem:[%s11738_s3 + $0x40] sm:$0xff]   ;;  %v3510_v51 = vor.u32 %v3509_v0, %v3505_v5 }
 0x1ec   : > { %v2113_v10 = vpop.f32.mrb[66].mxu1  ;;  %8870 = vmatpush3.bf16.msra.mxu1 %v9584_v30  ;;  %v8530_v11 = vpop.f32.mrb[67].mxu0  ;;  %8859 = vmatprep.subr.bf16.mxu0 %v9605_v1  ;;  %v10777_v19 = vld [vmem:[%s11738_s3] sm:$0xff]   ;;  %v10786_v30 = vld [vmem:[%s11738_s3 + $0x48] sm:$0xff]  }
 0x1ed   : > { %v8542_v29 = vpop.f32.mrb[67].mxu1  ;;  %8871 = vmatprep.subr.bf16.mxu1 %v9605_v1 }
 0x1ee   : > { %v10793_v29 = vld [vmem:[%s11738_s3 + $0x8] sm:$0xff]  }
 0x1ef   : > { %8860 = vmatpush3.bf16.msra.mxu0 %v9585_v14  ;;  %v10804_v14 = vld [vmem:[%s11738_s3 + $0x60] sm:$0xff]  }
 0x1f0   : > { %8872 = vmatpush3.bf16.msra.mxu1 %v9586_v43  ;;  %8861 = vmatprep.subr.bf16.mxu0 %v9605_v1 }
 0x1f1   : > { %8873 = vmatprep.subr.bf16.mxu1 %v9605_v1 }
 0x1f3   : > { %8862 = vmatpush3.bf16.msra.mxu0 %v9587_v15  ;;  %v10811_v15 = vld [vmem:[%s11738_s3 + $0x30] sm:$0xff]  }
 0x1f4   : > { %8874 = vmatpush3.bf16.msra.mxu1 %v9588_v47  ;;  %8879 = vmatprep.subr.bf16.mxu0 %v9605_v1 }
 0x1f5   : > { %8891 = vmatprep.subr.bf16.mxu1 %v9605_v1 }
 0x1f6   : > { %8864 = vmatmul.mubr.msk.bf16.vlgmr.msra.gmra.mrb[120].mxu0 %vm430_vm1, %v10275_v59 }
 0x1f7   : > { %8876 = vmatmul.mubr.msk.bf16.vlgmr.msra.gmra.mrb[120].mxu1 %vm430_vm1, %v9589_v24  ;;  %8880 = vmatpush3.bf16.msra.mxu0 %v9590_v17  ;;  %v10821_v24 = vld [vmem:[%s11738_s3 + $0x68] sm:$0xff]   ;;  %v891_v17 = vadd.f32 %v10686_v16, %v10325_v37 }
 0x1f8   : > { %8892 = vmatpush3.bf16.msra.mxu1 %v9591_v31  ;;  %8881 = vmatprep.subr.bf16.mxu0 %v9605_v1 }
 0x1f9   : > { %v2150_v59 = vpop.f32.mrb[68].mxu0  ;;  %8893 = vmatprep.subr.bf16.mxu1 %v9605_v1  ;;  %8887 = vmatprep.mubr.msk.bf16.mxu0 %vm9606_vm0, %v9605_v1  ;;  %v892_v38 = vmax.f32 %v891_v17, 0.0  ;;  %v10925_v17 = vld [vmem:[%s11738_s3 + $0xe8] sm:$0xff]  }
 0x1fa   : > { %v2156_v32 = vadd.f32 %v2150_v59, %v2111_v53  ;;  %v2191_v23 = vpop.f32.mrb[68].mxu1  ;;  %v8553_v52 = vpop.f32.mrb[69].mxu0  ;;  %8899 = vmatprep.mubr.msk.bf16.mxu1 %vm9606_vm0, %v9605_v1 }
 0x1fb   : > { %v8565_v46 = vpop.f32.mrb[69].mxu1  ;;  %v2153_v33 = vpop.f32.mrb[70].mxu0  ;;  %8882 = vmatpush3.bf16.msra.mxu0 %v9592_v26 }
 0x1fc   : > { %v2197_v39 = vadd.f32 %v2191_v23, %v2156_v32  ;;  %v2194_v40 = vpop.f32.mrb[70].mxu1  ;;  %8894 = vmatpush3.bf16.msra.mxu1 %v9593_v41  ;;  %v8554_v44 = vpop.f32.mrb[71].mxu0  ;;  %8883 = vmatprep.subr.bf16.mxu0 %v9605_v1 }
 0x1fd   : > { %v8566_v45 = vpop.f32.mrb[71].mxu1  ;;  %8895 = vmatprep.subr.bf16.mxu1 %v9605_v1 }
 0x1fe   : > { %v2198_v2 = vadd.f32 %v10686_v16, %v2197_v39 }
 0x1ff   : > { %8884 = vmatpush3.bf16.msra.mxu0 %v9594_v48 }
 0x200   : > { %8896 = vmatpush3.bf16.msra.mxu1 %v9595_v28  ;;  %8885 = vmatprep.subr.bf16.mxu0 %v9605_v1  ;;  %v2199_v36 = vmax.f32 %v2198_v2, 0.0  ;;  %v10868_v28 = vld [vmem:[%s11738_s3 + $0x58] sm:$0xff]  }
 0x201   : > { %8897 = vmatprep.subr.bf16.mxu1 %v9605_v1 }
 0x202   : > { %v2200_v11 = vpack.c.bf16 %v2199_v36, %v2199_v36 }
 0x203   : > { %8886 = vmatpush3.bf16.msra.mxu0 %v10272_v56  ;;  %v1454_v56 = vadd.f32 %v10686_v16, %v10478_v22  ;;  %v10758_v22 = vld [vmem:[%s11738_s3 + $0x18] sm:$0xff]  }
 0x204   : > { %8898 = vmatpush3.bf16.msra.mxu1 %v10280_v60  ;;  %8919 = vmatprep.subr.bf16.mxu0 %v9605_v1  ;;  %v10750_v60 = vld [vmem:[%s11738_s3 + $0x28] sm:$0xff]   ;;  %v3763_v43 = vshll.u32 %v2200_v11, 16  ;;  %v3761_v32 = vshrl.u32 %v2200_v11, 16 }
 0x205   : > { %8903 = vmatprep.subr.bf16.mxu1 %v9605_v1 }
 0x206   : > { %8888 = vmatmul.mubr.msk.bf16.vlgmr.msra.gmra.mrb[124].mxu0 %vm430_vm1, %v10491_v35  ;;  %v1455_v35 = vmax.f32 %v1454_v56, 0.0  ;;  %v3765_v20 = vrot.slane %v3763_v43, 1  ;;  %v10889_v56 = vld [vmem:[%s11738_s3 + $0xa8] sm:$0xff]   ;;  %v10917_v43 = vld [vmem:[%s11738_s3 + $0xe0] sm:$0xff]  }
 0x207   : > { %8900 = vmatmul.mubr.msk.bf16.vlgmr.msra.gmra.mrb[124].mxu1 %vm430_vm1, %v3332_v57  ;;  %8920 = vmatpush3.bf16.msra.mxu0 %v10730_v58  ;;  %v10877_v57 = vld [vmem:[%s11738_s3 + $0xa0] sm:$0xff]  }
 0x208   : > { %8904 = vmatpush3.bf16.msra.mxu1 %v10738_v62  ;;  %8921 = vmatprep.subr.bf16.mxu0 %v9605_v1  ;;  %v1456_v7 = vpack.c.bf16 %v1455_v35, %v1455_v35  ;;  %v3766_v39 = vor.u32 %v3765_v20, %v3761_v32 }
 0x209   : > { %v2235_v13 = vpop.f32.mrb[72].mxu0  ;;  %8905 = vmatprep.subr.bf16.mxu1 %v9605_v1  ;;  %8907 = vmatprep.mubr.msk.bf16.mxu1 %vm9606_vm0, %v9605_v1 }
 0x20a   : > { %v2275_v27 = vpop.f32.mrb[72].mxu1  ;;  %v8577_v50 = vpop.f32.mrb[73].mxu0  ;;  %8923 = vmatprep.mubr.msk.bf16.mxu0 %vm9606_vm0, %v9605_v1  ;;  %v3574_v47 = vshll.u32 %v1456_v7, 16  ;;  %v3572_v46 = vshrl.u32 %v1456_v7, 16 }
 0x20b   : > { %v2276_v6 = vadd.f32 %v2275_v27, %v2235_v13  ;;  %v8589_v8 = vpop.f32.mrb[73].mxu1  ;;  %v2238_v9 = vpop.f32.mrb[74].mxu0  ;;  %8922 = vmatpush3.bf16.msra.mxu0 %v10750_v60 }
 0x20c   : > { %v2278_v53 = vpop.f32.mrb[74].mxu1  ;;  %8906 = vmatpush3.bf16.msra.mxu1 %v10758_v22  ;;  %v8578_v42 = vpop.f32.mrb[75].mxu0  ;;  %8935 = vmatprep.subr.bf16.mxu0 %v9605_v1  ;;  %v3576_v31 = vrot.slane %v3574_v47, 1  ;;  %v10900_v9 = vld [vmem:[%s11738_s3 + $0xc0] sm:$0xff]  }
 0x20d   : > { %v8590_v10 = vpop.f32.mrb[75].mxu1  ;;  %8911 = vmatprep.subr.bf16.mxu1 %v9605_v1 }
 0x20e   : > { %8924 = vmatmul.mubr.msk.bf16.vlgmr.msra.gmra.mrb[128].mxu0 %vm3401_vm2, %v3510_v51  ;;  %v3577_v45 = vor.u32 %v3576_v31, %v3572_v46  ;;  %v10908_v10 = vld [vmem:[%s11738_s3 + $0xc8] sm:$0xff]  }
 0x20f   : > { %8908 = vmatmul.mubr.msk.bf16.vlgmr.msra.gmra.mrb[128].mxu1 %vm3401_vm2, %v1456_v7  ;;  %8936 = vmatpush3.bf16.msra.mxu0 %v10770_v12 }
 0x210   : > { %8912 = vmatpush3.bf16.msra.mxu1 %v10777_v19  ;;  %8937 = vmatprep.subr.bf16.mxu0 %v9605_v1 }
 0x211   : > { %8913 = vmatprep.subr.bf16.mxu1 %v9605_v1  ;;  %8915 = vmatprep.mubr.msk.bf16.mxu1 %vm9606_vm0, %v9605_v1 }
 0x212   : > { %8939 = vmatprep.mubr.msk.bf16.mxu0 %vm9606_vm0, %v9605_v1 }
 0x213   : > { %8938 = vmatpush3.bf16.msra.mxu0 %v10786_v30 }
 0x214   : > { %8914 = vmatpush3.bf16.msra.mxu1 %v10793_v29  ;;  %8951 = vmatprep.subr.bf16.mxu0 %v9605_v1 }
 0x215   : > { %8927 = vmatprep.subr.bf16.mxu1 %v9605_v1 }
 0x216   : > { %8940 = vmatmul.mubr.msk.bf16.vlgmr.msra.gmra.mrb[132].mxu0 %vm3401_vm2, %v2200_v11 }
 0x217   : > { %8916 = vmatmul.mubr.msk.bf16.vlgmr.msra.gmra.mrb[132].mxu1 %vm3401_vm2, %v10719_v55  ;;  %8952 = vmatpush3.bf16.msra.mxu0 %v10804_v14  ;;  %v10859_v55 = vpack.c.bf16 %v892_v38, %v892_v38 }
 0x218   : > { %8928 = vmatpush3.bf16.msra.mxu1 %v10811_v15  ;;  %8953 = vmatprep.subr.bf16.mxu0 %v9605_v1 }
 0x219   : > { %v2315_v59 = vpop.f32.mrb[76].mxu0  ;;  %8929 = vmatprep.subr.bf16.mxu1 %v9605_v1  ;;  %8931 = vmatprep.mubr.msk.bf16.mxu1 %vm9606_vm0, %v9605_v1  ;;  %v4019_v61 = vshll.u32 %v10859_v55, 16  ;;  %v4017_v13 = vshrl.u32 %v10859_v55, 16 }
 0x21a   : > { %v2321_v23 = vadd.f32 %v2315_v59, %v2276_v6  ;;  %v2356_v37 = vpop.f32.mrb[76].mxu1  ;;  %v8601_v52 = vpop.f32.mrb[77].mxu0  ;;  %8955 = vmatprep.mubr.msk.bf16.mxu0 %vm9606_vm0, %v9605_v1 }
 0x21b   : > { %v8613_v33 = vpop.f32.mrb[77].mxu1  ;;  %v2318_v26 = vpop.f32.mrb[78].mxu0  ;;  %8954 = vmatpush3.bf16.msra.mxu0 %v10821_v24  ;;  %v4021_v0 = vrot.slane %v4019_v61, 1 }
 0x21c   : > { %v2362_v40 = vadd.f32 %v2356_v37, %v2321_v23  ;;  %v2359_v41 = vpop.f32.mrb[78].mxu1  ;;  %8930 = vmatpush3.bf16.msra.mxu1 %v10830_v21  ;;  %v8602_v44 = vpop.f32.mrb[79].mxu0  ;;  %8967 = vmatprep.subr.bf16.mxu0 %v9605_v1  ;;  %v1647_v33 = vadd.f32 %v10686_v16, %v10531_v4 }
 0x21d   : > { %v8614_v48 = vpop.f32.mrb[79].mxu1  ;;  %8943 = vmatprep.subr.bf16.mxu1 %v9605_v1  ;;  %v4022_v42 = vor.u32 %v4021_v0, %v4017_v13 }
 0x21e   : > { %8956 = vmatmul.mubr.msk.bf16.vlgmr.msra.gmra.mrb[136].mxu0 %vm3401_vm2, %v3766_v39  ;;  %v2363_v2 = vadd.f32 %v10686_v16, %v2362_v40  ;;  %v1648_v44 = vmax.f32 %v1647_v33, 0.0 }
 0x21f   : > { %8932 = vmatmul.mubr.msk.bf16.vlgmr.msra.gmra.mrb[136].mxu1 %vm3401_vm2, %v3577_v45  ;;  %8968 = vmatpush3.bf16.msra.mxu0 %v10841_v25 }
 0x220   : > { %8969 = vmatprep.subr.bf16.mxu0 %v9605_v1  ;;  %8971 = vmatprep.mubr.msk.bf16.mxu0 %vm9606_vm0, %v9605_v1  ;;  %v2364_v51 = vmax.f32 %v2363_v2, 0.0  ;;  %v10942_v4 = vpack.c.bf16 %v1648_v44, %v1648_v44 }
 0x221   : > { %8944 = vmatpush3.bf16.msra.mxu1 %v10849_v63  ;;  %8947 = vmatprep.mubr.msk.bf16.mxu1 %vm9606_vm0, %v9605_v1 }
 0x222   : > { %8945 = vmatprep.subr.bf16.mxu1 %v9605_v1  ;;  %v2365_v11 = vpack.c.bf16 %v2364_v51, %v2364_v51 }
 0x223   : > { %8970 = vmatpush3.bf16.msra.mxu0 %v10857_v54 }
 0x224   : > { %8983 = vmatprep.subr.bf16.mxu0 %v9605_v1  ;;  %v4275_v47 = vshll.u32 %v2365_v11, 16  ;;  %v4273_v59 = vshrl.u32 %v2365_v11, 16 }
 0x225   : > { %8946 = vmatpush3.bf16.msra.mxu1 %v10868_v28 }
 0x226   : > { %8972 = vmatmul.mubr.msk.bf16.vlgmr.msra.gmra.mrb[140].mxu0 %vm3401_vm2, %v10859_v55  ;;  %8959 = vmatprep.subr.bf16.mxu1 %v9605_v1  ;;  %v4277_v20 = vrot.slane %v4275_v47, 1 }
 0x227   : > { %8984 = vmatpush3.bf16.msra.mxu0 %v10877_v57  ;;  %8987 = vmatprep.mubr.msk.bf16.mxu0 %vm9606_vm0, %v9605_v1 }
 0x228   : > { %8985 = vmatprep.subr.bf16.mxu0 %v9605_v1  ;;  %v4278_v40 = vor.u32 %v4277_v20, %v4273_v59 }
 0x229   : > { %v2400_v35 = vpop.f32.mrb[80].mxu0 }
 0x22a   : > { %v2440_v5 = vpop.f32.mrb[80].mxu1  ;;  %v8625_v27 = vpop.f32.mrb[81].mxu0 }
 0x22b   : > { %v2441_v50 = vadd.f32 %v2440_v5, %v2400_v35  ;;  %v8637_v6 = vpop.f32.mrb[81].mxu1  ;;  %v2403_v8 = vpop.f32.mrb[82].mxu0  ;;  %8986 = vmatpush3.bf16.msra.mxu0 %v10889_v56 }
 0x22c   : > { %v2443_v36 = vpop.f32.mrb[82].mxu1  ;;  %v8626_v53 = vpop.f32.mrb[83].mxu0  ;;  %8999 = vmatprep.subr.bf16.mxu0 %v9605_v1 }
 0x22d   : > { %v8638_v7 = vpop.f32.mrb[83].mxu1 }
 0x22e   : > { %8988 = vmatmul.mubr.msk.bf16.vlgmr.msra.gmra.mrb[144].mxu0 %vm3401_vm2, %v4022_v42 }
 0x22f   : > { %9000 = vmatpush3.bf16.msra.mxu0 %v10900_v9  ;;  %9003 = vmatprep.mubr.msk.bf16.mxu0 %vm9606_vm0, %v9605_v1 }
 0x230   : > { %9001 = vmatprep.subr.bf16.mxu0 %v9605_v1 }
 0x233   : > { %9002 = vmatpush3.bf16.msra.mxu0 %v10908_v10 }
 0x234   : > { %9015 = vmatprep.subr.bf16.mxu0 %v9605_v1 }
 0x236   : > { %9004 = vmatmul.mubr.msk.bf16.vlgmr.msra.gmra.mrb[148].mxu0 %vm3401_vm2, %v2365_v11 }
 0x237   : > { %9016 = vmatpush3.bf16.msra.mxu0 %v10917_v43  ;;  %9019 = vmatprep.mubr.msk.bf16.mxu0 %vm9606_vm0, %v9605_v1 }
 0x238   : > { %9017 = vmatprep.subr.bf16.mxu0 %v9605_v1 }
 0x239   : > { %v2480_v31 = vpop.f32.mrb[84].mxu0 }
 0x23a   : > { %v2486_v32 = vadd.f32 %v2480_v31, %v2441_v50  ;;  %v2521_v23 = vpop.f32.mrb[84].mxu1  ;;  %v8649_v37 = vpop.f32.mrb[85].mxu0  ;;  %v1076_v50 = vadd.f32 %v10686_v16, %v10378_v18 }
 0x23b   : > { %v8661_v52 = vpop.f32.mrb[85].mxu1  ;;  %v2483_v46 = vpop.f32.mrb[86].mxu0  ;;  %9018 = vmatpush3.bf16.msra.mxu0 %v10925_v17 }
 0x23c   : > { %v10933_v26 = vadd.f32 %v2521_v23, %v2486_v32  ;;  %v2524_v38 = vpop.f32.mrb[86].mxu1  ;;  %v8650_v39 = vpop.f32.mrb[87].mxu0  ;;  %9031 = vmatprep.subr.bf16.mxu0 %v9605_v1  ;;  %v1077_v7 = vmax.f32 %v1076_v50, 0.0 }
 0x23d   : > { %v8662_v41 = vpop.f32.mrb[87].mxu1 }
 0x23e   : > { %9020 = vmatmul.mubr.msk.bf16.vlgmr.msra.gmra.mrb[152].mxu0 %vm3401_vm2, %v4278_v40  ;;  %v10975_v18 = vpack.c.bf16 %v1077_v7, %v1077_v7  ;;  %v2528_v23 = vadd.f32 %v10686_v16, %v10933_v26 }
 0x23f   : > { %9032 = vmatpush3.bf16.msra.mxu0 %v10738_v62  ;;  %9035 = vmatprep.mubr.msk.bf16.mxu0 %vm9606_vm0, %v9605_v1 }
 0x240   : > { %9033 = vmatprep.subr.bf16.mxu0 %v9605_v1  ;;  %v4828_v59 = vshll.u32 %v10975_v18, 16  ;;  %v4826_v52 = vshrl.u32 %v10975_v18, 16  ;;  %v2529_v41 = vmax.f32 %v2528_v23, 0.0 }
 0x242   : > { %v4830_v32 = vrot.slane %v4828_v59, 1  ;;  %v11028_v59 = vld [vmem:[%s11738_s3 + $0x70] sm:$0xff]  }
 0x243   : > { %9034 = vmatpush3.bf16.msra.mxu0 %v10758_v22 }
 0x244   : > { %9047 = vmatprep.subr.bf16.mxu0 %v9605_v1 }
 0x246   : > { %9036 = vmatmul.mubr.msk.bf16.vlgmr.msra.gmra.mrb[156].mxu0 %vm3401_vm2, %v10942_v4 }
 0x247   : > { %9048 = vmatpush3.bf16.msra.mxu0 %v10730_v58  ;;  %9051 = vmatprep.mubr.msk.bf16.mxu0 %vm9606_vm0, %v9605_v1 }
 0x248   : > { %9049 = vmatprep.subr.bf16.mxu0 %v9605_v1 }
 0x249   : > { %v2565_v45 = vpop.f32.mrb[88].mxu0 }
 0x24a   : > { %v2605_v48 = vpop.f32.mrb[88].mxu1  ;;  %v8673_v61 = vpop.f32.mrb[89].mxu0 }
 0x24b   : > { %v2606_v0 = vadd.f32 %v2605_v48, %v2565_v45  ;;  %v8685_v2 = vpop.f32.mrb[89].mxu1  ;;  %v2568_v35 = vpop.f32.mrb[90].mxu0  ;;  %9050 = vmatpush3.bf16.msra.mxu0 %v10750_v60  ;;  %v10991_v48 = vor.u32 %v4830_v32, %v4826_v52  ;;  %v10999_v61 = vpack.c.bf16 %v2529_v41, %v2529_v41 }
 0x24c   : > { %v2608_v13 = vpop.f32.mrb[90].mxu1  ;;  %v8674_v5 = vpop.f32.mrb[91].mxu0  ;;  %9063 = vmatprep.subr.bf16.mxu0 %v9605_v1 }
 0x24d   : > { %v8686_v27 = vpop.f32.mrb[91].mxu1  ;;  %v5014_v13 = vshrl.u32 %v10999_v61, 16 }
 0x24e   : > { %9052 = vmatmul.mubr.msk.bf16.vlgmr.msra.gmra.mrb[160].mxu0 %vm3401_vm2, %v4022_v42 }
 0x24f   : > { %9064 = vmatpush3.bf16.msra.mxu0 %v10770_v12  ;;  %9067 = vmatprep.mubr.msk.bf16.mxu0 %vm9606_vm0, %v9605_v1 }
 0x250   : > { %9065 = vmatprep.subr.bf16.mxu0 %v9605_v1 }
 0x253   : > { %9066 = vmatpush3.bf16.msra.mxu0 %v10786_v30 }
 0x254   : > { %9079 = vmatprep.subr.bf16.mxu0 %v9605_v1 }
 0x256   : > { %9068 = vmatmul.mubr.msk.bf16.vlgmr.msra.gmra.mrb[164].mxu0 %vm3401_vm2, %v2365_v11 }
 0x257   : > { %9080 = vmatpush3.bf16.msra.mxu0 %v10804_v14  ;;  %9083 = vmatprep.mubr.msk.bf16.mxu0 %vm9606_vm0, %v9605_v1 }
 0x258   : > { %9081 = vmatprep.subr.bf16.mxu0 %v9605_v1 }
 0x259   : > { %v2650_v6 = vpop.f32.mrb[92].mxu0 }
 0x25a   : > { %v2656_v8 = vadd.f32 %v2650_v6, %v2606_v0  ;;  %v2696_v51 = vpop.f32.mrb[92].mxu1  ;;  %v8697_v36 = vpop.f32.mrb[93].mxu0  ;;  %v5016_v0 = vshll.u32 %v10999_v61, 16 }
 0x25b   : > { %v8709_v53 = vpop.f32.mrb[93].mxu1  ;;  %v2653_v42 = vpop.f32.mrb[94].mxu0  ;;  %9082 = vmatpush3.bf16.msra.mxu0 %v10821_v24 }
 0x25c   : > { %v10968_v11 = vadd.f32 %v2696_v51, %v2656_v8  ;;  %v2699_v47 = vpop.f32.mrb[94].mxu1  ;;  %v8698_v20 = vpop.f32.mrb[95].mxu0  ;;  %9095 = vmatprep.subr.bf16.mxu0 %v9605_v1  ;;  %v5018_v2 = vrot.slane %v5016_v0, 1  ;;  %v1840_v51 = vadd.f32 %v10686_v16, %v10581_v34 }
 0x25d   : > { %v8710_v31 = vpop.f32.mrb[95].mxu1 }
 0x25e   : > { %9084 = vmatmul.mubr.msk.bf16.vlgmr.msra.gmra.mrb[168].mxu0 %vm3401_vm2, %v4278_v40  ;;  %v11015_v7 = vor.u32 %v5018_v2, %v5014_v13  ;;  %v1841_v31 = vmax.f32 %v1840_v51, 0.0  ;;  %v11064_v2 = vld [vmem:[%s11738_s3 + $0x98] sm:$0xff]   ;;  %v4084_v13 = vshrl.u32 %v10942_v4, 16 }
 0x25f   : > { %9096 = vmatpush3.bf16.msra.mxu0 %v10841_v25  ;;  %9099 = vmatprep.mubr.msk.bf16.mxu0 %vm9606_vm0, %v9605_v1 }
 0x260   : > { %9097 = vmatprep.subr.bf16.mxu0 %v9605_v1  ;;  %v11031_v23 = vpack.c.bf16 %v1841_v31, %v1841_v31 }
 0x263   : > { %9098 = vmatpush3.bf16.msra.mxu0 %v10857_v54 }
 0x264   : > { %9111 = vmatprep.subr.bf16.mxu0 %v9605_v1 }
 0x266   : > { %9100 = vmatmul.mubr.msk.bf16.vlgmr.msra.gmra.mrb[172].mxu0 %vm3401_vm2, %v10975_v18 }
 0x267   : > { %9112 = vmatpush3.bf16.msra.mxu0 %v10877_v57  ;;  %9115 = vmatprep.mubr.msk.bf16.mxu0 %vm9606_vm0, %v9605_v1 }
 0x268   : > { %9113 = vmatprep.subr.bf16.mxu0 %v9605_v1 }
 0x269   : > { %v2740_v37 = vpop.f32.mrb[96].mxu0 }
 0x26a   : > { %v2780_v46 = vpop.f32.mrb[96].mxu1  ;;  %v8721_v33 = vpop.f32.mrb[97].mxu0 }
 0x26b   : > { %v2781_v38 = vadd.f32 %v2780_v46, %v2740_v37  ;;  %v8733_v39 = vpop.f32.mrb[97].mxu1  ;;  %v2743_v40 = vpop.f32.mrb[98].mxu0  ;;  %9114 = vmatpush3.bf16.msra.mxu0 %v10889_v56  ;;  %v11054_v33 = vld [vmem:[%s11738_s3 + $0x90] sm:$0xff]  }
 0x26c   : > { %v2783_v44 = vpop.f32.mrb[98].mxu1  ;;  %v8722_v45 = vpop.f32.mrb[99].mxu0  ;;  %9127 = vmatprep.subr.bf16.mxu0 %v9605_v1 }
 0x26d   : > { %v8734_v26 = vpop.f32.mrb[99].mxu1 }
 0x26e   : > { %9116 = vmatmul.mubr.msk.bf16.vlgmr.msra.gmra.mrb[176].mxu0 %vm3401_vm2, %v10991_v48 }
 0x26f   : > { %9128 = vmatpush3.bf16.msra.mxu0 %v10900_v9  ;;  %9131 = vmatprep.mubr.msk.bf16.mxu0 %vm9606_vm0, %v9605_v1 }
 0x270   : > { %9129 = vmatprep.subr.bf16.mxu0 %v9605_v1 }
 0x273   : > { %9130 = vmatpush3.bf16.msra.mxu0 %v10908_v10 }
 0x274   : > { %9143 = vmatprep.subr.bf16.mxu0 %v9605_v1 }
 0x276   : > { %9132 = vmatmul.mubr.msk.bf16.vlgmr.msra.gmra.mrb[180].mxu0 %vm3401_vm2, %v10999_v61 }
 0x277   : > { %9144 = vmatpush3.bf16.msra.mxu0 %v10917_v43  ;;  %9147 = vmatprep.mubr.msk.bf16.mxu0 %vm9606_vm0, %v9605_v1 }
 0x278   : > { %9145 = vmatprep.subr.bf16.mxu0 %v9605_v1 }
 0x279   : > { %v2820_v35 = vpop.f32.mrb[100].mxu0 }
 0x27a   : > { %v2826_v5 = vadd.f32 %v2820_v35, %v2781_v38  ;;  %v2861_v27 = vpop.f32.mrb[100].mxu1  ;;  %v8745_v50 = vpop.f32.mrb[101].mxu0  ;;  %v4086_v35 = vshll.u32 %v10942_v4, 16 }
 0x27b   : > { %v8757_v6 = vpop.f32.mrb[101].mxu1  ;;  %v2823_v8 = vpop.f32.mrb[102].mxu0  ;;  %9146 = vmatpush3.bf16.msra.mxu0 %v10925_v17 }
 0x27c   : > { %v2867_v36 = vadd.f32 %v2861_v27, %v2826_v5  ;;  %v2864_v53 = vpop.f32.mrb[102].mxu1  ;;  %v8746_v42 = vpop.f32.mrb[103].mxu0  ;;  %9159 = vmatprep.subr.bf16.mxu0 %v9605_v1 }
 0x27d   : > { %v8758_v47 = vpop.f32.mrb[103].mxu1 }
 0x27e   : > { %v2868_v20 = vadd.f32 %v10686_v16, %v2867_v36  ;;  %9148 = vmatmul.mubr.msk.bf16.vlgmr.msra.gmra.mrb[184].mxu0 %vm3401_vm2, %v11015_v7  ;;  %v11122_v47 = vld [vmem:[%s11738_s3 + $0xd8] sm:$0xff]  }
 0x27f   : > { %9160 = vmatpush3.bf16.msra.mxu0 %v10738_v62  ;;  %9163 = vmatprep.mubr.msk.bf16.mxu0 %vm9606_vm0, %v9605_v1  ;;  %v11039_v62 = vld [vmem:[%s11738_s3 + $0x78] sm:$0xff]  }
 0x280   : > { %v2869_v34 = vmax.f32 %v2868_v20, 0.0  ;;  %9161 = vmatprep.subr.bf16.mxu0 %v9605_v1 }
 0x282   : > { %v2870_v32 = vpack.c.bf16 %v2869_v34, %v2869_v34  ;;  %v11138_v34 = vld [vmem:[%s11738_s3 + $0xf0] sm:$0xff]  }
 0x283   : > { %9162 = vmatpush3.bf16.msra.mxu0 %v10758_v22 }
 0x284   : > { %v3830_v37 = vshll.u32 %v2870_v32, 16  ;;  %8948 = vmatmul.mubr.msk.bf16.vlgmr.msra.gmra.mrb[140].mxu1 %vm3401_vm2, %v2870_v32  ;;  %9175 = vmatprep.subr.bf16.mxu0 %v9605_v1  ;;  %v3828_v22 = vshrl.u32 %v2870_v32, 16 }
 0x285   : > { %8960 = vmatpush3.bf16.msra.mxu1 %v11028_v59  ;;  %8963 = vmatprep.mubr.msk.bf16.mxu1 %vm9606_vm0, %v9605_v1 }
 0x286   : > { %v3832_v52 = vrot.slane %v3830_v37, 1  ;;  %9164 = vmatmul.mubr.msk.bf16.vlgmr.msra.gmra.mrb[188].mxu0 %vm3401_vm2, %v11031_v23  ;;  %8961 = vmatprep.subr.bf16.mxu1 %v9605_v1  ;;  %v11152_v37 = vld [vmem:[%s11738_s3 + $0xf8] sm:$0xff]  }
 0x287   : > { %9176 = vmatpush3.bf16.msra.mxu0 %v10730_v58  ;;  %9179 = vmatprep.mubr.msk.bf16.mxu0 %vm9606_vm0, %v9605_v1 }
 0x288   : > { %9177 = vmatprep.subr.bf16.mxu0 %v9605_v1  ;;  %v3833_v38 = vor.u32 %v3832_v52, %v3828_v22  ;;  %v2703_v22 = vadd.f32 %v10686_v16, %v10968_v11 }
 0x289   : > { %8962 = vmatpush3.bf16.msra.mxu1 %v11039_v62  ;;  %v2905_v46 = vpop.f32.mrb[104].mxu0 }
 0x28a   : > { %v2945_v39 = vpop.f32.mrb[104].mxu1  ;;  %v8769_v40 = vpop.f32.mrb[105].mxu0  ;;  %8975 = vmatprep.subr.bf16.mxu1 %v9605_v1 }
 0x28b   : > { %v2946_v58 = vadd.f32 %v2945_v39, %v2905_v46  ;;  %v8781_v41 = vpop.f32.mrb[105].mxu1  ;;  %v2908_v44 = vpop.f32.mrb[106].mxu0  ;;  %9178 = vmatpush3.bf16.msra.mxu0 %v10750_v60  ;;  %v11079_v60 = vld [vmem:[%s11738_s3 + $0xb0] sm:$0xff]  }
 0x28c   : > { %v2948_v45 = vpop.f32.mrb[106].mxu1  ;;  %v8770_v26 = vpop.f32.mrb[107].mxu0  ;;  %8964 = vmatmul.mubr.msk.bf16.vlgmr.msra.gmra.mrb[144].mxu1 %vm3401_vm2, %v3833_v38  ;;  %9191 = vmatprep.subr.bf16.mxu0 %v9605_v1 }
 0x28d   : > { %v8782_v0 = vpop.f32.mrb[107].mxu1  ;;  %8976 = vmatpush3.bf16.msra.mxu1 %v11054_v33  ;;  %8979 = vmatprep.mubr.msk.bf16.mxu1 %vm9606_vm0, %v9605_v1  ;;  %v2704_v26 = vmax.f32 %v2703_v22, 0.0 }
 0x28e   : > { %9180 = vmatmul.mubr.msk.bf16.vlgmr.msra.gmra.mrb[192].mxu0 %vm3401_vm2, %v10991_v48  ;;  %8977 = vmatprep.subr.bf16.mxu1 %v9605_v1  ;;  %v4088_v48 = vrot.slane %v4086_v35, 1 }
 0x28f   : > { %9192 = vmatpush3.bf16.msra.mxu0 %v10770_v12  ;;  %9195 = vmatprep.mubr.msk.bf16.mxu0 %vm9606_vm0, %v9605_v1  ;;  %v11091_v12 = vld [vmem:[%s11738_s3 + $0xb8] sm:$0xff]  }
 0x290   : > { %9193 = vmatprep.subr.bf16.mxu0 %v9605_v1  ;;  %v11112_v6 = vor.u32 %v4088_v48, %v4084_v13 }
 0x291   : > { %8978 = vmatpush3.bf16.msra.mxu1 %v11064_v2 }
 0x292   : > { %8991 = vmatprep.subr.bf16.mxu1 %v9605_v1 }
 0x293   : > { %9194 = vmatpush3.bf16.msra.mxu0 %v10786_v30  ;;  %v1261_v30 = vadd.f32 %v10686_v16, %v10428_v49 }
 0x294   : > { %8980 = vmatmul.mubr.msk.bf16.vlgmr.msra.gmra.mrb[148].mxu1 %vm3401_vm2, %v10942_v4  ;;  %9207 = vmatprep.subr.bf16.mxu0 %v9605_v1 }
 0x295   : > { %8992 = vmatpush3.bf16.msra.mxu1 %v11079_v60  ;;  %8995 = vmatprep.mubr.msk.bf16.mxu1 %vm9606_vm0, %v9605_v1  ;;  %v1262_v4 = vmax.f32 %v1261_v30, 0.0 }
 0x296   : > { %9196 = vmatmul.mubr.msk.bf16.vlgmr.msra.gmra.mrb[196].mxu0 %vm3401_vm2, %v10999_v61  ;;  %8993 = vmatprep.subr.bf16.mxu1 %v9605_v1  ;;  %v11109_v61 = vld [vmem:[%s11738_s3 + $0xd0] sm:$0xff]  }
 0x297   : > { %9208 = vmatpush3.bf16.msra.mxu0 %v10804_v14  ;;  %9211 = vmatprep.mubr.msk.bf16.mxu0 %vm9606_vm0, %v9605_v1  ;;  %v1263_v20 = vpack.c.bf16 %v1262_v4, %v1262_v4 }
 0x298   : > { %9209 = vmatprep.subr.bf16.mxu0 %v9605_v1 }
 0x299   : > { %8994 = vmatpush3.bf16.msra.mxu1 %v11091_v12  ;;  %v2985_v5 = vpop.f32.mrb[108].mxu0  ;;  %v5531_v39 = vshrl.u32 %v1263_v20, 16 }
 0x29a   : > { %v2991_v27 = vadd.f32 %v2985_v5, %v2946_v58  ;;  %v3026_v14 = vpop.f32.mrb[108].mxu1  ;;  %v8793_v50 = vpop.f32.mrb[109].mxu0  ;;  %9007 = vmatprep.subr.bf16.mxu1 %v9605_v1 }
 0x29b   : > { %v8805_v49 = vpop.f32.mrb[109].mxu1  ;;  %v2988_v8 = vpop.f32.mrb[110].mxu0  ;;  %9210 = vmatpush3.bf16.msra.mxu0 %v10821_v24 }
 0x29c   : > { %v3032_v51 = vadd.f32 %v3026_v14, %v2991_v27  ;;  %v3029_v36 = vpop.f32.mrb[110].mxu1  ;;  %v8794_v53 = vpop.f32.mrb[111].mxu0  ;;  %8996 = vmatmul.mubr.msk.bf16.vlgmr.msra.gmra.mrb[152].mxu1 %vm3401_vm2, %v11112_v6  ;;  %9223 = vmatprep.subr.bf16.mxu0 %v9605_v1 }
 0x29d   : > { %v8806_v42 = vpop.f32.mrb[111].mxu1  ;;  %9008 = vmatpush3.bf16.msra.mxu1 %v11109_v61  ;;  %9011 = vmatprep.mubr.msk.bf16.mxu1 %vm9606_vm0, %v9605_v1 }
 0x29e   : > { %v3033_v24 = vadd.f32 %v10686_v16, %v3032_v51  ;;  %9212 = vmatmul.mubr.msk.bf16.vlgmr.msra.gmra.mrb[200].mxu0 %vm3401_vm2, %v11015_v7  ;;  %9009 = vmatprep.subr.bf16.mxu1 %v9605_v1 }
 0x29f   : > { %9224 = vmatpush3.bf16.msra.mxu0 %v10841_v25  ;;  %9227 = vmatprep.mubr.msk.bf16.mxu0 %vm9606_vm0, %v9605_v1  ;;  %v5533_v25 = vshll.u32 %v1263_v20, 16 }
 0x2a0   : > { %v3034_v31 = vmax.f32 %v3033_v24, 0.0  ;;  %9225 = vmatprep.subr.bf16.mxu0 %v9605_v1 }
 0x2a1   : > { %9010 = vmatpush3.bf16.msra.mxu1 %v11122_v47 }
 0x2a2   : > { %v11140_v32 = vpack.c.bf16 %v3034_v31, %v3034_v31  ;;  %9023 = vmatprep.subr.bf16.mxu1 %v9605_v1 }
 0x2a3   : > { %9226 = vmatpush3.bf16.msra.mxu0 %v10857_v54  ;;  %v5535_v54 = vrot.slane %v5533_v25, 1  ;;  %v4878_v25 = vshll.u32 %v11031_v23, 16 }
 0x2a4   : > { %v4342_v7 = vshll.u32 %v11140_v32, 16  ;;  %9012 = vmatmul.mubr.msk.bf16.vlgmr.msra.gmra.mrb[156].mxu1 %vm3401_vm2, %v11140_v32  ;;  %9239 = vmatprep.subr.bf16.mxu0 %v9605_v1  ;;  %v4340_v46 = vshrl.u32 %v11140_v32, 16 }
 0x2a5   : > { %9024 = vmatpush3.bf16.msra.mxu1 %v11138_v34  ;;  %9027 = vmatprep.mubr.msk.bf16.mxu1 %vm9606_vm0, %v9605_v1  ;;  %v5536_v11 = vor.u32 %v5535_v54, %v5531_v39  ;;  %v4876_v54 = vshrl.u32 %v11031_v23, 16 }
 0x2a6   : > { %v4344_v52 = vrot.slane %v4342_v7, 1  ;;  %9228 = vmatmul.mubr.msk.bf16.vlgmr.msra.gmra.mrb[204].mxu0 %vm3401_vm2, %v1263_v20  ;;  %9025 = vmatprep.subr.bf16.mxu1 %v9605_v1  ;;  %v4880_v7 = vrot.slane %v4878_v25, 1 }
 0x2a7   : > { %9240 = vmatpush3.bf16.msra.mxu0 %v10877_v57  ;;  %9243 = vmatprep.mubr.msk.bf16.mxu0 %vm9606_vm0, %v9605_v1 }
 0x2a8   : > { %9241 = vmatprep.subr.bf16.mxu0 %v9605_v1  ;;  %v11167_v40 = vor.u32 %v4344_v52, %v4340_v46 }
 0x2a9   : > { %9026 = vmatpush3.bf16.msra.mxu1 %v11152_v37  ;;  %v3070_v38 = vpop.f32.mrb[112].mxu0 }
 0x2aa   : > { %9039 = vmatprep.subr.bf16.mxu1 %v9605_v1  ;;  %v8817_v57 = vpop.f32.mrb[113].mxu0  ;;  %v3110_v58 = vpop.f32.mrb[112].mxu1 }
 0x2ab   : > { %9242 = vmatpush3.bf16.msra.mxu0 %v10889_v56  ;;  %v3073_v41 = vpop.f32.mrb[114].mxu0  ;;  %v3111_v44 = vadd.f32 %v3110_v58, %v3070_v38  ;;  %v8829_v45 = vpop.f32.mrb[113].mxu1  ;;  %v2705_v56 = vpack.c.bf16 %v2704_v26, %v2704_v26  ;;  %v11239_v38 = vor.u32 %v4880_v7, %v4876_v54  ;;  %v9465_v54 = vld [vmem:[%s11740_s5 + $0x20] sm:$0xff]  }
 0x2ac   : > { %9028 = vmatmul.mubr.msk.bf16.vlgmr.msra.gmra.mrb[160].mxu1 %vm3401_vm2, %v11167_v40  ;;  %9255 = vmatprep.subr.bf16.mxu0 %v9605_v1  ;;  %v8818_v0 = vpop.f32.mrb[115].mxu0  ;;  %v3113_v35 = vpop.f32.mrb[114].mxu1 }
 0x2ad   : > { %9040 = vmatpush3.bf16.msra.mxu1 %v10777_v19  ;;  %9043 = vmatprep.mubr.msk.bf16.mxu1 %vm9606_vm0, %v9605_v1  ;;  %v8830_v48 = vpop.f32.mrb[115].mxu1  ;;  %v5721_v30 = vshll.u32 %v2705_v56, 16 }
 0x2ae   : > { %9244 = vmatmul.mubr.msk.bf16.vlgmr.msra.gmra.mrb[208].mxu0 %vm3401_vm2, %v5536_v11  ;;  %9041 = vmatprep.subr.bf16.mxu1 %v9605_v1 }
 0x2af   : > { %9256 = vmatpush3.bf16.msra.mxu0 %v10900_v9  ;;  %9259 = vmatprep.mubr.msk.bf16.mxu0 %vm9606_vm0, %v9605_v1  ;;  %v5723_v9 = vrot.slane %v5721_v30, 1 }
 0x2b0   : > { %9257 = vmatprep.subr.bf16.mxu0 %v9605_v1 }
 0x2b1   : > { %9042 = vmatpush3.bf16.msra.mxu1 %v10793_v29 }
 0x2b2   : > { %9055 = vmatprep.subr.bf16.mxu1 %v9605_v1 }
 0x2b3   : > { %9258 = vmatpush3.bf16.msra.mxu0 %v10908_v10  ;;  %v5719_v10 = vshrl.u32 %v2705_v56, 16 }
 0x2b4   : > { %9044 = vmatmul.mubr.msk.bf16.vlgmr.msra.gmra.mrb[164].mxu1 %vm3401_vm2, %v10859_v55  ;;  %9271 = vmatprep.subr.bf16.mxu0 %v9605_v1 }
 0x2b5   : > { %9056 = vmatpush3.bf16.msra.mxu1 %v10811_v15  ;;  %9059 = vmatprep.mubr.msk.bf16.mxu1 %vm9606_vm0, %v9605_v1 }
 0x2b6   : > { %9260 = vmatmul.mubr.msk.bf16.vlgmr.msra.gmra.mrb[212].mxu0 %vm3401_vm2, %v2705_v56  ;;  %9057 = vmatprep.subr.bf16.mxu1 %v9605_v1 }
 0x2b7   : > { %9272 = vmatpush3.bf16.msra.mxu0 %v10917_v43  ;;  %9275 = vmatprep.mubr.msk.bf16.mxu0 %vm9606_vm0, %v9605_v1  ;;  %v5724_v43 = vor.u32 %v5723_v9, %v5719_v10 }
 0x2b8   : > { %9273 = vmatprep.subr.bf16.mxu0 %v9605_v1 }
 0x2b9   : > { %9058 = vmatpush3.bf16.msra.mxu1 %v10830_v21  ;;  %v3150_v55 = vpop.f32.mrb[116].mxu0 }
 0x2ba   : > { %9071 = vmatprep.subr.bf16.mxu1 %v9605_v1  ;;  %v3156_v13 = vadd.f32 %v3150_v55, %v3111_v44  ;;  %v3191_v5 = vpop.f32.mrb[116].mxu1  ;;  %v8841_v27 = vpop.f32.mrb[117].mxu0 }
 0x2bb   : > { %9274 = vmatpush3.bf16.msra.mxu0 %v10925_v17  ;;  %v8853_v14 = vpop.f32.mrb[117].mxu1  ;;  %v3153_v50 = vpop.f32.mrb[118].mxu0 }
 0x2bc   : > { %9060 = vmatmul.mubr.msk.bf16.vlgmr.msra.gmra.mrb[168].mxu1 %vm3401_vm2, %v11112_v6  ;;  %v3197_v49 = vadd.f32 %v3191_v5, %v3156_v13  ;;  %v3194_v8 = vpop.f32.mrb[118].mxu1  ;;  %v8842_v4 = vpop.f32.mrb[119].mxu0  ;;  %9287 = vmatprep.subr.bf16.mxu0 %v9605_v1 }
 0x2bd   : > { %9072 = vmatpush3.bf16.msra.mxu1 %v10849_v63  ;;  %9075 = vmatprep.mubr.msk.bf16.mxu1 %vm9606_vm0, %v9605_v1  ;;  %v8854_v51 = vpop.f32.mrb[119].mxu1 }
 0x2be   : > { %9276 = vmatmul.mubr.msk.bf16.vlgmr.msra.gmra.mrb[216].mxu0 %vm3401_vm2, %v5724_v43  ;;  %9073 = vmatprep.subr.bf16.mxu1 %v9605_v1  ;;  %v3198_v52 = vadd.f32 %v10686_v16, %v3197_v49 }
 0x2bf   : > { %9295 = vmatprep.mubr.msk.bf16.mxu0 %vm9606_vm0, %v9605_v1  ;;  %9288 = vmatpush3.bf16.msra.mxu0 %v9465_v54 }
 0x2c0   : > { %v3199_v46 = vmax.f32 %v3198_v52, 0.0  ;;  %9289 = vmatprep.subr.bf16.mxu0 %v9605_v1 }
 0x2c1   : > { %9074 = vmatpush3.bf16.msra.mxu1 %v10868_v28 }
 0x2c2   : > { %9087 = vmatprep.subr.bf16.mxu1 %v9605_v1  ;;  %v11248_v11 = vpack.c.bf16 %v3199_v46, %v3199_v46 }
 0x2c4   : > { %9076 = vmatmul.mubr.msk.bf16.vlgmr.msra.gmra.mrb[172].mxu1 %vm3401_vm2, %v11140_v32  ;;  %v5066_v0 = vshll.u32 %v11248_v11, 16  ;;  %v5064_v13 = vshrl.u32 %v11248_v11, 16 }
 0x2c5   : > { %9088 = vmatpush3.bf16.msra.mxu1 %v11028_v59  ;;  %9091 = vmatprep.mubr.msk.bf16.mxu1 %vm9606_vm0, %v9605_v1 }
 0x2c6   : > { %9089 = vmatprep.subr.bf16.mxu1 %v9605_v1  ;;  %v5068_v5 = vrot.slane %v5066_v0, 1 }
 0x2c8   : > { %v11263_v43 = vor.u32 %v5068_v5, %v5064_v13 }
 0x2c9   : > { %9090 = vmatpush3.bf16.msra.mxu1 %v11039_v62  ;;  %v3235_v17 = vpop.f32.mrb[120].mxu0 }
 0x2ca   : > { %9103 = vmatprep.subr.bf16.mxu1 %v9605_v1  ;;  %v3275_v6 = vpop.f32.mrb[120].mxu1  ;;  %v8865_v36 = vpop.f32.mrb[121].mxu0 }
 0x2cb   : > { %v3276_v53 = vadd.f32 %v3275_v6, %v3235_v17  ;;  %v8877_v42 = vpop.f32.mrb[121].mxu1  ;;  %v3238_v24 = vpop.f32.mrb[122].mxu0 }
 0x2cc   : > { %9092 = vmatmul.mubr.msk.bf16.vlgmr.msra.gmra.mrb[176].mxu1 %vm3401_vm2, %v11167_v40  ;;  %v3278_v20 = vpop.f32.mrb[122].mxu1  ;;  %v8866_v31 = vpop.f32.mrb[123].mxu0 }
 0x2cd   : > { %9104 = vmatpush3.bf16.msra.mxu1 %v11054_v33  ;;  %9107 = vmatprep.mubr.msk.bf16.mxu1 %vm9606_vm0, %v9605_v1  ;;  %v8878_v32 = vpop.f32.mrb[123].mxu1 }
 0x2ce   : > { %9105 = vmatprep.subr.bf16.mxu1 %v9605_v1 }
 0x2d1   : > { %9106 = vmatpush3.bf16.msra.mxu1 %v11064_v2 }
 0x2d2   : > { %9119 = vmatprep.subr.bf16.mxu1 %v9605_v1 }
 0x2d4   : > { %9108 = vmatmul.mubr.msk.bf16.vlgmr.msra.gmra.mrb[180].mxu1 %vm3401_vm2, %v11031_v23 }
 0x2d5   : > { %9120 = vmatpush3.bf16.msra.mxu1 %v11079_v60  ;;  %9123 = vmatprep.mubr.msk.bf16.mxu1 %vm9606_vm0, %v9605_v1 }
 0x2d6   : > { %9121 = vmatprep.subr.bf16.mxu1 %v9605_v1 }
 0x2d9   : > { %9122 = vmatpush3.bf16.msra.mxu1 %v11091_v12  ;;  %v3315_v22 = vpop.f32.mrb[124].mxu0 }
 0x2da   : > { %9135 = vmatprep.subr.bf16.mxu1 %v9605_v1  ;;  %v3321_v39 = vadd.f32 %v3315_v22, %v3276_v53  ;;  %v3370_v40 = vpop.f32.mrb[124].mxu1  ;;  %v8889_v57 = vpop.f32.mrb[125].mxu0 }
 0x2db   : > { %v8901_v58 = vpop.f32.mrb[125].mxu1  ;;  %v3318_v41 = vpop.f32.mrb[126].mxu0  ;;  %v9596_v57 = vld [vmem:[%s11737_s2] ss:$0 sm:$0xff] }
 0x2dc   : > { %9124 = vmatmul.mubr.msk.bf16.vlgmr.msra.gmra.mrb[184].mxu1 %vm3401_vm2, %v11239_v38  ;;  %v11243_v16 = vadd.f32 %v3370_v40, %v3321_v39  ;;  %v3373_v44 = vpop.f32.mrb[126].mxu1  ;;  %v8890_v23 = vpop.f32.mrb[127].mxu0  ;;  %v2033_v58 = vadd.f32 %v9596_v57, %v10631_v3 }
 0x2dd   : > { %9136 = vmatpush3.bf16.msra.mxu1 %v11109_v61  ;;  %v8902_v45 = vpop.f32.mrb[127].mxu1  ;;  %9139 = vmatprep.mubr.msk.bf16.mxu1 %vm9606_vm0, %v9605_v1 }
 0x2de   : > { %9137 = vmatprep.subr.bf16.mxu1 %v9605_v1  ;;  %v2034_v41 = vmax.f32 %v2033_v58, 0.0 }
 0x2e0   : > { %v2035_v3 = vpack.c.bf16 %v2034_v41, %v2034_v41 }
 0x2e1   : > { %9138 = vmatpush3.bf16.msra.mxu1 %v11122_v47  ;;  %v3560_v26 = vpop.f32.mrb[128].mxu0 }
 0x2e2   : > { %v3439_v35 = vpop.f32.mrb[128].mxu1  ;;  %v8925_v48 = vpop.f32.mrb[129].mxu0  ;;  %9151 = vmatprep.subr.bf16.mxu1 %v9605_v1 }
 0x2e3   : > { %v8909_v56 = vpop.f32.mrb[129].mxu1  ;;  %v3563_v30 = vpop.f32.mrb[130].mxu0  ;;  %v3377_v48 = vadd.f32 %v9596_v57, %v11243_v16 }
 0x2e4   : > { %v3442_v9 = vpop.f32.mrb[130].mxu1  ;;  %v8926_v55 = vpop.f32.mrb[131].mxu0  ;;  %9140 = vmatmul.mubr.msk.bf16.vlgmr.msra.gmra.mrb[188].mxu1 %vm3401_vm2, %v11248_v11 }
 0x2e5   : > { %v8910_v10 = vpop.f32.mrb[131].mxu1  ;;  %9152 = vmatpush3.bf16.msra.mxu1 %v11138_v34  ;;  %9155 = vmatprep.mubr.msk.bf16.mxu1 %vm9606_vm0, %v9605_v1  ;;  %v3378_v9 = vmax.f32 %v3377_v48, 0.0 }
 0x2e6   : > { %9153 = vmatprep.subr.bf16.mxu1 %v9605_v1 }
 0x2e7   : > { %v3379_v16 = vpack.c.bf16 %v3378_v9, %v3378_v9 }
 0x2e9   : > { %9154 = vmatpush3.bf16.msra.mxu1 %v11152_v37  ;;  %v3688_v27 = vpop.f32.mrb[132].mxu0  ;;  %v5771_v13 = vshll.u32 %v3379_v16, 16 }
 0x2ea   : > { %v3494_v14 = vpop.f32.mrb[132].mxu1  ;;  %v8941_v50 = vpop.f32.mrb[133].mxu0  ;;  %9167 = vmatprep.subr.bf16.mxu1 %v9605_v1 }
 0x2eb   : > { %v3495_v49 = vadd.f32 %v3494_v14, %v3439_v35  ;;  %v8917_v8 = vpop.f32.mrb[133].mxu1  ;;  %v3691_v4 = vpop.f32.mrb[134].mxu0  ;;  %v5773_v50 = vrot.slane %v5771_v13, 1 }
 0x2ec   : > { %v3497_v51 = vpop.f32.mrb[134].mxu1  ;;  %v8942_v17 = vpop.f32.mrb[135].mxu0  ;;  %9156 = vmatmul.mubr.msk.bf16.vlgmr.msra.gmra.mrb[192].mxu1 %vm3401_vm2, %v11263_v43 }
 0x2ed   : > { %v8918_v6 = vpop.f32.mrb[135].mxu1  ;;  %9168 = vmatpush3.bf16.msra.mxu1 %v10777_v19  ;;  %v3566_v36 = vadd.f32 %v3560_v26, %v3495_v49  ;;  %9171 = vmatprep.mubr.msk.bf16.mxu1 %vm9606_vm0, %v9605_v1  ;;  %v9466_v51 = vld [vmem:[%s11740_s5 + $0x8] sm:$0xff]   ;;  %v9468_v17 = vld [vmem:[%s11740_s5 + $0x10] sm:$0xff]  }
 0x2ee   : > { %9169 = vmatprep.subr.bf16.mxu1 %v9605_v1 }
 0x2f1   : > { %9170 = vmatpush3.bf16.msra.mxu1 %v10793_v29  ;;  %v11272_v53 = vpop.f32.mrb[136].mxu0 }
 0x2f2   : > { %v3627_v42 = vpop.f32.mrb[136].mxu1  ;;  %v8957_v24 = vpop.f32.mrb[137].mxu0  ;;  %9183 = vmatprep.subr.bf16.mxu1 %v9605_v1 }
 0x2f3   : > { %v3633_v20 = vadd.f32 %v3627_v42, %v3566_v36  ;;  %v8933_v31 = vpop.f32.mrb[137].mxu1  ;;  %v3819_v32 = vpop.f32.mrb[138].mxu0  ;;  %v9470_v24 = vld [vmem:[%s11740_s5 + $0x18] sm:$0xff]  }
 0x2f4   : > { %v3630_v25 = vpop.f32.mrb[138].mxu1  ;;  %v8958_v7 = vpop.f32.mrb[139].mxu0  ;;  %9172 = vmatmul.mubr.msk.bf16.vlgmr.msra.gmra.mrb[196].mxu1 %vm3401_vm2, %v10975_v18 }
 0x2f5   : > { %v8934_v19 = vpop.f32.mrb[139].mxu1  ;;  %9184 = vmatpush3.bf16.msra.mxu1 %v10811_v15  ;;  %9187 = vmatprep.mubr.msk.bf16.mxu1 %vm9606_vm0, %v9605_v1  ;;  %v11280_v29 = vadd.f32 %v3688_v27, %v3633_v20 }
 0x2f6   : > { %9185 = vmatprep.subr.bf16.mxu1 %v9605_v1 }
 0x2f9   : > { %9186 = vmatpush3.bf16.msra.mxu1 %v10830_v21  ;;  %v11284_v52 = vpop.f32.mrb[140].mxu0  ;;  %v9467_v21 = vld [vmem:[%s11740_s5 + $0x28] sm:$0xff]  }
 0x2fa   : > { %v8973_v22 = vpop.f32.mrb[141].mxu0  ;;  %9199 = vmatprep.subr.bf16.mxu1 %v9605_v1  ;;  %9290 = vmatpush3.bf16.msra.mxu0 %v9467_v21 }
 0x2fb   : > { %v3947_v18 = vpop.f32.mrb[142].mxu0  ;;  %9291 = vmatprep.subr.bf16.mxu0 %v9605_v1 }
 0x2fc   : > { %v8974_v15 = vpop.f32.mrb[143].mxu0  ;;  %9188 = vmatmul.mubr.msk.bf16.vlgmr.msra.gmra.mrb[200].mxu1 %vm3401_vm2, %v11239_v38  ;;  %v9469_v38 = vld [vmem:[%s11740_s5 + $0x30] sm:$0xff]  }
 0x2fd   : > { %9200 = vmatpush3.bf16.msra.mxu1 %v10849_v63  ;;  %9203 = vmatprep.mubr.msk.bf16.mxu1 %vm9606_vm0, %v9605_v1 }
 0x2fe   : > { %9201 = vmatprep.subr.bf16.mxu1 %v9605_v1  ;;  %9292 = vmatpush3.bf16.msra.mxu0 %v9469_v38 }
 0x2ff   : > { %9293 = vmatprep.subr.bf16.mxu0 %v9605_v1 }
 0x301   : > { %9202 = vmatpush3.bf16.msra.mxu1 %v10868_v28  ;;  %v11302_v46 = vpop.f32.mrb[144].mxu0  ;;  %v9471_v28 = vld [vmem:[%s11740_s5 + $0x38] sm:$0xff]  }
 0x302   : > { %v8989_v39 = vpop.f32.mrb[145].mxu0  ;;  %9215 = vmatprep.subr.bf16.mxu1 %v9605_v1  ;;  %9294 = vmatpush3.bf16.msra.mxu0 %v9471_v28 }
 0x303   : > { %v4075_v63 = vpop.f32.mrb[146].mxu0  ;;  %9311 = vmatprep.subr.bf16.mxu0 %v9605_v1 }
 0x304   : > { %v8990_v40 = vpop.f32.mrb[147].mxu0  ;;  %9204 = vmatmul.mubr.msk.bf16.vlgmr.msra.gmra.mrb[204].mxu1 %vm3401_vm2, %v11248_v11  ;;  %v5583_v11 = vshll.u32 %v2035_v3, 16 }
 0x305   : > { %9216 = vmatpush3.bf16.msra.mxu1 %v11028_v59  ;;  %9219 = vmatprep.mubr.msk.bf16.mxu1 %vm9606_vm0, %v9605_v1 }
 0x306   : > { %9217 = vmatprep.subr.bf16.mxu1 %v9605_v1 }
 0x309   : > { %9218 = vmatpush3.bf16.msra.mxu1 %v11039_v62  ;;  %v11324_v59 = vpop.f32.mrb[148].mxu0 }
 0x30a   : > { %v9005_v44 = vpop.f32.mrb[149].mxu0  ;;  %9231 = vmatprep.subr.bf16.mxu1 %v9605_v1 }
 0x30b   : > { %v4203_v23 = vpop.f32.mrb[150].mxu0 }
 0x30c   : > { %v9006_v45 = vpop.f32.mrb[151].mxu0  ;;  %9220 = vmatmul.mubr.msk.bf16.vlgmr.msra.gmra.mrb[208].mxu1 %vm3401_vm2, %v11263_v43  ;;  %v9464_v43 = vld [vmem:[%s11740_s5] sm:$0xff]  }
 0x30d   : > { %9232 = vmatpush3.bf16.msra.mxu1 %v11054_v33  ;;  %9235 = vmatprep.mubr.msk.bf16.mxu1 %vm9606_vm0, %v9605_v1  ;;  %v5585_v33 = vrot.slane %v5583_v11, 1 }
 0x30e   : > { %9233 = vmatprep.subr.bf16.mxu1 %v9605_v1 }
 0x311   : > { %9234 = vmatpush3.bf16.msra.mxu1 %v11064_v2  ;;  %v11334_v62 = vpop.f32.mrb[152].mxu0  ;;  %v5581_v2 = vshrl.u32 %v2035_v3, 16 }
 0x312   : > { %v9021_v26 = vpop.f32.mrb[153].mxu0  ;;  %9247 = vmatprep.subr.bf16.mxu1 %v9605_v1 }
 0x313   : > { %v4331_v0 = vpop.f32.mrb[154].mxu0  ;;  %v5586_v30 = vor.u32 %v5585_v33, %v5581_v2 }
 0x314   : > { %v9022_v35 = vpop.f32.mrb[155].mxu0  ;;  %9236 = vmatmul.mubr.msk.bf16.vlgmr.msra.gmra.mrb[212].mxu1 %vm3401_vm2, %v2035_v3 }
 0x315   : > { %9248 = vmatpush3.bf16.msra.mxu1 %v11079_v60  ;;  %9251 = vmatprep.mubr.msk.bf16.mxu1 %vm9606_vm0, %v9605_v1 }
 0x316   : > { %9249 = vmatprep.subr.bf16.mxu1 %v9605_v1 }
 0x319   : > { %9250 = vmatpush3.bf16.msra.mxu1 %v11091_v12  ;;  %v11344_v56 = vpop.f32.mrb[156].mxu0 }
 0x31a   : > { %v9037_v55 = vpop.f32.mrb[157].mxu0  ;;  %9263 = vmatprep.subr.bf16.mxu1 %v9605_v1 }
 0x31b   : > { %v4449_v10 = vpop.f32.mrb[158].mxu0 }
 0x31c   : > { %v9038_v60 = vpop.f32.mrb[159].mxu0  ;;  %9252 = vmatmul.mubr.msk.bf16.vlgmr.msra.gmra.mrb[216].mxu1 %vm3401_vm2, %v5586_v30 }
 0x31d   : > { %9264 = vmatpush3.bf16.msra.mxu1 %v11109_v61  ;;  %9267 = vmatprep.mubr.msk.bf16.mxu1 %vm9606_vm0, %v9605_v1  ;;  %v5769_v61 = vshrl.u32 %v3379_v16, 16 }
 0x31e   : > { %9265 = vmatprep.subr.bf16.mxu1 %v9605_v1 }
 0x31f   : > { %v5774_v49 = vor.u32 %v5773_v50, %v5769_v61 }
 0x321   : > { %9266 = vmatpush3.bf16.msra.mxu1 %v11122_v47  ;;  %v11353_v12 = vpop.f32.mrb[160].mxu0 }
 0x322   : > { %v9053_v5 = vpop.f32.mrb[161].mxu0  ;;  %9279 = vmatprep.subr.bf16.mxu1 %v9605_v1 }
 0x323   : > { %v4529_v27 = vpop.f32.mrb[162].mxu0 }
 0x324   : > { %v9054_v14 = vpop.f32.mrb[163].mxu0  ;;  %9268 = vmatmul.mubr.msk.bf16.vlgmr.msra.gmra.mrb[220].mxu1 %vm3401_vm2, %v3379_v16 }
 0x325   : > { %9280 = vmatpush3.bf16.msra.mxu1 %v11138_v34  ;;  %9283 = vmatprep.mubr.msk.bf16.mxu1 %vm9606_vm0, %v9605_v1 }
 0x326   : > { %9281 = vmatprep.subr.bf16.mxu1 %v9605_v1 }
 0x329   : > { %9282 = vmatpush3.bf16.msra.mxu1 %v11152_v37  ;;  %v11362_v47 = vpop.f32.mrb[164].mxu0 }
 0x32a   : > { %v9069_v8 = vpop.f32.mrb[165].mxu0  ;;  %9299 = vmatprep.subr.bf16.mxu1 %v9605_v1 }
 0x32b   : > { %v4611_v34 = vpop.f32.mrb[166].mxu0 }
 0x32c   : > { %v9070_v4 = vpop.f32.mrb[167].mxu0  ;;  %9284 = vmatmul.mubr.msk.bf16.vlgmr.msra.gmra.mrb[224].mxu1 %vm3401_vm2, %v5774_v49 }
 0x32d   : > { %9300 = vmatpush3.bf16.msra.mxu1 %v9464_v43  ;;  %9307 = vmatprep.mubr.msk.bf16.mxu1 %vm9606_vm0, %v9605_v1 }
 0x32e   : > { %9301 = vmatprep.subr.bf16.mxu1 %v9605_v1 }
 0x331   : > { %v11375_v37 = vpop.f32.mrb[168].mxu0  ;;  %9302 = vmatpush3.bf16.msra.mxu1 %v9466_v51 }
 0x332   : > { %v9085_v6 = vpop.f32.mrb[169].mxu0  ;;  %9303 = vmatprep.subr.bf16.mxu1 %v9605_v1 }
 0x333   : > { %v4693_v36 = vpop.f32.mrb[170].mxu0 }
 0x334   : > { %v9086_v42 = vpop.f32.mrb[171].mxu0 }
 0x335   : > { %9304 = vmatpush3.bf16.msra.mxu1 %v9468_v17 }
 0x336   : > { %9305 = vmatprep.subr.bf16.mxu1 %v9605_v1 }
 0x339   : > { %v11385_v20 = vpop.f32.mrb[172].mxu0  ;;  %9306 = vmatpush3.bf16.msra.mxu1 %v9470_v24 }
 0x33a   : > { %v9101_v31 = vpop.f32.mrb[173].mxu0  ;;  %9323 = vmatprep.subr.bf16.mxu1 %v9605_v1 }
 0x33b   : > { %v4778_v32 = vpop.f32.mrb[174].mxu0 }
 0x33c   : > { %v9102_v25 = vpop.f32.mrb[175].mxu0 }
 0x341   : > { %v11388_v7 = vpop.f32.mrb[176].mxu0 }
 0x342   : > { %v9117_v19 = vpop.f32.mrb[177].mxu0 }
 0x343   : > { %v4872_v54 = vpop.f32.mrb[178].mxu0 }
 0x344   : > { %v9118_v22 = vpop.f32.mrb[179].mxu0 }
 0x349   : > { %v11390_v18 = vpop.f32.mrb[180].mxu0 }
 0x34a   : > { %v9133_v15 = vpop.f32.mrb[181].mxu0 }
 0x34b   : > { %v4966_v21 = vpop.f32.mrb[182].mxu0 }
 0x34c   : > { %v9134_v38 = vpop.f32.mrb[183].mxu0 }
 0x351   : > { %v11392_v39 = vpop.f32.mrb[184].mxu0 }
 0x352   : > { %v9149_v63 = vpop.f32.mrb[185].mxu0 }
 0x353   : > { %v5060_v40 = vpop.f32.mrb[186].mxu0 }
 0x354   : > { %v9150_v28 = vpop.f32.mrb[187].mxu0  ;;  %v11413_v40 = vld [vmem:[%s11739_s4] ss:$0 sm:$0xff] }
 0x357   : > { %v3749_v57 = vpop.f32.mrb[140].mxu1 }
 0x358   : > { %v3755_v58 = vadd.f32 %v3749_v57, %v11280_v29  ;;  %v8949_v41 = vpop.f32.mrb[141].mxu1 }
 0x359   : > { %v3752_v44 = vpop.f32.mrb[142].mxu1  ;;  %v11395_v23 = vpop.f32.mrb[188].mxu0 }
 0x35a   : > { %v8950_v45 = vpop.f32.mrb[143].mxu1  ;;  %v9165_v3 = vpop.f32.mrb[189].mxu0  ;;  %v3822_v11 = vadd.f32 %v11272_v53, %v3755_v58 }
 0x35b   : > { %v5154_v26 = vpop.f32.mrb[190].mxu0 }
 0x35c   : > { %v9166_v0 = vpop.f32.mrb[191].mxu0  ;;  %v9476_v26 = vld [vmem:[%s11740_s5 + $0x60] sm:$0xff]  }
 0x35f   : > { %v3883_v35 = vpop.f32.mrb[144].mxu1 }
 0x360   : > { %v3889_v33 = vadd.f32 %v3883_v35, %v3822_v11  ;;  %v8965_v48 = vpop.f32.mrb[145].mxu1 }
 0x361   : > { %v3886_v2 = vpop.f32.mrb[146].mxu1  ;;  %v11398_v30 = vpop.f32.mrb[192].mxu0 }
 0x362   : > { %v8966_v9 = vpop.f32.mrb[147].mxu1  ;;  %v9181_v55 = vpop.f32.mrb[193].mxu0  ;;  %v3950_v29 = vadd.f32 %v11284_v52, %v3889_v33  ;;  %v9472_v33 = vld [vmem:[%s11740_s5 + $0x40] sm:$0xff]  }
 0x363   : > { %v5234_v10 = vpop.f32.mrb[194].mxu0 }
 0x364   : > { %v9182_v60 = vpop.f32.mrb[195].mxu0  ;;  %v9478_v10 = vld [vmem:[%s11740_s5 + $0x68] sm:$0xff]  }
 0x367   : > { %v4005_v16 = vpop.f32.mrb[148].mxu1 }
 0x368   : > { %v4011_v13 = vadd.f32 %v4005_v16, %v3950_v29  ;;  %v8981_v5 = vpop.f32.mrb[149].mxu1 }
 0x369   : > { %v4008_v27 = vpop.f32.mrb[150].mxu1  ;;  %v11401_v14 = vpop.f32.mrb[196].mxu0  ;;  %v9473_v5 = vld [vmem:[%s11740_s5 + $0x48] sm:$0xff]  }
 0x36a   : > { %v8982_v53 = vpop.f32.mrb[151].mxu1  ;;  %v9197_v61 = vpop.f32.mrb[197].mxu0  ;;  %v4078_v50 = vadd.f32 %v11302_v46, %v4011_v13 }
 0x36b   : > { %v5316_v43 = vpop.f32.mrb[198].mxu0  ;;  %v9480_v53 = vld [vmem:[%s11740_s5 + $0x70] sm:$0xff]  }
 0x36c   : > { %v9198_v49 = vpop.f32.mrb[199].mxu0  ;;  %v9474_v61 = vld [vmem:[%s11740_s5 + $0x50] sm:$0xff]  }
 0x36f   : > { %v4139_v8 = vpop.f32.mrb[152].mxu1 }
 0x370   : > { %v4145_v34 = vadd.f32 %v4139_v8, %v4078_v50  ;;  %v8997_v4 = vpop.f32.mrb[153].mxu1 }
 0x371   : > { %v4142_v51 = vpop.f32.mrb[154].mxu1  ;;  %v11404_v17 = vpop.f32.mrb[200].mxu0 }
 0x372   : > { %v8998_v52 = vpop.f32.mrb[155].mxu1  ;;  %v9213_v6 = vpop.f32.mrb[201].mxu0  ;;  %v4206_v36 = vadd.f32 %v11324_v59, %v4145_v34  ;;  %v9482_v34 = vld [vmem:[%s11740_s5 + $0x78] sm:$0xff]  }
 0x373   : > { %v5398_v42 = vpop.f32.mrb[202].mxu0 }
 0x374   : > { %v9214_v24 = vpop.f32.mrb[203].mxu0 }
 0x377   : > { %v4261_v31 = vpop.f32.mrb[156].mxu1 }
 0x378   : > { %v4267_v32 = vadd.f32 %v4261_v31, %v4206_v36  ;;  %v9013_v25 = vpop.f32.mrb[157].mxu1  ;;  %v9475_v36 = vld [vmem:[%s11740_s5 + $0x58] sm:$0xff]  }
 0x379   : > { %v4264_v19 = vpop.f32.mrb[158].mxu1  ;;  %v11407_v54 = vpop.f32.mrb[204].mxu0 }
 0x37a   : > { %v9014_v46 = vpop.f32.mrb[159].mxu1  ;;  %v9229_v22 = vpop.f32.mrb[205].mxu0  ;;  %v4334_v15 = vadd.f32 %v11334_v62, %v4267_v32 }
 0x37b   : > { %v5483_v21 = vpop.f32.mrb[206].mxu0 }
 0x37c   : > { %v9230_v38 = vpop.f32.mrb[207].mxu0 }
 0x37d   : > { %v9481_v38 = vld [vmem:[%s11740_s5 + $0x90] sm:$0xff]  }
 0x37f   : > { %v4395_v63 = vpop.f32.mrb[160].mxu1 }
 0x380   : > { %v4401_v59 = vadd.f32 %v4395_v63, %v4334_v15  ;;  %v9029_v28 = vpop.f32.mrb[161].mxu1  ;;  %v9479_v15 = vld [vmem:[%s11740_s5 + $0x88] sm:$0xff]  }
 0x381   : > { %v4398_v57 = vpop.f32.mrb[162].mxu1  ;;  %v11415_v58 = vpop.f32.mrb[208].mxu0 }
 0x382   : > { %v4409_v41 = vadd.f32 %v11413_v40, %v4401_v59  ;;  %v9030_v44 = vpop.f32.mrb[163].mxu1  ;;  %v9245_v45 = vpop.f32.mrb[209].mxu0 }
 0x383   : > { %v5577_v3 = vpop.f32.mrb[210].mxu0 }
 0x384   : > { %v4410_v11 = vmax.f32 %v4409_v41, 0.0  ;;  %v9246_v62 = vpop.f32.mrb[211].mxu0  ;;  %v9483_v41 = vld [vmem:[%s11740_s5 + $0x98] sm:$0xff]  }
 0x386   : > { %v4411_v0 = vpack.c.bf16 %v4410_v11, %v4410_v11 }
 0x387   : > { %v4486_v35 = vpop.f32.mrb[164].mxu1 }
 0x388   : > { %v5840_v48 = vshrl.u32 %v4411_v0, 16  ;;  %v4487_v2 = vadd.f32 %v4486_v35, %v11344_v56  ;;  %v9045_v9 = vpop.f32.mrb[165].mxu1  ;;  %9308 = vmatmul.mubr.msk.bf16.vlgmr.msra.gmra.mrb[228].mxu1 %vm430_vm1, %v4411_v0  ;;  %v5985_v31 = vrot.slane %v4411_v0, 1 }
 0x389   : > { %v4489_v55 = vpop.f32.mrb[166].mxu1  ;;  %v11426_v29 = vpop.f32.mrb[212].mxu0  ;;  %9324 = vmatpush3.bf16.msra.mxu1 %v9476_v26  ;;  %9331 = vmatprep.mubr.msk.bf16.mxu1 %vm9606_vm0, %v9605_v1 }
 0x38a   : > { %v9046_v60 = vpop.f32.mrb[167].mxu1  ;;  %v9261_v16 = vpop.f32.mrb[213].mxu0  ;;  %9296 = vmatmul.mubr.msk.bf16.vlgmr.msra.gmra.mrb[220].mxu0 %vm430_vm1, %v5840_v48  ;;  %v4532_v56 = vadd.f32 %v11353_v12, %v4487_v2  ;;  %9325 = vmatprep.subr.bf16.mxu1 %v9605_v1 }
 0x38b   : > { %9312 = vmatpush3.bf16.msra.mxu0 %v9472_v33  ;;  %v5671_v13 = vpop.f32.mrb[214].mxu0  ;;  %9319 = vmatprep.mubr.msk.bf16.mxu0 %vm9606_vm0, %v9605_v1 }
 0x38c   : > { %v9262_v27 = vpop.f32.mrb[215].mxu0  ;;  %9313 = vmatprep.subr.bf16.mxu0 %v9605_v1 }
 0x38d   : > { %9326 = vmatpush3.bf16.msra.mxu1 %v9478_v10 }
 0x38e   : > { %9327 = vmatprep.subr.bf16.mxu1 %v9605_v1 }
 0x38f   : > { %9314 = vmatpush3.bf16.msra.mxu0 %v9473_v5  ;;  %v4567_v12 = vpop.f32.mrb[168].mxu1 }
 0x390   : > { %v4573_v50 = vadd.f32 %v4567_v12, %v4532_v56  ;;  %v9061_v43 = vpop.f32.mrb[169].mxu1  ;;  %9315 = vmatprep.subr.bf16.mxu0 %v9605_v1 }
 0x391   : > { %v4570_v49 = vpop.f32.mrb[170].mxu1  ;;  %v11450_v8 = vpop.f32.mrb[216].mxu0  ;;  %9328 = vmatpush3.bf16.msra.mxu1 %v9480_v53 }
 0x392   : > { %v9062_v4 = vpop.f32.mrb[171].mxu1  ;;  %v9277_v51 = vpop.f32.mrb[217].mxu0  ;;  %v4614_v52 = vadd.f32 %v11362_v47, %v4573_v50  ;;  %9329 = vmatprep.subr.bf16.mxu1 %v9605_v1  ;;  %v9477_v47 = vld [vmem:[%s11740_s5 + $0x80] sm:$0xff]  }
 0x393   : > { %9316 = vmatpush3.bf16.msra.mxu0 %v9474_v61  ;;  %v5765_v6 = vpop.f32.mrb[218].mxu0  ;;  %v9484_v50 = vld [vmem:[%s11740_s5 + $0xa0] sm:$0xff]  }
 0x394   : > { %v9278_v42 = vpop.f32.mrb[219].mxu0  ;;  %9317 = vmatprep.subr.bf16.mxu0 %v9605_v1  ;;  %v9488_v49 = vld [vmem:[%s11740_s5 + $0xc0] sm:$0xff]  }
 0x395   : > { %9330 = vmatpush3.bf16.msra.mxu1 %v9482_v34  ;;  %v9486_v42 = vld [vmem:[%s11740_s5 + $0xb0] sm:$0xff]  }
 0x396   : > { %9347 = vmatprep.subr.bf16.mxu1 %v9605_v1 }
 0x397   : > { %9318 = vmatpush3.bf16.msra.mxu0 %v9475_v36  ;;  %v4649_v24 = vpop.f32.mrb[172].mxu1 }
 0x398   : > { %v4655_v32 = vadd.f32 %v4649_v24, %v4614_v52  ;;  %v9077_v25 = vpop.f32.mrb[173].mxu1  ;;  %9335 = vmatprep.subr.bf16.mxu0 %v9605_v1  ;;  %v9485_v52 = vld [vmem:[%s11740_s5 + $0xa8] sm:$0xff]  }
 0x399   : > { %v4652_v19 = vpop.f32.mrb[174].mxu1  ;;  %v9487_v25 = vld [vmem:[%s11740_s5 + $0xb8] sm:$0xff]  }
 0x39a   : > { %9320 = vmatmul.mubr.msk.bf16.vlgmr.msra.gmra.mrb[224].mxu0 %vm430_vm1, %v5985_v31  ;;  %v9078_v46 = vpop.f32.mrb[175].mxu1  ;;  %v4696_v22 = vadd.f32 %v11375_v37, %v4655_v32 }
 0x39b   : > { %9336 = vmatpush3.bf16.msra.mxu0 %v9477_v47  ;;  %9343 = vmatprep.mubr.msk.bf16.mxu0 %vm9606_vm0, %v9605_v1 }
 0x39c   : > { %9337 = vmatprep.subr.bf16.mxu0 %v9605_v1 }
 0x39f   : > { %v4731_v21 = vpop.f32.mrb[176].mxu1  ;;  %9338 = vmatpush3.bf16.msra.mxu0 %v9479_v15  ;;  %v9489_v15 = vld [vmem:[%s11740_s5 + $0xe0] sm:$0xff]  }
 0x3a0   : > { %v4737_v63 = vadd.f32 %v4731_v21, %v4696_v22  ;;  %v9093_v59 = vpop.f32.mrb[177].mxu1  ;;  %9339 = vmatprep.subr.bf16.mxu0 %v9605_v1  ;;  %v9494_v22 = vld [vmem:[%s11740_s5 + $0xd8] sm:$0xff]  }
 0x3a1   : > { %v4734_v37 = vpop.f32.mrb[178].mxu1 }
 0x3a2   : > { %v9094_v28 = vpop.f32.mrb[179].mxu1  ;;  %v4781_v57 = vadd.f32 %v11385_v20, %v4737_v63  ;;  %v9491_v37 = vld [vmem:[%s11740_s5 + $0xe8] sm:$0xff]  }
 0x3a3   : > { %9340 = vmatpush3.bf16.msra.mxu0 %v9481_v38 }
 0x3a4   : > { %9341 = vmatprep.subr.bf16.mxu0 %v9605_v1 }
 0x3a7   : > { %v4819_v44 = vpop.f32.mrb[180].mxu1  ;;  %9342 = vmatpush3.bf16.msra.mxu0 %v9483_v41  ;;  %v9493_v41 = vld [vmem:[%s11740_s5 + $0xf0] sm:$0xff]  }
 0x3a8   : > { %v4825_v45 = vadd.f32 %v4819_v44, %v4781_v57  ;;  %v9109_v3 = vpop.f32.mrb[181].mxu1  ;;  %9359 = vmatprep.subr.bf16.mxu0 %v9605_v1 }
 0x3a9   : > { %v4822_v11 = vpop.f32.mrb[182].mxu1 }
 0x3aa   : > { %v9110_v62 = vpop.f32.mrb[183].mxu1  ;;  %v4875_v26 = vadd.f32 %v11388_v7, %v4825_v45 }
 0x3ab   : > { %v9495_v62 = vld [vmem:[%s11740_s5 + $0xf8] sm:$0xff]  }
 0x3af   : > { %v4919_v0 = vpop.f32.mrb[184].mxu1 }
 0x3b0   : > { %v4925_v35 = vadd.f32 %v4919_v0, %v4875_v26  ;;  %v9125_v20 = vpop.f32.mrb[185].mxu1 }
 0x3b1   : > { %v4922_v33 = vpop.f32.mrb[186].mxu1 }
 0x3b2   : > { %v9126_v48 = vpop.f32.mrb[187].mxu1  ;;  %v4969_v2 = vadd.f32 %v11390_v18, %v4925_v35 }
 0x3b7   : > { %v5007_v9 = vpop.f32.mrb[188].mxu1 }
 0x3b8   : > { %v5013_v55 = vadd.f32 %v5007_v9, %v4969_v2  ;;  %v9141_v10 = vpop.f32.mrb[189].mxu1 }
 0x3b9   : > { %v5010_v60 = vpop.f32.mrb[190].mxu1 }
 0x3ba   : > { %v9142_v16 = vpop.f32.mrb[191].mxu1  ;;  %v5063_v56 = vadd.f32 %v11392_v39, %v5013_v55 }
 0x3bf   : > { %v5107_v13 = vpop.f32.mrb[192].mxu1 }
 0x3c0   : > { %v5113_v5 = vadd.f32 %v5107_v13, %v5063_v56  ;;  %v9157_v27 = vpop.f32.mrb[193].mxu1 }
 0x3c1   : > { %v5110_v53 = vpop.f32.mrb[194].mxu1 }
 0x3c2   : > { %v5114_v7 = vadd.f32 %v11413_v40, %v5113_v5  ;;  %v9158_v12 = vpop.f32.mrb[195].mxu1 }
 0x3c4   : > { %v5115_v61 = vmax.f32 %v5114_v7, 0.0 }
 0x3c6   : > { %v5116_v18 = vpack.c.bf16 %v5115_v61, %v5115_v61 }
 0x3c7   : > { %v5191_v43 = vpop.f32.mrb[196].mxu1 }
 0x3c8   : > { %v6140_v34 = vshrl.u32 %v5116_v18, 16  ;;  %v5192_v39 = vadd.f32 %v5191_v43, %v11395_v23  ;;  %v9173_v4 = vpop.f32.mrb[197].mxu1  ;;  %9332 = vmatmul.mubr.msk.bf16.vlgmr.msra.gmra.mrb[232].mxu1 %vm430_vm1, %v5116_v18  ;;  %v9490_v23 = vld [vmem:[%s11740_s5 + $0xc8] sm:$0xff]   ;;  %v6220_v21 = vrot.slane %v5116_v18, 1 }
 0x3c9   : > { %9348 = vmatpush3.bf16.msra.mxu1 %v9484_v50  ;;  %v5194_v51 = vpop.f32.mrb[198].mxu1  ;;  %9355 = vmatprep.mubr.msk.bf16.mxu1 %vm9606_vm0, %v9605_v1  ;;  %v9499_v4 = vld [vmem:[%s11740_s5 + $0x118] sm:$0xff]  }
 0x3ca   : > { %v9174_v6 = vpop.f32.mrb[199].mxu1  ;;  %9344 = vmatmul.mubr.msk.bf16.vlgmr.msra.gmra.mrb[228].mxu0 %vm430_vm1, %v6140_v34  ;;  %9349 = vmatprep.subr.bf16.mxu1 %v9605_v1  ;;  %v5237_v36 = vadd.f32 %v11398_v30, %v5192_v39  ;;  %v9492_v30 = vld [vmem:[%s11740_s5 + $0xd0] sm:$0xff]   ;;  %v9496_v34 = vld [vmem:[%s11740_s5 + $0x100] sm:$0xff]  }
 0x3cb   : > { %9360 = vmatpush3.bf16.msra.mxu0 %v9488_v49  ;;  %9367 = vmatprep.mubr.msk.bf16.mxu0 %vm9606_vm0, %v9605_v1 }
 0x3cc   : > { %9361 = vmatprep.subr.bf16.mxu0 %v9605_v1 }
 0x3cd   : > { %9350 = vmatpush3.bf16.msra.mxu1 %v9485_v52 }
 0x3ce   : > { %9351 = vmatprep.subr.bf16.mxu1 %v9605_v1 }
 0x3cf   : > { %v5272_v24 = vpop.f32.mrb[200].mxu1  ;;  %9362 = vmatpush3.bf16.msra.mxu0 %v9490_v23 }
 0x3d0   : > { %v5278_v47 = vadd.f32 %v5272_v24, %v5237_v36  ;;  %v9189_v31 = vpop.f32.mrb[201].mxu1  ;;  %9363 = vmatprep.subr.bf16.mxu0 %v9605_v1 }
 0x3d1   : > { %9352 = vmatpush3.bf16.msra.mxu1 %v9486_v42  ;;  %v5275_v32 = vpop.f32.mrb[202].mxu1 }
 0x3d2   : > { %v9190_v19 = vpop.f32.mrb[203].mxu1  ;;  %9353 = vmatprep.subr.bf16.mxu1 %v9605_v1  ;;  %v5319_v46 = vadd.f32 %v11401_v14, %v5278_v47  ;;  %v9500_v32 = vld [vmem:[%s11742_s7] ss:$16 sps:$4 sm:$0xff]  }
 0x3d3   : > { %9364 = vmatpush3.bf16.msra.mxu0 %v9492_v30  ;;  %v9505_v19 = vld [vmem:[%s11742_s7 + $0xc] ss:$16 sps:$4 sm:$0xff]  }
 0x3d4   : > { %9365 = vmatprep.subr.bf16.mxu0 %v9605_v1 }
 0x3d5   : > { %9354 = vmatpush3.bf16.msra.mxu1 %v9487_v25  ;;  %v9503_v25 = vld [vmem:[%s11742_s7 + $0x8] ss:$16 sps:$4 sm:$0xff]  }
 0x3d6   : > { %9371 = vmatprep.subr.bf16.mxu1 %v9605_v1 }
 0x3d7   : > { %v5354_v38 = vpop.f32.mrb[204].mxu1  ;;  %9366 = vmatpush3.bf16.msra.mxu0 %v9494_v22  ;;  %v9511_v22 = vld [vmem:[%s11742_s7 + $0x2c] ss:$16 sps:$4 sm:$0xff]  }
 0x3d8   : > { %v5360_v63 = vadd.f32 %v5354_v38, %v5319_v46  ;;  %9356 = vmatmul.mubr.msk.bf16.vlgmr.msra.gmra.mrb[236].mxu1 %vm430_vm1, %v6220_v21  ;;  %v9205_v14 = vpop.f32.mrb[205].mxu1  ;;  %9383 = vmatprep.subr.bf16.mxu0 %v9605_v1  ;;  %v9508_v46 = vld [vmem:[%s11742_s7 + $0x24] ss:$16 sps:$4 sm:$0xff]   ;;  %v9509_v21 = vld [vmem:[%s11742_s7 + $0x28] ss:$16 sps:$4 sm:$0xff]  }
 0x3d9   : > { %v5357_v59 = vpop.f32.mrb[206].mxu1  ;;  %9372 = vmatpush3.bf16.msra.mxu1 %v9489_v15  ;;  %9379 = vmatprep.mubr.msk.bf16.mxu1 %vm9606_vm0, %v9605_v1  ;;  %v9506_v15 = vld [vmem:[%s11742_s7 + $0x20] ss:$16 sps:$4 sm:$0xff]   ;;  %v9514_v38 = vld [vmem:[%s11742_s7 + $0x44] ss:$16 sps:$4 sm:$0xff]  }
 0x3da   : > { %v9206_v28 = vpop.f32.mrb[207].mxu1  ;;  %v5401_v57 = vadd.f32 %v11404_v17, %v5360_v63  ;;  %9373 = vmatprep.subr.bf16.mxu1 %v9605_v1  ;;  %v9517_v63 = vld [vmem:[%s11742_s7 + $0x4c] ss:$16 sps:$4 sm:$0xff]   ;;  %v9512_v14 = vld [vmem:[%s11742_s7 + $0x40] ss:$16 sps:$4 sm:$0xff]  }
 0x3db   : > { %v9515_v59 = vld [vmem:[%s11742_s7 + $0x48] ss:$16 sps:$4 sm:$0xff]  }
 0x3dd   : > { %9374 = vmatpush3.bf16.msra.mxu1 %v9491_v37 }
 0x3de   : > { %9375 = vmatprep.subr.bf16.mxu1 %v9605_v1 }
 0x3df   : > { %v5436_v44 = vpop.f32.mrb[208].mxu1 }
 0x3e0   : > { %v5442_v45 = vadd.f32 %v5436_v44, %v5401_v57  ;;  %v9221_v3 = vpop.f32.mrb[209].mxu1  ;;  %v9523_v44 = vld [vmem:[%s11742_s7 + $0x6c] ss:$16 sps:$4 sm:$0xff]  }
 0x3e1   : > { %v5439_v11 = vpop.f32.mrb[210].mxu1  ;;  %9376 = vmatpush3.bf16.msra.mxu1 %v9493_v41  ;;  %v9520_v41 = vld [vmem:[%s11742_s7 + $0x64] ss:$16 sps:$4 sm:$0xff]   ;;  %v9518_v3 = vld [vmem:[%s11742_s7 + $0x60] ss:$16 sps:$4 sm:$0xff]  }
 0x3e2   : > { %v9222_v26 = vpop.f32.mrb[211].mxu1  ;;  %v5486_v17 = vadd.f32 %v11407_v54, %v5442_v45  ;;  %9377 = vmatprep.subr.bf16.mxu1 %v9605_v1  ;;  %v9521_v11 = vld [vmem:[%s11742_s7 + $0x68] ss:$16 sps:$4 sm:$0xff]  }
 0x3e3   : > { %v9607_v26 = vmov 0  }
 0x3e5   : > { %9378 = vmatpush3.bf16.msra.mxu1 %v9495_v62 }
 0x3e7   : > { %v5524_v0 = vpop.f32.mrb[212].mxu1 }
 0x3e8   : > { %v5530_v35 = vadd.f32 %v5524_v0, %v5486_v17  ;;  %v9237_v20 = vpop.f32.mrb[213].mxu1  ;;  %v9524_v17 = vld [vmem:[%s11744_s9 + $0x40] sm:$0xff]  }
 0x3e9   : > { %v5527_v33 = vpop.f32.mrb[214].mxu1  ;;  %v9525_v0 = vld [vmem:[%s11744_s9 + $0xc0] sm:$0xff]  }
 0x3ea   : > { %v9238_v48 = vpop.f32.mrb[215].mxu1  ;;  %v5580_v2 = vadd.f32 %v11415_v58, %v5530_v35 }
 0x3ef   : > { %v5624_v9 = vpop.f32.mrb[216].mxu1 }
 0x3f0   : > { %v5630_v55 = vadd.f32 %v5624_v9, %v5580_v2  ;;  %v9253_v10 = vpop.f32.mrb[217].mxu1 }
 0x3f1   : > { %v5627_v60 = vpop.f32.mrb[218].mxu1 }
 0x3f2   : > { %v9254_v16 = vpop.f32.mrb[219].mxu1  ;;  %v5674_v56 = vadd.f32 %v11426_v29, %v5630_v55 }
 0x3f7   : > { %v5712_v13 = vpop.f32.mrb[220].mxu1 }
 0x3f8   : > { %v5718_v5 = vadd.f32 %v5712_v13, %v5674_v56  ;;  %v9269_v54 = vpop.f32.mrb[221].mxu1 }
 0x3f9   : > { %v5715_v27 = vpop.f32.mrb[222].mxu1 }
 0x3fa   : > { %v9270_v53 = vpop.f32.mrb[223].mxu1  ;;  %v5768_v7 = vadd.f32 %v11450_v8, %v5718_v5  ;;  %v9497_v8 = vld [vmem:[%s11740_s5 + $0x108] sm:$0xff]  }
 0x3ff   : > { %v5812_v12 = vpop.f32.mrb[224].mxu1 }
 0x400   : > { %v5818_v61 = vadd.f32 %v5812_v12, %v5768_v7  ;;  %v9285_v50 = vpop.f32.mrb[225].mxu1 }
 0x401   : > { %v5815_v18 = vpop.f32.mrb[226].mxu1 }
 0x402   : > { %v5819_v58 = vadd.f32 %v11413_v40, %v5818_v61  ;;  %v9286_v43 = vpop.f32.mrb[227].mxu1  ;;  %v9498_v40 = vld [vmem:[%s11740_s5 + $0x110] sm:$0xff]  }
 0x404   : > { %v5820_v49 = vmax.f32 %v5819_v58, 0.0 }
 0x406   : > { %v5821_v29 = vpack.c.bf16 %v5820_v49, %v5820_v49 }
 0x408   : > { %v6375_v39 = vshrl.u32 %v5821_v29, 16  ;;  %9368 = vmatmul.mubr.msk.bf16.vlgmr.msra.gmra.mrb[232].mxu0 %vm430_vm1, %v5821_v29  ;;  %v6455_v51 = vrot.slane %v5821_v29, 1 }
 0x409   : > { %9384 = vmatpush3.bf16.msra.mxu0 %v9496_v34  ;;  %9391 = vmatprep.mubr.msk.bf16.mxu0 %vm9606_vm0, %v9605_v1 }
 0x40a   : > { %9380 = vmatmul.mubr.msk.bf16.vlgmr.msra.gmra.mrb[240].mxu1 %vm430_vm1, %v6375_v39  ;;  %9385 = vmatprep.subr.bf16.mxu0 %v9605_v1  ;;  %v6524_v39 = vld [vmem:[%s11741_s6] sm:$0x1] }
 0x40b   : > { %6681 = vmatprep.mubr.bf16.mxu1 %v9607_v26 }
 0x40d   : > { %9386 = vmatpush3.bf16.msra.mxu0 %v9497_v8 }
 0x40e   : > { %9387 = vmatprep.subr.bf16.mxu0 %v9605_v1 }
 0x411   : > { %9388 = vmatpush3.bf16.msra.mxu0 %v9498_v40 }
 0x412   : > { %9389 = vmatprep.subr.bf16.mxu0 %v9605_v1  ;;  %v9502_v1 = vld [vmem:[%s11742_s7 + $0x4] ss:$16 sps:$4 sm:$0xff]  }
 0x413   : > { %6649 = vmatprep.subr.bf16.mxu1 %v9502_v1  ;;  %v9533_v1 = vld [vmem:[%s11744_s9 + $0xd0] sm:$0xff]  }
 0x414   : > { %6650 = vmatpush1.bf16.msra.mxu1 %v9500_v32  ;;  %v9532_v32 = vld [vmem:[%s11744_s9 + $0x50] sm:$0xff]  }
 0x415   : > { %9390 = vmatpush3.bf16.msra.mxu0 %v9499_v4  ;;  %6651 = vmatprep.subr.bf16.mxu1 %v9508_v46  ;;  %v9536_v46 = vld [vmem:[%s11744_s9 + $0x58] sm:$0xff]  }
 0x416   : > { %6690 = vmatprep.subr.bf16.mxu0 %v9505_v19  ;;  %v9535_v19 = vld [vmem:[%s11744_s9 + $0x90] sm:$0xff]  }
 0x418   : > { %9392 = vmatmul.mubr.msk.bf16.vlgmr.msra.gmra.mrb[236].mxu0 %vm430_vm1, %v6455_v51  ;;  %6652 = vmatpush1.bf16.msra.mxu1 %v9506_v15  ;;  %v9538_v15 = vld [vmem:[%s11744_s9 + $0x18] sm:$0xff]  }
 0x419   : > { %6691 = vmatpush1.bf16.msra.mxu0 %v9503_v25  ;;  %6653 = vmatprep.subr.bf16.mxu1 %v9514_v38  ;;  %v9534_v25 = vld [vmem:[%s11744_s9 + $0x10] sm:$0xff]   ;;  %v9540_v38 = vld [vmem:[%s11744_s9 + $0x60] sm:$0xff]  }
 0x41a   : > { %6692 = vmatprep.subr.bf16.mxu0 %v9511_v22  ;;  %6722 = vmatprep.mubr.bf16.mxu0 %v9607_v26  ;;  %v9537_v22 = vld [vmem:[%s11744_s9 + $0xd8] sm:$0xff]  }
 0x41b   : > { %v9553_v26 = vld [vmem:[%s11744_s9 + $0xf8] sm:$0xff]  }
 0x41c   : > { %6654 = vmatpush1.bf16.msra.mxu1 %v9512_v14  ;;  %v9542_v14 = vld [vmem:[%s11744_s9 + $0x20] sm:$0xff]  }
 0x41d   : > { %6693 = vmatpush1.bf16.msra.mxu0 %v9509_v21  ;;  %6655 = vmatprep.subr.bf16.mxu1 %v9520_v41  ;;  %v9539_v21 = vld [vmem:[%s11744_s9 + $0x98] sm:$0xff]   ;;  %v9547_v41 = vld [vmem:[%s11744_s9 + $0xa8] sm:$0xff]  }
 0x41e   : > { %6694 = vmatprep.subr.bf16.mxu0 %v9517_v63  ;;  %v9541_v63 = vld [vmem:[%s11744_s9 + $0xe0] sm:$0xff]  }
 0x420   : > { %6656 = vmatpush1.bf16.msra.mxu1 %v9518_v3  ;;  %v9550_v3 = vld [vmem:[%s11744_s9 + $0x30] sm:$0xff]  }
 0x421   : > { %6695 = vmatpush1.bf16.msra.mxu0 %v9515_v59  ;;  %8091 = vmatprep.subr.bf16.mxu1 %v9524_v17  ;;  %v9543_v59 = vld [vmem:[%s11744_s9 + $0xa0] sm:$0xff]   ;;  %v9554_v17 = vld [vmem:[%s11744_s9 + $0x38] sm:$0xff]  }
 0x422   : > { %6696 = vmatprep.subr.bf16.mxu0 %v9523_v44  ;;  %v9548_v44 = vld [vmem:[%s11744_s9 + $0x70] sm:$0xff]  }
 0x425   : > { %6697 = vmatpush1.bf16.msra.mxu0 %v9521_v11  ;;  %v9551_v11 = vld [vmem:[%s11744_s9 + $0xb0] sm:$0xff]  }
 0x426   : > { %8113 = vmatprep.subr.bf16.mxu0 %v9525_v0  ;;  %v9555_v0 = vld [vmem:[%s11744_s9 + $0xb8] sm:$0xff]  }
 0x45b   : > { %v5969_v52 = vpop.f32.mrb[228].mxu1 }
 0x45c   : > { %v9309_v6 = vpop.f32.mrb[229].mxu1 }
 0x45d   : > { %v5903_v36 = vpop.f32.mrb[220].mxu0  ;;  %v5972_v23 = vpop.f32.mrb[230].mxu1 }
 0x45e   : > { %v5970_v42 = vadd.f32 %v5969_v52, %v5903_v36  ;;  %v9297_v24 = vpop.f32.mrb[221].mxu0  ;;  %v9310_v30 = vpop.f32.mrb[231].mxu1  ;;  %v9526_v36 = vld [vmem:[%s11744_s9] sm:$0xff]  }
 0x45f   : > { %v5906_v47 = vpop.f32.mrb[222].mxu0  ;;  %v9527_v23 = vld [vmem:[%s11744_s9 + $0x80] sm:$0xff]   ;;  %v9528_v24 = vld [vmem:[%s11744_s9 + $0x48] sm:$0xff]  }
 0x460   : > { %v9298_v31 = vpop.f32.mrb[223].mxu0  ;;  %v9529_v30 = vld [vmem:[%s11744_s9 + $0xc8] sm:$0xff]  }
 0x461   : > { %v9530_v47 = vld [vmem:[%s11744_s9 + $0x8] sm:$0xff]  }
 0x462   : > { %v9531_v31 = vld [vmem:[%s11744_s9 + $0x88] sm:$0xff]  }
 0x46d   : > { %v6047_v37 = vpop.f32.mrb[224].mxu0 }
 0x46e   : > { %v6053_v28 = vadd.f32 %v6047_v37, %v5970_v42  ;;  %v9321_v57 = vpop.f32.mrb[225].mxu0  ;;  %v9544_v37 = vld [vmem:[%s11744_s9 + $0x68] sm:$0xff]  }
 0x46f   : > { %v6050_v45 = vpop.f32.mrb[226].mxu0  ;;  %v9546_v57 = vld [vmem:[%s11744_s9 + $0x28] sm:$0xff]  }
 0x470   : > { %v9322_v62 = vpop.f32.mrb[227].mxu0  ;;  %v9549_v45 = vld [vmem:[%s11744_s9 + $0xf0] sm:$0xff]  }
 0x471   : > { %v9552_v62 = vld [vmem:[%s11744_s9 + $0x78] sm:$0xff]  }
 0x49b   : > { %v6124_v35 = vpop.f32.mrb[232].mxu1 }
 0x49c   : > { %v6130_v20 = vadd.f32 %v6124_v35, %v6053_v28  ;;  %v9333_v33 = vpop.f32.mrb[233].mxu1  ;;  %v9545_v28 = vld [vmem:[%s11744_s9 + $0xe8] sm:$0xff]   ;;  %v6626_v35 = vlaneseq }
 0x49d   : > { %v6127_v48 = vpop.f32.mrb[234].mxu1  ;;  %v6203_v2 = vpop.f32.mrb[228].mxu0 }
 0x49e   : > { %v6209_v9 = vadd.f32 %v6203_v2, %v6130_v20  ;;  %v9334_v55 = vpop.f32.mrb[235].mxu1  ;;  %v9345_v10 = vpop.f32.mrb[229].mxu0  ;;  %v6627_v20 = vshrl.u32 %v6626_v35, 7  ;;  %v6544_v2 = vld [vmem:[%s11743_s8] sm:$0xf] }
 0x49f   : > { %v6206_v60 = vpop.f32.mrb[230].mxu0 }
 0x4a0   : > { %v9346_v16 = vpop.f32.mrb[231].mxu0  ;;  %v6628_v33 = vsub.s32 0, %v6627_v20  ;;  %v6636_v48 = vsub.s32 2, %v6627_v20  ;;  %v6640_v55 = vsub.s32 3, %v6627_v20 }
 0x4a2   : > { %v6629_v10 = vrot.slane %v6544_v2, %v6628_v33  ;;  %v6637_v60 = vrot.slane %v6544_v2, %v6636_v48 }
 0x4ab   : > { %v6282_v56 = vpop.f32.mrb[236].mxu1 }
 0x4ac   : > { %v6288_v13 = vadd.f32 %v6282_v56, %v6209_v9  ;;  %v9357_v5 = vpop.f32.mrb[237].mxu1  ;;  %v6632_v9 = vsub.s32 1, %v6627_v20  ;;  %v6641_v56 = vrot.slane %v6544_v2, %v6640_v55 }
 0x4ad   : > { %v6285_v54 = vpop.f32.mrb[238].mxu1 }
 0x4ae   : > { %v9358_v27 = vpop.f32.mrb[239].mxu1  ;;  %v6633_v16 = vrot.slane %v6544_v2, %v6632_v9 }
 0x4db   : > { %v6359_v53 = vpop.f32.mrb[232].mxu0 }
 0x4dc   : > { %v6365_v7 = vadd.f32 %v6359_v53, %v6288_v13  ;;  %v9369_v12 = vpop.f32.mrb[233].mxu0 }
 0x4dd   : > { %v6362_v61 = vpop.f32.mrb[234].mxu0  ;;  %v6438_v50 = vpop.f32.mrb[240].mxu1 }
 0x4de   : > { %v6444_v18 = vadd.f32 %v6438_v50, %v6365_v7  ;;  %v9370_v58 = vpop.f32.mrb[235].mxu0  ;;  %v9381_v43 = vpop.f32.mrb[241].mxu1 }
 0x4df   : > { %v6441_v49 = vpop.f32.mrb[242].mxu1 }
 0x4e0   : > { %v9382_v34 = vpop.f32.mrb[243].mxu1 }
 0x4eb   : > { %v6517_v29 = vpop.f32.mrb[236].mxu0 }
 0x4ec   : > { %v6523_v8 = vadd.f32 %v6517_v29, %v6444_v18  ;;  %v9393_v40 = vpop.f32.mrb[237].mxu0 }
 0x4ed   : > { %v6520_v4 = vpop.f32.mrb[238].mxu0 }
 0x4ee   : > { %v6525_v51 = vadd.f32 %v6524_v39, %v6523_v8  ;;  %v9394_v52 = vpop.f32.mrb[239].mxu0 }
 0x4f0   : > { %v6526_v6 = vmax.f32 %v6525_v51, 0.0 }
 0x4f2   : > { %v6527_v42 = vpack.c.bf16 %v6526_v6, %v6526_v6 }
 0x4f4   : > { %7546 = vmatmul.mubr.msk.bf16.vlgmr.msra.gmra.mrb[244].mxu1 %vm430_vm1, %v6527_v42  ;;  %7547 = vmatmul.mubr.msk.bf16.vlgmr.msra.gmra.mrb[240].mxu0 %vm430_vm1, %v6527_v42 }
 0x4f5   : > { %8092 = vmatpush3.bf16.msra.mxu1 %v9526_v36  ;;  %8114 = vmatpush3.bf16.msra.mxu0 %v9527_v23  ;;  %v6803_v36 = vld [vmem:[%s11745_s10] sm:$0x1] }
 0x4f6   : > { %8093 = vmatprep.subr.bf16.mxu1 %v9528_v24  ;;  %8115 = vmatprep.subr.bf16.mxu0 %v9529_v30 }
 0x4f9   : > { %8094 = vmatpush3.bf16.msra.mxu1 %v9530_v47  ;;  %8116 = vmatpush3.bf16.msra.mxu0 %v9531_v31 }
 0x4fa   : > { %8095 = vmatprep.subr.bf16.mxu1 %v9532_v32  ;;  %8117 = vmatprep.subr.bf16.mxu0 %v9533_v1 }
 0x4fd   : > { %8096 = vmatpush3.bf16.msra.mxu1 %v9534_v25  ;;  %8118 = vmatpush3.bf16.msra.mxu0 %v9535_v19 }
 0x4fe   : > { %8097 = vmatprep.subr.bf16.mxu1 %v9536_v46  ;;  %8119 = vmatprep.subr.bf16.mxu0 %v9537_v22 }
 0x501   : > { %8098 = vmatpush3.bf16.msra.mxu1 %v9538_v15  ;;  %8120 = vmatpush3.bf16.msra.mxu0 %v9539_v21 }
 0x502   : > { %8099 = vmatprep.subr.bf16.mxu1 %v9540_v38  ;;  %8121 = vmatprep.subr.bf16.mxu0 %v9541_v63 }
 0x505   : > { %8100 = vmatpush3.bf16.msra.mxu1 %v9542_v14  ;;  %8122 = vmatpush3.bf16.msra.mxu0 %v9543_v59 }
 0x506   : > { %8101 = vmatprep.subr.bf16.mxu1 %v9544_v37  ;;  %8123 = vmatprep.subr.bf16.mxu0 %v9545_v28 }
 0x509   : > { %8102 = vmatpush3.bf16.msra.mxu1 %v9546_v57  ;;  %8124 = vmatpush3.bf16.msra.mxu0 %v9547_v41 }
 0x50a   : > { %8103 = vmatprep.subr.bf16.mxu1 %v9548_v44  ;;  %8125 = vmatprep.subr.bf16.mxu0 %v9549_v45 }
 0x50d   : > { %8104 = vmatpush3.bf16.msra.mxu1 %v9550_v3  ;;  %8126 = vmatpush3.bf16.msra.mxu0 %v9551_v11 }
 0x50e   : > { %8105 = vmatprep.subr.bf16.mxu1 %v9552_v62  ;;  %8127 = vmatprep.subr.bf16.mxu0 %v9553_v26 }
 0x511   : > { %8106 = vmatpush3.bf16.msra.mxu1 %v9554_v17  ;;  %8128 = vmatpush3.bf16.msra.mxu0 %v9555_v0 }
 0x5c7   : > { %v6683_v13 = vpop.f32.mrb[244].mxu1  ;;  %v6724_v5 = vpop.f32.mrb[240].mxu0 }
 0x5c8   : > { %v6684_v54 = vadd.f32 %v6683_v13, %v6629_v10  ;;  %v6725_v27 = vadd.f32 %v6724_v5, %v6637_v60  ;;  %v6685_v53 = vpop.f32.mrb[245].mxu1  ;;  %v6726_v7 = vpop.f32.mrb[241].mxu0 }
 0x5c9   : > { %v6686_v12 = vadd.f32 %v6685_v53, %v6633_v16  ;;  %v6727_v61 = vadd.f32 %v6726_v7, %v6641_v56  ;;  %v6687_v50 = vpop.f32.mrb[246].mxu1  ;;  %v6728_v18 = vpop.f32.mrb[242].mxu0 }
 0x5ca   : > { %v6731_v58 = vmax.f32 %v6684_v54, 0.0  ;;  %v6733_v43 = vmax.f32 %v6725_v27, 0.0  ;;  %v6688_v49 = vpop.f32.mrb[247].mxu1  ;;  %v6729_v34 = vpop.f32.mrb[243].mxu0 }
 0x5cb   : > { %v6732_v29 = vmax.f32 %v6686_v12, 0.0  ;;  %v6734_v39 = vmax.f32 %v6727_v61, 0.0 }
 0x5cc   : > { %v6735_v4 = vpack.c.bf16 %v6731_v58, %v6731_v58  ;;  %v6737_v51 = vpack.c.bf16 %v6733_v43, %v6733_v43 }
 0x5cd   : > { %v6736_v8 = vpack.c.bf16 %v6732_v29, %v6732_v29  ;;  %v6738_v40 = vpack.c.bf16 %v6734_v39, %v6734_v39 }
 0x5cf   : > { %7028 = vmatprep.mubr.bf16.mxu1 %v6736_v8  ;;  %7068 = vmatprep.mubr.bf16.mxu0 %v6738_v40 }
 0x5d0   : > { %7029 = vmatmul.mubr.bf16.vlgmr.msra.gmra.mrb[248].mxu1 %v6735_v4  ;;  %7069 = vmatmul.mubr.bf16.vlgmr.msra.gmra.mrb[244].mxu0 %v6737_v51 }
 0x6a3   : > { %v8107_v52 = vpop.f32.mrb[248].mxu1  ;;  %v8129_v6 = vpop.f32.mrb[244].mxu0 }
 0x6a4   : > { %v8108_v23 = vpop.f32.mrb[249].mxu1  ;;  %v8130_v42 = vpop.f32.mrb[245].mxu0 }
 0x6a5   : > { %v8109_v24 = vadd.f32 %v8108_v23, %v8107_v52  ;;  %v8131_v30 = vadd.f32 %v8130_v42, %v8129_v6  ;;  %v8110_v47 = vpop.f32.mrb[250].mxu1  ;;  %v8132_v31 = vpop.f32.mrb[246].mxu0 }
 0x6a6   : > { %v8111_v32 = vpop.f32.mrb[251].mxu1  ;;  %v8133_v1 = vpop.f32.mrb[247].mxu0 }
 0x6a7   : > { %v7031_v25 = vadd.f32 %v8109_v24, %v6803_v36 }
 0x6a9   : > { %v7071_v19 = vadd.f32 %v8131_v30, %v7031_v25 }
 0x6ab   : > { %v7079_v46 = vrot.slane %v7071_v19, %v6628_v33 }
 0x6ad   : > { %7080 = vst [vmem:[%s384_s26] sm:$0xff] %v7079_v46 }
 0x6ae PF: > { %s21_s17 = sadd.s32 1, %s9603_s17  }
 0x6af   : > { %p18_p4 = scmp.ge.s32.totalorder %s21_s17, 4  }
 0x6b1   :  { %20 = sbr.rel (!%p18_p4) target bundleno = 1 (0x1), region = 137 }

</bundles_post_ra>
